<compile_context>
chip_gen: v7x
topology: tpu7x:2x2x1
jax: 0.10.0
libtpu: 0.0.40
codegen_flags: <defaults>
</compile_context>

<pallas_src>
import math
import functools

import jax
import jax.numpy as jnp
import numpy as np
from jax import lax
from jax.experimental import pallas as pl
from jax.experimental.pallas import tpu as pltpu


def _subattn_kernel(xfull_ref, xtile_ref, kbias_ref, gmap_ref,
                    wqkv_ref, bqkv_ref, wproj_ref, bproj_ref,
                    o_ref, q_s, k_s, v_s, *,
                    num_heads, eps, t_valid, t_pad, blk_q, mm_dtype, has_pad):
    C = xfull_ref.shape[0]
    groups = gmap_ref.shape[1]
    ch = C // num_heads
    qi = pl.program_id(1)

    # ---- once per batch element (first query tile): GroupNorm + qkv proj ----
    @pl.when(qi == 0)
    def _():
        x = xfull_ref[...]                               # (C, Tp) f32
        # Stats without reshaping the activation: reduce along T (lanes) per
        # channel, then combine channels within each group via a tiny one-hot
        # indicator matmul.  Zero padding of T does not perturb the sums.
        s1 = jnp.sum(x, axis=-1, keepdims=True)          # (C, 1)
        s2 = jnp.sum(x * x, axis=-1, keepdims=True)      # (C, 1)
        g1 = lax.dot_general(gmap_ref[...], s1, (((0,), (0,)), ((), ())),
                             preferred_element_type=jnp.float32)   # (G, 1)
        g2 = lax.dot_general(gmap_ref[...], s2, (((0,), (0,)), ((), ())),
                             preferred_element_type=jnp.float32)   # (G, 1)
        inv_n = 1.0 / float((C // groups) * t_valid)
        gmean = g1 * inv_n
        gvar = g2 * inv_n - gmean * gmean                # biased variance
        grstd = lax.rsqrt(gvar + eps)
        mean_c = jnp.dot(gmap_ref[...], gmean, preferred_element_type=jnp.float32)
        rstd_c = jnp.dot(gmap_ref[...], grstd, preferred_element_type=jnp.float32)
        # gamma/beta and the attention scale are folded into W_qkv / b_qkv on
        # the host, so only the pure normalization remains here.
        xn = ((x - mean_c) * rstd_c).astype(mm_dtype)    # (C, Tp)

        # Three separate dots writing straight into scratch: avoids building a
        # (3C, Tp) f32 peak temporary before the slice/reshape.
        for idx, dst in ((0, q_s), (1, k_s), (2, v_s)):
            blk = jnp.dot(wqkv_ref[idx], xn,
                          preferred_element_type=jnp.float32) + bqkv_ref[idx]
            dst[...] = blk.reshape(num_heads, ch, t_pad).astype(mm_dtype)

    # ---- per query tile: all heads batched in single dot_generals ----------
    q_start = pl.multiple_of(qi * blk_q, 128)
    q = q_s[:, :, pl.ds(q_start, blk_q)]                 # (nH, ch, blk_q)
    k = k_s[...]                                         # (nH, ch, Tp)
    v = v_s[...]                                         # (nH, ch, Tp)

    # scores[h, t, s] = sum_c q[h, c, t] * k[h, c, s]   (scale pre-folded)
    scores = lax.dot_general(q, k, (((1,), (1,)), ((0,), (0,))),
                             preferred_element_type=jnp.float32)   # (nH, blk_q, Tp)
    if has_pad:                     # static branch: additive key-pad bias
        scores = scores + kbias_ref[...].reshape(1, 1, t_pad)

    scores = scores - jnp.max(scores, axis=-1, keepdims=True)
    p = jnp.exp(scores.astype(mm_dtype))                 # bf16 EUP on v6e/v7x path
    denom = jnp.sum(p, axis=-1, keepdims=True, dtype=jnp.float32)
    p = p * pl.reciprocal(denom, approx=True).astype(mm_dtype)

    # a[h, c, t] = sum_s p[h, t, s] * v[h, c, s]   (p fed to MXU without cast)
    a = lax.dot_general(v, p, (((2,), (2,)), ((0,), (0,))),
                        preferred_element_type=jnp.float32)        # (nH, ch, blk_q)
    a = a.reshape(C, blk_q)

    proj = jnp.dot(wproj_ref[...], a.astype(mm_dtype),
                   preferred_element_type=jnp.float32) + bproj_ref[...]    # (C, blk_q)

    o_ref[...] = (xtile_ref[...] + proj).astype(o_ref.dtype)


def sub_attention_block(x, gamma, beta, wqkv, bqkv, wproj, bproj, *,
                        num_heads, groups=32, eps=1e-5,
                        matmul_dtype=jnp.bfloat16, block_q=256):
    B, C, H, W = x.shape
    assert C % num_heads == 0 and C % groups == 0
    assert block_q % 128 == 0
    T = H * W
    ch = C // num_heads
    cpg = C // groups
    nH = num_heads

    # ---- query-tile / padding choice ---------------------------------------
    Tp128 = -(-T // 128) * 128
    blk = max(128, min(int(block_q), Tp128))
    blk -= blk % 128
    if Tp128 % blk != 0:
        blk = 128                               # keep padding < 128 columns
    Tp = -(-T // blk) * blk
    has_pad = Tp != T

    x3 = x.reshape(B, C, T).astype(jnp.float32)
    if has_pad:
        # TODO(synk): mask the ragged final tile in-kernel instead of padding
        # (saves one extra HBM pass over the activation on each side).
        x3 = jnp.pad(x3, ((0, 0), (0, 0), (0, Tp - T)))

    # --- host-side weight preprocessing -------------------------------------
    #  1) de-interleave W_qkv rows from the legacy per-head [q|k|v] layout into
    #     [Q_all | K_all | V_all] so heads can be batched in one matmul,
    #  2) fold the GroupNorm affine (gamma, beta) into W_qkv / b_qkv,
    #  3) fold the 1/sqrt(sqrt(ch)) attention scale into the Q and K rows.
    w4 = wqkv.astype(jnp.float32).reshape(num_heads, 3, ch, C)
    b4 = bqkv.astype(jnp.float32).reshape(num_heads, 3, ch)
    gamma32 = gamma.astype(jnp.float32)
    beta32 = beta.astype(jnp.float32)
    scale = 1.0 / math.sqrt(math.sqrt(ch))

    def fold(idx, s):
        wm = w4[:, idx].reshape(C, C)            # de-interleaved, head-major
        bm = b4[:, idx].reshape(C)
        wf = wm * gamma32[None, :] * s           # gamma fold (column scale)
        bf = (wm @ beta32 + bm) * s              # beta fold
        return wf, bf

    wq_f, bq_f = fold(0, scale)
    wk_f, bk_f = fold(1, scale)
    wv_f, bv_f = fold(2, 1.0)
    wqkv_d = jnp.stack([wq_f, wk_f, wv_f], axis=0).astype(matmul_dtype)   # (3,C,C)
    bqkv_d = jnp.stack([bq_f, bk_f, bv_f], axis=0).reshape(3, C, 1)       # f32
    wproj_c = wproj.astype(matmul_dtype)
    bproj_c = bproj.astype(jnp.float32).reshape(C, 1)

    # one-hot channel -> group indicator for the in-kernel GroupNorm reduction
    gmap = np.zeros((C, groups), dtype=np.float32)
    gmap[np.arange(C), np.arange(C) // cpg] = 1.0
    gmap = jnp.asarray(gmap)

    # additive key-padding bias (0 for valid keys, -1e30 for padded columns)
    kbias = jnp.where(jnp.arange(Tp) < T, 0.0, -1e30).astype(jnp.float32)
    kbias = kbias.reshape(1, Tp)

    n_q = Tp // blk
    kernel = functools.partial(
        _subattn_kernel, num_heads=num_heads, eps=eps, t_valid=T, t_pad=Tp,
        blk_q=blk, mm_dtype=matmul_dtype, has_pad=has_pad)

    # ---- VMEM budgeting ------------------------------------------------------
    itb = jnp.dtype(matmul_dtype).itemsize
    vmem_est = (C * Tp * 4                       # x full view (single buffered)
                + 2 * C * blk * 4                # x residual tile (dbuf)
                + 2 * C * blk * 4                # output tile (dbuf)
                + 3 * C * Tp * itb               # Q/K/V scratch
                + 4 * C * C * itb                # folded weights
                + (C * groups + 8 * C + 2 * Tp) * 4
                + 2 * C * Tp * 4 + C * Tp * itb  # qi==0 temps (xn f32, one (C,Tp) f32 dot, xn cast)
                + 3 * nH * blk * Tp * 4          # scores / softmax temporaries
                + (8 << 20))                     # slack
    try:
        cap = int(getattr(pltpu.get_tpu_info(), "vmem_capacity_bytes", 128 << 20))
    except Exception:
        cap = 64 << 20
    budget = max(cap - (16 << 20), 32 << 20)
    vmem_limit = int(min(max(vmem_est, 32 << 20), budget))

    cost = pl.CostEstimate(
        flops=int(B * (8 * C * C * T + 4 * C * T * T)),
        transcendentals=int(B * nH * T * T),
        bytes_accessed=int(3 * B * C * T * 4 + 4 * C * C * itb))

    def build(single_buffer):
        def invspec(shape, imap):
            if single_buffer:
                return pl.BlockSpec(shape, imap, pipeline_mode=pl.Buffered(1))
            return pl.BlockSpec(shape, imap)

        in_specs = [
            invspec((pl.Squeezed(), C, Tp), lambda b, q: (b, 0, 0)),        # x (full T)
            pl.BlockSpec((pl.Squeezed(), C, blk), lambda b, q: (b, 0, q)),  # x (residual tile)
            invspec((1, Tp), lambda b, q: (0, 0)),                          # key-pad bias
            invspec((C, groups), lambda b, q: (0, 0)),                      # group map
            invspec((3, C, C), lambda b, q: (0, 0, 0)),                     # W_qkv'
            invspec((3, C, 1), lambda b, q: (0, 0, 0)),                     # b_qkv'
            invspec((C, C), lambda b, q: (0, 0)),                           # W_proj
            invspec((C, 1), lambda b, q: (0, 0)),                           # b_proj
        ]
        return pl.pallas_call(
            kernel,
            out_shape=jax.ShapeDtypeStruct((B, C, Tp), jnp.float32),
            grid_spec=pltpu.PrefetchScalarGridSpec(
                num_scalar_prefetch=0,
                grid=(B, n_q),
                in_specs=in_specs,
                out_specs=pl.BlockSpec((pl.Squeezed(), C, blk),
                                       lambda b, q: (b, 0, q)),
                scratch_shapes=[
                    pltpu.VMEM((nH, ch, Tp), matmul_dtype),   # Q (all tiles)
                    pltpu.VMEM((nH, ch, Tp), matmul_dtype),   # K
                    pltpu.VMEM((nH, ch, Tp), matmul_dtype),   # V
                ]),
            compiler_params=pltpu.CompilerParams(
                dimension_semantics=("parallel", "arbitrary"),
                vmem_limit_bytes=vmem_limit),
            cost_estimate=cost,
        )

    operands = (x3, x3, kbias, gmap, wqkv_d, bqkv_d, wproj_c, bproj_c)
    try:
        out = build(True)(*operands)
    except Exception:
        # Fallback for jax versions where BlockSpec(pipeline_mode=...) is not
        # supported by the TPU lowering: identical kernel, default buffering.
        out = build(False)(*operands)

    if has_pad:
        out = out[:, :, :T]
    return out.reshape(B, C, H, W)


def reference(x, gamma, beta, wqkv, bqkv, wproj, bproj,
              *, num_heads, groups=32, eps=1e-5):
    """Plain-JAX mirror of the PyTorch forward, for validation."""
    B, C, H, W = x.shape
    T = H * W
    x3 = x.reshape(B, C, T).astype(jnp.float32)
    xg = x3.reshape(B, groups, -1)
    mean = xg.mean(-1, keepdims=True)
    var = ((xg - mean) ** 2).mean(-1, keepdims=True)
    xn = ((xg - mean) / jnp.sqrt(var + eps)).reshape(B, C, T)
    xn = xn * gamma[None, :, None] + beta[None, :, None]
    qkv = jnp.einsum('oc,bct->bot', wqkv, xn) + bqkv[None, :, None]
    ch = C // num_heads
    qkv_r = qkv.reshape(B * num_heads, 3 * ch, T)
    q, k, v = qkv_r[:, :ch], qkv_r[:, ch:2 * ch], qkv_r[:, 2 * ch:]
    scale = 1.0 / math.sqrt(math.sqrt(ch))
    w = jnp.einsum('bct,bcs->bts', q * scale, k * scale)
    w = jax.nn.softmax(w.astype(jnp.float32), axis=-1)
    a = jnp.einsum('bts,bcs->bct', w, v).reshape(B, C, T)
    h = jnp.einsum('oc,bct->bot', wproj, a) + bproj[None, :, None]
    return (x3 + h).reshape(B, C, H, W)


if __name__ == "__main__":
    def run_case(B, C, H, W, num_heads, groups, matmul_dtype, block_q, tol, seed):
        key = jax.random.PRNGKey(seed)
        kx, kg, kb, kw1, kb1, kw2, kb2 = jax.random.split(key, 7)
        x = jax.random.normal(kx, (B, C, H, W), dtype=jnp.float32)
        gamma = 1.0 + 0.1 * jax.random.normal(kg, (C,), dtype=jnp.float32)
        beta = 0.1 * jax.random.normal(kb, (C,), dtype=jnp.float32)
        wqkv = 0.2 * jax.random.normal(kw1, (3 * C, C), dtype=jnp.float32)
        bqkv = 0.1 * jax.random.normal(kb1, (3 * C,), dtype=jnp.float32)
        # NOTE: the PyTorch module zero-inits proj_out (zero_module) when
        # norm_type='group'; a non-zero init is used so the attention path is
        # actually checked.
        wproj = 0.2 * jax.random.normal(kw2, (C, C), dtype=jnp.float32)
        bproj = 0.1 * jax.random.normal(kb2, (C,), dtype=jnp.float32)

        out = sub_attention_block(x, gamma, beta, wqkv, bqkv, wproj, bproj,
                                  num_heads=num_heads, groups=groups,
                                  matmul_dtype=matmul_dtype, block_q=block_q)
        out = jax.block_until_ready(out)
        ref = reference(x, gamma, beta, wqkv, bqkv, wproj, bproj,
                        num_heads=num_heads, groups=groups)
        np.testing.assert_allclose(np.asarray(out), np.asarray(ref),
                                   rtol=tol, atol=tol)

    # f32 MXU operands, 128-wide tiles (two query tiles -> scratch reuse path)
    run_case(2, 64, 16, 16, 4, 32, jnp.float32, 128, 3e-2, 0)
    # T=64 (8x8) exercises the pad-to-128 + additive key-pad-bias path
    run_case(1, 32, 8, 8, 4, 32, jnp.float32, 256, 3e-2, 1)
    # default production path: bf16 MXU operands + bf16 softmax exp, 256 tile
    run_case(2, 64, 16, 16, 4, 32, jnp.bfloat16, 256, 1.2e-1, 2)

    print("KERNEL_OK")
</pallas_src>

<mosaic_0001>
module attributes {stable_mosaic.version = 11 : i64} {
  func.func @_subattn_kernel(%arg0: i32, %arg1: i32, %arg2: memref<1x64x256xf32, #tpu.memory_space<vmem>>, %arg3: memref<1x64x128xf32, #tpu.memory_space<vmem>>, %arg4: memref<1x256xf32, #tpu.memory_space<vmem>>, %arg5: memref<64x32xf32, #tpu.memory_space<vmem>>, %arg6: memref<3x64x64xf32, #tpu.memory_space<vmem>>, %arg7: memref<3x64x1xf32, #tpu.memory_space<vmem>>, %arg8: memref<64x64xf32, #tpu.memory_space<vmem>>, %arg9: memref<64x1xf32, #tpu.memory_space<vmem>>, %arg10: memref<1x64x128xf32, #tpu.memory_space<vmem>>, %arg11: memref<4x16x256xf32, #tpu.memory_space<vmem>>, %arg12: memref<4x16x256xf32, #tpu.memory_space<vmem>>, %arg13: memref<4x16x256xf32, #tpu.memory_space<vmem>>) attributes {dimension_semantics = [#tpu.dimension_semantics<parallel>, #tpu.dimension_semantics<arbitrary>], iteration_bounds = array<i64: 2, 2>, scalar_prefetch = 0 : i64, scratch_operands = 3 : i64, tpu.core_type = #tpu.core_type<tc>, window_params = [{pipeline_mode = #tpu.pipeline_mode<synchronous>, transform_indices = @transform_0, window_bounds = array<i64: 1, 64, 256>}, {transform_indices = @transform_1, window_bounds = array<i64: 1, 64, 128>}, {pipeline_mode = #tpu.pipeline_mode<synchronous>, transform_indices = @transform_2, window_bounds = array<i64: 1, 256>}, {pipeline_mode = #tpu.pipeline_mode<synchronous>, transform_indices = @transform_3, window_bounds = array<i64: 64, 32>}, {pipeline_mode = #tpu.pipeline_mode<synchronous>, transform_indices = @transform_4, window_bounds = array<i64: 3, 64, 64>}, {pipeline_mode = #tpu.pipeline_mode<synchronous>, transform_indices = @transform_5, window_bounds = array<i64: 3, 64, 1>}, {pipeline_mode = #tpu.pipeline_mode<synchronous>, transform_indices = @transform_6, window_bounds = array<i64: 64, 64>}, {pipeline_mode = #tpu.pipeline_mode<synchronous>, transform_indices = @transform_7, window_bounds = array<i64: 64, 1>}, {transform_indices = @transform_8, window_bounds = array<i64: 1, 64, 128>}]} {
    %c0_i32 = arith.constant 0 : i32
    %0 = arith.cmpi eq, %arg1, %c0_i32 : i32
    %1 = arith.extui %0 : i1 to i32
    %c0_i32_0 = arith.constant 0 : i32
    %2 = arith.cmpi ne, %1, %c0_i32_0 : i32
    scf.if %2 {
      %c0_22 = arith.constant 0 : index
      %c0_23 = arith.constant 0 : index
      %c0_24 = arith.constant 0 : index
      %33 = vector.load %arg2[%c0_22, %c0_23, %c0_24] : memref<1x64x256xf32, #tpu.memory_space<vmem>>, vector<1x64x256xf32>
      %34 = vector.shape_cast %33 : vector<1x64x256xf32> to vector<64x256xf32>
      %cst_25 = arith.constant dense<0.000000e+00> : vector<64xf32>
      %35 = vector.multi_reduction <add>, %34, %cst_25 [1] : vector<64x256xf32> to vector<64xf32>
      %36 = vector.shape_cast %35 : vector<64xf32> to vector<64x1xf32>
      %37 = arith.mulf %34, %34 : vector<64x256xf32>
      %cst_26 = arith.constant dense<0.000000e+00> : vector<64xf32>
      %38 = vector.multi_reduction <add>, %37, %cst_26 [1] : vector<64x256xf32> to vector<64xf32>
      %39 = vector.shape_cast %38 : vector<64xf32> to vector<64x1xf32>
      %c0_27 = arith.constant 0 : index
      %c0_28 = arith.constant 0 : index
      %40 = vector.load %arg5[%c0_27, %c0_28] : memref<64x32xf32, #tpu.memory_space<vmem>>, vector<64x32xf32>
      %cst_29 = arith.constant dense<0.000000e+00> : vector<32x1xf32>
      %41 = tpu.matmul %40, %36, %cst_29 {dimension_numbers = #tpu.dot_dimension_numbers<[0], [0], [1], [1], [0, 1, 1, 1], [], []>} : vector<64x32xf32>, vector<64x1xf32>, vector<32x1xf32> -> vector<32x1xf32>
      %c0_30 = arith.constant 0 : index
      %c0_31 = arith.constant 0 : index
      %42 = vector.load %arg5[%c0_30, %c0_31] : memref<64x32xf32, #tpu.memory_space<vmem>>, vector<64x32xf32>
      %cst_32 = arith.constant dense<0.000000e+00> : vector<32x1xf32>
      %43 = tpu.matmul %42, %39, %cst_32 {dimension_numbers = #tpu.dot_dimension_numbers<[0], [0], [1], [1], [0, 1, 1, 1], [], []>} : vector<64x32xf32>, vector<64x1xf32>, vector<32x1xf32> -> vector<32x1xf32>
      %cst_33 = arith.constant 0.001953125 : f32
      %44 = vector.broadcast %cst_33 : f32 to vector<32x1xf32>
      %45 = arith.mulf %41, %44 : vector<32x1xf32>
      %cst_34 = arith.constant 0.001953125 : f32
      %46 = vector.broadcast %cst_34 : f32 to vector<32x1xf32>
      %47 = arith.mulf %43, %46 : vector<32x1xf32>
      %48 = arith.mulf %45, %45 : vector<32x1xf32>
      %49 = arith.subf %47, %48 : vector<32x1xf32>
      %cst_35 = arith.constant 9.99999974E-6 : f32
      %50 = vector.broadcast %cst_35 : f32 to vector<32x1xf32>
      %51 = arith.addf %49, %50 : vector<32x1xf32>
      %52 = math.rsqrt %51 : vector<32x1xf32>
      %c0_36 = arith.constant 0 : index
      %c0_37 = arith.constant 0 : index
      %53 = vector.load %arg5[%c0_36, %c0_37] : memref<64x32xf32, #tpu.memory_space<vmem>>, vector<64x32xf32>
      %cst_38 = arith.constant dense<0.000000e+00> : vector<64x1xf32>
      %54 = tpu.matmul %53, %45, %cst_38 {dimension_numbers = #tpu.dot_dimension_numbers<[1], [0], [0], [1], [0, 0, 1, 1], [], []>} : vector<64x32xf32>, vector<32x1xf32>, vector<64x1xf32> -> vector<64x1xf32>
      %c0_39 = arith.constant 0 : index
      %c0_40 = arith.constant 0 : index
      %55 = vector.load %arg5[%c0_39, %c0_40] : memref<64x32xf32, #tpu.memory_space<vmem>>, vector<64x32xf32>
      %cst_41 = arith.constant dense<0.000000e+00> : vector<64x1xf32>
      %56 = tpu.matmul %55, %52, %cst_41 {dimension_numbers = #tpu.dot_dimension_numbers<[1], [0], [0], [1], [0, 0, 1, 1], [], []>} : vector<64x32xf32>, vector<32x1xf32>, vector<64x1xf32> -> vector<64x1xf32>
      %57 = vector.broadcast %54 : vector<64x1xf32> to vector<64x256xf32>
      %58 = arith.subf %34, %57 : vector<64x256xf32>
      %59 = vector.broadcast %56 : vector<64x1xf32> to vector<64x256xf32>
      %60 = arith.mulf %58, %59 : vector<64x256xf32>
      %c0_42 = arith.constant 0 : index
      %c0_43 = arith.constant 0 : index
      %c0_44 = arith.constant 0 : index
      %61 = vector.load %arg6[%c0_42, %c0_43, %c0_44] : memref<3x64x64xf32, #tpu.memory_space<vmem>>, vector<1x64x64xf32>
      %62 = vector.shape_cast %61 : vector<1x64x64xf32> to vector<64x64xf32>
      %cst_45 = arith.constant dense<0.000000e+00> : vector<64x256xf32>
      %63 = tpu.matmul %62, %60, %cst_45 {dimension_numbers = #tpu.dot_dimension_numbers<[1], [0], [0], [1], [0, 0, 1, 1], [], []>} : vector<64x64xf32>, vector<64x256xf32>, vector<64x256xf32> -> vector<64x256xf32>
      %c0_46 = arith.constant 0 : index
      %c0_47 = arith.constant 0 : index
      %c0_48 = arith.constant 0 : index
      %64 = vector.load %arg7[%c0_46, %c0_47, %c0_48] : memref<3x64x1xf32, #tpu.memory_space<vmem>>, vector<1x64x1xf32>
      %65 = vector.shape_cast %64 : vector<1x64x1xf32> to vector<64x1xf32>
      %66 = vector.broadcast %65 : vector<64x1xf32> to vector<64x256xf32>
      %67 = arith.addf %63, %66 : vector<64x256xf32>
      %68 = vector.shape_cast %67 : vector<64x256xf32> to vector<4x16x256xf32>
      %c0_49 = arith.constant 0 : index
      %c0_50 = arith.constant 0 : index
      %c0_51 = arith.constant 0 : index
      %69 = vector.load %arg11[%c0_49, %c0_50, %c0_51] : memref<4x16x256xf32, #tpu.memory_space<vmem>>, vector<4x16x256xf32>
      tpu.vector_store %arg11[%c0_49, %c0_50, %c0_51], %68 {strides = array<i32>} : memref<4x16x256xf32, #tpu.memory_space<vmem>>, vector<4x16x256xf32>,
      %c1 = arith.constant 1 : index
      %c0_52 = arith.constant 0 : index
      %c0_53 = arith.constant 0 : index
      %70 = vector.load %arg6[%c1, %c0_52, %c0_53] : memref<3x64x64xf32, #tpu.memory_space<vmem>>, vector<1x64x64xf32>
      %71 = vector.shape_cast %70 : vector<1x64x64xf32> to vector<64x64xf32>
      %cst_54 = arith.constant dense<0.000000e+00> : vector<64x256xf32>
      %72 = tpu.matmul %71, %60, %cst_54 {dimension_numbers = #tpu.dot_dimension_numbers<[1], [0], [0], [1], [0, 0, 1, 1], [], []>} : vector<64x64xf32>, vector<64x256xf32>, vector<64x256xf32> -> vector<64x256xf32>
      %c1_55 = arith.constant 1 : index
      %c0_56 = arith.constant 0 : index
      %c0_57 = arith.constant 0 : index
      %73 = vector.load %arg7[%c1_55, %c0_56, %c0_57] : memref<3x64x1xf32, #tpu.memory_space<vmem>>, vector<1x64x1xf32>
      %74 = vector.shape_cast %73 : vector<1x64x1xf32> to vector<64x1xf32>
      %75 = vector.broadcast %74 : vector<64x1xf32> to vector<64x256xf32>
      %76 = arith.addf %72, %75 : vector<64x256xf32>
      %77 = vector.shape_cast %76 : vector<64x256xf32> to vector<4x16x256xf32>
      %c0_58 = arith.constant 0 : index
      %c0_59 = arith.constant 0 : index
      %c0_60 = arith.constant 0 : index
      %78 = vector.load %arg12[%c0_58, %c0_59, %c0_60] : memref<4x16x256xf32, #tpu.memory_space<vmem>>, vector<4x16x256xf32>
      tpu.vector_store %arg12[%c0_58, %c0_59, %c0_60], %77 {strides = array<i32>} : memref<4x16x256xf32, #tpu.memory_space<vmem>>, vector<4x16x256xf32>,
      %c2 = arith.constant 2 : index
      %c0_61 = arith.constant 0 : index
      %c0_62 = arith.constant 0 : index
      %79 = vector.load %arg6[%c2, %c0_61, %c0_62] : memref<3x64x64xf32, #tpu.memory_space<vmem>>, vector<1x64x64xf32>
      %80 = vector.shape_cast %79 : vector<1x64x64xf32> to vector<64x64xf32>
      %cst_63 = arith.constant dense<0.000000e+00> : vector<64x256xf32>
      %81 = tpu.matmul %80, %60, %cst_63 {dimension_numbers = #tpu.dot_dimension_numbers<[1], [0], [0], [1], [0, 0, 1, 1], [], []>} : vector<64x64xf32>, vector<64x256xf32>, vector<64x256xf32> -> vector<64x256xf32>
      %c2_64 = arith.constant 2 : index
      %c0_65 = arith.constant 0 : index
      %c0_66 = arith.constant 0 : index
      %82 = vector.load %arg7[%c2_64, %c0_65, %c0_66] : memref<3x64x1xf32, #tpu.memory_space<vmem>>, vector<1x64x1xf32>
      %83 = vector.shape_cast %82 : vector<1x64x1xf32> to vector<64x1xf32>
      %84 = vector.broadcast %83 : vector<64x1xf32> to vector<64x256xf32>
      %85 = arith.addf %81, %84 : vector<64x256xf32>
      %86 = vector.shape_cast %85 : vector<64x256xf32> to vector<4x16x256xf32>
      %c0_67 = arith.constant 0 : index
      %c0_68 = arith.constant 0 : index
      %c0_69 = arith.constant 0 : index
      %87 = vector.load %arg13[%c0_67, %c0_68, %c0_69] : memref<4x16x256xf32, #tpu.memory_space<vmem>>, vector<4x16x256xf32>
      tpu.vector_store %arg13[%c0_67, %c0_68, %c0_69], %86 {strides = array<i32>} : memref<4x16x256xf32, #tpu.memory_space<vmem>>, vector<4x16x256xf32>,
    } else {
    }
    %c128_i32 = arith.constant 128 : i32
    %3 = arith.muli %arg1, %c128_i32 : i32
    %4 = tpu.assume_multiple %3, 128 : i32
    %c0 = arith.constant 0 : index
    %c0_1 = arith.constant 0 : index
    %5 = arith.index_cast %4 : i32 to index
    %6 = vector.load %arg11[%c0, %c0_1, %5] : memref<4x16x256xf32, #tpu.memory_space<vmem>>, vector<4x16x128xf32>
    %c0_2 = arith.constant 0 : index
    %c0_3 = arith.constant 0 : index
    %c0_4 = arith.constant 0 : index
    %7 = vector.load %arg12[%c0_2, %c0_3, %c0_4] : memref<4x16x256xf32, #tpu.memory_space<vmem>>, vector<4x16x256xf32>
    %c0_5 = arith.constant 0 : index
    %c0_6 = arith.constant 0 : index
    %c0_7 = arith.constant 0 : index
    %8 = vector.load %arg13[%c0_5, %c0_6, %c0_7] : memref<4x16x256xf32, #tpu.memory_space<vmem>>, vector<4x16x256xf32>
    %cst = arith.constant dense<0.000000e+00> : vector<4x128x256xf32>
    %9 = tpu.matmul %6, %7, %cst {dimension_numbers = #tpu.dot_dimension_numbers<[1], [1], [2], [2], [0, 0, 0, 2, 1, 2], [0], [0]>} : vector<4x16x128xf32>, vector<4x16x256xf32>, vector<4x128x256xf32> -> vector<4x128x256xf32>
    %cst_8 = arith.constant dense<0xFF800000> : vector<4x128xf32>
    %10 = vector.multi_reduction <maximumf>, %9, %cst_8 [2] : vector<4x128x256xf32> to vector<4x128xf32>
    %11 = vector.shape_cast %10 : vector<4x128xf32> to vector<4x128x1xf32>
    %12 = vector.broadcast %11 : vector<4x128x1xf32> to vector<4x128x256xf32>
    %13 = arith.subf %9, %12 : vector<4x128x256xf32>
    %14 = math.exp %13 : vector<4x128x256xf32>
    %cst_9 = arith.constant dense<0.000000e+00> : vector<4x128xf32>
    %15 = vector.multi_reduction <add>, %14, %cst_9 [2] : vector<4x128x256xf32> to vector<4x128xf32>
    %16 = vector.shape_cast %15 : vector<4x128xf32> to vector<4x128x1xf32>
    %17 = tpu.reciprocal %16 {approx = true} : vector<4x128x1xf32> -> vector<4x128x1xf32>
    %18 = vector.broadcast %17 : vector<4x128x1xf32> to vector<4x128x256xf32>
    %19 = arith.mulf %14, %18 : vector<4x128x256xf32>
    %cst_10 = arith.constant dense<0.000000e+00> : vector<4x16x128xf32>
    %20 = tpu.matmul %8, %19, %cst_10 {dimension_numbers = #tpu.dot_dimension_numbers<[2], [2], [1], [1], [0, 0, 0, 1, 1, 1], [0], [0]>} : vector<4x16x256xf32>, vector<4x128x256xf32>, vector<4x16x128xf32> -> vector<4x16x128xf32>
    %21 = vector.shape_cast %20 : vector<4x16x128xf32> to vector<64x128xf32>
    %c0_11 = arith.constant 0 : index
    %c0_12 = arith.constant 0 : index
    %22 = vector.load %arg8[%c0_11, %c0_12] : memref<64x64xf32, #tpu.memory_space<vmem>>, vector<64x64xf32>
    %cst_13 = arith.constant dense<0.000000e+00> : vector<64x128xf32>
    %23 = tpu.matmul %22, %21, %cst_13 {dimension_numbers = #tpu.dot_dimension_numbers<[1], [0], [0], [1], [0, 0, 1, 1], [], []>} : vector<64x64xf32>, vector<64x128xf32>, vector<64x128xf32> -> vector<64x128xf32>
    %c0_14 = arith.constant 0 : index
    %c0_15 = arith.constant 0 : index
    %24 = vector.load %arg9[%c0_14, %c0_15] : memref<64x1xf32, #tpu.memory_space<vmem>>, vector<64x1xf32>
    %25 = vector.broadcast %24 : vector<64x1xf32> to vector<64x128xf32>
    %26 = arith.addf %23, %25 : vector<64x128xf32>
    %c0_16 = arith.constant 0 : index
    %c0_17 = arith.constant 0 : index
    %c0_18 = arith.constant 0 : index
    %27 = vector.load %arg3[%c0_16, %c0_17, %c0_18] : memref<1x64x128xf32, #tpu.memory_space<vmem>>, vector<1x64x128xf32>
    %28 = vector.shape_cast %27 : vector<1x64x128xf32> to vector<64x128xf32>
    %29 = arith.addf %28, %26 : vector<64x128xf32>
    %c0_19 = arith.constant 0 : index
    %c0_20 = arith.constant 0 : index
    %c0_21 = arith.constant 0 : index
    %30 = vector.load %arg10[%c0_19, %c0_20, %c0_21] : memref<1x64x128xf32, #tpu.memory_space<vmem>>, vector<1x64x128xf32>
    %31 = vector.shape_cast %30 : vector<1x64x128xf32> to vector<64x128xf32>
    %32 = vector.shape_cast %29 : vector<64x128xf32> to vector<1x64x128xf32>
    tpu.vector_store %arg10[%c0_19, %c0_20, %c0_21], %32 {strides = array<i32>} : memref<1x64x128xf32, #tpu.memory_space<vmem>>, vector<1x64x128xf32>,
    return
  }
  func.func @transform_0(%arg0: i32, %arg1: i32) -> (i32, i32, i32) {
    %c0_i32 = arith.constant 0 : i32
    %c0_i32_0 = arith.constant 0 : i32
    %c0_i32_1 = arith.constant 0 : i32
    return %arg0, %c0_i32, %c0_i32_0 : i32, i32, i32
  }
  func.func @transform_1(%arg0: i32, %arg1: i32) -> (i32, i32, i32) {
    %c0_i32 = arith.constant 0 : i32
    %c0_i32_0 = arith.constant 0 : i32
    return %arg0, %c0_i32, %arg1 : i32, i32, i32
  }
  func.func @transform_2(%arg0: i32, %arg1: i32) -> (i32, i32) {
    %c0_i32 = arith.constant 0 : i32
    %c0_i32_0 = arith.constant 0 : i32
    %c0_i32_1 = arith.constant 0 : i32
    return %c0_i32, %c0_i32_0 : i32, i32
  }
  func.func @transform_3(%arg0: i32, %arg1: i32) -> (i32, i32) {
    %c0_i32 = arith.constant 0 : i32
    %c0_i32_0 = arith.constant 0 : i32
    %c0_i32_1 = arith.constant 0 : i32
    return %c0_i32, %c0_i32_0 : i32, i32
  }
  func.func @transform_4(%arg0: i32, %arg1: i32) -> (i32, i32, i32) {
    %c0_i32 = arith.constant 0 : i32
    %c0_i32_0 = arith.constant 0 : i32
    %c0_i32_1 = arith.constant 0 : i32
    %c0_i32_2 = arith.constant 0 : i32
    return %c0_i32, %c0_i32_0, %c0_i32_1 : i32, i32, i32
  }
  func.func @transform_5(%arg0: i32, %arg1: i32) -> (i32, i32, i32) {
    %c0_i32 = arith.constant 0 : i32
    %c0_i32_0 = arith.constant 0 : i32
    %c0_i32_1 = arith.constant 0 : i32
    %c0_i32_2 = arith.constant 0 : i32
    return %c0_i32, %c0_i32_0, %c0_i32_1 : i32, i32, i32
  }
  func.func @transform_6(%arg0: i32, %arg1: i32) -> (i32, i32) {
    %c0_i32 = arith.constant 0 : i32
    %c0_i32_0 = arith.constant 0 : i32
    %c0_i32_1 = arith.constant 0 : i32
    return %c0_i32, %c0_i32_0 : i32, i32
  }
  func.func @transform_7(%arg0: i32, %arg1: i32) -> (i32, i32) {
    %c0_i32 = arith.constant 0 : i32
    %c0_i32_0 = arith.constant 0 : i32
    %c0_i32_1 = arith.constant 0 : i32
    return %c0_i32, %c0_i32_0 : i32, i32
  }
  func.func @transform_8(%arg0: i32, %arg1: i32) -> (i32, i32, i32) {
    %c0_i32 = arith.constant 0 : i32
    %c0_i32_0 = arith.constant 0 : i32
    return %arg0, %c0_i32, %arg1 : i32, i32, i32
  }
}

module attributes {stable_mosaic.version = 11 : i64} {
  func.func @_subattn_kernel(%arg0: i32, %arg1: i32, %arg2: memref<1x64x256xf32, #tpu.memory_space<vmem>>, %arg3: memref<1x64x128xf32, #tpu.memory_space<vmem>>, %arg4: memref<1x256xf32, #tpu.memory_space<vmem>>, %arg5: memref<64x32xf32, #tpu.memory_space<vmem>>, %arg6: memref<3x64x64xf32, #tpu.memory_space<vmem>>, %arg7: memref<3x64x1xf32, #tpu.memory_space<vmem>>, %arg8: memref<64x64xf32, #tpu.memory_space<vmem>>, %arg9: memref<64x1xf32, #tpu.memory_space<vmem>>, %arg10: memref<1x64x128xf32, #tpu.memory_space<vmem>>, %arg11: memref<4x16x256xf32, #tpu.memory_space<vmem>>, %arg12: memref<4x16x256xf32, #tpu.memory_space<vmem>>, %arg13: memref<4x16x256xf32, #tpu.memory_space<vmem>>) attributes {dimension_semantics = [#tpu.dimension_semantics<parallel>, #tpu.dimension_semantics<arbitrary>], iteration_bounds = array<i64: 2, 2>, scalar_prefetch = 0 : i64, scratch_operands = 3 : i64, tpu.core_type = #tpu.core_type<tc>, window_params = [{transform_indices = @transform_0, window_bounds = array<i64: 1, 64, 256>}, {transform_indices = @transform_1, window_bounds = array<i64: 1, 64, 128>}, {pipeline_mode = #tpu.pipeline_mode<synchronous>, transform_indices = @transform_2, window_bounds = array<i64: 1, 256>}, {pipeline_mode = #tpu.pipeline_mode<synchronous>, transform_indices = @transform_3, window_bounds = array<i64: 64, 32>}, {pipeline_mode = #tpu.pipeline_mode<synchronous>, transform_indices = @transform_4, window_bounds = array<i64: 3, 64, 64>}, {pipeline_mode = #tpu.pipeline_mode<synchronous>, transform_indices = @transform_5, window_bounds = array<i64: 3, 64, 1>}, {pipeline_mode = #tpu.pipeline_mode<synchronous>, transform_indices = @transform_6, window_bounds = array<i64: 64, 64>}, {pipeline_mode = #tpu.pipeline_mode<synchronous>, transform_indices = @transform_7, window_bounds = array<i64: 64, 1>}, {transform_indices = @transform_8, window_bounds = array<i64: 1, 64, 128>}]} {
    %c0_i32 = arith.constant 0 : i32
    %0 = arith.cmpi eq, %arg1, %c0_i32 : i32
    %1 = arith.extui %0 : i1 to i32
    %c0_i32_0 = arith.constant 0 : i32
    %2 = arith.cmpi ne, %1, %c0_i32_0 : i32
    scf.if %2 {
      %c0_22 = arith.constant 0 : index
      %c0_23 = arith.constant 0 : index
      %c0_24 = arith.constant 0 : index
      %33 = vector.load %arg2[%c0_22, %c0_23, %c0_24] : memref<1x64x256xf32, #tpu.memory_space<vmem>>, vector<1x64x256xf32>
      %34 = vector.shape_cast %33 : vector<1x64x256xf32> to vector<64x256xf32>
      %cst_25 = arith.constant dense<0.000000e+00> : vector<64xf32>
      %35 = vector.multi_reduction <add>, %34, %cst_25 [1] : vector<64x256xf32> to vector<64xf32>
      %36 = vector.shape_cast %35 : vector<64xf32> to vector<64x1xf32>
      %37 = arith.mulf %34, %34 : vector<64x256xf32>
      %cst_26 = arith.constant dense<0.000000e+00> : vector<64xf32>
      %38 = vector.multi_reduction <add>, %37, %cst_26 [1] : vector<64x256xf32> to vector<64xf32>
      %39 = vector.shape_cast %38 : vector<64xf32> to vector<64x1xf32>
      %c0_27 = arith.constant 0 : index
      %c0_28 = arith.constant 0 : index
      %40 = vector.load %arg5[%c0_27, %c0_28] : memref<64x32xf32, #tpu.memory_space<vmem>>, vector<64x32xf32>
      %cst_29 = arith.constant dense<0.000000e+00> : vector<32x1xf32>
      %41 = tpu.matmul %40, %36, %cst_29 {dimension_numbers = #tpu.dot_dimension_numbers<[0], [0], [1], [1], [0, 1, 1, 1], [], []>} : vector<64x32xf32>, vector<64x1xf32>, vector<32x1xf32> -> vector<32x1xf32>
      %c0_30 = arith.constant 0 : index
      %c0_31 = arith.constant 0 : index
      %42 = vector.load %arg5[%c0_30, %c0_31] : memref<64x32xf32, #tpu.memory_space<vmem>>, vector<64x32xf32>
      %cst_32 = arith.constant dense<0.000000e+00> : vector<32x1xf32>
      %43 = tpu.matmul %42, %39, %cst_32 {dimension_numbers = #tpu.dot_dimension_numbers<[0], [0], [1], [1], [0, 1, 1, 1], [], []>} : vector<64x32xf32>, vector<64x1xf32>, vector<32x1xf32> -> vector<32x1xf32>
      %cst_33 = arith.constant 0.001953125 : f32
      %44 = vector.broadcast %cst_33 : f32 to vector<32x1xf32>
      %45 = arith.mulf %41, %44 : vector<32x1xf32>
      %cst_34 = arith.constant 0.001953125 : f32
      %46 = vector.broadcast %cst_34 : f32 to vector<32x1xf32>
      %47 = arith.mulf %43, %46 : vector<32x1xf32>
      %48 = arith.mulf %45, %45 : vector<32x1xf32>
      %49 = arith.subf %47, %48 : vector<32x1xf32>
      %cst_35 = arith.constant 9.99999974E-6 : f32
      %50 = vector.broadcast %cst_35 : f32 to vector<32x1xf32>
      %51 = arith.addf %49, %50 : vector<32x1xf32>
      %52 = math.rsqrt %51 : vector<32x1xf32>
      %c0_36 = arith.constant 0 : index
      %c0_37 = arith.constant 0 : index
      %53 = vector.load %arg5[%c0_36, %c0_37] : memref<64x32xf32, #tpu.memory_space<vmem>>, vector<64x32xf32>
      %cst_38 = arith.constant dense<0.000000e+00> : vector<64x1xf32>
      %54 = tpu.matmul %53, %45, %cst_38 {dimension_numbers = #tpu.dot_dimension_numbers<[1], [0], [0], [1], [0, 0, 1, 1], [], []>} : vector<64x32xf32>, vector<32x1xf32>, vector<64x1xf32> -> vector<64x1xf32>
      %c0_39 = arith.constant 0 : index
      %c0_40 = arith.constant 0 : index
      %55 = vector.load %arg5[%c0_39, %c0_40] : memref<64x32xf32, #tpu.memory_space<vmem>>, vector<64x32xf32>
      %cst_41 = arith.constant dense<0.000000e+00> : vector<64x1xf32>
      %56 = tpu.matmul %55, %52, %cst_41 {dimension_numbers = #tpu.dot_dimension_numbers<[1], [0], [0], [1], [0, 0, 1, 1], [], []>} : vector<64x32xf32>, vector<32x1xf32>, vector<64x1xf32> -> vector<64x1xf32>
      %57 = vector.broadcast %54 : vector<64x1xf32> to vector<64x256xf32>
      %58 = arith.subf %34, %57 : vector<64x256xf32>
      %59 = vector.broadcast %56 : vector<64x1xf32> to vector<64x256xf32>
      %60 = arith.mulf %58, %59 : vector<64x256xf32>
      %c0_42 = arith.constant 0 : index
      %c0_43 = arith.constant 0 : index
      %c0_44 = arith.constant 0 : index
      %61 = vector.load %arg6[%c0_42, %c0_43, %c0_44] : memref<3x64x64xf32, #tpu.memory_space<vmem>>, vector<1x64x64xf32>
      %62 = vector.shape_cast %61 : vector<1x64x64xf32> to vector<64x64xf32>
      %cst_45 = arith.constant dense<0.000000e+00> : vector<64x256xf32>
      %63 = tpu.matmul %62, %60, %cst_45 {dimension_numbers = #tpu.dot_dimension_numbers<[1], [0], [0], [1], [0, 0, 1, 1], [], []>} : vector<64x64xf32>, vector<64x256xf32>, vector<64x256xf32> -> vector<64x256xf32>
      %c0_46 = arith.constant 0 : index
      %c0_47 = arith.constant 0 : index
      %c0_48 = arith.constant 0 : index
      %64 = vector.load %arg7[%c0_46, %c0_47, %c0_48] : memref<3x64x1xf32, #tpu.memory_space<vmem>>, vector<1x64x1xf32>
      %65 = vector.shape_cast %64 : vector<1x64x1xf32> to vector<64x1xf32>
      %66 = vector.broadcast %65 : vector<64x1xf32> to vector<64x256xf32>
      %67 = arith.addf %63, %66 : vector<64x256xf32>
      %68 = vector.shape_cast %67 : vector<64x256xf32> to vector<4x16x256xf32>
      %c0_49 = arith.constant 0 : index
      %c0_50 = arith.constant 0 : index
      %c0_51 = arith.constant 0 : index
      %69 = vector.load %arg11[%c0_49, %c0_50, %c0_51] : memref<4x16x256xf32, #tpu.memory_space<vmem>>, vector<4x16x256xf32>
      tpu.vector_store %arg11[%c0_49, %c0_50, %c0_51], %68 {strides = array<i32>} : memref<4x16x256xf32, #tpu.memory_space<vmem>>, vector<4x16x256xf32>,
      %c1 = arith.constant 1 : index
      %c0_52 = arith.constant 0 : index
      %c0_53 = arith.constant 0 : index
      %70 = vector.load %arg6[%c1, %c0_52, %c0_53] : memref<3x64x64xf32, #tpu.memory_space<vmem>>, vector<1x64x64xf32>
      %71 = vector.shape_cast %70 : vector<1x64x64xf32> to vector<64x64xf32>
      %cst_54 = arith.constant dense<0.000000e+00> : vector<64x256xf32>
      %72 = tpu.matmul %71, %60, %cst_54 {dimension_numbers = #tpu.dot_dimension_numbers<[1], [0], [0], [1], [0, 0, 1, 1], [], []>} : vector<64x64xf32>, vector<64x256xf32>, vector<64x256xf32> -> vector<64x256xf32>
      %c1_55 = arith.constant 1 : index
      %c0_56 = arith.constant 0 : index
      %c0_57 = arith.constant 0 : index
      %73 = vector.load %arg7[%c1_55, %c0_56, %c0_57] : memref<3x64x1xf32, #tpu.memory_space<vmem>>, vector<1x64x1xf32>
      %74 = vector.shape_cast %73 : vector<1x64x1xf32> to vector<64x1xf32>
      %75 = vector.broadcast %74 : vector<64x1xf32> to vector<64x256xf32>
      %76 = arith.addf %72, %75 : vector<64x256xf32>
      %77 = vector.shape_cast %76 : vector<64x256xf32> to vector<4x16x256xf32>
      %c0_58 = arith.constant 0 : index
      %c0_59 = arith.constant 0 : index
      %c0_60 = arith.constant 0 : index
      %78 = vector.load %arg12[%c0_58, %c0_59, %c0_60] : memref<4x16x256xf32, #tpu.memory_space<vmem>>, vector<4x16x256xf32>
      tpu.vector_store %arg12[%c0_58, %c0_59, %c0_60], %77 {strides = array<i32>} : memref<4x16x256xf32, #tpu.memory_space<vmem>>, vector<4x16x256xf32>,
      %c2 = arith.constant 2 : index
      %c0_61 = arith.constant 0 : index
      %c0_62 = arith.constant 0 : index
      %79 = vector.load %arg6[%c2, %c0_61, %c0_62] : memref<3x64x64xf32, #tpu.memory_space<vmem>>, vector<1x64x64xf32>
      %80 = vector.shape_cast %79 : vector<1x64x64xf32> to vector<64x64xf32>
      %cst_63 = arith.constant dense<0.000000e+00> : vector<64x256xf32>
      %81 = tpu.matmul %80, %60, %cst_63 {dimension_numbers = #tpu.dot_dimension_numbers<[1], [0], [0], [1], [0, 0, 1, 1], [], []>} : vector<64x64xf32>, vector<64x256xf32>, vector<64x256xf32> -> vector<64x256xf32>
      %c2_64 = arith.constant 2 : index
      %c0_65 = arith.constant 0 : index
      %c0_66 = arith.constant 0 : index
      %82 = vector.load %arg7[%c2_64, %c0_65, %c0_66] : memref<3x64x1xf32, #tpu.memory_space<vmem>>, vector<1x64x1xf32>
      %83 = vector.shape_cast %82 : vector<1x64x1xf32> to vector<64x1xf32>
      %84 = vector.broadcast %83 : vector<64x1xf32> to vector<64x256xf32>
      %85 = arith.addf %81, %84 : vector<64x256xf32>
      %86 = vector.shape_cast %85 : vector<64x256xf32> to vector<4x16x256xf32>
      %c0_67 = arith.constant 0 : index
      %c0_68 = arith.constant 0 : index
      %c0_69 = arith.constant 0 : index
      %87 = vector.load %arg13[%c0_67, %c0_68, %c0_69] : memref<4x16x256xf32, #tpu.memory_space<vmem>>, vector<4x16x256xf32>
      tpu.vector_store %arg13[%c0_67, %c0_68, %c0_69], %86 {strides = array<i32>} : memref<4x16x256xf32, #tpu.memory_space<vmem>>, vector<4x16x256xf32>,
    } else {
    }
    %c128_i32 = arith.constant 128 : i32
    %3 = arith.muli %arg1, %c128_i32 : i32
    %4 = tpu.assume_multiple %3, 128 : i32
    %c0 = arith.constant 0 : index
    %c0_1 = arith.constant 0 : index
    %5 = arith.index_cast %4 : i32 to index
    %6 = vector.load %arg11[%c0, %c0_1, %5] : memref<4x16x256xf32, #tpu.memory_space<vmem>>, vector<4x16x128xf32>
    %c0_2 = arith.constant 0 : index
    %c0_3 = arith.constant 0 : index
    %c0_4 = arith.constant 0 : index
    %7 = vector.load %arg12[%c0_2, %c0_3, %c0_4] : memref<4x16x256xf32, #tpu.memory_space<vmem>>, vector<4x16x256xf32>
    %c0_5 = arith.constant 0 : index
    %c0_6 = arith.constant 0 : index
    %c0_7 = arith.constant 0 : index
    %8 = vector.load %arg13[%c0_5, %c0_6, %c0_7] : memref<4x16x256xf32, #tpu.memory_space<vmem>>, vector<4x16x256xf32>
    %cst = arith.constant dense<0.000000e+00> : vector<4x128x256xf32>
    %9 = tpu.matmul %6, %7, %cst {dimension_numbers = #tpu.dot_dimension_numbers<[1], [1], [2], [2], [0, 0, 0, 2, 1, 2], [0], [0]>} : vector<4x16x128xf32>, vector<4x16x256xf32>, vector<4x128x256xf32> -> vector<4x128x256xf32>
    %cst_8 = arith.constant dense<0xFF800000> : vector<4x128xf32>
    %10 = vector.multi_reduction <maximumf>, %9, %cst_8 [2] : vector<4x128x256xf32> to vector<4x128xf32>
    %11 = vector.shape_cast %10 : vector<4x128xf32> to vector<4x128x1xf32>
    %12 = vector.broadcast %11 : vector<4x128x1xf32> to vector<4x128x256xf32>
    %13 = arith.subf %9, %12 : vector<4x128x256xf32>
    %14 = math.exp %13 : vector<4x128x256xf32>
    %cst_9 = arith.constant dense<0.000000e+00> : vector<4x128xf32>
    %15 = vector.multi_reduction <add>, %14, %cst_9 [2] : vector<4x128x256xf32> to vector<4x128xf32>
    %16 = vector.shape_cast %15 : vector<4x128xf32> to vector<4x128x1xf32>
    %17 = tpu.reciprocal %16 {approx = true} : vector<4x128x1xf32> -> vector<4x128x1xf32>
    %18 = vector.broadcast %17 : vector<4x128x1xf32> to vector<4x128x256xf32>
    %19 = arith.mulf %14, %18 : vector<4x128x256xf32>
    %cst_10 = arith.constant dense<0.000000e+00> : vector<4x16x128xf32>
    %20 = tpu.matmul %8, %19, %cst_10 {dimension_numbers = #tpu.dot_dimension_numbers<[2], [2], [1], [1], [0, 0, 0, 1, 1, 1], [0], [0]>} : vector<4x16x256xf32>, vector<4x128x256xf32>, vector<4x16x128xf32> -> vector<4x16x128xf32>
    %21 = vector.shape_cast %20 : vector<4x16x128xf32> to vector<64x128xf32>
    %c0_11 = arith.constant 0 : index
    %c0_12 = arith.constant 0 : index
    %22 = vector.load %arg8[%c0_11, %c0_12] : memref<64x64xf32, #tpu.memory_space<vmem>>, vector<64x64xf32>
    %cst_13 = arith.constant dense<0.000000e+00> : vector<64x128xf32>
    %23 = tpu.matmul %22, %21, %cst_13 {dimension_numbers = #tpu.dot_dimension_numbers<[1], [0], [0], [1], [0, 0, 1, 1], [], []>} : vector<64x64xf32>, vector<64x128xf32>, vector<64x128xf32> -> vector<64x128xf32>
    %c0_14 = arith.constant 0 : index
    %c0_15 = arith.constant 0 : index
    %24 = vector.load %arg9[%c0_14, %c0_15] : memref<64x1xf32, #tpu.memory_space<vmem>>, vector<64x1xf32>
    %25 = vector.broadcast %24 : vector<64x1xf32> to vector<64x128xf32>
    %26 = arith.addf %23, %25 : vector<64x128xf32>
    %c0_16 = arith.constant 0 : index
    %c0_17 = arith.constant 0 : index
    %c0_18 = arith.constant 0 : index
    %27 = vector.load %arg3[%c0_16, %c0_17, %c0_18] : memref<1x64x128xf32, #tpu.memory_space<vmem>>, vector<1x64x128xf32>
    %28 = vector.shape_cast %27 : vector<1x64x128xf32> to vector<64x128xf32>
    %29 = arith.addf %28, %26 : vector<64x128xf32>
    %c0_19 = arith.constant 0 : index
    %c0_20 = arith.constant 0 : index
    %c0_21 = arith.constant 0 : index
    %30 = vector.load %arg10[%c0_19, %c0_20, %c0_21] : memref<1x64x128xf32, #tpu.memory_space<vmem>>, vector<1x64x128xf32>
    %31 = vector.shape_cast %30 : vector<1x64x128xf32> to vector<64x128xf32>
    %32 = vector.shape_cast %29 : vector<64x128xf32> to vector<1x64x128xf32>
    tpu.vector_store %arg10[%c0_19, %c0_20, %c0_21], %32 {strides = array<i32>} : memref<1x64x128xf32, #tpu.memory_space<vmem>>, vector<1x64x128xf32>,
    return
  }
  func.func @transform_0(%arg0: i32, %arg1: i32) -> (i32, i32, i32) {
    %c0_i32 = arith.constant 0 : i32
    %c0_i32_0 = arith.constant 0 : i32
    %c0_i32_1 = arith.constant 0 : i32
    return %arg0, %c0_i32, %c0_i32_0 : i32, i32, i32
  }
  func.func @transform_1(%arg0: i32, %arg1: i32) -> (i32, i32, i32) {
    %c0_i32 = arith.constant 0 : i32
    %c0_i32_0 = arith.constant 0 : i32
    return %arg0, %c0_i32, %arg1 : i32, i32, i32
  }
  func.func @transform_2(%arg0: i32, %arg1: i32) -> (i32, i32) {
    %c0_i32 = arith.constant 0 : i32
    %c0_i32_0 = arith.constant 0 : i32
    %c0_i32_1 = arith.constant 0 : i32
    return %c0_i32, %c0_i32_0 : i32, i32
  }
  func.func @transform_3(%arg0: i32, %arg1: i32) -> (i32, i32) {
    %c0_i32 = arith.constant 0 : i32
    %c0_i32_0 = arith.constant 0 : i32
    %c0_i32_1 = arith.constant 0 : i32
    return %c0_i32, %c0_i32_0 : i32, i32
  }
  func.func @transform_4(%arg0: i32, %arg1: i32) -> (i32, i32, i32) {
    %c0_i32 = arith.constant 0 : i32
    %c0_i32_0 = arith.constant 0 : i32
    %c0_i32_1 = arith.constant 0 : i32
    %c0_i32_2 = arith.constant 0 : i32
    return %c0_i32, %c0_i32_0, %c0_i32_1 : i32, i32, i32
  }
  func.func @transform_5(%arg0: i32, %arg1: i32) -> (i32, i32, i32) {
    %c0_i32 = arith.constant 0 : i32
    %c0_i32_0 = arith.constant 0 : i32
    %c0_i32_1 = arith.constant 0 : i32
    %c0_i32_2 = arith.constant 0 : i32
    return %c0_i32, %c0_i32_0, %c0_i32_1 : i32, i32, i32
  }
  func.func @transform_6(%arg0: i32, %arg1: i32) -> (i32, i32) {
    %c0_i32 = arith.constant 0 : i32
    %c0_i32_0 = arith.constant 0 : i32
    %c0_i32_1 = arith.constant 0 : i32
    return %c0_i32, %c0_i32_0 : i32, i32
  }
  func.func @transform_7(%arg0: i32, %arg1: i32) -> (i32, i32) {
    %c0_i32 = arith.constant 0 : i32
    %c0_i32_0 = arith.constant 0 : i32
    %c0_i32_1 = arith.constant 0 : i32
    return %c0_i32, %c0_i32_0 : i32, i32
  }
  func.func @transform_8(%arg0: i32, %arg1: i32) -> (i32, i32, i32) {
    %c0_i32 = arith.constant 0 : i32
    %c0_i32_0 = arith.constant 0 : i32
    return %arg0, %c0_i32, %arg1 : i32, i32, i32
  }
}

</mosaic_0001>

<bundles_post_ra>
// kernel: tpu_custom_call.1
= control target key start
LH: loop header
LB: loop body
LE: loop exit
PB: predicated region body
PF: predicated region fallthrough
CT: control target
= control target key end

     0   :  { %s7525_s0 = inlined_call_operand.vmem [shape: f32[2,64,256], index: 0, kind: input, shape index: {}]   ;;  %s7526_s1 = inlined_call_operand.hbm [shape: f32[2,64,256], index: 1, kind: input, shape index: {}]   ;;  %s7527_s2 = inlined_call_operand.vmem [shape: f32[1,256], index: 2, kind: input, shape index: {}]   ;;  %s7528_s3 = inlined_call_operand.vmem [shape: f32[64,32], index: 3, kind: input, shape index: {}]   ;;  %s7529_s4 = inlined_call_operand.hbm [shape: f32[3,64,64], index: 4, kind: input, shape index: {}]   ;;  %s7530_s5 = inlined_call_operand.vmem [shape: f32[3,64,1], index: 5, kind: input, shape index: {}]   ;;  %s7531_s6 = inlined_call_operand.vmem [shape: f32[64,64], index: 6, kind: input, shape index: {}]   ;;  %s7532_s7 = inlined_call_operand.vmem [shape: f32[64,1], index: 7, kind: input, shape index: {}]   ;;  %s7533_s8 = inlined_call_operand.hbm [shape: f32[2,64,256], index: 8, kind: output, shape index: {}]  }
   0x1   :  { %7710 = sst [smem:[#allocation119_spill]] %s7529_s4 }
   0x2   :  { %7711 = sst [smem:[#allocation120_spill]] %s7533_s8 }
   0x3   :  { %13 = vsyncpa [#allocation6], 0 }
   0x4   :  { %15 = vsyncpa [#allocation6 + $0x1], 0 }
   0x5   :  { %16 = vsyncpa [#allocation9], 0 }
   0x6   :  { %17 = vsyncpa [#allocation7], 0 }
   0x7   :  { %19 = vsyncpa [#allocation7 + $0x1], 0  ;;  %s5603_s2 = smov 0   ;;  %s5605_s27 = smov 0  }
   0x8   :  { %s5607_s28 = smov 0   ;;  %s5609_s29 = smov 0  }
   0x9   :  { %s5611_s30 = smov 0   ;;  %s5613_s9 = smov 0  }
   0xa   :  { %s5615_s10 = smov 0   ;;  %s5617_s11 = smov 0  }
   0xb LB: > { %7712 = sst [smem:[#allocation14_spill]] %s5515_s2  ;;  %s4295_s12 = sadd.s32 4294967295, %s5543_s11   ;;  %s5543_s11 = sphi %s5617_s11, %s25_s11   ;;  %s5539_s10 = sphi %s5615_s10, %s8070_s10   ;;  %s5535_s9 = sphi %s5613_s9, %s8069_s9   ;;  %s5531_s30 = sphi %s5611_s30, %s8068_s30   ;;  %s5527_s29 = sphi %s5609_s29, %s8067_s29   ;;  %s5523_s28 = sphi %s5607_s28, %s8066_s28   ;;  %s5519_s27 = sphi %s5605_s27, %s8065_s27   ;;  %s5515_s2 = sphi %s5603_s2, %s8064_s2  }
   0xc   : > { %7713 = sst [smem:[#allocation15_spill]] %s5543_s11  ;;  %s4296_s13 = sadd.s32 4294967294, %s5543_s11  }
   0xd   : > { %p79_p0 = scmp.ne.s32.totalorder %s5523_s28, %s5519_s27  ;;  %p80_p1 = scmp.eq.s32.totalorder %s5543_s11, 0 }
   0xe   : > { %p85_p2 = scmp.ne.s32.totalorder %s5519_s27, %s5515_s2  ;;  %p5651_p3 = scmp.eq.s32.totalorder %s4295_s12, 0 }
   0xf   : > { %p237_p4 = scmp.eq.s32.totalorder %s4295_s12, 3  ;;  %p5655_p5 = por %p80_p1, %p79_p0 }
  0x10   : > { %s7714_s15 = scalar_select %p5651_p3, 1, 0 }
  0x11   : > { %p243_p6 = scmp.eq.s32.totalorder %s4296_s13, 3  ;;  %p5661_p7 = por %p5651_p3, %p85_p2 }
  0x12   : > { %p5665_p8 = por %p237_p4, %p79_p0  ;;  %p4297_p10 = scmp.ge.s32.totalorder %s5543_s11, 1 }
  0x13   : > { %s7716_s17 = scalar_select %p5661_p7, 1, 0 }
  0x14   : > { %s7717_s18 = scalar_select %p5665_p8, 1, 0 }
  0x15   : > { %p5669_p9 = por %p243_p6, %p85_p2  ;;  %p250_p11 = scmp.lt.s32.totalorder %s5543_s11, 5 }
  0x16   : > { %s5545_s21 = smov [#allocation8]   ;;  %p4909_p0 = scmp.lt.s32.totalorder %s5543_s11, 4 }
  0x17   : > { %s7718_s19 = scalar_select %p5669_p9, 1, 0 }
  0x18   : > { %p5675_p12 = pnand %p4297_p10, %p250_p11  ;;  %s276_s22 = sshll.u32 %s5545_s21, 4  ;;  %s277_s22 = int_to_ptr.vmem [resolvable:$true] %s276_s22 }
  0x19   : > { %7719 = sst [smem:[#allocation16_spill]] %s7718_s19  ;;  %p5690_p2 = pnand %p4909_p0, %p5655_p5 }
  0x1a   : > { %s7720_s20 = scalar_select %p5675_p12, 1, 0 }
  0x1b   : > { %p4896_p13 = pneg %p5675_p12  ;;  %s7723_s4 = sld [smem:[#allocation119_spill]] }
  0x1c   : > { %s7722_s24 = scalar_select %p5690_p2, 1, 0 }
  0x1d   : > { %p5684_p1 = pnand %p4896_p13, %p5651_p3 }
  0x1f   : > { %p5385_p6 = pneg %p5684_p1 }
  0x21   : > { %s5383_s12 = scalar_lea.hbm %s7723_s4, 3072 }
  0x22   : > { %p5384_p4 = scmp.ne.s32.totalorder %s7723_s4, %s5383_s12  ;;  %p5390_p13 = scmp.lt.u32.totalorder %s5383_s12, %s7723_s4 }
  0x24   : > { %p5386_p10 = pnand %p5385_p6, %p5384_p4 }
  0x26   : > { %p5387_p11 = pneg %p5386_p10 }
  0x28   : > { %p5392_p5 = pnand %p5390_p13, %p5387_p11 }
  0x2a   : > { %5395 = shalt.err (!%p5392_p5)
}
  0x2b   : > { %s5396_s16 = scalar_lea.vmem %s277_s22, 3072  ;;  %p5404_p3 = scmp.lt.s32.totalorder %s277_s22, %s277_s22 }
  0x2c   : > { %p5397_p0 = scmp.ne.s32.totalorder %s277_s22, %s5396_s16  ;;  %p5405_p7 = scmp.lt.s32.totalorder %s5396_s16, %s5396_s16 }
  0x2e   : > { %p5399_p9 = pnand %p5397_p0, %p5385_p6  ;;  %p5406_p12 = por %p5405_p7, %p5404_p3 }
  0x30   : > { %p5400_p8 = pneg %p5399_p9 }
  0x32   : > { %p5407_p2 = pnand %p5406_p12, %p5400_p8 }
  0x34   : > { %5410 = shalt.err (!%p5407_p2)
}
  0x35   : > { %s7544_s25 = smov 128   ;;  %s7545_s14 = smov 8  }
  0x36   : > { %4899 = dma.hbm_to_vmem [thread:$0]  (!%p5684_p1), %s7723_s4, 3072, %s277_s22, [#allocation9], %s7544_s25, %s7544_s25, %s7545_s14  }
  0x37   : > { %s34_s12 = sadd.s32 1, %s5535_s9  ;;  %s37_s13 = sadd.s32 1, %s5539_s10 }
  0x38   : > { %p35_p3 = scmp.ge.s32.totalorder %s34_s12, 2  ;;  %s299_s21 = sand.u32 1, %s5523_s28  }
  0x39   : > { %s4301_s16 = sshll.u32 %s5539_s10, 4  ;;  %s4300_s23 = sshll.u32 %s299_s21, 6 }
  0x3a   : > { %s8072_s12 = smov (%p35_p3, %s34_s12), 0  ;;  %s8074_s13 = smov (!%p35_p3, %s37_s13), %s5539_s10 }
  0x3b   : > { %7724 = sst [smem:[#allocation17_spill]] %s8072_s12  ;;  %s68_s2 = ssub.s32 %s5535_s9, %s8072_s12 }
  0x3c   : > { %p39_p7 = scmp.ge.s32.totalorder %s8074_s13, 2  ;;  %s308_s11 = sadd.s32 %s5535_s9, %s4301_s16 }
  0x3d   : > { %s4302_s22 = sshll.u32 %s308_s11, 7  ;;  %s303_s19 = scalar_lea.vmem [#allocation5], %s4300_s23 }
  0x3e   : > { %s8076_s13 = smov (%p39_p7, %s8074_s13), 0  ;;  %s311_s26 = sshll.u32 %s303_s19, 4  ;;  %s5734_s26 = int_to_ptr.vmem [resolvable:$true] %s311_s26 }
  0x3f   : > { %s67_s25 = ssub.s32 %s5539_s10, %s8076_s13  ;;  %s5730_s8 = scalar_lea.hbm %s7526_s1, %s4302_s22 }
  0x40   : > { %s5732_s12 = sor.u32 %s68_s2, %s67_s25  ;;  %s5737_s16 = scalar_lea.sflag [#allocation6], %s299_s21 }
  0x41   : > { %p70_p8 = scmp.eq.s32.totalorder %s5732_s12, 0  ;;  %s5411_s11 = scalar_lea.hbm %s5730_s8, 1024 }
  0x42   : > { %p5412_p9 = scmp.ne.s32.totalorder %s5730_s8, %s5411_s11  ;;  %p7725_p12 = scmp.ne.s32.totalorder %s7722_s24, 0 }
  0x43   : > { %s5416_s23 = scalar_lea.hbm %s7526_s1, 4096  ;;  %p5417_p6 = scmp.lt.u32.totalorder %s5730_s8, %s7526_s1 }
  0x44   : > { %p5413_p1 = pneg %p7725_p12  ;;  %p5418_p10 = scmp.lt.u32.totalorder %s5416_s23, %s5411_s11 }
  0x45   : > { %p5420_p13 = scmp.lt.u32.totalorder %s5411_s11, %s5730_s8 }
  0x46   : > { %p5414_p2 = pnand %p5413_p1, %p5412_p9  ;;  %p5419_p11 = por %p5418_p10, %p5417_p6 }
  0x48   : > { %p5415_p4 = pneg %p5414_p2  ;;  %p5421_p5 = por %p5420_p13, %p5419_p11 }
  0x4a   : > { %p5422_p0 = pnand %p5421_p5, %p5415_p4 }
  0x4c   : > { %5425 = shalt.err (!%p5422_p0)
}
  0x4d   : > { %s5426_s21 = scalar_lea.vmem %s5734_s26, 1024  ;;  %s5548_s22 = smov [#allocation5]  }
  0x4e   : > { %p5427_p3 = scmp.ne.s32.totalorder %s5734_s26, %s5426_s21  ;;  %s5431_s19 = sshll.u32 %s5548_s22, 4  ;;  %s5432_s19 = int_to_ptr.vmem [resolvable:$false] %s5431_s19 }
  0x4f   : > { %s5433_s4 = scalar_lea.vmem %s5432_s19, 2048  ;;  %p5434_p2 = scmp.lt.s32.totalorder %s5734_s26, %s5432_s19 }
  0x50   : > { %p5429_p7 = pnand %p5427_p3, %p5413_p1  ;;  %p5435_p6 = scmp.lt.s32.totalorder %s5433_s4, %s5426_s21 }
  0x52   : > { %p5430_p9 = pneg %p5429_p7  ;;  %p5436_p10 = por %p5435_p6, %p5434_p2 }
  0x54   : > { %p5437_p11 = pnand %p5436_p10, %p5430_p9 }
  0x56   : > { %5440 = shalt.err (!%p5437_p11)
}
  0x57   : > { %s5549_s11 = smov 256   ;;  %s7726_s14 = smov 8  }
  0x58   : > { %s7727_s23 = smov 128   ;;  %s7728_s2 = sadd.s32 1, %s5523_s28 }
  0x59   : > { %4903 = dma.hbm_to_vmem [thread:$0]  (!%p7725_p12), %s5730_s8, 1024, %s5734_s26, %s5737_s16, %s5549_s11, %s7727_s23, %s7726_s14  }
  0x5a   : > { %s5772_s25 = scalar_select %p70_p8, %s5523_s28, %s7728_s2  }
  0x5b   : > { %p7729_p1 = scmp.ne.s32.totalorder %s7720_s20, 0 }
  0x5d   : > { %323 = sbr.rel (%p7729_p1) target bundleno = 2647 (0xa57), region = 52 }
  0x64   : > { %s5777_s21 = sand.u32 1, %s5519_s27   ;;  %p7730_p4 = scmp.ne.s32.totalorder %s7716_s17, 0 }
  0x65   : > { %s4304_s24 = sshll.u32 %s5777_s21, 6  ;;  %s326_s22 = scalar_lea.sflag [#allocation6], %s5777_s21 }
  0x66   : > { %s5781_s19 = scalar_lea.vmem [#allocation5], %s4304_s24 }
  0x67   : > { %5502 = dma.done.wait (%p7730_p4), %s326_s22, 1024  }
  0x68   : > { %5504 = vsyncadd (%p7730_p4), %s326_s22, 4294966272  ;;  %p7731_p8 = scmp.ne.s32.totalorder %s7714_s15, 0 }
  0x6a   : > { %5506 = dma.done.wait (%p7731_p8), [#allocation9], 3072  }
  0x6b   : > { %5508 = vsyncadd (%p7731_p8), [#allocation9], 4294964224  ;;  %p371_p12 = scmp.lt.s32.totalorder %s5531_s30, 1  ;;  %s5796_s4 = scalar_lea.vmem [#allocation10], %s4304_s24 }
  0x6c   : > { %p4309_p13 = scmp.ne.s32.totalorder %s5527_s29, 0 }
  0x6d   : > { %s372_s8 = scalar_select %p371_p12, %s5531_s30, 1 }
  0x6e   : > { %379 = sbr.rel (%p4309_p13) target bundleno = 1232 (0x4d0), region = 64  ;;  %v5882_v48 = vld [vmem:[%s7528_s3] sm:$0xff] (!%p4309_p13)  ;;  %v5888_v49 = vld [vmem:[%s7528_s3 + $0x8] sm:$0xff] (!%p4309_p13)  ;;  %v5894_v50 = vld [vmem:[%s7528_s3 + $0x10] sm:$0xff] (!%p4309_p13)  ;;  %vm500_vm0 = vcmask (!%p4309_p13), 523264   ;;  %vm707_vm1 = vcmask (!%p4309_p13), 261120  }
  0x6f   : > { %s4453_s20 = sshll.u32 %s372_s8, 7  ;;  %v5900_v51 = vld [vmem:[%s7528_s3 + $0x18] sm:$0xff] (!%p4309_p13)  ;;  %v5906_v52 = vld [vmem:[%s7528_s3 + $0x20] sm:$0xff] (!%p4309_p13)  ;;  %v5912_v53 = vld [vmem:[%s7528_s3 + $0x28] sm:$0xff] (!%p4309_p13)  ;;  %4570 = vmatprep.mubr.msk.f32.mxu0 (!%p4309_p13), %vm707_vm1, %v5882_v48 }
  0x70   : > { %s375_s16 = scalar_lea.vmem %s7525_s0, %s4453_s20  ;;  %v5918_v54 = vld [vmem:[%s7528_s3 + $0x30] sm:$0xff] (!%p4309_p13)  ;;  %v5924_v55 = vld [vmem:[%s7528_s3 + $0x38] sm:$0xff] (!%p4309_p13) }
  0x71   : > { %v5799_v0 = vld [vmem:[%s375_s16 + $0x20] sm:$0xff] (!%p4309_p13)  ;;  %v5801_v1 = vld [vmem:[%s375_s16 + $0x28] sm:$0xff] (!%p4309_p13)  ;;  %v5809_v5 = vld [vmem:[%s375_s16 + $0x30] sm:$0xff] (!%p4309_p13) }
  0x72   : > { %v5803_v2 = vld [vmem:[%s375_s16] sm:$0xff] (!%p4309_p13)  ;;  %v402_v3 = vadd.f32 (!%p4309_p13), %v5801_v1, %v5799_v0  ;;  %v5807_v4 = vld [vmem:[%s375_s16 + $0x8] sm:$0xff] (!%p4309_p13)  ;;  %v5811_v6 = vld [vmem:[%s375_s16 + $0x38] sm:$0xff] (!%p4309_p13)  ;;  %v426_v29 = vmul.f32 (!%p4309_p13), %v5809_v5, %v5809_v5  ;;  %v424_v32 = vmul.f32 (!%p4309_p13), %v5799_v0, %v5799_v0  ;;  %v425_v33 = vmul.f32 (!%p4309_p13), %v5801_v1, %v5801_v1 }
  0x73   : > { %v396_v7 = vadd.f32 (!%p4309_p13), %v5807_v4, %v5803_v2  ;;  %v5815_v8 = vld [vmem:[%s375_s16 + $0x10] sm:$0xff] (!%p4309_p13)  ;;  %v5817_v9 = vld [vmem:[%s375_s16 + $0x18] sm:$0xff] (!%p4309_p13)  ;;  %v405_v10 = vadd.f32 (!%p4309_p13), %v5811_v6, %v5809_v5  ;;  %v5827_v14 = vld [vmem:[%s375_s16 + $0x40] sm:$0xff] (!%p4309_p13)  ;;  %v420_v26 = vmul.f32 (!%p4309_p13), %v5803_v2, %v5803_v2  ;;  %v421_v27 = vmul.f32 (!%p4309_p13), %v5807_v4, %v5807_v4 }
  0x74   : > { %403 = vadd.xlane.f32.xlu1 (!%p4309_p13), %v402_v3  ;;  %v399_v11 = vadd.f32 (!%p4309_p13), %v5817_v9, %v5815_v8  ;;  %v5823_v12 = vld [vmem:[%s375_s16 + $0x50] sm:$0xff] (!%p4309_p13)  ;;  %v5825_v13 = vld [vmem:[%s375_s16 + $0x58] sm:$0xff] (!%p4309_p13)  ;;  %v5829_v15 = vld [vmem:[%s375_s16 + $0x48] sm:$0xff] (!%p4309_p13)  ;;  %v422_v23 = vmul.f32 (!%p4309_p13), %v5815_v8, %v5815_v8  ;;  %v423_v24 = vmul.f32 (!%p4309_p13), %v5817_v9, %v5817_v9  ;;  %v427_v30 = vmul.f32 (!%p4309_p13), %v5811_v6, %v5811_v6 }
  0x75   : > { %397 = vadd.xlane.f32.xlu0 %v396_v7  ;;  %v411_v16 = vadd.f32 %v5825_v13, %v5823_v12  ;;  %v408_v17 = vadd.f32 %v5829_v15, %v5827_v14  ;;  %v5835_v18 = vld [vmem:[%s375_s16 + $0x70] sm:$0xff]  ;;  %v5837_v19 = vld [vmem:[%s375_s16 + $0x78] sm:$0xff]  ;;  %v5839_v20 = vld [vmem:[%s375_s16 + $0x60] sm:$0xff]  ;;  %v436_v31 = vadd.f32 %v421_v27, %v420_v26  ;;  %v430_v35 = vmul.f32 %v5823_v12, %v5823_v12 }
  0x76   : > { %v5841_v21 = vld [vmem:[%s375_s16 + $0x68] sm:$0xff]  ;;  %v417_v22 = vadd.f32 %v5837_v19, %v5835_v18  ;;  %v439_v28 = vadd.f32 %v423_v24, %v422_v23  ;;  %v445_v34 = vadd.f32 %v427_v30, %v426_v29  ;;  %v431_v36 = vmul.f32 %v5825_v13, %v5825_v13 }
  0x77   : > { %v414_v25 = vadd.f32 %v5841_v21, %v5839_v20  ;;  %v442_v37 = vadd.f32 %v425_v33, %v424_v32  ;;  %v428_v38 = vmul.f32 %v5827_v14, %v5827_v14  ;;  %v429_v39 = vmul.f32 %v5829_v15, %v5829_v15 }
  0x78   : > { %406 = vadd.xlane.f32.xlu1 %v405_v10  ;;  %v451_v40 = vadd.f32 %v431_v36, %v430_v35  ;;  %v434_v41 = vmul.f32 %v5835_v18, %v5835_v18  ;;  %v435_v42 = vmul.f32 %v5837_v19, %v5837_v19  ;;  %v432_v44 = vmul.f32 %v5839_v20, %v5839_v20 }
  0x79   : > { %400 = vadd.xlane.f32.xlu0 %v399_v11  ;;  %v448_v43 = vadd.f32 %v429_v39, %v428_v38  ;;  %v433_v45 = vmul.f32 %v5841_v21, %v5841_v21  ;;  %v5550_v36 = vmov 0  }
  0x7a   : > { %v457_v46 = vadd.f32 %v435_v42, %v434_v41  ;;  %4987 = vset.pattern.permute.xlu1 %v5550_v36 }
  0x7b   : > { %v454_v47 = vadd.f32 %v433_v45, %v432_v44 }
  0x7c   : > { %412 = vadd.xlane.f32.xlu1 %v411_v16 }
  0x7d   : > { %409 = vadd.xlane.f32.xlu0 %v408_v17 }
  0x80   : > { %418 = vadd.xlane.f32.xlu1 %v417_v22 }
  0x81   : > { %415 = vadd.xlane.f32.xlu0 %v414_v25 }
  0x84   : > { %440 = vadd.xlane.f32.xlu1 %v439_v28 }
  0x85   : > { %437 = vadd.xlane.f32.xlu0 %v436_v31 }
  0x88   : > { %446 = vadd.xlane.f32.xlu1 %v445_v34 }
  0x89   : > { %443 = vadd.xlane.f32.xlu0 %v442_v37 }
  0x8c   : > { %452 = vadd.xlane.f32.xlu1 %v451_v40 }
  0x8d   : > { %449 = vadd.xlane.f32.xlu0 %v448_v43 }
  0x90   : > { %458 = vadd.xlane.f32.xlu1 %v457_v46 }
  0x91   : > { %455 = vadd.xlane.f32.xlu0 %v454_v47 }
  0xbe   : > { %468 = vxpose.xlu0.b32.start [1/8] (short) (narrow) %v5882_v48, 32 }
  0xc2   : > { %469 = vxpose.xlu0.b32.cont [2/8] (short) (narrow) %v5888_v49, 32 }
  0xc6   : > { %470 = vxpose.xlu0.b32.cont [3/8] (short) (narrow) %v5894_v50, 32 }
  0xca   : > { %471 = vxpose.xlu0.b32.cont [4/8] (short) (narrow) %v5900_v51, 32 }
  0xce   : > { %472 = vxpose.xlu0.b32.cont [5/8] (short) (narrow) %v5906_v52, 32 }
  0xd2   : > { %473 = vxpose.xlu0.b32.cont [6/8] (short) (narrow) %v5912_v53, 32 }
  0xd6   : > { %474 = vxpose.xlu0.b32.cont [7/8] (short) (narrow) %v5918_v54, 32 }
  0xda   : > { %475 = vxpose.xlu0.b32.end [8/8] (short) (narrow) %v5924_v55, 32 }
 0x101   : > { %v404_v56 = vpop.xlane.xlu1 %403 }
 0x102   : > { %v398_v57 = vpop.xlane.xlu0 %397 }
 0x103   : > { %4988 = vset.pattern.permute.xlu0 %v5550_v36 }
 0x105   : > { %v407_v58 = vpop.xlane.xlu1 %406 }
 0x106   : > { %v401_v59 = vpop.xlane.xlu0 %400  ;;  %v4634_v60 = vpack.c.bf16 %v407_v58, %v404_v56 }
 0x107   : > { %v4630_v61 = vpack.c.bf16 %v401_v59, %v398_v57 }
 0x109   : > { %4631 = vmatprep.subr.bf16.mxu1 %v4630_v61  ;;  %v413_v62 = vpop.xlane.xlu1 %412 }
 0x10a   : > { %4633 = vmatpush3.bf16.msra.mxu1 %v4630_v61  ;;  %v410_v63 = vpop.xlane.xlu0 %409 }
 0x10b   : > { %4635 = vmatprep.subr.bf16.mxu1 %v4634_v60  ;;  %v4638_v3 = vpack.c.bf16 %v413_v62, %v410_v63 }
 0x10d   : > { %v419_v7 = vpop.xlane.xlu1 %418 }
 0x10e   : > { %4637 = vmatpush3.bf16.msra.mxu1 %v4634_v60  ;;  %v416_v10 = vpop.xlane.xlu0 %415 }
 0x10f   : > { %4639 = vmatprep.subr.bf16.mxu1 %v4638_v3  ;;  %v4642_v11 = vpack.c.bf16 %v419_v7, %v416_v10 }
 0x111   : > { %v441_v16 = vpop.xlane.xlu1 %440 }
 0x112   : > { %4641 = vmatpush3.bf16.msra.mxu1 %v4638_v3  ;;  %v438_v17 = vpop.xlane.xlu0 %437 }
 0x113   : > { %4643 = vmatprep.subr.bf16.mxu1 %v4642_v11  ;;  %v4646_v22 = vpack.c.bf16 %v441_v16, %v438_v17 }
 0x115   : > { %v447_v26 = vpop.xlane.xlu1 %446 }
 0x116   : > { %4645 = vmatpush3.bf16.msra.mxu1 %v4642_v11  ;;  %v444_v23 = vpop.xlane.xlu0 %443 }
 0x117   : > { %4647 = vmatprep.subr.bf16.mxu1 %v4646_v22  ;;  %v4650_v30 = vpack.c.bf16 %v447_v26, %v444_v23 }
 0x119   : > { %v453_v28 = vpop.xlane.xlu1 %452 }
 0x11a   : > { %v450_v24 = vpop.xlane.xlu0 %449 }
 0x11b   : > { %v4654_v32 = vpack.c.bf16 %v453_v28, %v450_v24 }
 0x11d   : > { %v459_v33 = vpop.xlane.xlu1 %458 }
 0x11e   : > { %v456_v25 = vpop.xlane.xlu0 %455 }
 0x11f   : > { %v4658_v35 = vpack.c.bf16 %v459_v33, %v456_v25 }
 0x13e   : > { %v484_v27 = vpop.trf.xlu0 }
 0x13f   : > { %4534 = vmatprep.mubr.msk.f32.mxu1 %vm500_vm0, %v484_v27 }
 0x142   : > { %v485_v29 = vpop.trf.xlu0 }
 0x143   : > { %4535 = vmatmul.mubr.msk.f32.vlgmr.msra.gmra.mrb[0].mxu1 %vm500_vm0, %v485_v29 }
 0x144   : > { %4649 = vmatpush3.bf16.msra.mxu1 %v4646_v22 }
 0x145   : > { %4651 = vmatprep.subr.bf16.mxu1 %v4650_v30 }
 0x146   : > { %v486_v31 = vpop.trf.xlu0 }
 0x147   : > { %4537 = vmatprep.mubr.msk.f32.mxu1 %vm500_vm0, %v486_v31 }
 0x148   : > { %4653 = vmatpush3.bf16.msra.mxu1 %v4650_v30 }
 0x149   : > { %4655 = vmatprep.subr.bf16.mxu1 %v4654_v32 }
 0x14a   : > { %v487_v34 = vpop.trf.xlu0 }
 0x14b   : > { %4538 = vmatmul.mubr.msk.f32.gmra.mrb[2].mxu1 %vm500_vm0, %v487_v34 }
 0x14c   : > { %4657 = vmatpush3.bf16.msra.mxu1 %v4654_v32  ;;  %4556 = vmatprep.mubr.msk.f32.mxu1 %vm500_vm0, %v484_v27 }
 0x14d   : > { %4659 = vmatprep.subr.bf16.mxu1 %v4658_v35 }
 0x150   : > { %4661 = vmatpush3.bf16.msra.mxu1 %v4658_v35 }
 0x153   : > { %4557 = vmatmul.mubr.msk.f32.vlgmr.msra.gmra.mrb[4].mxu1 %vm500_vm0, %v485_v29 }
 0x154   : > { %4559 = vmatprep.mubr.msk.f32.mxu1 %vm500_vm0, %v486_v31 }
 0x157   : > { %4560 = vmatmul.mubr.msk.f32.gmra.mrb[6].mxu1 %vm500_vm0, %v487_v34 }
 0x158   : > { %4590 = vmatprep.mubr.msk.f32.mxu1 %vm707_vm1, %v5882_v48 }
 0x216   : > { %v4536_v37 = vpop.f32.mrb[0].mxu1 }
 0x217   : > { %v684_v38 = vmul.f32 0.001953125, %v4536_v37  ;;  %v579_v39 = vpop.f32.mrb[1].mxu1 }
 0x218   : > { %v683_v40 = vmul.f32 0.001953125, %v579_v39 }
 0x219   : > { %v692_v56 = vmul.f32 %v684_v38, %v684_v38 }
 0x21a   : > { %v4662_v41 = vpack.c.bf16 %v684_v38, %v683_v40  ;;  %v691_v58 = vmul.f32 %v683_v40, %v683_v40 }
 0x21c   : > { %4663 = vmatprep.subr.bf16.mxu0 %v4662_v41 }
 0x21d   : > { %4665 = vmatpush3.bf16.msra.mxu0 %v4662_v41  ;;  %v4345_v41 = vld [vmem:[%s7530_s5 + $0x58] sm:$0xff] }
 0x21e   : > { %v4539_v42 = vpop.f32.mrb[2].mxu1 }
 0x21f   : > { %v686_v43 = vmul.f32 0.001953125, %v4539_v42  ;;  %v589_v44 = vpop.f32.mrb[3].mxu1  ;;  %v4347_v42 = vld [vmem:[%s7530_s5 + $0x68] sm:$0xff] }
 0x220   : > { %v685_v45 = vmul.f32 0.001953125, %v589_v44  ;;  %v4359_v44 = vld [vmem:[%s7530_s5 + $0x88] sm:$0xff] }
 0x221   : > { %v694_v63 = vmul.f32 %v686_v43, %v686_v43 }
 0x222   : > { %v4666_v46 = vpack.c.bf16 %v686_v43, %v685_v45  ;;  %v693_v11 = vmul.f32 %v685_v45, %v685_v45  ;;  %v4349_v43 = vld [vmem:[%s7530_s5 + $0x78] sm:$0xff] }
 0x223   : > { %v4361_v45 = vld [vmem:[%s7530_s5 + $0x98] sm:$0xff] }
 0x224   : > { %4667 = vmatprep.subr.bf16.mxu0 %v4666_v46 }
 0x225   : > { %4669 = vmatpush3.bf16.msra.mxu0 %v4666_v46  ;;  %v1062_v46 = vld [vmem:[%s7530_s5] sm:$0xff] }
 0x226   : > { %v4558_v47 = vpop.f32.mrb[4].mxu1 }
 0x227   : > { %v688_v48 = vmul.f32 0.001953125, %v4558_v47  ;;  %v664_v57 = vpop.f32.mrb[5].mxu1  ;;  %v4363_v47 = vld [vmem:[%s7530_s5 + $0xa8] sm:$0xff] }
 0x228   : > { %v687_v59 = vmul.f32 0.001953125, %v664_v57  ;;  %4571 = vmatmul.mubr.msk.f32.vlgmr.msra.gmra.mrb[0].mxu0 %vm707_vm1, %v5888_v49  ;;  %v4365_v57 = vld [vmem:[%s7530_s5 + $0xb8] sm:$0xff] }
 0x229   : > { %v696_v60 = vsub.f32 %v688_v48, %v692_v56  ;;  %4573 = vmatprep.mubr.msk.f32.mxu0 %vm707_vm1, %v5894_v50  ;;  %v1063_v56 = vld [vmem:[%s7530_s5 + $0x8] sm:$0xff]  ;;  %v5551_v48 = vmov 0.0  }
 0x22a   : > { %v695_v61 = vsub.f32 %v687_v59, %v691_v58  ;;  %v4561_v62 = vpop.f32.mrb[6].mxu1  ;;  %v1064_v58 = vld [vmem:[%s7530_s5 + $0x10] sm:$0xff]  ;;  %v1065_v59 = vld [vmem:[%s7530_s5 + $0x18] sm:$0xff] }
 0x22b   : > { %v700_v3 = vadd.f32 1e-05, %v696_v60  ;;  %v690_v7 = vmul.f32 0.001953125, %v4561_v62  ;;  %v674_v10 = vpop.f32.mrb[7].mxu1  ;;  %v1066_v60 = vld [vmem:[%s7530_s5 + $0x20] sm:$0xff]  ;;  %v1068_v62 = vld [vmem:[%s7530_s5 + $0x30] sm:$0xff] }
 0x22c   : > { %v699_v16 = vadd.f32 1e-05, %v695_v61  ;;  %v689_v17 = vmul.f32 0.001953125, %v674_v10  ;;  %4574 = vmatmul.mubr.msk.f32.gmra.mrb[2].mxu0 %vm707_vm1, %v5900_v51  ;;  %v1067_v61 = vld [vmem:[%s7530_s5 + $0x28] sm:$0xff]  ;;  %v4344_v10 = vld [vmem:[%s7530_s5 + $0x50] sm:$0xff] }
 0x22d   : > { %4989 = vrsqrt.f32 %v700_v3  ;;  %v698_v22 = vsub.f32 %v690_v7, %v694_v63  ;;  %4576 = vmatprep.mubr.msk.f32.mxu0 %vm707_vm1, %v5906_v52  ;;  %v1069_v63 = vld [vmem:[%s7530_s5 + $0x38] sm:$0xff]  ;;  %v4342_v3 = vld [vmem:[%s7530_s5 + $0x40] sm:$0xff]  ;;  %v4343_v7 = vld [vmem:[%s7530_s5 + $0x48] sm:$0xff] }
 0x22e   : > { %4991 = vrsqrt.f32 %v699_v16  ;;  %v697_v23 = vsub.f32 %v689_v17, %v693_v11  ;;  %v4346_v11 = vld [vmem:[%s7530_s5 + $0x60] sm:$0xff]  ;;  %v4348_v16 = vld [vmem:[%s7530_s5 + $0x70] sm:$0xff] }
 0x22f   : > { %v702_v24 = vadd.f32 1e-05, %v698_v22  ;;  %v4358_v17 = vld [vmem:[%s7530_s5 + $0x80] sm:$0xff]  ;;  %v4360_v22 = vld [vmem:[%s7530_s5 + $0x90] sm:$0xff] }
 0x230   : > { %v701_v25 = vadd.f32 1e-05, %v697_v23  ;;  %4577 = vmatmul.mubr.msk.f32.gmra.mrb[4].mxu0 %vm707_vm1, %v5912_v53  ;;  %v4362_v23 = vld [vmem:[%s7530_s5 + $0xa0] sm:$0xff] }
 0x231   : > { %4993 = vrsqrt.f32 %v702_v24  ;;  %4579 = vmatprep.mubr.msk.f32.mxu0 %vm707_vm1, %v5918_v54  ;;  %v4364_v24 = vld [vmem:[%s7530_s5 + $0xb0] sm:$0xff] }
 0x232   : > { %4995 = vrsqrt.f32 %v701_v25 }
 0x234   : > { %4580 = vmatmul.mubr.msk.f32.gmra.mrb[6].mxu0 %vm707_vm1, %v5924_v55 }
 0x235   : > { %1198 = vmatprep.mubr.f32.mxu0 %v5551_v48 }
 0x237   : > { %v4990_v26 = vpop.eup %4989 }
 0x238   : > { %v4992_v27 = vpop.eup %4991 }
 0x239   : > { %v4670_v28 = vpack.c.bf16 %v4990_v26, %v4992_v27 }
 0x23b   : > { %v4994_v29 = vpop.eup %4993  ;;  %4671 = vmatprep.subr.bf16.mxu1 %v4670_v28 }
 0x23c   : > { %v4996_v30 = vpop.eup %4995  ;;  %4673 = vmatpush3.bf16.msra.mxu1 %v4670_v28 }
 0x23d   : > { %v4674_v31 = vpack.c.bf16 %v4994_v29, %v4996_v30 }
 0x23f   : > { %4675 = vmatprep.subr.bf16.mxu1 %v4674_v31 }
 0x240   : > { %4677 = vmatpush3.bf16.msra.mxu1 %v4674_v31 }
 0x243   : > { %4591 = vmatmul.mubr.msk.f32.vlgmr.msra.gmra.mrb[8].mxu1 %vm707_vm1, %v5888_v49 }
 0x244   : > { %4593 = vmatprep.mubr.msk.f32.mxu1 %vm707_vm1, %v5894_v50 }
 0x247   : > { %4594 = vmatmul.mubr.msk.f32.gmra.mrb[10].mxu1 %vm707_vm1, %v5900_v51 }
 0x248   : > { %4596 = vmatprep.mubr.msk.f32.mxu1 %vm707_vm1, %v5906_v52 }
 0x24b   : > { %4597 = vmatmul.mubr.msk.f32.gmra.mrb[12].mxu1 %vm707_vm1, %v5912_v53 }
 0x24c   : > { %4599 = vmatprep.mubr.msk.f32.mxu1 %vm707_vm1, %v5918_v54 }
 0x24f   : > { %4600 = vmatmul.mubr.msk.f32.gmra.mrb[14].mxu1 %vm707_vm1, %v5924_v55 }
 0x250   : > { %1409 = vmatprep.mubr.f32.mxu1 %v5551_v48 }
 0x2fb   : > { %v4572_v32 = vpop.f32.mrb[0].mxu0 }
 0x2fc   : > { %949 = vperm.xlu1 %4987, %v4572_v32   ;;  %v798_v49 = vpop.f32.mrb[1].mxu0 }
 0x2ff   : > { %v4575_v33 = vpop.f32.mrb[2].mxu0 }
 0x300   : > { %944 = vperm.xlu1 %4987, %v798_v49   ;;  %v808_v50 = vpop.f32.mrb[3].mxu0 }
 0x303   : > { %v4578_v34 = vpop.f32.mrb[4].mxu0 }
 0x304   : > { %959 = vperm.xlu1 %4987, %v4575_v33   ;;  %v818_v51 = vpop.f32.mrb[5].mxu0 }
 0x307   : > { %v4581_v35 = vpop.f32.mrb[6].mxu0 }
 0x308   : > { %954 = vperm.xlu1 %4987, %v808_v50   ;;  %v828_v52 = vpop.f32.mrb[7].mxu0 }
 0x30c   : > { %969 = vperm.xlu1 %4987, %v4578_v34  }
 0x310   : > { %964 = vperm.xlu1 %4987, %v818_v51  }
 0x314   : > { %979 = vperm.xlu1 %4987, %v4581_v35  }
 0x316   : > { %v4592_v53 = vpop.f32.mrb[8].mxu1 }
 0x317   : > { %v903_v54 = vpop.f32.mrb[9].mxu1 }
 0x318   : > { %974 = vperm.xlu1 %4987, %v828_v52  }
 0x31a   : > { %v4595_v36 = vpop.f32.mrb[10].mxu1 }
 0x31b   : > { %v913_v55 = vpop.f32.mrb[11].mxu1 }
 0x31c   : > { %1005 = vperm.xlu1 %4987, %v4592_v53  }
 0x31e   : > { %v4598_v37 = vpop.f32.mrb[12].mxu1 }
 0x31f   : > { %v923_v38 = vpop.f32.mrb[13].mxu1 }
 0x320   : > { %1000 = vperm.xlu1 %4987, %v903_v54  }
 0x322   : > { %v4601_v39 = vpop.f32.mrb[14].mxu1 }
 0x323   : > { %1035 = vperm.xlu0 %4988, %v4601_v39   ;;  %v933_v40 = vpop.f32.mrb[15].mxu1 }
 0x324   : > { %1015 = vperm.xlu1 %4987, %v4595_v36  }
 0x327   : > { %1298 = vperm.xlu0 %4988, %v4345_v41  }
 0x328   : > { %1010 = vperm.xlu1 %4987, %v913_v55  }
 0x32b   : > { %1308 = vperm.xlu0 %4988, %v4347_v42  }
 0x32c   : > { %1025 = vperm.xlu1 %4987, %v4598_v37  }
 0x32f   : > { %1318 = vperm.xlu0 %4988, %v4349_v43  }
 0x330   : > { %1020 = vperm.xlu1 %4987, %v923_v38  }
 0x333   : > { %1499 = vperm.xlu0 %4988, %v4359_v44  }
 0x334   : > { %1030 = vperm.xlu1 %4987, %v933_v40  }
 0x337   : > { %1509 = vperm.xlu0 %4988, %v4361_v45  }
 0x338   : > { %1072 = vperm.xlu1 %4987, %v1062_v46  }
 0x33b   : > { %1519 = vperm.xlu0 %4988, %v4363_v47  }
 0x33c   : > { %1077 = vperm.xlu1 %4987, %v1063_v56  }
 0x33f   : > { %1529 = vperm.xlu0 %4988, %v4365_v57  }
 0x340   : > { %1082 = vperm.xlu1 %4987, %v1064_v58  }
 0x344   : > { %1087 = vperm.xlu1 %4987, %v1065_v59  }
 0x348   : > { %1092 = vperm.xlu1 %4987, %v1066_v60  }
 0x34c   : > { %1097 = vperm.xlu1 %4987, %v1067_v61  }
 0x350   : > { %1102 = vperm.xlu1 %4987, %v1068_v62  }
 0x354   : > { %1107 = vperm.xlu1 %4987, %v1069_v63  }
 0x358   : > { %1283 = vperm.xlu1 %4987, %v4342_v3  }
 0x35c   : > { %1288 = vperm.xlu1 %4987, %v4343_v7  }
 0x360   : > { %1293 = vperm.xlu1 %4987, %v4344_v10  }
 0x364   : > { %1303 = vperm.xlu1 %4987, %v4346_v11  }
 0x368   : > { %1313 = vperm.xlu1 %4987, %v4348_v16  }
 0x36c   : > { %1494 = vperm.xlu1 %4987, %v4358_v17  }
 0x370   : > { %1504 = vperm.xlu1 %4987, %v4360_v22   ;;  %v1056_v22 = vld [vmem:[#allocation8 + $0x10] sm:$0xff] }
 0x374   : > { %1514 = vperm.xlu1 %4987, %v4362_v23   ;;  %v1266_v23 = vld [vmem:[#allocation8 + $0x50] sm:$0xff] }
 0x378   : > { %1524 = vperm.xlu1 %4987, %v4364_v24   ;;  %v1057_v24 = vld [vmem:[#allocation8 + $0x18] sm:$0xff] }
 0x37b   : > { %v950_v25 = vpop.permute.xlu1 %949 }
 0x37c   : > { %v984_v33 = vsub.f32 %v5815_v8, %v950_v25  ;;  %v985_v50 = vsub.f32 %v5817_v9, %v950_v25  ;;  %v1267_v25 = vld [vmem:[#allocation8 + $0x58] sm:$0xff] }
 0x37f   : > { %v945_v26 = vpop.permute.xlu1 %944 }
 0x380   : > { %v982_v34 = vsub.f32 %v5803_v2, %v945_v26  ;;  %v983_v51 = vsub.f32 %v5807_v4, %v945_v26  ;;  %v1058_v26 = vld [vmem:[#allocation8 + $0x20] sm:$0xff] }
 0x383   : > { %v960_v27 = vpop.permute.xlu1 %959 }
 0x384   : > { %v988_v8 = vsub.f32 %v5809_v5, %v960_v27  ;;  %v989_v9 = vsub.f32 %v5811_v6, %v960_v27  ;;  %v1268_v27 = vld [vmem:[#allocation8 + $0x60] sm:$0xff] }
 0x387   : > { %v955_v28 = vpop.permute.xlu1 %954 }
 0x388   : > { %v986_v2 = vsub.f32 %v5799_v0, %v955_v28  ;;  %v987_v4 = vsub.f32 %v5801_v1, %v955_v28  ;;  %v1059_v28 = vld [vmem:[#allocation8 + $0x28] sm:$0xff] }
 0x38b   : > { %v970_v29 = vpop.permute.xlu1 %969 }
 0x38c   : > { %v992_v5 = vsub.f32 %v5823_v12, %v970_v29  ;;  %v993_v6 = vsub.f32 %v5825_v13, %v970_v29  ;;  %v1269_v29 = vld [vmem:[#allocation8 + $0x68] sm:$0xff] }
 0x38f   : > { %v965_v30 = vpop.permute.xlu1 %964 }
 0x390   : > { %v990_v0 = vsub.f32 %v5827_v14, %v965_v30  ;;  %v991_v1 = vsub.f32 %v5829_v15, %v965_v30  ;;  %v1060_v30 = vld [vmem:[#allocation8 + $0x30] sm:$0xff] }
 0x393   : > { %v980_v31 = vpop.permute.xlu1 %979 }
 0x394   : > { %v996_v61 = vsub.f32 %v5835_v18, %v980_v31  ;;  %v997_v62 = vsub.f32 %v5837_v19, %v980_v31  ;;  %v1054_v18 = vld [vmem:[#allocation8] sm:$0xff]  ;;  %v1270_v31 = vld [vmem:[#allocation8 + $0x70] sm:$0xff] }
 0x395   : > { %v1264_v19 = vld [vmem:[#allocation8 + $0x40] sm:$0xff] }
 0x397   : > { %v975_v32 = vpop.permute.xlu1 %974 }
 0x398   : > { %v994_v63 = vsub.f32 %v5839_v20, %v975_v32  ;;  %v995_v12 = vsub.f32 %v5841_v21, %v975_v32  ;;  %v1055_v20 = vld [vmem:[#allocation8 + $0x8] sm:$0xff]  ;;  %v1061_v32 = vld [vmem:[#allocation8 + $0x38] sm:$0xff] }
 0x399   : > { %v1265_v21 = vld [vmem:[#allocation8 + $0x48] sm:$0xff] }
 0x39b   : > { %v1006_v49 = vpop.permute.xlu1 %1005 }
 0x39c   : > { %v1040_v52 = vmul.f32 %v1006_v49, %v984_v33  ;;  %v1041_v53 = vmul.f32 %v1006_v49, %v985_v50  ;;  %v1271_v49 = vld [vmem:[#allocation8 + $0x78] sm:$0xff]  ;;  %v1475_v33 = vld [vmem:[#allocation8 + $0x80] sm:$0xff]  ;;  %v1476_v50 = vld [vmem:[#allocation8 + $0x88] sm:$0xff] }
 0x39f   : > { %v1001_v35 = vpop.permute.xlu1 %1000 }
 0x3a0   : > { %v1038_v54 = vmul.f32 %v1001_v35, %v982_v34  ;;  %v1039_v36 = vmul.f32 %v1001_v35, %v983_v51  ;;  %v1477_v34 = vld [vmem:[#allocation8 + $0x90] sm:$0xff]  ;;  %v1478_v51 = vld [vmem:[#allocation8 + $0x98] sm:$0xff]  ;;  %v1479_v35 = vld [vmem:[#allocation8 + $0xa0] sm:$0xff] }
 0x3a2   : > { %v4678_v55 = vpack.c.bf16 %v1041_v53, %v1039_v36  ;;  %v4680_v37 = vpack.c.bf16 %v1040_v52, %v1038_v54  ;;  %v1036_v56 = vpop.permute.xlu0 %1035  ;;  %v1480_v52 = vld [vmem:[#allocation8 + $0xa8] sm:$0xff]  ;;  %v1481_v53 = vld [vmem:[#allocation8 + $0xb0] sm:$0xff]  ;;  %v1482_v54 = vld [vmem:[#allocation8 + $0xb8] sm:$0xff] }
 0x3a3   : > { %v1016_v38 = vpop.permute.xlu1 %1015  ;;  %v1052_v7 = vmul.f32 %v1036_v56, %v996_v61  ;;  %v1053_v10 = vmul.f32 %v1036_v56, %v997_v62 }
 0x3a4   : > { %4679 = vmatprep.subr.bf16.mxu0 %v4678_v55  ;;  %4695 = vmatprep.subr.bf16.mxu1 %v4678_v55  ;;  %v1044_v40 = vmul.f32 %v1016_v38, %v988_v8  ;;  %v1045_v41 = vmul.f32 %v1016_v38, %v989_v9 }
 0x3a5   : > { %4681 = vmatpush1.bf16.msra.mxu0 %v4680_v37  ;;  %4697 = vmatpush1.bf16.msra.mxu1 %v4680_v37 }
 0x3a7   : > { %v1011_v39 = vpop.permute.xlu1 %1010 }
 0x3a8   : > { %v1042_v42 = vmul.f32 %v1011_v39, %v986_v2  ;;  %v1043_v43 = vmul.f32 %v1011_v39, %v987_v4 }
 0x3aa   : > { %v4682_v44 = vpack.c.bf16 %v1045_v41, %v1043_v43  ;;  %v4684_v45 = vpack.c.bf16 %v1044_v40, %v1042_v42 }
 0x3ab   : > { %v1026_v46 = vpop.permute.xlu1 %1025 }
 0x3ac   : > { %4683 = vmatprep.subr.bf16.mxu0 %v4682_v44  ;;  %4699 = vmatprep.subr.bf16.mxu1 %v4682_v44  ;;  %v1048_v57 = vmul.f32 %v1026_v46, %v992_v5  ;;  %v1049_v58 = vmul.f32 %v1026_v46, %v993_v6 }
 0x3ad   : > { %4685 = vmatpush1.bf16.msra.mxu0 %v4684_v45  ;;  %4701 = vmatpush1.bf16.msra.mxu1 %v4684_v45 }
 0x3af   : > { %v1021_v47 = vpop.permute.xlu1 %1020 }
 0x3b0   : > { %v1046_v59 = vmul.f32 %v1021_v47, %v990_v0  ;;  %v1047_v60 = vmul.f32 %v1021_v47, %v991_v1 }
 0x3b2   : > { %v4686_v3 = vpack.c.bf16 %v1049_v58, %v1047_v60  ;;  %v4688_v13 = vpack.c.bf16 %v1048_v57, %v1046_v59 }
 0x3b3   : > { %v1031_v14 = vpop.permute.xlu1 %1030 }
 0x3b4   : > { %v1050_v15 = vmul.f32 %v1031_v14, %v994_v63  ;;  %v1051_v11 = vmul.f32 %v1031_v14, %v995_v12  ;;  %4687 = vmatprep.subr.bf16.mxu0 %v4686_v3  ;;  %4703 = vmatprep.subr.bf16.mxu1 %v4686_v3 }
 0x3b5   : > { %4689 = vmatpush1.bf16.msra.mxu0 %v4688_v13  ;;  %4705 = vmatpush1.bf16.msra.mxu1 %v4688_v13 }
 0x3b6   : > { %v4690_v16 = vpack.c.bf16 %v1053_v10, %v1051_v11  ;;  %v4692_v17 = vpack.c.bf16 %v1052_v7, %v1050_v15  ;;  %v1299_v10 = vpop.permute.xlu0 %1298 }
 0x3b7   : > { %v1073_v36 = vpop.permute.xlu1 %1072 }
 0x3b8   : > { %4691 = vmatprep.subr.bf16.mxu0 %v4690_v16  ;;  %4707 = vmatprep.subr.bf16.mxu1 %v4690_v16 }
 0x3b9   : > { %4693 = vmatpush1.bf16.msra.mxu0 %v4692_v17  ;;  %4709 = vmatpush1.bf16.msra.mxu1 %v4692_v17 }
 0x3ba   : > { %4711 = vmatprep.subr.bf16.mxu0 %v4678_v55 }
 0x3bb   : > { %v1078_v55 = vpop.permute.xlu1 %1077 }
 0x3bc   : > { %4334 = vmatmul.mubr.msk.f32.vlgmr.msra.gmra.mrb[8].mxu0 %vm500_vm0, %v1054_v18  ;;  %4350 = vmatmul.mubr.msk.f32.vlgmr.msra.gmra.mrb[16].mxu1 %vm500_vm0, %v1264_v19 }
 0x3bd   : > { %4713 = vmatpush1.bf16.msra.mxu0 %v4680_v37  ;;  %1204 = vmatprep.mubr.f32.mxu0 %v5551_v48 }
 0x3be   : > { %4715 = vmatprep.subr.bf16.mxu0 %v4682_v44  ;;  %1415 = vmatprep.mubr.f32.mxu1 %v5551_v48 }
 0x3bf   : > { %v1083_v37 = vpop.permute.xlu1 %1082 }
 0x3c0   : > { %4335 = vmatmul.mubr.msk.f32.gmra.mrb[10].mxu0 %vm500_vm0, %v1055_v20  ;;  %4351 = vmatmul.mubr.msk.f32.gmra.mrb[18].mxu1 %vm500_vm0, %v1265_v21 }
 0x3c1   : > { %4717 = vmatpush1.bf16.msra.mxu0 %v4684_v45  ;;  %1210 = vmatprep.mubr.f32.mxu0 %v5551_v48 }
 0x3c2   : > { %4719 = vmatprep.subr.bf16.mxu0 %v4686_v3  ;;  %1421 = vmatprep.mubr.f32.mxu1 %v5551_v48 }
 0x3c3   : > { %v1088_v38 = vpop.permute.xlu1 %1087 }
 0x3c4   : > { %4336 = vmatmul.mubr.msk.f32.gmra.mrb[12].mxu0 %vm500_vm0, %v1056_v22  ;;  %4352 = vmatmul.mubr.msk.f32.gmra.mrb[20].mxu1 %vm500_vm0, %v1266_v23 }
 0x3c5   : > { %4721 = vmatpush1.bf16.msra.mxu0 %v4688_v13  ;;  %1216 = vmatprep.mubr.f32.mxu0 %v5551_v48 }
 0x3c6   : > { %4723 = vmatprep.subr.bf16.mxu0 %v4690_v16  ;;  %1427 = vmatprep.mubr.f32.mxu1 %v5551_v48 }
 0x3c7   : > { %v6103_v8 = vpop.permute.xlu1 %1092 }
 0x3c8   : > { %4337 = vmatmul.mubr.msk.f32.gmra.mrb[14].mxu0 %vm500_vm0, %v1057_v24  ;;  %4353 = vmatmul.mubr.msk.f32.gmra.mrb[22].mxu1 %vm500_vm0, %v1267_v25 }
 0x3c9   : > { %4725 = vmatpush1.bf16.msra.mxu0 %v4692_v17  ;;  %1222 = vmatprep.mubr.f32.mxu0 %v5551_v48 }
 0x3ca   : > { %1433 = vmatprep.mubr.f32.mxu1 %v5551_v48 }
 0x3cb   : > { %v6105_v9 = vpop.permute.xlu1 %1097 }
 0x3cc   : > { %4338 = vmatmul.mubr.msk.f32.gmra.mrb[16].mxu0 %vm500_vm0, %v1058_v26  ;;  %4354 = vmatmul.mubr.msk.f32.gmra.mrb[24].mxu1 %vm500_vm0, %v1268_v27 }
 0x3cd   : > { %1228 = vmatprep.mubr.f32.mxu0 %v5551_v48  ;;  %1439 = vmatprep.mubr.f32.mxu1 %v5551_v48 }
 0x3cf   : > { %v6107_v2 = vpop.permute.xlu1 %1102 }
 0x3d0   : > { %4339 = vmatmul.mubr.msk.f32.gmra.mrb[18].mxu0 %vm500_vm0, %v1059_v28  ;;  %4355 = vmatmul.mubr.msk.f32.gmra.mrb[26].mxu1 %vm500_vm0, %v1269_v29 }
 0x3d1   : > { %1234 = vmatprep.mubr.f32.mxu0 %v5551_v48  ;;  %1445 = vmatprep.mubr.f32.mxu1 %v5551_v48 }
 0x3d3   : > { %v6109_v4 = vpop.permute.xlu1 %1107 }
 0x3d4   : > { %4340 = vmatmul.mubr.msk.f32.gmra.mrb[20].mxu0 %vm500_vm0, %v1060_v30  ;;  %4356 = vmatmul.mubr.msk.f32.gmra.mrb[28].mxu1 %vm500_vm0, %v1270_v31  ;;  %v1309_v31 = vpop.permute.xlu0 %1308 }
 0x3d5   : > { %1240 = vmatprep.mubr.f32.mxu0 %v5551_v48  ;;  %1451 = vmatprep.mubr.f32.mxu1 %v5551_v48 }
 0x3d7   : > { %v1284_v39 = vpop.permute.xlu1 %1283 }
 0x3d8   : > { %4341 = vmatmul.mubr.msk.f32.gmra.mrb[22].mxu0 %vm500_vm0, %v1061_v32  ;;  %4357 = vmatmul.mubr.msk.f32.gmra.mrb[30].mxu1 %vm500_vm0, %v1271_v49 }
 0x3d9   : > { %1620 = vmatprep.mubr.f32.mxu0 %v5551_v48 }
 0x3db   : > { %v1289_v40 = vpop.permute.xlu1 %1288 }
 0x3dc   : > { %4366 = vmatmul.mubr.msk.f32.vlgmr.msra.gmra.mrb[24].mxu0 %vm500_vm0, %v1475_v33 }
 0x3dd   : > { %1626 = vmatprep.mubr.f32.mxu0 %v5551_v48 }
 0x3df   : > { %v1294_v60 = vpop.permute.xlu1 %1293 }
 0x3e0   : > { %4367 = vmatmul.mubr.msk.f32.gmra.mrb[26].mxu0 %vm500_vm0, %v1476_v50 }
 0x3e1   : > { %1632 = vmatprep.mubr.f32.mxu0 %v5551_v48 }
 0x3e3   : > { %v1304_v22 = vpop.permute.xlu1 %1303 }
 0x3e4   : > { %4368 = vmatmul.mubr.msk.f32.gmra.mrb[28].mxu0 %vm500_vm0, %v1477_v34 }
 0x3e5   : > { %1638 = vmatprep.mubr.f32.mxu0 %v5551_v48 }
 0x3e8   : > { %4369 = vmatmul.mubr.msk.f32.gmra.mrb[30].mxu0 %vm500_vm0, %v1478_v51 }
 0x3e9   : > { %1644 = vmatprep.mubr.f32.mxu0 %v5551_v48 }
 0x3ec   : > { %4370 = vmatmul.mubr.msk.f32.gmra.mrb[32].mxu0 %vm500_vm0, %v1479_v35 }
 0x3ed   : > { %1650 = vmatprep.mubr.f32.mxu0 %v5551_v48 }
 0x3f0   : > { %4371 = vmatmul.mubr.msk.f32.gmra.mrb[34].mxu0 %vm500_vm0, %v1480_v52 }
 0x3f1   : > { %1656 = vmatprep.mubr.f32.mxu0 %v5551_v48 }
 0x3f4   : > { %4372 = vmatmul.mubr.msk.f32.gmra.mrb[36].mxu0 %vm500_vm0, %v1481_v53  ;;  %v1314_v53 = vpop.permute.xlu1 %1313 }
 0x3f5   : > { %1662 = vmatprep.mubr.f32.mxu0 %v5551_v48 }
 0x3f8   : > { %4373 = vmatmul.mubr.msk.f32.gmra.mrb[38].mxu0 %vm500_vm0, %v1482_v54 }
 0x48f   : > { %v1200_v41 = vpop.f32.mrb[8].mxu0  ;;  %v1411_v42 = vpop.f32.mrb[16].mxu1 }
 0x490   : > { %v1201_v48 = vadd.f32 %v1200_v41, %v1073_v36  ;;  %v1412_v43 = vadd.f32 %v1411_v42, %v1284_v39  ;;  %v1202_v44 = vpop.f32.mrb[9].mxu0  ;;  %v1413_v45 = vpop.f32.mrb[17].mxu1 }
 0x491   : > { %v1203_v46 = vadd.f32 %v1202_v44, %v1073_v36  ;;  %v1414_v5 = vadd.f32 %v1413_v45, %v1284_v39  ;;  %v1319_v41 = vpop.permute.xlu0 %1318 }
 0x492   : > { %1247 = vst [vmem:[#allocation2] sm:$0xff] %v1201_v48  ;;  %1458 = vst [vmem:[#allocation3] sm:$0xff] %v1412_v43 }
 0x493   : > { %1248 = vst [vmem:[#allocation2 + $0x8] sm:$0xff] %v1203_v46  ;;  %1459 = vst [vmem:[#allocation3 + $0x8] sm:$0xff] %v1414_v5  ;;  %v1206_v6 = vpop.f32.mrb[10].mxu0  ;;  %v1417_v0 = vpop.f32.mrb[18].mxu1 }
 0x494   : > { %v1207_v1 = vadd.f32 %v1206_v6, %v1078_v55  ;;  %v1418_v47 = vadd.f32 %v1417_v0, %v1289_v40  ;;  %v1208_v56 = vpop.f32.mrb[11].mxu0  ;;  %v1419_v57 = vpop.f32.mrb[19].mxu1 }
 0x495   : > { %v1209_v58 = vadd.f32 %v1208_v56, %v1078_v55  ;;  %v1420_v59 = vadd.f32 %v1419_v57, %v1289_v40  ;;  %v1495_v6 = vpop.permute.xlu1 %1494  ;;  %v1500_v56 = vpop.permute.xlu0 %1499 }
 0x496   : > { %1249 = vst [vmem:[#allocation2 + $0x10] sm:$0xff] %v1207_v1  ;;  %1460 = vst [vmem:[#allocation3 + $0x10] sm:$0xff] %v1418_v47 }
 0x497   : > { %1250 = vst [vmem:[#allocation2 + $0x18] sm:$0xff] %v1209_v58  ;;  %1461 = vst [vmem:[#allocation3 + $0x18] sm:$0xff] %v1420_v59  ;;  %v1212_v61 = vpop.f32.mrb[12].mxu0  ;;  %v1423_v62 = vpop.f32.mrb[20].mxu1 }
 0x498   : > { %v1213_v63 = vadd.f32 %v1212_v61, %v1083_v37  ;;  %v1424_v12 = vadd.f32 %v1423_v62, %v1294_v60  ;;  %v1214_v3 = vpop.f32.mrb[13].mxu0  ;;  %v1425_v13 = vpop.f32.mrb[21].mxu1 }
 0x499   : > { %v1215_v7 = vadd.f32 %v1214_v3, %v1083_v37  ;;  %v1426_v14 = vadd.f32 %v1425_v13, %v1294_v60  ;;  %v1505_v61 = vpop.permute.xlu1 %1504  ;;  %v1510_v3 = vpop.permute.xlu0 %1509 }
 0x49a   : > { %1251 = vst [vmem:[#allocation2 + $0x20] sm:$0xff] %v1213_v63  ;;  %1462 = vst [vmem:[#allocation3 + $0x20] sm:$0xff] %v1424_v12 }
 0x49b   : > { %1252 = vst [vmem:[#allocation2 + $0x28] sm:$0xff] %v1215_v7  ;;  %1463 = vst [vmem:[#allocation3 + $0x28] sm:$0xff] %v1426_v14  ;;  %v1218_v15 = vpop.f32.mrb[14].mxu0  ;;  %v1429_v11 = vpop.f32.mrb[22].mxu1 }
 0x49c   : > { %v1219_v16 = vadd.f32 %v1218_v15, %v1088_v38  ;;  %v1430_v17 = vadd.f32 %v1429_v11, %v1299_v10  ;;  %v1220_v18 = vpop.f32.mrb[15].mxu0  ;;  %v1431_v19 = vpop.f32.mrb[23].mxu1 }
 0x49d   : > { %v1221_v20 = vadd.f32 %v1220_v18, %v1088_v38  ;;  %v1432_v21 = vadd.f32 %v1431_v19, %v1299_v10  ;;  %v1515_v15 = vpop.permute.xlu1 %1514  ;;  %v1520_v19 = vpop.permute.xlu0 %1519 }
 0x49e   : > { %1253 = vst [vmem:[#allocation2 + $0x30] sm:$0xff] %v1219_v16  ;;  %1464 = vst [vmem:[#allocation3 + $0x30] sm:$0xff] %v1430_v17 }
 0x49f   : > { %1254 = vst [vmem:[#allocation2 + $0x38] sm:$0xff] %v1221_v20  ;;  %1465 = vst [vmem:[#allocation3 + $0x38] sm:$0xff] %v1432_v21  ;;  %v1224_v23 = vpop.f32.mrb[16].mxu0  ;;  %v1435_v24 = vpop.f32.mrb[24].mxu1 }
 0x4a0   : > { %v1225_v25 = vadd.f32 %v1224_v23, %v6103_v8  ;;  %v1436_v26 = vadd.f32 %v1435_v24, %v1304_v22  ;;  %v1226_v27 = vpop.f32.mrb[17].mxu0  ;;  %v1437_v28 = vpop.f32.mrb[25].mxu1 }
 0x4a1   : > { %v1227_v29 = vadd.f32 %v1226_v27, %v6103_v8  ;;  %v1438_v30 = vadd.f32 %v1437_v28, %v1304_v22  ;;  %v1525_v24 = vpop.permute.xlu1 %1524 }
 0x4a2   : > { %1255 = vst [vmem:[#allocation2 + $0x40] sm:$0xff] %v1225_v25  ;;  %1466 = vst [vmem:[#allocation3 + $0x40] sm:$0xff] %v1436_v26 }
 0x4a3   : > { %1256 = vst [vmem:[#allocation2 + $0x48] sm:$0xff] %v1227_v29  ;;  %1467 = vst [vmem:[#allocation3 + $0x48] sm:$0xff] %v1438_v30  ;;  %v1230_v32 = vpop.f32.mrb[18].mxu0  ;;  %v1441_v49 = vpop.f32.mrb[26].mxu1 }
 0x4a4   : > { %v1231_v33 = vadd.f32 %v1230_v32, %v6105_v9  ;;  %v1442_v50 = vadd.f32 %v1441_v49, %v1309_v31  ;;  %v1232_v34 = vpop.f32.mrb[19].mxu0  ;;  %v1443_v51 = vpop.f32.mrb[27].mxu1 }
 0x4a5   : > { %v1233_v35 = vadd.f32 %v1232_v34, %v6105_v9  ;;  %v1444_v52 = vadd.f32 %v1443_v51, %v1309_v31  ;;  %v1530_v29 = vpop.permute.xlu0 %1529 }
 0x4a6   : > { %1257 = vst [vmem:[#allocation2 + $0x50] sm:$0xff] %v1231_v33  ;;  %1468 = vst [vmem:[#allocation3 + $0x50] sm:$0xff] %v1442_v50 }
 0x4a7   : > { %1258 = vst [vmem:[#allocation2 + $0x58] sm:$0xff] %v1233_v35  ;;  %1469 = vst [vmem:[#allocation3 + $0x58] sm:$0xff] %v1444_v52  ;;  %v1236_v54 = vpop.f32.mrb[20].mxu0  ;;  %v1447_v36 = vpop.f32.mrb[28].mxu1 }
 0x4a8   : > { %v1237_v55 = vadd.f32 %v1236_v54, %v6107_v2  ;;  %v1448_v37 = vadd.f32 %v1447_v36, %v1314_v53  ;;  %v1238_v38 = vpop.f32.mrb[21].mxu0  ;;  %v1449_v8 = vpop.f32.mrb[29].mxu1 }
 0x4a9   : > { %v1239_v39 = vadd.f32 %v1238_v38, %v6107_v2  ;;  %v1450_v40 = vadd.f32 %v1449_v8, %v1314_v53 }
 0x4aa   : > { %1259 = vst [vmem:[#allocation2 + $0x60] sm:$0xff] %v1237_v55  ;;  %1470 = vst [vmem:[#allocation3 + $0x60] sm:$0xff] %v1448_v37 }
 0x4ab   : > { %1260 = vst [vmem:[#allocation2 + $0x68] sm:$0xff] %v1239_v39  ;;  %1471 = vst [vmem:[#allocation3 + $0x68] sm:$0xff] %v1450_v40  ;;  %v1242_v9 = vpop.f32.mrb[22].mxu0  ;;  %v1453_v42 = vpop.f32.mrb[30].mxu1 }
 0x4ac   : > { %v1243_v48 = vadd.f32 %v1242_v9, %v6109_v4  ;;  %v1454_v43 = vadd.f32 %v1453_v42, %v1319_v41  ;;  %v1244_v44 = vpop.f32.mrb[23].mxu0  ;;  %v1455_v45 = vpop.f32.mrb[31].mxu1 }
 0x4ad   : > { %v1245_v46 = vadd.f32 %v1244_v44, %v6109_v4  ;;  %v1456_v5 = vadd.f32 %v1455_v45, %v1319_v41 }
 0x4ae   : > { %1261 = vst [vmem:[#allocation2 + $0x70] sm:$0xff] %v1243_v48  ;;  %1472 = vst [vmem:[#allocation3 + $0x70] sm:$0xff] %v1454_v43 }
 0x4af   : > { %1262 = vst [vmem:[#allocation2 + $0x78] sm:$0xff] %v1245_v46  ;;  %1473 = vst [vmem:[#allocation3 + $0x78] sm:$0xff] %v1456_v5  ;;  %v1622_v2 = vpop.f32.mrb[24].mxu0 }
 0x4b0   : > { %v1623_v0 = vadd.f32 %v1622_v2, %v1495_v6  ;;  %v1624_v1 = vpop.f32.mrb[25].mxu0 }
 0x4b1   : > { %v1625_v47 = vadd.f32 %v1624_v1, %v1495_v6 }
 0x4b2   : > { %1669 = vst [vmem:[#allocation4] sm:$0xff] %v1623_v0 }
 0x4b3   : > { %1670 = vst [vmem:[#allocation4 + $0x8] sm:$0xff] %v1625_v47  ;;  %v1628_v57 = vpop.f32.mrb[26].mxu0 }
 0x4b4   : > { %v1629_v58 = vadd.f32 %v1628_v57, %v1500_v56  ;;  %v1630_v59 = vpop.f32.mrb[27].mxu0 }
 0x4b5   : > { %v1631_v60 = vadd.f32 %v1630_v59, %v1500_v56 }
 0x4b6   : > { %1671 = vst [vmem:[#allocation4 + $0x10] sm:$0xff] %v1629_v58 }
 0x4b7   : > { %1672 = vst [vmem:[#allocation4 + $0x18] sm:$0xff] %v1631_v60  ;;  %v1634_v4 = vpop.f32.mrb[28].mxu0 }
 0x4b8   : > { %v1635_v62 = vadd.f32 %v1634_v4, %v1505_v61  ;;  %v1636_v63 = vpop.f32.mrb[29].mxu0 }
 0x4b9   : > { %v1637_v12 = vadd.f32 %v1636_v63, %v1505_v61 }
 0x4ba   : > { %1673 = vst [vmem:[#allocation4 + $0x20] sm:$0xff] %v1635_v62 }
 0x4bb   : > { %1674 = vst [vmem:[#allocation4 + $0x28] sm:$0xff] %v1637_v12  ;;  %v1640_v13 = vpop.f32.mrb[30].mxu0 }
 0x4bc   : > { %v1641_v7 = vadd.f32 %v1640_v13, %v1510_v3  ;;  %v1642_v14 = vpop.f32.mrb[31].mxu0 }
 0x4bd   : > { %v1643_v10 = vadd.f32 %v1642_v14, %v1510_v3 }
 0x4be   : > { %1675 = vst [vmem:[#allocation4 + $0x30] sm:$0xff] %v1641_v7 }
 0x4bf   : > { %1676 = vst [vmem:[#allocation4 + $0x38] sm:$0xff] %v1643_v10  ;;  %v1646_v11 = vpop.f32.mrb[32].mxu0 }
 0x4c0   : > { %v1647_v16 = vadd.f32 %v1646_v11, %v1515_v15  ;;  %v1648_v17 = vpop.f32.mrb[33].mxu0 }
 0x4c1   : > { %v1649_v18 = vadd.f32 %v1648_v17, %v1515_v15 }
 0x4c2   : > { %1677 = vst [vmem:[#allocation4 + $0x40] sm:$0xff] %v1647_v16 }
 0x4c3   : > { %1678 = vst [vmem:[#allocation4 + $0x48] sm:$0xff] %v1649_v18  ;;  %v1652_v20 = vpop.f32.mrb[34].mxu0 }
 0x4c4   : > { %v1653_v21 = vadd.f32 %v1652_v20, %v1520_v19  ;;  %v1654_v22 = vpop.f32.mrb[35].mxu0 }
 0x4c5   : > { %v1655_v23 = vadd.f32 %v1654_v22, %v1520_v19 }
 0x4c6   : > { %1679 = vst [vmem:[#allocation4 + $0x50] sm:$0xff] %v1653_v21 }
 0x4c7   : > { %1680 = vst [vmem:[#allocation4 + $0x58] sm:$0xff] %v1655_v23  ;;  %v1658_v25 = vpop.f32.mrb[36].mxu0 }
 0x4c8   : > { %v1659_v26 = vadd.f32 %v1658_v25, %v1525_v24  ;;  %v1660_v27 = vpop.f32.mrb[37].mxu0 }
 0x4c9   : > { %v1661_v28 = vadd.f32 %v1660_v27, %v1525_v24 }
 0x4ca   : > { %1681 = vst [vmem:[#allocation4 + $0x60] sm:$0xff] %v1659_v26 }
 0x4cb   : > { %1682 = vst [vmem:[#allocation4 + $0x68] sm:$0xff] %v1661_v28  ;;  %v1664_v30 = vpop.f32.mrb[38].mxu0 }
 0x4cc   : > { %v1665_v31 = vadd.f32 %v1664_v30, %v1530_v29  ;;  %v1666_v32 = vpop.f32.mrb[39].mxu0 }
 0x4cd   : > { %v1667_v49 = vadd.f32 %v1666_v32, %v1530_v29 }
 0x4ce   : > { %1683 = vst [vmem:[#allocation4 + $0x70] sm:$0xff] %v1665_v31 }
 0x4cf   : > { %1684 = vst [vmem:[#allocation4 + $0x78] sm:$0xff] %v1667_v49 }
 0x4d0 PF: > { %s4374_s16 = sshll.u32 %s5527_s29, 7  ;;  %v1699_v33 = vld [vmem:[#allocation3 + $0x8] sm:$0xff]  ;;  %v1701_v50 = vld [vmem:[#allocation3 + $0x18] sm:$0xff]  ;;  %v1698_v34 = vld [vmem:[#allocation3] sm:$0xff]  ;;  %v5552_v52 = vmov 0.0   ;;  %vm1762_vm2 = vcmask 130048  }
 0x4d1   : > { %s1686_s15 = sshra.s32 %s4374_s16, 7  ;;  %v4726_v51 = vpack.c.bf16 %v1701_v50, %v1699_v33  ;;  %v1700_v35 = vld [vmem:[#allocation3 + $0x10] sm:$0xff]  ;;  %1875 = vmatprep.mubr.f32.mxu0 %v5552_v52  ;;  %1953 = vmatprep.mubr.f32.mxu1 %v5552_v52  ;;  %v1707_v38 = vld [vmem:[#allocation3 + $0x48] sm:$0xff]  ;;  %v1709_v8 = vld [vmem:[#allocation3 + $0x58] sm:$0xff]  ;;  %vm4011_vm3 = vcmask 523264   ;;  %s4449_s20 = sshll.u32 %s5531_s30, 4 }
 0x4d2   : > { %s4375_s17 = sshll.u32 %s1686_s15, 3  ;;  %v4728_v53 = vpack.c.bf16 %v1700_v35, %v1698_v34  ;;  %v4734_v39 = vpack.c.bf16 %v1709_v8, %v1707_v38  ;;  %v1703_v9 = vld [vmem:[#allocation3 + $0x28] sm:$0xff]  ;;  %v1705_v42 = vld [vmem:[#allocation3 + $0x38] sm:$0xff]  ;;  %v1706_v45 = vld [vmem:[#allocation3 + $0x40] sm:$0xff]  ;;  %s4177_s12 = sadd.s32 %s5527_s29, %s4449_s20 }
 0x4d3   : > { %4727 = vmatprep.subr.bf16.mxu0 %v4726_v51  ;;  %4886 = vmatprep.subr.bf16.mxu1 %v4726_v51  ;;  %s1689_s11 = scalar_lea.vmem [#allocation2], %s4375_s17  ;;  %v4730_v48 = vpack.c.bf16 %v1705_v42, %v1703_v9  ;;  %v1708_v46 = vld [vmem:[#allocation3 + $0x50] sm:$0xff]  ;;  %v1702_v10 = vld [vmem:[#allocation3 + $0x20] sm:$0xff]  ;;  %v1711_v16 = vld [vmem:[#allocation3 + $0x68] sm:$0xff]  ;;  %s4180_s26 = sshll.u32 %s5796_s4, 4  ;;  %s7464_s26 = int_to_ptr.vmem [resolvable:$true] %s4180_s26 }
 0x4d4   : > { %v1690_v54 = vld [vmem:[%s1689_s11] sm:$0xff]  ;;  %4729 = vmatpush1.bf16.msra.mxu0 %v4728_v53  ;;  %4887 = vmatpush1.bf16.msra.mxu1 %v4728_v53  ;;  %v1691_v55 = vld [vmem:[%s1689_s11 + $0x10] sm:$0xff]  ;;  %v4736_v5 = vpack.c.bf16 %v1708_v46, %v1706_v45  ;;  %v1713_v17 = vld [vmem:[#allocation3 + $0x78] sm:$0xff]  ;;  %s4450_s30 = sshll.u32 %s4177_s12, 7  ;;  %s8057_s15 = sld [smem:[#allocation120_spill]] }
 0x4d5   : > { %v1692_v36 = vld [vmem:[%s1689_s11 + $0x20] sm:$0xff]  ;;  %1730 = vxpose.xlu0.b32.start [1/2] (short) %v1690_v54, 128  ;;  %v1693_v37 = vld [vmem:[%s1689_s11 + $0x30] sm:$0xff]  ;;  %4735 = vmatprep.subr.bf16.mxu0 %v4734_v39  ;;  %v4738_v19 = vpack.c.bf16 %v1713_v17, %v1711_v16  ;;  %s5441_s14 = scalar_lea.vmem %s7464_s26, 1024  ;;  %p8058_p0 = scmp.ne.s32.totalorder %s7717_s18, 0 }
 0x4d6   : > { %1972 = vxpose.xlu1.b32.start [1/2] (short) %v1692_v36, 128  ;;  %v1694_v40 = vld [vmem:[%s1689_s11 + $0x40] sm:$0xff]  ;;  %v1695_v43 = vld [vmem:[%s1689_s11 + $0x50] sm:$0xff]  ;;  %4731 = vmatprep.subr.bf16.mxu1 %v4730_v48  ;;  %p5442_p5 = scmp.ne.s32.totalorder %s7464_s26, %s5441_s14 }
 0x4d7   : > { %v1696_v41 = vld [vmem:[%s1689_s11 + $0x60] sm:$0xff]  ;;  %v1697_v44 = vld [vmem:[%s1689_s11 + $0x70] sm:$0xff]  ;;  %s4166_s11 = scalar_lea.sflag [#allocation7], %s5777_s21 }
 0x4d8   : > { %v1704_v15 = vld [vmem:[#allocation3 + $0x30] sm:$0xff]  ;;  %v1710_v25 = vld [vmem:[#allocation3 + $0x60] sm:$0xff]  ;;  %p5443_p3 = pnand %p5442_p5, %p8058_p0 }
 0x4d9   : > { %1731 = vxpose.xlu0.b32.end [2/2] (short) %v1691_v55, 128  ;;  %v4732_v18 = vpack.c.bf16 %v1704_v15, %v1702_v10  ;;  %v1712_v26 = vld [vmem:[#allocation3 + $0x70] sm:$0xff] }
 0x4da   : > { %1973 = vxpose.xlu1.b32.end [2/2] (short) %v1693_v37, 128  ;;  %v4740_v27 = vpack.c.bf16 %v1712_v26, %v1710_v25  ;;  %s7469_s17 = scalar_lea.hbm %s8057_s15, %s4450_s30  ;;  %p5444_p7 = pneg %p5443_p3 }
 0x512   : > { %2213 = vxpose.xlu0.b32.start [1/2] (short) %v1694_v40, 128 }
 0x513   : > { %2454 = vxpose.xlu1.b32.start [1/2] (short) %v1696_v41, 128 }
 0x516   : > { %2214 = vxpose.xlu0.b32.end [2/2] (short) %v1695_v43, 128 }
 0x517   : > { %2455 = vxpose.xlu1.b32.end [2/2] (short) %v1697_v44, 128 }
 0x555   : > { %v1746_v6 = vpop.trf.xlu0 }
 0x556   : > { %4376 = vmatmul.mubr.msk.f32.vlgmr.msra.gmra.mrb[0].mxu0 %vm1762_vm2, %v1746_v6  ;;  %v1988_v1 = vpop.trf.xlu1 }
 0x557   : > { %1881 = vmatprep.mubr.f32.mxu0 %v5552_v52  ;;  %4737 = vmatpush1.bf16.msra.mxu0 %v4736_v5 }
 0x559   : > { %v1747_v2 = vpop.trf.xlu0 }
 0x55a   : > { %4377 = vmatmul.mubr.msk.f32.gmra.mrb[2].mxu0 %vm1762_vm2, %v1747_v2  ;;  %v1989_v57 = vpop.trf.xlu1 }
 0x55b   : > { %1887 = vmatprep.mubr.f32.mxu0 %v5552_v52 }
 0x55d   : > { %v1748_v0 = vpop.trf.xlu0 }
 0x55e   : > { %4378 = vmatmul.mubr.msk.f32.gmra.mrb[4].mxu0 %vm1762_vm2, %v1748_v0  ;;  %v1990_v59 = vpop.trf.xlu1 }
 0x55f   : > { %1893 = vmatprep.mubr.f32.mxu0 %v5552_v52 }
 0x561   : > { %v1749_v47 = vpop.trf.xlu0 }
 0x562   : > { %4379 = vmatmul.mubr.msk.f32.gmra.mrb[6].mxu0 %vm1762_vm2, %v1749_v47  ;;  %v6136_v4 = vpop.trf.xlu1 }
 0x563   : > { %1899 = vmatprep.mubr.f32.mxu0 %v5552_v52 }
 0x565   : > { %v1750_v56 = vpop.trf.xlu0 }
 0x566   : > { %4380 = vmatmul.mubr.msk.f32.gmra.mrb[8].mxu0 %vm1762_vm2, %v1750_v56  ;;  %v1992_v63 = vpop.trf.xlu1 }
 0x567   : > { %1905 = vmatprep.mubr.f32.mxu0 %v5552_v52 }
 0x569   : > { %v1751_v58 = vpop.trf.xlu0 }
 0x56a   : > { %4381 = vmatmul.mubr.msk.f32.gmra.mrb[10].mxu0 %vm1762_vm2, %v1751_v58  ;;  %v6144_v13 = vpop.trf.xlu1 }
 0x56b   : > { %1911 = vmatprep.mubr.f32.mxu0 %v5552_v52 }
 0x56d   : > { %v1752_v60 = vpop.trf.xlu0 }
 0x56e   : > { %4382 = vmatmul.mubr.msk.f32.gmra.mrb[12].mxu0 %vm1762_vm2, %v1752_v60  ;;  %v6150_v14 = vpop.trf.xlu1 }
 0x56f   : > { %1917 = vmatprep.mubr.f32.mxu0 %v5552_v52 }
 0x571   : > { %v1753_v61 = vpop.trf.xlu0 }
 0x572   : > { %4383 = vmatmul.mubr.msk.f32.gmra.mrb[14].mxu0 %vm1762_vm2, %v1753_v61  ;;  %v1995_v21 = vpop.trf.xlu1 }
 0x573   : > { %1923 = vmatprep.mubr.f32.mxu0 %v5552_v52 }
 0x575   : > { %v1754_v62 = vpop.trf.xlu0 }
 0x576   : > { %4384 = vmatmul.mubr.msk.f32.gmra.mrb[16].mxu0 %vm1762_vm2, %v1754_v62  ;;  %v1996_v23 = vpop.trf.xlu1 }
 0x577   : > { %1929 = vmatprep.mubr.f32.mxu0 %v5552_v52 }
 0x579   : > { %v1755_v12 = vpop.trf.xlu0 }
 0x57a   : > { %4385 = vmatmul.mubr.msk.f32.gmra.mrb[18].mxu0 %vm1762_vm2, %v1755_v12  ;;  %v1997_v29 = vpop.trf.xlu1 }
 0x57b   : > { %1935 = vmatprep.mubr.f32.mxu0 %v5552_v52 }
 0x57d   : > { %v1756_v3 = vpop.trf.xlu0 }
 0x57e   : > { %4386 = vmatmul.mubr.msk.f32.gmra.mrb[20].mxu0 %vm1762_vm2, %v1756_v3  ;;  %v1998_v31 = vpop.trf.xlu1 }
 0x57f   : > { %1941 = vmatprep.mubr.f32.mxu0 %v5552_v52 }
 0x581   : > { %v1757_v7 = vpop.trf.xlu0 }
 0x582   : > { %4387 = vmatmul.mubr.msk.f32.gmra.mrb[22].mxu0 %vm1762_vm2, %v1757_v7  ;;  %v1999_v33 = vpop.trf.xlu1 }
 0x583   : > { %1947 = vmatprep.mubr.f32.mxu0 %v5552_v52 }
 0x585   : > { %v1758_v11 = vpop.trf.xlu0 }
 0x586   : > { %4388 = vmatmul.mubr.msk.f32.gmra.mrb[24].mxu0 %vm1762_vm2, %v1758_v11  ;;  %v2000_v34 = vpop.trf.xlu1 }
 0x587   : > { %2357 = vmatprep.mubr.f32.mxu0 %v5552_v52 }
 0x589   : > { %v1759_v20 = vpop.trf.xlu0 }
 0x58a   : > { %4389 = vmatmul.mubr.msk.f32.vlgmr.msra.gmra.mrb[0].mxu1 %vm1762_vm2, %v1759_v20  ;;  %v2001_v53 = vpop.trf.xlu1 }
 0x58b   : > { %1959 = vmatprep.mubr.f32.mxu1 %v5552_v52  ;;  %4733 = vmatpush1.bf16.msra.mxu1 %v4732_v18 }
 0x58c   : > { %4739 = vmatprep.subr.bf16.mxu1 %v4738_v19 }
 0x58d   : > { %v1760_v22 = vpop.trf.xlu0 }
 0x58e   : > { %4390 = vmatmul.mubr.msk.f32.gmra.mrb[2].mxu1 %vm1762_vm2, %v1760_v22  ;;  %v2002_v36 = vpop.trf.xlu1 }
 0x58f   : > { %1965 = vmatprep.mubr.f32.mxu1 %v5552_v52 }
 0x591   : > { %v1761_v24 = vpop.trf.xlu0 }
 0x592   : > { %4391 = vmatmul.mubr.msk.f32.gmra.mrb[4].mxu1 %vm1762_vm2, %v1761_v24  ;;  %v2003_v38 = vpop.trf.xlu1 }
 0x593   : > { %2116 = vmatprep.mubr.f32.mxu1 %v5552_v52 }
 0x595   : > { %v2229_v28 = vpop.trf.xlu0 }
 0x596   : > { %4392 = vmatmul.mubr.msk.f32.vlgmr.msra.gmra.mrb[6].mxu1 %vm1762_vm2, %v1988_v1  ;;  %4408 = vmatmul.mubr.msk.f32.vlgmr.msra.gmra.mrb[26].mxu0 %vm1762_vm2, %v2229_v28  ;;  %v2470_v39 = vpop.trf.xlu1 }
 0x597   : > { %2122 = vmatprep.mubr.f32.mxu1 %v5552_v52  ;;  %2363 = vmatprep.mubr.f32.mxu0 %v5552_v52 }
 0x598   : > { %4741 = vmatpush1.bf16.msra.mxu1 %v4740_v27 }
 0x599   : > { %v2230_v30 = vpop.trf.xlu0 }
 0x59a   : > { %4393 = vmatmul.mubr.msk.f32.gmra.mrb[8].mxu1 %vm1762_vm2, %v1989_v57  ;;  %4409 = vmatmul.mubr.msk.f32.gmra.mrb[28].mxu0 %vm1762_vm2, %v2230_v30  ;;  %v2471_v9 = vpop.trf.xlu1 }
 0x59b   : > { %2128 = vmatprep.mubr.f32.mxu1 %v5552_v52  ;;  %2369 = vmatprep.mubr.f32.mxu0 %v5552_v52 }
 0x59d   : > { %v2231_v32 = vpop.trf.xlu0 }
 0x59e   : > { %4394 = vmatmul.mubr.msk.f32.gmra.mrb[10].mxu1 %vm1762_vm2, %v1990_v59  ;;  %4410 = vmatmul.mubr.msk.f32.gmra.mrb[30].mxu0 %vm1762_vm2, %v2231_v32  ;;  %v2472_v48 = vpop.trf.xlu1 }
 0x59f   : > { %2134 = vmatprep.mubr.f32.mxu1 %v5552_v52  ;;  %2375 = vmatprep.mubr.f32.mxu0 %v5552_v52 }
 0x5a1   : > { %v2232_v49 = vpop.trf.xlu0 }
 0x5a2   : > { %4395 = vmatmul.mubr.msk.f32.gmra.mrb[12].mxu1 %vm1762_vm2, %v6136_v4  ;;  %4411 = vmatmul.mubr.msk.f32.gmra.mrb[32].mxu0 %vm1762_vm2, %v2232_v49  ;;  %v2473_v44 = vpop.trf.xlu1 }
 0x5a3   : > { %2140 = vmatprep.mubr.f32.mxu1 %v5552_v52  ;;  %2381 = vmatprep.mubr.f32.mxu0 %v5552_v52 }
 0x5a5   : > { %v2233_v50 = vpop.trf.xlu0 }
 0x5a6   : > { %4396 = vmatmul.mubr.msk.f32.gmra.mrb[14].mxu1 %vm1762_vm2, %v1992_v63  ;;  %4412 = vmatmul.mubr.msk.f32.gmra.mrb[34].mxu0 %vm1762_vm2, %v2233_v50  ;;  %v2474_v46 = vpop.trf.xlu1 }
 0x5a7   : > { %2146 = vmatprep.mubr.f32.mxu1 %v5552_v52  ;;  %2387 = vmatprep.mubr.f32.mxu0 %v5552_v52 }
 0x5a9   : > { %v2234_v51 = vpop.trf.xlu0 }
 0x5aa   : > { %4397 = vmatmul.mubr.msk.f32.gmra.mrb[16].mxu1 %vm1762_vm2, %v6144_v13  ;;  %4413 = vmatmul.mubr.msk.f32.gmra.mrb[36].mxu0 %vm1762_vm2, %v2234_v51  ;;  %v2475_v5 = vpop.trf.xlu1 }
 0x5ab   : > { %2152 = vmatprep.mubr.f32.mxu1 %v5552_v52  ;;  %2393 = vmatprep.mubr.f32.mxu0 %v5552_v52 }
 0x5ad   : > { %v2235_v35 = vpop.trf.xlu0 }
 0x5ae   : > { %4398 = vmatmul.mubr.msk.f32.gmra.mrb[18].mxu1 %vm1762_vm2, %v6150_v14  ;;  %4414 = vmatmul.mubr.msk.f32.gmra.mrb[38].mxu0 %vm1762_vm2, %v2235_v35  ;;  %v2476_v6 = vpop.trf.xlu1 }
 0x5af   : > { %2158 = vmatprep.mubr.f32.mxu1 %v5552_v52  ;;  %2399 = vmatprep.mubr.f32.mxu0 %v5552_v52 }
 0x5b1   : > { %v2236_v54 = vpop.trf.xlu0 }
 0x5b2   : > { %4399 = vmatmul.mubr.msk.f32.gmra.mrb[20].mxu1 %vm1762_vm2, %v1995_v21  ;;  %4415 = vmatmul.mubr.msk.f32.gmra.mrb[40].mxu0 %vm1762_vm2, %v2236_v54  ;;  %v2477_v2 = vpop.trf.xlu1 }
 0x5b3   : > { %2164 = vmatprep.mubr.f32.mxu1 %v5552_v52  ;;  %2405 = vmatprep.mubr.f32.mxu0 %v5552_v52 }
 0x5b5   : > { %v2237_v55 = vpop.trf.xlu0 }
 0x5b6   : > { %4400 = vmatmul.mubr.msk.f32.gmra.mrb[22].mxu1 %vm1762_vm2, %v1996_v23  ;;  %4416 = vmatmul.mubr.msk.f32.gmra.mrb[42].mxu0 %vm1762_vm2, %v2237_v55  ;;  %v2478_v0 = vpop.trf.xlu1 }
 0x5b7   : > { %2170 = vmatprep.mubr.f32.mxu1 %v5552_v52  ;;  %2411 = vmatprep.mubr.f32.mxu0 %v5552_v52 }
 0x5b9   : > { %v2238_v37 = vpop.trf.xlu0 }
 0x5ba   : > { %4401 = vmatmul.mubr.msk.f32.gmra.mrb[24].mxu1 %vm1762_vm2, %v1997_v29  ;;  %4417 = vmatmul.mubr.msk.f32.gmra.mrb[44].mxu0 %vm1762_vm2, %v2238_v37  ;;  %v2479_v1 = vpop.trf.xlu1 }
 0x5bb   : > { %2176 = vmatprep.mubr.f32.mxu1 %v5552_v52  ;;  %2417 = vmatprep.mubr.f32.mxu0 %v5552_v52 }
 0x5bd   : > { %v2239_v8 = vpop.trf.xlu0 }
 0x5be   : > { %4402 = vmatmul.mubr.msk.f32.gmra.mrb[26].mxu1 %vm1762_vm2, %v1998_v31  ;;  %4418 = vmatmul.mubr.msk.f32.gmra.mrb[46].mxu0 %vm1762_vm2, %v2239_v8  ;;  %v2480_v47 = vpop.trf.xlu1 }
 0x5bf   : > { %2182 = vmatprep.mubr.f32.mxu1 %v5552_v52  ;;  %2423 = vmatprep.mubr.f32.mxu0 %v5552_v52 }
 0x5c1   : > { %v2240_v40 = vpop.trf.xlu0 }
 0x5c2   : > { %4403 = vmatmul.mubr.msk.f32.gmra.mrb[28].mxu1 %vm1762_vm2, %v1999_v33  ;;  %4419 = vmatmul.mubr.msk.f32.gmra.mrb[48].mxu0 %vm1762_vm2, %v2240_v40  ;;  %v2481_v56 = vpop.trf.xlu1 }
 0x5c3   : > { %2188 = vmatprep.mubr.f32.mxu1 %v5552_v52  ;;  %2429 = vmatprep.mubr.f32.mxu0 %v5552_v52 }
 0x5c5   : > { %v2241_v41 = vpop.trf.xlu0 }
 0x5c6   : > { %4404 = vmatmul.mubr.msk.f32.gmra.mrb[30].mxu1 %vm1762_vm2, %v2000_v34  ;;  %4420 = vmatmul.mubr.msk.f32.gmra.mrb[50].mxu0 %vm1762_vm2, %v2241_v41  ;;  %v2482_v57 = vpop.trf.xlu1 }
 0x5c7   : > { %2194 = vmatprep.mubr.f32.mxu1 %v5552_v52  ;;  %2435 = vmatprep.mubr.f32.mxu0 %v5552_v52 }
 0x5c9   : > { %v2242_v42 = vpop.trf.xlu0 }
 0x5ca   : > { %4405 = vmatmul.mubr.msk.f32.gmra.mrb[32].mxu1 %vm1762_vm2, %v2001_v53  ;;  %4421 = vmatmul.mubr.msk.f32.gmra.mrb[52].mxu0 %vm1762_vm2, %v2242_v42  ;;  %v2483_v58 = vpop.trf.xlu1 }
 0x5cb   : > { %2200 = vmatprep.mubr.f32.mxu1 %v5552_v52  ;;  %2441 = vmatprep.mubr.f32.mxu0 %v5552_v52 }
 0x5cd   : > { %v2243_v43 = vpop.trf.xlu0 }
 0x5ce   : > { %4406 = vmatmul.mubr.msk.f32.gmra.mrb[34].mxu1 %vm1762_vm2, %v2002_v36  ;;  %4422 = vmatmul.mubr.msk.f32.gmra.mrb[54].mxu0 %vm1762_vm2, %v2243_v43  ;;  %v2484_v59 = vpop.trf.xlu1 }
 0x5cf   : > { %2206 = vmatprep.mubr.f32.mxu1 %v5552_v52  ;;  %2447 = vmatprep.mubr.f32.mxu0 %v5552_v52 }
 0x5d1   : > { %v2244_v45 = vpop.trf.xlu0 }
 0x5d2   : > { %4407 = vmatmul.mubr.msk.f32.gmra.mrb[36].mxu1 %vm1762_vm2, %v2003_v38  ;;  %4423 = vmatmul.mubr.msk.f32.gmra.mrb[56].mxu0 %vm1762_vm2, %v2244_v45  ;;  %v2485_v60 = vpop.trf.xlu1 }
 0x5d3   : > { %2598 = vmatprep.mubr.f32.mxu1 %v5552_v52 }
 0x5d6   : > { %4424 = vmatmul.mubr.msk.f32.vlgmr.msra.gmra.mrb[38].mxu1 %vm1762_vm2, %v2470_v39 }
 0x5d7   : > { %2604 = vmatprep.mubr.f32.mxu1 %v5552_v52 }
 0x5da   : > { %4425 = vmatmul.mubr.msk.f32.gmra.mrb[40].mxu1 %vm1762_vm2, %v2471_v9 }
 0x5db   : > { %2610 = vmatprep.mubr.f32.mxu1 %v5552_v52 }
 0x5de   : > { %4426 = vmatmul.mubr.msk.f32.gmra.mrb[42].mxu1 %vm1762_vm2, %v2472_v48 }
 0x5df   : > { %2616 = vmatprep.mubr.f32.mxu1 %v5552_v52 }
 0x5e2   : > { %4427 = vmatmul.mubr.msk.f32.gmra.mrb[44].mxu1 %vm1762_vm2, %v2473_v44 }
 0x5e3   : > { %2622 = vmatprep.mubr.f32.mxu1 %v5552_v52 }
 0x5e6   : > { %4428 = vmatmul.mubr.msk.f32.gmra.mrb[46].mxu1 %vm1762_vm2, %v2474_v46 }
 0x5e7   : > { %2628 = vmatprep.mubr.f32.mxu1 %v5552_v52 }
 0x5ea   : > { %4429 = vmatmul.mubr.msk.f32.gmra.mrb[48].mxu1 %vm1762_vm2, %v2475_v5 }
 0x5eb   : > { %2634 = vmatprep.mubr.f32.mxu1 %v5552_v52 }
 0x5ee   : > { %4430 = vmatmul.mubr.msk.f32.gmra.mrb[50].mxu1 %vm1762_vm2, %v2476_v6 }
 0x5ef   : > { %2640 = vmatprep.mubr.f32.mxu1 %v5552_v52 }
 0x5f2   : > { %4431 = vmatmul.mubr.msk.f32.gmra.mrb[52].mxu1 %vm1762_vm2, %v2477_v2 }
 0x5f3   : > { %2646 = vmatprep.mubr.f32.mxu1 %v5552_v52 }
 0x5f6   : > { %4432 = vmatmul.mubr.msk.f32.gmra.mrb[54].mxu1 %vm1762_vm2, %v2478_v0 }
 0x5f7   : > { %2652 = vmatprep.mubr.f32.mxu1 %v5552_v52 }
 0x5fa   : > { %4433 = vmatmul.mubr.msk.f32.gmra.mrb[56].mxu1 %vm1762_vm2, %v2479_v1 }
 0x5fb   : > { %2658 = vmatprep.mubr.f32.mxu1 %v5552_v52 }
 0x5fe   : > { %4434 = vmatmul.mubr.msk.f32.gmra.mrb[58].mxu1 %vm1762_vm2, %v2480_v47 }
 0x5ff   : > { %2664 = vmatprep.mubr.f32.mxu1 %v5552_v52 }
 0x602   : > { %4435 = vmatmul.mubr.msk.f32.gmra.mrb[60].mxu1 %vm1762_vm2, %v2481_v56 }
 0x603   : > { %2670 = vmatprep.mubr.f32.mxu1 %v5552_v52 }
 0x606   : > { %4436 = vmatmul.mubr.msk.f32.gmra.mrb[62].mxu1 %vm1762_vm2, %v2482_v57 }
 0x607   : > { %2676 = vmatprep.mubr.f32.mxu1 %v5552_v52 }
 0x60a   : > { %4437 = vmatmul.mubr.msk.f32.gmra.mrb[64].mxu1 %vm1762_vm2, %v2483_v58 }
 0x60b   : > { %2682 = vmatprep.mubr.f32.mxu1 %v5552_v52 }
 0x60e   : > { %4438 = vmatmul.mubr.msk.f32.gmra.mrb[66].mxu1 %vm1762_vm2, %v2484_v59 }
 0x60f   : > { %2688 = vmatprep.mubr.f32.mxu1 %v5552_v52 }
 0x612   : > { %4439 = vmatmul.mubr.msk.f32.gmra.mrb[68].mxu1 %vm1762_vm2, %v2485_v60 }
 0x629   : > { %v6257_v61 = vpop.f32.mrb[0].mxu0 }
 0x62a   : > { %v6259_v4 = vpop.f32.mrb[1].mxu0 }
 0x62b   : > { %v2695_v62 = vmax.f32 %v6257_v61, %v6259_v4 }
 0x62d   : > { %2696 = vmax.xlane.f32.xlu0 %v2695_v62  ;;  %v6263_v63 = vpop.f32.mrb[2].mxu0 }
 0x62e   : > { %v6265_v12 = vpop.f32.mrb[3].mxu0 }
 0x62f   : > { %v2698_v3 = vmax.f32 %v6263_v63, %v6265_v12 }
 0x631   : > { %2699 = vmax.xlane.f32.xlu1 %v2698_v3  ;;  %v6269_v13 = vpop.f32.mrb[4].mxu0 }
 0x632   : > { %v6271_v52 = vpop.f32.mrb[5].mxu0 }
 0x633   : > { %v2701_v7 = vmax.f32 %v6269_v13, %v6271_v52 }
 0x635   : > { %2702 = vmax.xlane.f32.xlu0 %v2701_v7  ;;  %v6275_v14 = vpop.f32.mrb[6].mxu0 }
 0x636   : > { %v6277_v10 = vpop.f32.mrb[7].mxu0 }
 0x637   : > { %v2704_v15 = vmax.f32 %v6275_v14, %v6277_v10 }
 0x639   : > { %2705 = vmax.xlane.f32.xlu1 %v2704_v15  ;;  %v6281_v11 = vpop.f32.mrb[8].mxu0 }
 0x63a   : > { %v6283_v16 = vpop.f32.mrb[9].mxu0 }
 0x63b   : > { %v2707_v17 = vmax.f32 %v6281_v11, %v6283_v16 }
 0x63d   : > { %2708 = vmax.xlane.f32.xlu0 %v2707_v17  ;;  %v6287_v18 = vpop.f32.mrb[10].mxu0 }
 0x63e   : > { %v6289_v19 = vpop.f32.mrb[11].mxu0 }
 0x63f   : > { %v2710_v20 = vmax.f32 %v6287_v18, %v6289_v19 }
 0x641   : > { %2711 = vmax.xlane.f32.xlu1 %v2710_v20  ;;  %v6293_v21 = vpop.f32.mrb[12].mxu0 }
 0x642   : > { %v6295_v22 = vpop.f32.mrb[13].mxu0 }
 0x643   : > { %v2713_v23 = vmax.f32 %v6293_v21, %v6295_v22 }
 0x645   : > { %2714 = vmax.xlane.f32.xlu0 %v2713_v23  ;;  %v6299_v24 = vpop.f32.mrb[14].mxu0 }
 0x646   : > { %v6301_v25 = vpop.f32.mrb[15].mxu0 }
 0x647   : > { %v2716_v26 = vmax.f32 %v6299_v24, %v6301_v25 }
 0x649   : > { %2717 = vmax.xlane.f32.xlu1 %v2716_v26  ;;  %v6305_v27 = vpop.f32.mrb[16].mxu0 }
 0x64a   : > { %v6307_v28 = vpop.f32.mrb[17].mxu0 }
 0x64b   : > { %v2719_v29 = vmax.f32 %v6305_v27, %v6307_v28 }
 0x64d   : > { %2720 = vmax.xlane.f32.xlu0 %v2719_v29  ;;  %v6311_v30 = vpop.f32.mrb[18].mxu0 }
 0x64e   : > { %v6313_v31 = vpop.f32.mrb[19].mxu0 }
 0x64f   : > { %v2722_v32 = vmax.f32 %v6311_v30, %v6313_v31 }
 0x651   : > { %2723 = vmax.xlane.f32.xlu1 %v2722_v32  ;;  %v6317_v49 = vpop.f32.mrb[20].mxu0 }
 0x652   : > { %v6319_v33 = vpop.f32.mrb[21].mxu0 }
 0x653   : > { %v2725_v50 = vmax.f32 %v6317_v49, %v6319_v33 }
 0x655   : > { %2726 = vmax.xlane.f32.xlu0 %v2725_v50  ;;  %v6323_v34 = vpop.f32.mrb[22].mxu0 }
 0x656   : > { %v6325_v51 = vpop.f32.mrb[23].mxu0 }
 0x657   : > { %v2728_v35 = vmax.f32 %v6323_v34, %v6325_v51 }
 0x659   : > { %2729 = vmax.xlane.f32.xlu1 %v2728_v35  ;;  %v6329_v53 = vpop.f32.mrb[24].mxu0 }
 0x65a   : > { %v6331_v54 = vpop.f32.mrb[25].mxu0 }
 0x65b   : > { %v2731_v36 = vmax.f32 %v6329_v53, %v6331_v54 }
 0x65d   : > { %2732 = vmax.xlane.f32.xlu0 %v2731_v36  ;;  %v6335_v55 = vpop.f32.mrb[0].mxu1 }
 0x65e   : > { %v6337_v37 = vpop.f32.mrb[1].mxu1 }
 0x65f   : > { %v2734_v38 = vmax.f32 %v6335_v55, %v6337_v37 }
 0x661   : > { %2735 = vmax.xlane.f32.xlu1 %v2734_v38  ;;  %v6341_v8 = vpop.f32.mrb[2].mxu1 }
 0x662   : > { %7732 = vst [vmem:[#allocation18_spill] sm:$0xff] %v6341_v8  ;;  %v6343_v39 = vpop.f32.mrb[3].mxu1 }
 0x663   : > { %7733 = vst [vmem:[#allocation19_spill] sm:$0xff] %v6343_v39  ;;  %v2737_v40 = vmax.f32 %v6341_v8, %v6343_v39 }
 0x665   : > { %v6347_v41 = vpop.f32.mrb[4].mxu1 }
 0x666   : > { %7734 = vst [vmem:[#allocation20_spill] sm:$0xff] %v6347_v41  ;;  %v6349_v9 = vpop.f32.mrb[5].mxu1 }
 0x667   : > { %7735 = vst [vmem:[#allocation21_spill] sm:$0xff] %v6349_v9  ;;  %v2740_v42 = vmax.f32 %v6347_v41, %v6349_v9 }
 0x669   : > { %v6353_v48 = vpop.f32.mrb[26].mxu0  ;;  %v6355_v43 = vpop.f32.mrb[6].mxu1 }
 0x66a   : > { %v6357_v44 = vpop.f32.mrb[27].mxu0  ;;  %v6359_v45 = vpop.f32.mrb[7].mxu1 }
 0x66b   : > { %v2791_v46 = vmax.f32 %v6353_v48, %v6357_v44  ;;  %v2743_v5 = vmax.f32 %v6355_v43, %v6359_v45 }
 0x66d   : > { %2792 = vmax.xlane.f32.xlu0 %v2791_v46  ;;  %v6365_v6 = vpop.f32.mrb[28].mxu0  ;;  %v6367_v2 = vpop.f32.mrb[8].mxu1 }
 0x66e   : > { %v6369_v0 = vpop.f32.mrb[29].mxu0  ;;  %v6371_v1 = vpop.f32.mrb[9].mxu1 }
 0x66f   : > { %v2794_v47 = vmax.f32 %v6365_v6, %v6369_v0  ;;  %v2746_v56 = vmax.f32 %v6367_v2, %v6371_v1 }
 0x671   : > { %2738 = vmax.xlane.f32.xlu0 %v2737_v40  ;;  %2795 = vmax.xlane.f32.xlu1 %v2794_v47  ;;  %v6377_v57 = vpop.f32.mrb[30].mxu0  ;;  %v6379_v58 = vpop.f32.mrb[10].mxu1 }
 0x672   : > { %7736 = vst [vmem:[#allocation22_spill] sm:$0xff] %v6377_v57  ;;  %v6381_v59 = vpop.f32.mrb[31].mxu0  ;;  %v6383_v60 = vpop.f32.mrb[11].mxu1 }
 0x673   : > { %7737 = vst [vmem:[#allocation23_spill] sm:$0xff] %v6381_v59  ;;  %v2797_v62 = vmax.f32 %v6377_v57, %v6381_v59  ;;  %v2749_v3 = vmax.f32 %v6379_v58, %v6383_v60 }
 0x675   : > { %2741 = vmax.xlane.f32.xlu1 %v2740_v42  ;;  %2798 = vmax.xlane.f32.xlu0 %v2797_v62  ;;  %v6389_v7 = vpop.f32.mrb[32].mxu0  ;;  %v6391_v15 = vpop.f32.mrb[12].mxu1 }
 0x676   : > { %7738 = vst [vmem:[#allocation24_spill] sm:$0xff] %v6389_v7  ;;  %v6393_v17 = vpop.f32.mrb[33].mxu0  ;;  %v6395_v20 = vpop.f32.mrb[13].mxu1 }
 0x677   : > { %7739 = vst [vmem:[#allocation25_spill] sm:$0xff] %v6393_v17  ;;  %v2800_v23 = vmax.f32 %v6389_v7, %v6393_v17  ;;  %v2752_v26 = vmax.f32 %v6391_v15, %v6395_v20 }
 0x679   : > { %2744 = vmax.xlane.f32.xlu1 %v2743_v5  ;;  %v6401_v29 = vpop.f32.mrb[34].mxu0  ;;  %v6403_v32 = vpop.f32.mrb[14].mxu1 }
 0x67a   : > { %7740 = vst [vmem:[#allocation26_spill] sm:$0xff] %v6401_v29  ;;  %v6405_v50 = vpop.f32.mrb[35].mxu0  ;;  %v6407_v35 = vpop.f32.mrb[15].mxu1 }
 0x67b   : > { %7741 = vst [vmem:[#allocation27_spill] sm:$0xff] %v6405_v50  ;;  %v2803_v36 = vmax.f32 %v6401_v29, %v6405_v50  ;;  %v2755_v38 = vmax.f32 %v6403_v32, %v6407_v35 }
 0x67d   : > { %2801 = vmax.xlane.f32.xlu1 %v2800_v23  ;;  %2804 = vmax.xlane.f32.xlu0 %v2803_v36  ;;  %v6413_v40 = vpop.f32.mrb[36].mxu0  ;;  %v6415_v42 = vpop.f32.mrb[16].mxu1 }
 0x67e   : > { %7742 = vst [vmem:[#allocation28_spill] sm:$0xff] %v6413_v40  ;;  %v6417_v46 = vpop.f32.mrb[37].mxu0  ;;  %v6419_v5 = vpop.f32.mrb[17].mxu1 }
 0x67f   : > { %7743 = vst [vmem:[#allocation29_spill] sm:$0xff] %v6417_v46  ;;  %v2806_v47 = vmax.f32 %v6413_v40, %v6417_v46  ;;  %v2758_v62 = vmax.f32 %v6415_v42, %v6419_v5 }
 0x681   : > { %2747 = vmax.xlane.f32.xlu1 %v2746_v56  ;;  %2750 = vmax.xlane.f32.xlu0 %v2749_v3  ;;  %v6425_v50 = vpop.f32.mrb[38].mxu0  ;;  %v6427_v23 = vpop.f32.mrb[18].mxu1 }
 0x682   : > { %7744 = vst [vmem:[#allocation30_spill] sm:$0xff] %v6425_v50  ;;  %v6429_v36 = vpop.f32.mrb[39].mxu0  ;;  %v6431_v29 = vpop.f32.mrb[19].mxu1 }
 0x683   : > { %7745 = vst [vmem:[#allocation31_spill] sm:$0xff] %v6429_v36  ;;  %v2809_v17 = vmax.f32 %v6425_v50, %v6429_v36  ;;  %v2761_v7 = vmax.f32 %v6427_v23, %v6431_v29 }
 0x685   : > { %2807 = vmax.xlane.f32.xlu1 %v2806_v47  ;;  %2810 = vmax.xlane.f32.xlu0 %v2809_v17  ;;  %v6437_v46 = vpop.f32.mrb[40].mxu0  ;;  %v6439_v56 = vpop.f32.mrb[20].mxu1 }
 0x686   : > { %7746 = vst [vmem:[#allocation32_spill] sm:$0xff] %v6437_v46  ;;  %7747 = vst [vmem:[#allocation33_spill] sm:$0xff] %v6439_v56  ;;  %v6441_v3 = vpop.f32.mrb[41].mxu0  ;;  %v6443_v40 = vpop.f32.mrb[21].mxu1 }
 0x687   : > { %7748 = vst [vmem:[#allocation34_spill] sm:$0xff] %v6441_v3  ;;  %7749 = vst [vmem:[#allocation35_spill] sm:$0xff] %v6443_v40  ;;  %v2812_v59 = vmax.f32 %v6437_v46, %v6441_v3  ;;  %v2764_v57 = vmax.f32 %v6439_v56, %v6443_v40 }
 0x689   : > { %2753 = vmax.xlane.f32.xlu1 %v2752_v26  ;;  %2756 = vmax.xlane.f32.xlu0 %v2755_v38  ;;  %v6449_v36 = vpop.f32.mrb[42].mxu0  ;;  %v6451_v47 = vpop.f32.mrb[22].mxu1 }
 0x68a   : > { %7750 = vst [vmem:[#allocation36_spill] sm:$0xff] %v6449_v36  ;;  %7751 = vst [vmem:[#allocation37_spill] sm:$0xff] %v6451_v47  ;;  %v6453_v17 = vpop.f32.mrb[43].mxu0  ;;  %v6455_v50 = vpop.f32.mrb[23].mxu1 }
 0x68b   : > { %7752 = vst [vmem:[#allocation38_spill] sm:$0xff] %v6453_v17  ;;  %7753 = vst [vmem:[#allocation39_spill] sm:$0xff] %v6455_v50  ;;  %v2815_v9 = vmax.f32 %v6449_v36, %v6453_v17  ;;  %v2767_v41 = vmax.f32 %v6451_v47, %v6455_v50 }
 0x68d   : > { %2813 = vmax.xlane.f32.xlu1 %v2812_v59  ;;  %2816 = vmax.xlane.f32.xlu0 %v2815_v9  ;;  %v6461_v3 = vpop.f32.mrb[44].mxu0  ;;  %v6463_v26 = vpop.f32.mrb[24].mxu1 }
 0x68e   : > { %7754 = vst [vmem:[#allocation40_spill] sm:$0xff] %v6461_v3  ;;  %7755 = vst [vmem:[#allocation41_spill] sm:$0xff] %v6463_v26  ;;  %v6465_v38 = vpop.f32.mrb[45].mxu0  ;;  %v6467_v46 = vpop.f32.mrb[25].mxu1 }
 0x68f   : > { %7756 = vst [vmem:[#allocation42_spill] sm:$0xff] %v6465_v38  ;;  %7757 = vst [vmem:[#allocation43_spill] sm:$0xff] %v6467_v46  ;;  %v2818_v39 = vmax.f32 %v6461_v3, %v6465_v38  ;;  %v2770_v8 = vmax.f32 %v6463_v26, %v6467_v46 }
 0x691   : > { %2759 = vmax.xlane.f32.xlu1 %v2758_v62  ;;  %2762 = vmax.xlane.f32.xlu0 %v2761_v7  ;;  %v6473_v17 = vpop.f32.mrb[46].mxu0  ;;  %v6475_v59 = vpop.f32.mrb[26].mxu1 }
 0x692   : > { %7758 = vst [vmem:[#allocation44_spill] sm:$0xff] %v6475_v59  ;;  %v6477_v9 = vpop.f32.mrb[47].mxu0  ;;  %v6479_v36 = vpop.f32.mrb[27].mxu1 }
 0x693   : > { %7759 = vst [vmem:[#allocation45_spill] sm:$0xff] %v6479_v36  ;;  %v2821_v50 = vmax.f32 %v6473_v17, %v6477_v9  ;;  %v2773_v47 = vmax.f32 %v6475_v59, %v6479_v36 }
 0x695   : > { %2819 = vmax.xlane.f32.xlu1 %v2818_v39  ;;  %2822 = vmax.xlane.f32.xlu0 %v2821_v50  ;;  %v6485_v38 = vpop.f32.mrb[48].mxu0  ;;  %v6487_v62 = vpop.f32.mrb[28].mxu1 }
 0x696   : > { %7760 = vst [vmem:[#allocation46_spill] sm:$0xff] %v6485_v38  ;;  %7761 = vst [vmem:[#allocation47_spill] sm:$0xff] %v6487_v62  ;;  %v6489_v7 = vpop.f32.mrb[49].mxu0  ;;  %v6491_v3 = vpop.f32.mrb[29].mxu1 }
 0x697   : > { %7762 = vst [vmem:[#allocation48_spill] sm:$0xff] %v6489_v7  ;;  %7763 = vst [vmem:[#allocation49_spill] sm:$0xff] %v6491_v3  ;;  %v2824_v46 = vmax.f32 %v6485_v38, %v6489_v7  ;;  %v2776_v26 = vmax.f32 %v6487_v62, %v6491_v3 }
 0x699   : > { %2765 = vmax.xlane.f32.xlu1 %v2764_v57  ;;  %2768 = vmax.xlane.f32.xlu0 %v2767_v41  ;;  %v6497_v40 = vpop.f32.mrb[50].mxu0  ;;  %v6499_v39 = vpop.f32.mrb[30].mxu1 }
 0x69a   : > { %7764 = vst [vmem:[#allocation50_spill] sm:$0xff] %v6497_v40  ;;  %7765 = vst [vmem:[#allocation51_spill] sm:$0xff] %v6499_v39  ;;  %v6501_v50 = vpop.f32.mrb[51].mxu0  ;;  %v6503_v36 = vpop.f32.mrb[31].mxu1 }
 0x69b   : > { %7766 = vst [vmem:[#allocation52_spill] sm:$0xff] %v6501_v50  ;;  %7767 = vst [vmem:[#allocation53_spill] sm:$0xff] %v6503_v36  ;;  %v2827_v59 = vmax.f32 %v6497_v40, %v6501_v50  ;;  %v2779_v56 = vmax.f32 %v6499_v39, %v6503_v36 }
 0x69d   : > { %2825 = vmax.xlane.f32.xlu1 %v2824_v46  ;;  %2828 = vmax.xlane.f32.xlu0 %v2827_v59  ;;  %v6509_v7 = vpop.f32.mrb[52].mxu0  ;;  %v6511_v57 = vpop.f32.mrb[32].mxu1 }
 0x69e   : > { %7768 = vst [vmem:[#allocation54_spill] sm:$0xff] %v6509_v7  ;;  %7769 = vst [vmem:[#allocation55_spill] sm:$0xff] %v6511_v57  ;;  %v6513_v41 = vpop.f32.mrb[53].mxu0  ;;  %v6515_v38 = vpop.f32.mrb[33].mxu1 }
 0x69f   : > { %7770 = vst [vmem:[#allocation56_spill] sm:$0xff] %v6513_v41  ;;  %7771 = vst [vmem:[#allocation57_spill] sm:$0xff] %v6515_v38  ;;  %v2830_v3 = vmax.f32 %v6509_v7, %v6513_v41  ;;  %v2782_v62 = vmax.f32 %v6511_v57, %v6515_v38 }
 0x6a1   : > { %2771 = vmax.xlane.f32.xlu1 %v2770_v8  ;;  %2774 = vmax.xlane.f32.xlu0 %v2773_v47  ;;  %v6521_v50 = vpop.f32.mrb[34].mxu1  ;;  %v6527_v36 = vpop.f32.mrb[54].mxu0 }
 0x6a2   : > { %7772 = vst [vmem:[#allocation58_spill] sm:$0xff] %v6521_v50  ;;  %v6523_v46 = vpop.f32.mrb[35].mxu1  ;;  %v6531_v40 = vpop.f32.mrb[55].mxu0 }
 0x6a3   : > { %7773 = vst [vmem:[#allocation59_spill] sm:$0xff] %v6523_v46  ;;  %v2785_v59 = vmax.f32 %v6521_v50, %v6523_v46 }
 0x6a5   : > { %2780 = vmax.xlane.f32.xlu0 %v2779_v56  ;;  %2831 = vmax.xlane.f32.xlu1 %v2830_v3  ;;  %v6529_v39 = vpop.f32.mrb[36].mxu1  ;;  %v6545_v3 = vpop.f32.mrb[56].mxu0 }
 0x6a6   : > { %7774 = vst [vmem:[#allocation60_spill] sm:$0xff] %v6529_v39  ;;  %v6533_v41 = vpop.f32.mrb[37].mxu1  ;;  %v6547_v50 = vpop.f32.mrb[57].mxu0 }
 0x6a7   : > { %7775 = vst [vmem:[#allocation61_spill] sm:$0xff] %v6533_v41  ;;  %v2788_v47 = vmax.f32 %v6529_v39, %v6533_v41  ;;  %7778 = vst [vmem:[#allocation64_spill] sm:$0xff] %v6547_v50 }
 0x6a9   : > { %v6539_v7 = vpop.f32.mrb[38].mxu1  ;;  %2786 = vmax.xlane.f32.xlu0 %v2785_v59  ;;  %2777 = vmax.xlane.f32.xlu1 %v2776_v26 }
 0x6aa   : > { %7776 = vst [vmem:[#allocation62_spill] sm:$0xff] %v6539_v7  ;;  %v6541_v46 = vpop.f32.mrb[39].mxu1 }
 0x6ab   : > { %7777 = vst [vmem:[#allocation63_spill] sm:$0xff] %v6541_v46  ;;  %v2839_v56 = vmax.f32 %v6539_v7, %v6541_v46 }
 0x6ad   : > { %2840 = vmax.xlane.f32.xlu0 %v2839_v56  ;;  %2783 = vmax.xlane.f32.xlu1 %v2782_v62  ;;  %v6549_v38 = vpop.f32.mrb[40].mxu1 }
 0x6ae   : > { %7779 = vst [vmem:[#allocation65_spill] sm:$0xff] %v6549_v38  ;;  %v6553_v41 = vpop.f32.mrb[41].mxu1 }
 0x6af   : > { %7780 = vst [vmem:[#allocation66_spill] sm:$0xff] %v6553_v41  ;;  %v2842_v26 = vmax.f32 %v6549_v38, %v6553_v41 }
 0x6b1   : > { %v6557_v59 = vpop.f32.mrb[42].mxu1  ;;  %2789 = vmax.xlane.f32.xlu1 %v2788_v47 }
 0x6b2   : > { %7781 = vst [vmem:[#allocation67_spill] sm:$0xff] %v6557_v59  ;;  %v6559_v46 = vpop.f32.mrb[43].mxu1 }
 0x6b3   : > { %7782 = vst [vmem:[#allocation68_spill] sm:$0xff] %v6559_v46  ;;  %v2845_v7 = vmax.f32 %v6557_v59, %v6559_v46 }
 0x6b5   : > { %v6563_v56 = vpop.f32.mrb[44].mxu1  ;;  %2846 = vmax.xlane.f32.xlu0 %v2845_v7  ;;  %2843 = vmax.xlane.f32.xlu1 %v2842_v26 }
 0x6b6   : > { %7783 = vst [vmem:[#allocation69_spill] sm:$0xff] %v6563_v56  ;;  %v6565_v62 = vpop.f32.mrb[45].mxu1 }
 0x6b7   : > { %7784 = vst [vmem:[#allocation70_spill] sm:$0xff] %v6565_v62  ;;  %v2848_v8 = vmax.f32 %v6563_v56, %v6565_v62 }
 0x6b9   : > { %v6569_v39 = vpop.f32.mrb[46].mxu1  ;;  %2849 = vmax.xlane.f32.xlu1 %v2848_v8 }
 0x6ba   : > { %7785 = vst [vmem:[#allocation71_spill] sm:$0xff] %v6569_v39  ;;  %v6571_v41 = vpop.f32.mrb[47].mxu1  ;;  %v2697_v47 = vpop.xlane.xlu0 %2696 }
 0x6bb   : > { %7786 = vst [vmem:[#allocation72_spill] sm:$0xff] %v6571_v41  ;;  %v2851_v38 = vmax.f32 %v6569_v39, %v6571_v41  ;;  %v2887_v46 = vsub.f32 %v6257_v61, %v2697_v47  ;;  %v2888_v59 = vsub.f32 %v6259_v4, %v2697_v47 }
 0x6bd   : > { %v3015_v7 = vmul.f32 1.442695, %v2887_v46  ;;  %v3017_v26 = vmul.f32 1.442695, %v2888_v59  ;;  %v6577_v57 = vpop.f32.mrb[48].mxu1  ;;  %2852 = vmax.xlane.f32.xlu0 %v2851_v38 }
 0x6be   : > { %7787 = vst [vmem:[#allocation73_spill] sm:$0xff] %v6577_v57  ;;  %v2700_v50 = vpop.xlane.xlu1 %2699  ;;  %v6579_v62 = vpop.f32.mrb[49].mxu1 }
 0x6bf   : > { %7788 = vst [vmem:[#allocation74_spill] sm:$0xff] %v6579_v62  ;;  %4999 = vpow2.f32 %v3015_v7  ;;  %v2889_v8 = vsub.f32 %v6263_v63, %v2700_v50  ;;  %v2890_v56 = vsub.f32 %v6265_v12, %v2700_v50  ;;  %v2854_v41 = vmax.f32 %v6577_v57, %v6579_v62 }
 0x6c0   : > { %5001 = vpow2.f32 %v3017_v26 }
 0x6c1   : > { %v3019_v61 = vmul.f32 1.442695, %v2889_v8  ;;  %v3021_v39 = vmul.f32 1.442695, %v2890_v56  ;;  %v6585_v4 = vpop.f32.mrb[50].mxu1  ;;  %2855 = vmax.xlane.f32.xlu1 %v2854_v41 }
 0x6c2   : > { %7789 = vst [vmem:[#allocation75_spill] sm:$0xff] %v6585_v4  ;;  %v6587_v46 = vpop.f32.mrb[51].mxu1  ;;  %v2703_v38 = vpop.xlane.xlu0 %2702 }
 0x6c3   : > { %7790 = vst [vmem:[#allocation76_spill] sm:$0xff] %v6587_v46  ;;  %5003 = vpow2.f32 %v3019_v61  ;;  %v2857_v59 = vmax.f32 %v6585_v4, %v6587_v46  ;;  %v2891_v63 = vsub.f32 %v6269_v13, %v2703_v38  ;;  %v2892_v12 = vsub.f32 %v6271_v52, %v2703_v38 }
 0x6c4   : > { %5005 = vpow2.f32 %v3021_v39 }
 0x6c5   : > { %v3023_v50 = vmul.f32 1.442695, %v2891_v63  ;;  %v3025_v47 = vmul.f32 1.442695, %v2892_v12  ;;  %v6593_v7 = vpop.f32.mrb[52].mxu1  ;;  %2858 = vmax.xlane.f32.xlu0 %v2857_v59 }
 0x6c6   : > { %7791 = vst [vmem:[#allocation77_spill] sm:$0xff] %v6593_v7  ;;  %v2706_v56 = vpop.xlane.xlu1 %2705  ;;  %v6595_v26 = vpop.f32.mrb[53].mxu1 }
 0x6c7   : > { %7792 = vst [vmem:[#allocation78_spill] sm:$0xff] %v6595_v26  ;;  %5007 = vpow2.f32 %v3023_v50  ;;  %v2893_v41 = vsub.f32 %v6275_v14, %v2706_v56  ;;  %v2894_v8 = vsub.f32 %v6277_v10, %v2706_v56  ;;  %v2860_v61 = vmax.f32 %v6593_v7, %v6595_v26 }
 0x6c8   : > { %5009 = vpow2.f32 %v3025_v47 }
 0x6c9   : > { %v6601_v13 = vpop.eup %4999  ;;  %v3027_v52 = vmul.f32 1.442695, %v2893_v41  ;;  %v3029_v39 = vmul.f32 1.442695, %v2894_v8  ;;  %2861 = vmax.xlane.f32.xlu1 %v2860_v61  ;;  %v6603_v38 = vpop.f32.mrb[54].mxu1 }
 0x6ca   : > { %7793 = vst [vmem:[#allocation79_spill] sm:$0xff] %v6601_v13  ;;  %7794 = vst [vmem:[#allocation80_spill] sm:$0xff] %v6603_v38  ;;  %v6605_v59 = vpop.eup %5001  ;;  %v2709_v63 = vpop.xlane.xlu0 %2708 }
 0x6cb   : > { %7795 = vst [vmem:[#allocation81_spill] sm:$0xff] %v6605_v59  ;;  %v6607_v12 = vpop.f32.mrb[55].mxu1  ;;  %5011 = vpow2.f32 %v3027_v52  ;;  %v2895_v14 = vsub.f32 %v6281_v11, %v2709_v63  ;;  %v2896_v10 = vsub.f32 %v6283_v16, %v2709_v63  ;;  %v3271_v50 = vadd.f32 %v6605_v59, %v6601_v13 }
 0x6cc   : > { %7796 = vst [vmem:[#allocation82_spill] sm:$0xff] %v6607_v12  ;;  %5013 = vpow2.f32 %v3029_v39  ;;  %v2863_v47 = vmax.f32 %v6603_v38, %v6607_v12 }
 0x6cd   : > { %v6615_v56 = vpop.eup %5003  ;;  %v3031_v41 = vmul.f32 1.442695, %v2895_v14  ;;  %v3033_v8 = vmul.f32 1.442695, %v2896_v10  ;;  %3272 = vadd.xlane.f32.xlu0 %v3271_v50  ;;  %v6617_v61 = vpop.f32.mrb[56].mxu1 }
 0x6ce   : > { %7797 = vst [vmem:[#allocation83_spill] sm:$0xff] %v6615_v56  ;;  %7798 = vst [vmem:[#allocation84_spill] sm:$0xff] %v6617_v61  ;;  %v6619_v26 = vpop.eup %5005  ;;  %v2712_v52 = vpop.xlane.xlu1 %2711 }
 0x6cf   : > { %7799 = vst [vmem:[#allocation85_spill] sm:$0xff] %v6619_v26  ;;  %v6621_v11 = vpop.f32.mrb[57].mxu1  ;;  %5015 = vpow2.f32 %v3031_v41  ;;  %v2897_v16 = vsub.f32 %v6287_v18, %v2712_v52  ;;  %v2898_v39 = vsub.f32 %v6289_v19, %v2712_v52  ;;  %v3274_v63 = vadd.f32 %v6619_v26, %v6615_v56 }
 0x6d0   : > { %7800 = vst [vmem:[#allocation86_spill] sm:$0xff] %v6621_v11  ;;  %5017 = vpow2.f32 %v3033_v8  ;;  %v2866_v14 = vmax.f32 %v6617_v61, %v6621_v11 }
 0x6d1   : > { %v6629_v10 = vpop.eup %5007  ;;  %v3035_v50 = vmul.f32 1.442695, %v2897_v16  ;;  %v3037_v13 = vmul.f32 1.442695, %v2898_v39  ;;  %3275 = vadd.xlane.f32.xlu1 %v3274_v63  ;;  %2864 = vmax.xlane.f32.xlu0 %v2863_v47  ;;  %v6631_v59 = vpop.f32.mrb[58].mxu1 }
 0x6d2   : > { %7801 = vst [vmem:[#allocation87_spill] sm:$0xff] %v6629_v10  ;;  %7802 = vst [vmem:[#allocation88_spill] sm:$0xff] %v6631_v59  ;;  %v6633_v41 = vpop.eup %5009  ;;  %v2715_v18 = vpop.xlane.xlu0 %2714 }
 0x6d3   : > { %7803 = vst [vmem:[#allocation89_spill] sm:$0xff] %v6633_v41  ;;  %v6635_v12 = vpop.f32.mrb[59].mxu1  ;;  %5019 = vpow2.f32 %v3035_v50  ;;  %v2899_v19 = vsub.f32 %v6293_v21, %v2715_v18  ;;  %v2900_v8 = vsub.f32 %v6295_v22, %v2715_v18  ;;  %v3277_v52 = vadd.f32 %v6633_v41, %v6629_v10 }
 0x6d4   : > { %7804 = vst [vmem:[#allocation90_spill] sm:$0xff] %v6635_v12  ;;  %5021 = vpow2.f32 %v3037_v13  ;;  %v2869_v16 = vmax.f32 %v6631_v59, %v6635_v12 }
 0x6d5   : > { %v6643_v47 = vpop.eup %5011  ;;  %v3039_v39 = vmul.f32 1.442695, %v2899_v19  ;;  %v3041_v63 = vmul.f32 1.442695, %v2900_v8  ;;  %2867 = vmax.xlane.f32.xlu1 %v2866_v14  ;;  %3278 = vadd.xlane.f32.xlu0 %v3277_v52  ;;  %v6645_v56 = vpop.f32.mrb[60].mxu1 }
 0x6d6   : > { %7805 = vst [vmem:[#allocation91_spill] sm:$0xff] %v6643_v47  ;;  %7806 = vst [vmem:[#allocation92_spill] sm:$0xff] %v6645_v56  ;;  %v6647_v50 = vpop.eup %5013  ;;  %v2718_v21 = vpop.xlane.xlu1 %2717 }
 0x6d7   : > { %7807 = vst [vmem:[#allocation93_spill] sm:$0xff] %v6647_v50  ;;  %v6649_v26 = vpop.f32.mrb[61].mxu1  ;;  %5023 = vpow2.f32 %v3039_v39  ;;  %v2901_v22 = vsub.f32 %v6299_v24, %v2718_v21  ;;  %v2902_v13 = vsub.f32 %v6301_v25, %v2718_v21  ;;  %v3280_v18 = vadd.f32 %v6647_v50, %v6643_v47 }
 0x6d8   : > { %7808 = vst [vmem:[#allocation94_spill] sm:$0xff] %v6649_v26  ;;  %5025 = vpow2.f32 %v3041_v63  ;;  %v2872_v14 = vmax.f32 %v6645_v56, %v6649_v26 }
 0x6d9   : > { %v6657_v19 = vpop.eup %5015  ;;  %v3043_v8 = vmul.f32 1.442695, %v2901_v22  ;;  %v3045_v52 = vmul.f32 1.442695, %v2902_v13  ;;  %3281 = vadd.xlane.f32.xlu1 %v3280_v18  ;;  %2870 = vmax.xlane.f32.xlu0 %v2869_v16  ;;  %v6659_v10 = vpop.f32.mrb[62].mxu1 }
 0x6da   : > { %7809 = vst [vmem:[#allocation95_spill] sm:$0xff] %v6657_v19  ;;  %v6661_v39 = vpop.eup %5017  ;;  %v6663_v24 = vpop.f32.mrb[63].mxu1 }
 0x6db   : > { %7810 = vst [vmem:[#allocation96_spill] sm:$0xff] %v6661_v39  ;;  %5027 = vpow2.f32 %v3043_v8  ;;  %v3283_v25 = vadd.f32 %v6661_v39, %v6657_v19 }
 0x6dc   : > { %5029 = vpow2.f32 %v3045_v52 }
 0x6dd   : > { %v6669_v21 = vpop.eup %5019  ;;  %2873 = vmax.xlane.f32.xlu1 %v2872_v14  ;;  %3284 = vadd.xlane.f32.xlu0 %v3283_v25  ;;  %v6671_v22 = vpop.f32.mrb[64].mxu1 }
 0x6de   : > { %7811 = vst [vmem:[#allocation97_spill] sm:$0xff] %v6669_v21  ;;  %v6673_v16 = vpop.eup %5021  ;;  %v6675_v13 = vpop.f32.mrb[65].mxu1 }
 0x6df   : > { %7812 = vst [vmem:[#allocation98_spill] sm:$0xff] %v6673_v16  ;;  %v3286_v18 = vadd.f32 %v6673_v16, %v6669_v21 }
 0x6e1   : > { %v6681_v52 = vpop.eup %5023  ;;  %3287 = vadd.xlane.f32.xlu1 %v3286_v18  ;;  %v6683_v63 = vpop.f32.mrb[66].mxu1 }
 0x6e2   : > { %7813 = vst [vmem:[#allocation99_spill] sm:$0xff] %v6681_v52  ;;  %v6685_v19 = vpop.eup %5025  ;;  %v6687_v14 = vpop.f32.mrb[67].mxu1 }
 0x6e3   : > { %7814 = vst [vmem:[#allocation100_spill] sm:$0xff] %v6685_v19  ;;  %7815 = vst [vmem:[#allocation101_spill] sm:$0xff] %v6687_v14  ;;  %v3289_v25 = vadd.f32 %v6685_v19, %v6681_v52  ;;  %v2721_v52 = vpop.xlane.xlu0 %2720  ;;  %v2724_v19 = vpop.xlane.xlu1 %2723 }
 0x6e4   : > { %v2905_v11 = vsub.f32 %v6311_v30, %v2724_v19  ;;  %v2906_v7 = vsub.f32 %v6313_v31, %v2724_v19 }
 0x6e5   : > { %v6693_v47 = vpop.eup %5027  ;;  %3290 = vadd.xlane.f32.xlu0 %v3289_v25  ;;  %v6695_v21 = vpop.f32.mrb[68].mxu1 }
 0x6e6   : > { %7816 = vst [vmem:[#allocation102_spill] sm:$0xff] %v6693_v47  ;;  %7817 = vst [vmem:[#allocation103_spill] sm:$0xff] %v6695_v21  ;;  %v6697_v8 = vpop.eup %5029  ;;  %v6699_v18 = vpop.f32.mrb[69].mxu1  ;;  %v3053_v31 = vmul.f32 1.442695, %v2906_v7 }
 0x6e7   : > { %7818 = vst [vmem:[#allocation104_spill] sm:$0xff] %v6697_v8  ;;  %7819 = vst [vmem:[#allocation105_spill] sm:$0xff] %v6699_v18  ;;  %v3292_v16 = vadd.f32 %v6697_v8, %v6693_v47  ;;  %v2727_v41 = vpop.xlane.xlu0 %2726  ;;  %v2730_v39 = vpop.xlane.xlu1 %2729  ;;  %v2903_v47 = vsub.f32 %v6305_v27, %v2721_v52 }
 0x6e8   : > { %v2907_v62 = vsub.f32 %v6317_v49, %v2727_v41  ;;  %v2908_v27 = vsub.f32 %v6319_v33, %v2727_v41  ;;  %v2909_v30 = vsub.f32 %v6323_v34, %v2730_v39 }
 0x6e9   : > { %3293 = vadd.xlane.f32.xlu1 %v3292_v16  ;;  %v2904_v16 = vsub.f32 %v6307_v28, %v2721_v52  ;;  %v3047_v50 = vmul.f32 1.442695, %v2903_v47  ;;  %v3051_v28 = vmul.f32 1.442695, %v2905_v11  ;;  %v2910_v11 = vsub.f32 %v6325_v51, %v2730_v39 }
 0x6ea   : > { %v3059_v49 = vmul.f32 1.442695, %v2909_v30 }
 0x6eb   : > { %v6705_v26 = vpop.xlane.xlu0 %2732  ;;  %v3049_v57 = vmul.f32 1.442695, %v2904_v16  ;;  %5031 = vpow2.f32 %v3047_v50 }
 0x6ec   : > { %v2911_v50 = vsub.f32 %v6329_v53, %v6705_v26 }
 0x6ee   : > { %v6707_v25 = vpop.xlane.xlu1 %2735  ;;  %v3063_v39 = vmul.f32 1.442695, %v2911_v50 }
 0x6fa   : > { %v6709_v56 = vpop.xlane.xlu0 %2792 }
 0x6fe   : > { %v6711_v12 = vpop.xlane.xlu1 %2795  ;;  %v6713_v59 = vpop.xlane.xlu0 %2738 }
 0x702   : > { %v6716_v8 = vpop.xlane.xlu1 %2741  ;;  %v6720_v61 = vpop.xlane.xlu0 %2798 }
 0x706   : > { %v2745_v38 = vpop.xlane.xlu1 %2744 }
 0x707   : > { %v2919_v46 = vsub.f32 %v6355_v43, %v2745_v38  ;;  %v2920_v4 = vsub.f32 %v6359_v45, %v2745_v38  ;;  %v3055_v43 = vmul.f32 1.442695, %v2907_v62  ;;  %v3057_v45 = vmul.f32 1.442695, %v2908_v27 }
 0x708   : > { %v2912_v27 = vsub.f32 %v6331_v54, %v6705_v26  ;;  %v2914_v54 = vsub.f32 %v6337_v37, %v6707_v25 }
 0x709   : > { %v3079_v18 = vmul.f32 1.442695, %v2919_v46  ;;  %v3081_v21 = vmul.f32 1.442695, %v2920_v4 }
 0x70a   : > { %v6728_v47 = vpop.xlane.xlu1 %2801  ;;  %v6730_v52 = vpop.xlane.xlu0 %2804 }
 0x70b   : > { %5033 = vpow2.f32 %v3079_v18 }
 0x70c   : > { %5035 = vpow2.f32 %v3081_v21 }
 0x70d   : > { %5037 = vpow2.f32 %v3049_v57 }
 0x70e   : > { %5039 = vpow2.f32 %v3051_v28  ;;  %v2748_v38 = vpop.xlane.xlu1 %2747  ;;  %v2751_v33 = vpop.xlane.xlu0 %2750 }
 0x70f   : > { %5041 = vpow2.f32 %v3053_v31  ;;  %v2921_v4 = vsub.f32 %v6367_v2, %v2748_v38  ;;  %v2922_v46 = vsub.f32 %v6371_v1, %v2748_v38  ;;  %v2923_v34 = vsub.f32 %v6379_v58, %v2751_v33  ;;  %v6743_v1 = vpop.eup %5031 }
 0x710   : > { %5043 = vpow2.f32 %v3055_v43  ;;  %v2924_v7 = vsub.f32 %v6383_v60, %v2751_v33  ;;  %7820 = vst [vmem:[#allocation106_spill] sm:$0xff] %v6743_v1  ;;  %v3061_v58 = vmul.f32 1.442695, %v2910_v11  ;;  %v3065_v11 = vmul.f32 1.442695, %v2912_v27 }
 0x711   : > { %5045 = vpow2.f32 %v3057_v45  ;;  %v3083_v62 = vmul.f32 1.442695, %v2921_v4  ;;  %v3085_v57 = vmul.f32 1.442695, %v2922_v46  ;;  %v3087_v41 = vmul.f32 1.442695, %v2923_v34 }
 0x712   : > { %5047 = vpow2.f32 %v3059_v49  ;;  %v3089_v19 = vmul.f32 1.442695, %v2924_v7  ;;  %v6739_v21 = vpop.xlane.xlu1 %2807  ;;  %v6741_v2 = vpop.xlane.xlu0 %2810  ;;  %v2913_v45 = vsub.f32 %v6335_v55, %v6707_v25  ;;  %v2951_v4 = vsub.f32 %v6353_v48, %v6709_v56 }
 0x713   : > { %5049 = vpow2.f32 %v3083_v62  ;;  %v3069_v62 = vmul.f32 1.442695, %v2914_v54 }
 0x714   : > { %5051 = vpow2.f32 %v3085_v57  ;;  %v3067_v25 = vmul.f32 1.442695, %v2913_v45  ;;  %v3143_v48 = vmul.f32 1.442695, %v2951_v4 }
 0x715   : > { %v6745_v51 = vpop.eup %5033  ;;  %5053 = vpow2.f32 %v3087_v41  ;;  %v7827_v41 = vmax.f32 %v6659_v10, %v6663_v24 }
 0x716   : > { %v6747_v60 = vpop.eup %5035  ;;  %5055 = vpow2.f32 %v3089_v19  ;;  %v2754_v18 = vpop.xlane.xlu1 %2753 }
 0x717   : > { %v2757_v16 = vpop.xlane.xlu0 %2756  ;;  %v6749_v53 = vpop.eup %5037  ;;  %v2925_v28 = vsub.f32 %v6391_v15, %v2754_v18  ;;  %v2926_v30 = vsub.f32 %v6395_v20, %v2754_v18  ;;  %5057 = vpow2.f32 %v3061_v58  ;;  %v3319_v38 = vadd.f32 %v6747_v60, %v6745_v51 }
 0x718   : > { %7821 = vst [vmem:[#allocation107_spill] sm:$0xff] %v6749_v53  ;;  %v2927_v31 = vsub.f32 %v6403_v32, %v2757_v16  ;;  %v6756_v43 = vpop.eup %5039  ;;  %v2928_v49 = vsub.f32 %v6407_v35, %v2757_v16  ;;  %5059 = vpow2.f32 %v3063_v39 }
 0x719   : > { %7822 = vst [vmem:[#allocation108_spill] sm:$0xff] %v6756_v43  ;;  %v6763_v33 = vpop.eup %5041  ;;  %v3091_v15 = vmul.f32 1.442695, %v2925_v28  ;;  %v3093_v20 = vmul.f32 1.442695, %v2926_v30  ;;  %3320 = vadd.xlane.f32.xlu0 %v3319_v38  ;;  %v2952_v28 = vsub.f32 %v6357_v44, %v6709_v56 }
 0x71a   : > { %7823 = vst [vmem:[#allocation109_spill] sm:$0xff] %v6763_v33  ;;  %v3095_v26 = vmul.f32 1.442695, %v2927_v31  ;;  %v6767_v32 = vpop.eup %5043  ;;  %v3097_v55 = vmul.f32 1.442695, %v2928_v49  ;;  %v6771_v35 = vpop.xlane.xlu1 %2813 }
 0x71b   : > { %7824 = vst [vmem:[#allocation110_spill] sm:$0xff] %v6767_v32  ;;  %v6773_v46 = vpop.xlane.xlu0 %2816  ;;  %v6775_v34 = vpop.eup %5045  ;;  %5061 = vpow2.f32 %v3091_v15 }
 0x71c   : > { %7825 = vst [vmem:[#allocation111_spill] sm:$0xff] %v6775_v34  ;;  %v6777_v37 = vpop.eup %5047  ;;  %5063 = vpow2.f32 %v3093_v20  ;;  %v3145_v20 = vmul.f32 1.442695, %v2952_v28 }
 0x71d   : > { %v6779_v7 = vpop.eup %5049  ;;  %5065 = vpow2.f32 %v3095_v26  ;;  %2876 = vmax.xlane.f32.xlu0 %v7827_v41  ;;  %v2954_v41 = vsub.f32 %v6369_v0, %v6711_v12 }
 0x71e   : > { %7826 = vst [vmem:[#allocation112_spill] sm:$0xff] %v6779_v7  ;;  %v6781_v57 = vpop.eup %5051  ;;  %5067 = vpow2.f32 %v3097_v55  ;;  %v2760_v50 = vpop.xlane.xlu1 %2759 }
 0x71f   : > { %v2763_v19 = vpop.xlane.xlu0 %2762  ;;  %v6786_v58 = vpop.eup %5053  ;;  %5069 = vpow2.f32 %v3065_v11  ;;  %v2929_v39 = vsub.f32 %v6415_v42, %v2760_v50  ;;  %v2930_v18 = vsub.f32 %v6419_v5, %v2760_v50  ;;  %v3322_v31 = vadd.f32 %v6781_v57, %v6779_v7  ;;  %v7835_v50 = vld [vmem:[#allocation33_spill] sm:$0xff] }
 0x720   : > { %7828 = vst [vmem:[#allocation113_spill] sm:$0xff] %v6786_v58  ;;  %v2931_v16 = vsub.f32 %v6427_v23, %v2763_v19  ;;  %v6791_v27 = vpop.eup %5055  ;;  %5071 = vpow2.f32 %v3067_v25  ;;  %v2932_v30 = vsub.f32 %v6431_v29, %v2763_v19  ;;  %v2953_v5 = vsub.f32 %v6365_v6, %v6711_v12 }
 0x721   : > { %7829 = vst [vmem:[#allocation114_spill] sm:$0xff] %v6791_v27  ;;  %5073 = vpow2.f32 %v3069_v62  ;;  %v3099_v45 = vmul.f32 1.442695, %v2929_v39  ;;  %v3101_v49 = vmul.f32 1.442695, %v2930_v18  ;;  %v6798_v42 = vpop.eup %5057  ;;  %3323 = vadd.xlane.f32.xlu1 %v3322_v31  ;;  %v3325_v44 = vadd.f32 %v6791_v27, %v6786_v58  ;;  %v7836_v39 = vld [vmem:[#allocation35_spill] sm:$0xff] }
 0x722   : > { %v3103_v38 = vmul.f32 1.442695, %v2931_v16  ;;  %5075 = vpow2.f32 %v3143_v48  ;;  %v3105_v23 = vmul.f32 1.442695, %v2932_v30  ;;  %v6804_v56 = vpop.xlane.xlu1 %2819  ;;  %v6810_v15 = vpop.eup %5059  ;;  %v3147_v55 = vmul.f32 1.442695, %v2953_v5 }
 0x723   : > { %v6806_v29 = vpop.xlane.xlu0 %2822  ;;  %5077 = vpow2.f32 %v3099_v45  ;;  %7830 = vst [vmem:[#allocation115_spill] sm:$0xff] %v6810_v15  ;;  %3326 = vadd.xlane.f32.xlu0 %v3325_v44  ;;  %v7833_v11 = vmax.f32 %v6671_v22, %v6675_v13  ;;  %v7837_v16 = vld [vmem:[#allocation37_spill] sm:$0xff]  ;;  %v7839_v31 = vld [vmem:[#allocation18_spill] sm:$0xff] }
 0x724   : > { %5079 = vpow2.f32 %v3101_v49  ;;  %v2915_v45 = vsub.f32 %v7839_v31, %v6713_v59  ;;  %v7840_v49 = vmax.f32 %v6527_v36, %v6531_v40 }
 0x725   : > { %v6814_v26 = vpop.eup %5061  ;;  %5081 = vpow2.f32 %v3103_v38  ;;  %2879 = vmax.xlane.f32.xlu1 %v7833_v11  ;;  %v7841_v38 = vld [vmem:[#allocation39_spill] sm:$0xff] }
 0x726   : > { %7831 = vst [vmem:[#allocation116_spill] sm:$0xff] %v6814_v26  ;;  %v6816_v4 = vpop.eup %5063  ;;  %5083 = vpow2.f32 %v3105_v23  ;;  %v2766_v25 = vpop.xlane.xlu1 %2765  ;;  %v7843_v23 = vld [vmem:[#allocation19_spill] sm:$0xff] }
 0x727   : > { %7832 = vst [vmem:[#allocation117_spill] sm:$0xff] %v6816_v4  ;;  %v2769_v62 = vpop.xlane.xlu0 %2768  ;;  %v6821_v48 = vpop.eup %5065  ;;  %v2933_v19 = vsub.f32 %v7835_v50, %v2766_v25  ;;  %v2934_v18 = vsub.f32 %v7836_v39, %v2766_v25  ;;  %5085 = vpow2.f32 %v3145_v20  ;;  %2834 = vmax.xlane.f32.xlu0 %v7840_v49  ;;  %v3328_v0 = vadd.f32 %v6816_v4, %v6814_v26  ;;  %v7845_v39 = vld [vmem:[#allocation20_spill] sm:$0xff]  ;;  %v7856_v26 = vld [vmem:[#allocation43_spill] sm:$0xff] }
 0x728   : > { %7834 = vst [vmem:[#allocation118_spill] sm:$0xff] %v6821_v48  ;;  %v2935_v28 = vsub.f32 %v7837_v16, %v2769_v62  ;;  %v6828_v30 = vpop.eup %5067  ;;  %v2936_v5 = vsub.f32 %v7841_v38, %v2769_v62  ;;  %v2916_v44 = vsub.f32 %v7843_v23, %v6713_v59  ;;  %5087 = vpow2.f32 %v3147_v55  ;;  %v7857_v4 = vld [vmem:[#allocation44_spill] sm:$0xff] }
 0x729   : > { %7838 = vst [vmem:[#allocation33_spill] sm:$0xff] %v6828_v30  ;;  %v6838_v12 = vpop.eup %5069  ;;  %v3107_v11 = vmul.f32 1.442695, %v2933_v19  ;;  %v3109_v25 = vmul.f32 1.442695, %v2934_v18  ;;  %v2917_v16 = vsub.f32 %v7845_v39, %v6716_v8  ;;  %3329 = vadd.xlane.f32.xlu1 %v3328_v0  ;;  %v3331_v62 = vadd.f32 %v6828_v30, %v6821_v48  ;;  %v7846_v19 = vld [vmem:[#allocation50_spill] sm:$0xff] }
 0x72a   : > { %7842 = vst [vmem:[#allocation35_spill] sm:$0xff] %v6838_v12  ;;  %v3111_v20 = vmul.f32 1.442695, %v2935_v28  ;;  %v6842_v50 = vpop.eup %5071  ;;  %v3113_v31 = vmul.f32 1.442695, %v2936_v5  ;;  %v6848_v49 = vpop.xlane.xlu1 %2825  ;;  %v7848_v5 = vld [vmem:[#allocation52_spill] sm:$0xff] }
 0x72b   : > { %7844 = vst [vmem:[#allocation37_spill] sm:$0xff] %v6842_v50  ;;  %v6850_v38 = vpop.xlane.xlu0 %2828  ;;  %v6852_v6 = vpop.eup %5073  ;;  %v3149_v59 = vmul.f32 1.442695, %v2954_v41  ;;  %5089 = vpow2.f32 %v3107_v11  ;;  %v3071_v28 = vmul.f32 1.442695, %v2915_v45  ;;  %3332 = vadd.xlane.f32.xlu0 %v3331_v62  ;;  %v7851_v41 = vld [vmem:[#allocation21_spill] sm:$0xff]  ;;  %v3295_v45 = vadd.f32 %v6749_v53, %v6743_v1 }
 0x72c   : > { %v6856_v55 = vpop.eup %5075  ;;  %5091 = vpow2.f32 %v3109_v25  ;;  %v3073_v39 = vmul.f32 1.442695, %v2916_v44  ;;  %v2918_v11 = vsub.f32 %v7851_v41, %v6716_v8  ;;  %v3075_v48 = vmul.f32 1.442695, %v2917_v16  ;;  %v7852_v18 = vld [vmem:[#allocation64_spill] sm:$0xff]  ;;  %v7855_v44 = vld [vmem:[#allocation41_spill] sm:$0xff] }
 0x72d   : > { %7847 = vst [vmem:[#allocation18_spill] sm:$0xff] %v6856_v55  ;;  %v6860_v23 = vpop.eup %5077  ;;  %5093 = vpow2.f32 %v3111_v20  ;;  %v7853_v30 = vmax.f32 %v6545_v3, %v7852_v18  ;;  %v7860_v41 = vld [vmem:[#allocation45_spill] sm:$0xff] }
 0x72e   : > { %7849 = vst [vmem:[#allocation39_spill] sm:$0xff] %v6860_v23  ;;  %v6862_v54 = vpop.eup %5079  ;;  %5095 = vpow2.f32 %v3113_v31  ;;  %v2772_v25 = vpop.xlane.xlu1 %2771  ;;  %v7859_v31 = vld [vmem:[#allocation22_spill] sm:$0xff] }
 0x72f   : > { %7850 = vst [vmem:[#allocation19_spill] sm:$0xff] %v6862_v54  ;;  %2837 = vmax.xlane.f32.xlu1 %v7853_v30  ;;  %v2775_v62 = vpop.xlane.xlu0 %2774  ;;  %v6871_v0 = vpop.eup %5081  ;;  %5097 = vpow2.f32 %v3149_v59  ;;  %v2937_v20 = vsub.f32 %v7855_v44, %v2772_v25  ;;  %v2938_v58 = vsub.f32 %v7856_v26, %v2772_v25  ;;  %v2955_v30 = vsub.f32 %v7859_v31, %v6720_v61 }
 0x730   : > { %7854 = vst [vmem:[#allocation20_spill] sm:$0xff] %v6871_v0  ;;  %v2939_v8 = vsub.f32 %v7857_v4, %v2775_v62  ;;  %v6876_v16 = vpop.eup %5083  ;;  %5099 = vpow2.f32 %v3071_v28  ;;  %3296 = vadd.xlane.f32.xlu0 %v3295_v45  ;;  %v2940_v1 = vsub.f32 %v7860_v41, %v2775_v62  ;;  %v3334_v53 = vadd.f32 %v6862_v54, %v6860_v23  ;;  %v7862_v62 = vld [vmem:[#allocation51_spill] sm:$0xff]  ;;  %v7881_v54 = vld [vmem:[#allocation58_spill] sm:$0xff] }
 0x731   : > { %7858 = vst [vmem:[#allocation50_spill] sm:$0xff] %v6876_v16  ;;  %5101 = vpow2.f32 %v3073_v39  ;;  %v3115_v59 = vmul.f32 1.442695, %v2937_v20  ;;  %v3117_v27 = vmul.f32 1.442695, %v2938_v58  ;;  %v6883_v7 = vpop.eup %5085  ;;  %v3337_v4 = vadd.f32 %v6876_v16, %v6871_v0  ;;  %v7870_v0 = vld [vmem:[#allocation47_spill] sm:$0xff] }
 0x732   : > { %v3119_v44 = vmul.f32 1.442695, %v2939_v8  ;;  %7861 = vst [vmem:[#allocation52_spill] sm:$0xff] %v6883_v7  ;;  %5103 = vpow2.f32 %v3075_v48  ;;  %v3121_v26 = vmul.f32 1.442695, %v2940_v1  ;;  %v6887_v28 = vpop.xlane.xlu1 %2831  ;;  %v6890_v41 = vpop.eup %5087  ;;  %v3298_v58 = vadd.f32 %v6763_v33, %v6756_v43 }
 0x733   : > { %3335 = vadd.xlane.f32.xlu1 %v3334_v53  ;;  %v2781_v45 = vpop.xlane.xlu0 %2780  ;;  %v3077_v25 = vmul.f32 1.442695, %v2918_v11  ;;  %5105 = vpow2.f32 %v3115_v59  ;;  %7863 = vst [vmem:[#allocation21_spill] sm:$0xff] %v6890_v41  ;;  %v3151_v39 = vmul.f32 1.442695, %v2955_v30  ;;  %v7865_v53 = vld [vmem:[#allocation53_spill] sm:$0xff] }
 0x734   : > { %v2943_v31 = vsub.f32 %v7862_v62, %v2781_v45  ;;  %5107 = vpow2.f32 %v3117_v27  ;;  %3338 = vadd.xlane.f32.xlu0 %v3337_v4  ;;  %v2944_v48 = vsub.f32 %v7865_v53, %v2781_v45  ;;  %v7867_v11 = vld [vmem:[#allocation23_spill] sm:$0xff]  ;;  %v7869_v27 = vld [vmem:[#allocation24_spill] sm:$0xff]  ;;  %v7873_v53 = vld [vmem:[#allocation25_spill] sm:$0xff] }
 0x735   : > { %v6894_v1 = vpop.eup %5089  ;;  %5109 = vpow2.f32 %v3119_v44  ;;  %v2956_v8 = vsub.f32 %v7867_v11, %v6720_v61  ;;  %v2957_v4 = vsub.f32 %v7869_v27, %v6728_v47  ;;  %v7871_v44 = vld [vmem:[#allocation49_spill] sm:$0xff]  ;;  %v2958_v61 = vsub.f32 %v7873_v53, %v6728_v47 }
 0x736   : > { %7864 = vst [vmem:[#allocation64_spill] sm:$0xff] %v6894_v1  ;;  %v6897_v20 = vpop.eup %5091  ;;  %5111 = vpow2.f32 %v3121_v26  ;;  %v3127_v59 = vmul.f32 1.442695, %v2943_v31  ;;  %v2778_v62 = vpop.xlane.xlu1 %2777  ;;  %v7874_v26 = vmax.f32 %v6683_v63, %v6687_v14  ;;  %v3129_v11 = vmul.f32 1.442695, %v2944_v48 }
 0x737   : > { %7866 = vst [vmem:[#allocation41_spill] sm:$0xff] %v6897_v20  ;;  %3299 = vadd.xlane.f32.xlu1 %v3298_v58  ;;  %v6901_v30 = vpop.eup %5093  ;;  %5113 = vpow2.f32 %v3077_v25  ;;  %v2941_v16 = vsub.f32 %v7870_v0, %v2778_v62  ;;  %v2942_v43 = vsub.f32 %v7871_v44, %v2778_v62  ;;  %v3340_v25 = vadd.f32 %v6897_v20, %v6894_v1  ;;  %v7876_v58 = vld [vmem:[#allocation26_spill] sm:$0xff]  ;;  %v2787_v44 = vpop.xlane.xlu0 %2786  ;;  %v7879_v20 = vld [vmem:[#allocation55_spill] sm:$0xff] }
 0x738   : > { %7868 = vst [vmem:[#allocation43_spill] sm:$0xff] %v6901_v30  ;;  %v6907_v45 = vpop.eup %5095  ;;  %5115 = vpow2.f32 %v3151_v39  ;;  %2882 = vmax.xlane.f32.xlu0 %v7874_v26  ;;  %v2959_v0 = vsub.f32 %v7876_v58, %v6730_v52  ;;  %v3153_v33 = vmul.f32 1.442695, %v2956_v8  ;;  %v3155_v1 = vmul.f32 1.442695, %v2957_v4  ;;  %v7880_v58 = vld [vmem:[#allocation57_spill] sm:$0xff] }
 0x739   : > { %7872 = vst [vmem:[#allocation44_spill] sm:$0xff] %v6907_v45  ;;  %v6916_v31 = vpop.eup %5097  ;;  %v3123_v62 = vmul.f32 1.442695, %v2941_v16  ;;  %v3125_v27 = vmul.f32 1.442695, %v2942_v43  ;;  %5117 = vpow2.f32 %v3127_v59  ;;  %v3343_v47 = vadd.f32 %v6907_v45, %v6901_v30  ;;  %v7883_v30 = vld [vmem:[#allocation59_spill] sm:$0xff] }
 0x73a   : > { %7875 = vst [vmem:[#allocation22_spill] sm:$0xff] %v6916_v31  ;;  %v6920_v39 = vpop.eup %5099  ;;  %v2784_v53 = vpop.xlane.xlu1 %2783  ;;  %v3157_v43 = vmul.f32 1.442695, %v2958_v61  ;;  %v2947_v8 = vsub.f32 %v7881_v54, %v2787_v44  ;;  %v2948_v45 = vsub.f32 %v7883_v30, %v2787_v44  ;;  %v3301_v54 = vadd.f32 %v6775_v34, %v6767_v32 }
 0x73b   : > { %7877 = vst [vmem:[#allocation45_spill] sm:$0xff] %v6920_v39  ;;  %3341 = vadd.xlane.f32.xlu1 %v3340_v25  ;;  %v6924_v26 = vpop.eup %5101  ;;  %5119 = vpow2.f32 %v3123_v62  ;;  %v2945_v23 = vsub.f32 %v7879_v20, %v2784_v53  ;;  %v2946_v48 = vsub.f32 %v7880_v58, %v2784_v53  ;;  %v3159_v25 = vmul.f32 1.442695, %v2959_v0  ;;  %v7885_v20 = vld [vmem:[#allocation27_spill] sm:$0xff]  ;;  %v7887_v58 = vld [vmem:[#allocation105_spill] sm:$0xff]  ;;  %v7890_v0 = vld [vmem:[#allocation28_spill] sm:$0xff] }
 0x73c   : > { %7878 = vst [vmem:[#allocation51_spill] sm:$0xff] %v6924_v26  ;;  %v6928_v16 = vpop.eup %5103  ;;  %5121 = vpow2.f32 %v3125_v27  ;;  %3344 = vadd.xlane.f32.xlu0 %v3343_v47  ;;  %v2960_v4 = vsub.f32 %v7885_v20, %v6730_v52  ;;  %v7886_v53 = vld [vmem:[#allocation103_spill] sm:$0xff]  ;;  %v2961_v30 = vsub.f32 %v7890_v0, %v6739_v21  ;;  %v3135_v20 = vmul.f32 1.442695, %v2947_v8  ;;  %v7896_v8 = vld [vmem:[#allocation61_spill] sm:$0xff] }
 0x73d   : > { %v6931_v59 = vpop.eup %5105  ;;  %5123 = vpow2.f32 %v3129_v11  ;;  %v3131_v62 = vmul.f32 1.442695, %v2945_v23  ;;  %v7888_v61 = vmax.f32 %v7886_v53, %v7887_v58  ;;  %v3133_v11 = vmul.f32 1.442695, %v2946_v48  ;;  %v7892_v23 = vld [vmem:[#allocation29_spill] sm:$0xff]  ;;  %v2841_v48 = vpop.xlane.xlu0 %2840 }
 0x73e   : > { %7882 = vst [vmem:[#allocation53_spill] sm:$0xff] %v6931_v59  ;;  %v6934_v14 = vpop.eup %5107  ;;  %5125 = vpow2.f32 %v3153_v33  ;;  %v2790_v44 = vpop.xlane.xlu1 %2789  ;;  %v2962_v47 = vsub.f32 %v7892_v23, %v6739_v21  ;;  %v3137_v0 = vmul.f32 1.442695, %v2948_v45  ;;  %v3163_v21 = vmul.f32 1.442695, %v2961_v30  ;;  %v7898_v45 = vld [vmem:[#allocation62_spill] sm:$0xff] }
 0x73f   : > { %7884 = vst [vmem:[#allocation23_spill] sm:$0xff] %v6934_v14  ;;  %2885 = vmax.xlane.f32.xlu1 %v7888_v61  ;;  %v6943_v27 = vpop.eup %5109  ;;  %5127 = vpow2.f32 %v3155_v1  ;;  %v3346_v33 = vadd.f32 %v6934_v14, %v6931_v59  ;;  %v7893_v1 = vld [vmem:[#allocation30_spill] sm:$0xff]  ;;  %v3161_v14 = vmul.f32 1.442695, %v2960_v4 }
 0x740   : > { %7889 = vst [vmem:[#allocation24_spill] sm:$0xff] %v6943_v27  ;;  %v6949_v52 = vpop.eup %5111  ;;  %5129 = vpow2.f32 %v3157_v43  ;;  %3302 = vadd.xlane.f32.xlu0 %v3301_v54  ;;  %v2963_v32 = vsub.f32 %v7893_v1, %v6741_v2  ;;  %v7895_v43 = vld [vmem:[#allocation60_spill] sm:$0xff]  ;;  %v2950_v54 = vsub.f32 %v7896_v8, %v2790_v44  ;;  %v3165_v23 = vmul.f32 1.442695, %v2962_v47 }
 0x741   : > { %7891 = vst [vmem:[#allocation47_spill] sm:$0xff] %v6949_v52  ;;  %v6953_v61 = vpop.eup %5113  ;;  %5131 = vpow2.f32 %v3159_v25  ;;  %v3349_v34 = vadd.f32 %v6949_v52, %v6943_v27  ;;  %v2949_v58 = vsub.f32 %v7895_v43, %v2790_v44  ;;  %v2983_v1 = vsub.f32 %v7898_v45, %v2841_v48  ;;  %v7904_v43 = vld [vmem:[#allocation32_spill] sm:$0xff] }
 0x742   : > { %v6959_v59 = vpop.eup %5115  ;;  %5133 = vpow2.f32 %v3131_v62  ;;  %v3304_v27 = vadd.f32 %v6798_v42, %v6777_v37  ;;  %v3167_v4 = vmul.f32 1.442695, %v2963_v32  ;;  %v7900_v62 = vld [vmem:[#allocation63_spill] sm:$0xff]  ;;  %v2965_v32 = vsub.f32 %v7904_v43, %v6771_v35  ;;  %v2844_v8 = vpop.xlane.xlu1 %2843 }
 0x743   : > { %7894 = vst [vmem:[#allocation49_spill] sm:$0xff] %v6959_v59  ;;  %3347 = vadd.xlane.f32.xlu1 %v3346_v33  ;;  %5135 = vpow2.f32 %v3133_v11  ;;  %v6963_v25 = vpop.eup %5117  ;;  %v2984_v33 = vsub.f32 %v7900_v62, %v2841_v48  ;;  %v7902_v11 = vld [vmem:[#allocation31_spill] sm:$0xff]  ;;  %v3139_v47 = vmul.f32 1.442695, %v2949_v58 }
 0x744   : > { %7897 = vst [vmem:[#allocation25_spill] sm:$0xff] %v6963_v25  ;;  %5137 = vpow2.f32 %v3135_v20  ;;  %3350 = vadd.xlane.f32.xlu0 %v3349_v34  ;;  %v2964_v44 = vsub.f32 %v7902_v11, %v6741_v2  ;;  %v3307_v34 = vadd.f32 %v6838_v12, %v6810_v15  ;;  %v7906_v2 = vld [vmem:[#allocation34_spill] sm:$0xff]  ;;  %v7910_v12 = vld [vmem:[#allocation65_spill] sm:$0xff] }
 0x745   : > { %v6968_v52 = vpop.eup %5119  ;;  %5139 = vpow2.f32 %v3137_v0  ;;  %v3141_v0 = vmul.f32 1.442695, %v2950_v54  ;;  %v2966_v58 = vsub.f32 %v7906_v2, %v6771_v35  ;;  %v3209_v11 = vmul.f32 1.442695, %v2984_v33  ;;  %v2847_v54 = vpop.xlane.xlu0 %2846 }
 0x746   : > { %7899 = vst [vmem:[#allocation26_spill] sm:$0xff] %v6968_v52  ;;  %v6971_v30 = vpop.eup %5121  ;;  %5141 = vpow2.f32 %v3161_v14  ;;  %v3169_v15 = vmul.f32 1.442695, %v2964_v44 }
 0x747   : > { %7901 = vst [vmem:[#allocation55_spill] sm:$0xff] %v6971_v30  ;;  %3305 = vadd.xlane.f32.xlu1 %v3304_v27  ;;  %v6977_v20 = vpop.eup %5123  ;;  %5143 = vpow2.f32 %v3163_v21  ;;  %v3352_v48 = vadd.f32 %v6971_v30, %v6968_v52  ;;  %v3207_v27 = vmul.f32 1.442695, %v2983_v1  ;;  %v7908_v21 = vld [vmem:[#allocation36_spill] sm:$0xff]  ;;  %v2985_v52 = vsub.f32 %v7910_v12, %v2844_v8 }
 0x748   : > { %7903 = vst [vmem:[#allocation57_spill] sm:$0xff] %v6977_v20  ;;  %v6983_v14 = vpop.eup %5125  ;;  %5145 = vpow2.f32 %v3165_v23  ;;  %3308 = vadd.xlane.f32.xlu0 %v3307_v34  ;;  %v2967_v62 = vsub.f32 %v7908_v21, %v6773_v46  ;;  %v3355_v35 = vadd.f32 %v6977_v20, %v6963_v25  ;;  %v3171_v1 = vmul.f32 1.442695, %v2965_v32  ;;  %v7914_v21 = vld [vmem:[#allocation67_spill] sm:$0xff]  ;;  %v2850_v32 = vpop.xlane.xlu1 %2849  ;;  %v7920_v20 = vld [vmem:[#allocation69_spill] sm:$0xff] }
 0x749   : > { %7905 = vst [vmem:[#allocation58_spill] sm:$0xff] %v6983_v14  ;;  %v6987_v45 = vpop.eup %5127  ;;  %5147 = vpow2.f32 %v3167_v4  ;;  %v7912_v4 = vld [vmem:[#allocation66_spill] sm:$0xff]  ;;  %v3173_v33 = vmul.f32 1.442695, %v2966_v58  ;;  %v2987_v30 = vsub.f32 %v7914_v21, %v2847_v54  ;;  %v3310_v12 = vadd.f32 %v6852_v6, %v6842_v50 }
 0x74a   : > { %7907 = vst [vmem:[#allocation59_spill] sm:$0xff] %v6987_v45  ;;  %v6991_v43 = vpop.eup %5129  ;;  %5149 = vpow2.f32 %v3139_v47  ;;  %v2986_v34 = vsub.f32 %v7912_v4, %v2844_v8  ;;  %v3175_v47 = vmul.f32 1.442695, %v2967_v62  ;;  %v7917_v8 = vld [vmem:[#allocation38_spill] sm:$0xff]  ;;  %v7918_v62 = vld [vmem:[#allocation40_spill] sm:$0xff]  ;;  %v2989_v50 = vsub.f32 %v7920_v20, %v2850_v32 }
 0x74b   : > { %7909 = vst [vmem:[#allocation27_spill] sm:$0xff] %v6991_v43  ;;  %3353 = vadd.xlane.f32.xlu1 %v3352_v48  ;;  %v6996_v23 = vpop.eup %5131  ;;  %5151 = vpow2.f32 %v3141_v0  ;;  %v7915_v48 = vld [vmem:[#allocation68_spill] sm:$0xff]  ;;  %v2968_v58 = vsub.f32 %v7917_v8, %v6773_v46 }
 0x74c   : > { %7911 = vst [vmem:[#allocation103_spill] sm:$0xff] %v6996_v23  ;;  %v6999_v2 = vpop.eup %5133  ;;  %5153 = vpow2.f32 %v3207_v27  ;;  %3356 = vadd.xlane.f32.xlu0 %v3355_v35  ;;  %v2988_v25 = vsub.f32 %v7915_v48, %v2847_v54  ;;  %v3211_v27 = vmul.f32 1.442695, %v2985_v52  ;;  %v3313_v35 = vadd.f32 %v6924_v26, %v6920_v39  ;;  %v2853_v54 = vpop.xlane.xlu0 %2852 }
 0x74d   : > { %7913 = vst [vmem:[#allocation28_spill] sm:$0xff] %v6999_v2  ;;  %v7004_v44 = vpop.eup %5135  ;;  %5155 = vpow2.f32 %v3209_v11  ;;  %v2969_v11 = vsub.f32 %v7918_v62, %v6804_v56  ;;  %v3213_v21 = vmul.f32 1.442695, %v2986_v34  ;;  %v3177_v34 = vmul.f32 1.442695, %v2968_v58  ;;  %v7922_v62 = vld [vmem:[#allocation71_spill] sm:$0xff] }
 0x74e   : > { %v7007_v0 = vpop.eup %5137  ;;  %5157 = vpow2.f32 %v3169_v15  ;;  %v3215_v15 = vmul.f32 1.442695, %v2987_v30  ;;  %v3358_v46 = vadd.f32 %v7004_v44, %v6999_v2  ;;  %v2991_v26 = vsub.f32 %v7922_v62, %v2853_v54 }
 0x74f   : > { %7916 = vst [vmem:[#allocation29_spill] sm:$0xff] %v7007_v0  ;;  %3311 = vadd.xlane.f32.xlu1 %v3310_v12  ;;  %v7013_v4 = vpop.eup %5139  ;;  %5159 = vpow2.f32 %v3171_v1  ;;  %v3217_v12 = vmul.f32 1.442695, %v2988_v25  ;;  %v7921_v1 = vld [vmem:[#allocation70_spill] sm:$0xff]  ;;  %v3219_v58 = vmul.f32 1.442695, %v2989_v50 }
 0x750   : > { %v7017_v48 = vpop.eup %5141  ;;  %5161 = vpow2.f32 %v3173_v33  ;;  %3314 = vadd.xlane.f32.xlu0 %v3313_v35  ;;  %v2990_v8 = vsub.f32 %v7921_v1, %v2850_v32  ;;  %v3361_v30 = vadd.f32 %v7013_v4, %v7007_v0  ;;  %v3179_v33 = vmul.f32 1.442695, %v2969_v11  ;;  %v7923_v35 = vld [vmem:[#allocation72_spill] sm:$0xff]  ;;  %v7925_v25 = vld [vmem:[#allocation42_spill] sm:$0xff] }
 0x751   : > { %7919 = vst [vmem:[#allocation30_spill] sm:$0xff] %v7017_v48  ;;  %v7022_v52 = vpop.eup %5143  ;;  %5163 = vpow2.f32 %v3175_v47  ;;  %v2992_v2 = vsub.f32 %v7923_v35, %v2853_v54  ;;  %v2970_v32 = vsub.f32 %v7925_v25, %v6804_v56  ;;  %v3223_v11 = vmul.f32 1.442695, %v2991_v26  ;;  %v7928_v26 = vld [vmem:[#allocation46_spill] sm:$0xff] }
 0x752   : > { %v7025_v39 = vpop.eup %5145  ;;  %5165 = vpow2.f32 %v3211_v27  ;;  %v3316_v27 = vadd.f32 %v6953_v61, %v6928_v16  ;;  %v3221_v1 = vmul.f32 1.442695, %v2990_v8  ;;  %v2859_v54 = vpop.xlane.xlu0 %2858  ;;  %v3367_v56 = vadd.f32 %v6883_v7, %v6856_v55 }
 0x753   : > { %3359 = vadd.xlane.f32.xlu1 %v3358_v46  ;;  %v7030_v20 = vpop.eup %5147  ;;  %5167 = vpow2.f32 %v3213_v21  ;;  %v2856_v21 = vpop.xlane.xlu1 %2855  ;;  %v3225_v50 = vmul.f32 1.442695, %v2992_v2  ;;  %v3181_v35 = vmul.f32 1.442695, %v2970_v32 }
 0x754   : > { %v7033_v47 = vpop.eup %5149  ;;  %5169 = vpow2.f32 %v3215_v15  ;;  %3362 = vadd.xlane.f32.xlu0 %v3361_v30 }
 0x755   : > { %7924 = vst [vmem:[#allocation60_spill] sm:$0xff] %v7033_v47  ;;  %v7039_v46 = vpop.eup %5151  ;;  %5171 = vpow2.f32 %v3217_v12 }
 0x756   : > { %v7041_v62 = vpop.eup %5153  ;;  %5173 = vpow2.f32 %v3177_v34  ;;  %v3364_v12 = vadd.f32 %v7039_v46, %v7033_v47  ;;  %v2973_v34 = vsub.f32 %v7928_v26, %v6848_v49  ;;  %v7936_v47 = vld [vmem:[#allocation76_spill] sm:$0xff] }
 0x757   : > { %7926 = vst [vmem:[#allocation61_spill] sm:$0xff] %v7041_v62  ;;  %3317 = vadd.xlane.f32.xlu1 %v3316_v27  ;;  %v7045_v15 = vpop.eup %5155  ;;  %5175 = vpow2.f32 %v3179_v33  ;;  %v7929_v33 = vsub.f32 %v6473_v17, %v6806_v29  ;;  %v7930_v27 = vld [vmem:[#allocation73_spill] sm:$0xff]  ;;  %v7933_v17 = vsub.f32 %v6477_v9, %v6806_v29  ;;  %v3373_v29 = vadd.f32 %v6983_v14, %v6959_v59 }
 0x758   : > { %7927 = vst [vmem:[#allocation62_spill] sm:$0xff] %v7045_v15  ;;  %v7047_v30 = vpop.eup %5157  ;;  %5177 = vpow2.f32 %v3219_v58  ;;  %3368 = vadd.xlane.f32.xlu0 %v3367_v56  ;;  %v2993_v32 = vsub.f32 %v7930_v27, %v2856_v21  ;;  %v7061_v58 = vpop.xlane.xlu1 %2861  ;;  %v3415_v56 = vadd.f32 %v7045_v15, %v7041_v62  ;;  %v3187_v15 = vmul.f32 1.442695, %v2973_v34 }
 0x759   : > { %v7051_v8 = vpop.eup %5159  ;;  %5179 = vpow2.f32 %v3221_v1  ;;  %v3183_v2 = vmul.f32 1.442695, %v7929_v33  ;;  %v7931_v1 = vld [vmem:[#allocation74_spill] sm:$0xff]  ;;  %v7934_v33 = vld [vmem:[#allocation75_spill] sm:$0xff] }
 0x75a   : > { %v7055_v25 = vpop.eup %5161  ;;  %5181 = vpow2.f32 %v3223_v11  ;;  %v3273_v55 = vpop.xlane.xlu0 %3272  ;;  %v2994_v26 = vsub.f32 %v7931_v1, %v2856_v21  ;;  %v3185_v11 = vmul.f32 1.442695, %v7933_v17  ;;  %v2995_v27 = vsub.f32 %v7934_v33, %v2859_v54 }
 0x75b   : > { %3365 = vadd.xlane.f32.xlu1 %v3364_v12  ;;  %v7065_v7 = vpop.eup %5163  ;;  %5183 = vpow2.f32 %v3225_v50  ;;  %v3370_v12 = vadd.f32 %v6916_v31, %v6890_v41  ;;  %v2996_v50 = vsub.f32 %v7936_v47, %v2859_v54  ;;  %v3227_v9 = vmul.f32 1.442695, %v2993_v32  ;;  %v7940_v47 = vld [vmem:[#allocation77_spill] sm:$0xff] }
 0x75c   : > { %v7068_v0 = vpop.eup %5165  ;;  %5185 = vpow2.f32 %v3181_v35  ;;  %3416 = vadd.xlane.f32.xlu0 %v3415_v56  ;;  %v7938_v35 = vld [vmem:[#allocation48_spill] sm:$0xff]  ;;  %v3229_v41 = vmul.f32 1.442695, %v2994_v26  ;;  %v2997_v54 = vsub.f32 %v7940_v47, %v7061_v58 }
 0x75d   : > { %7932 = vst [vmem:[#allocation63_spill] sm:$0xff] %v7068_v0  ;;  %v7076_v62 = vpop.eup %5167  ;;  %5187 = vrcp.f32 %v3273_v55  ;;  %v2974_v1 = vsub.f32 %v7938_v35, %v6848_v49  ;;  %v3231_v55 = vmul.f32 1.442695, %v2995_v27  ;;  %v3233_v32 = vmul.f32 1.442695, %v2996_v50  ;;  %v7945_v50 = vld [vmem:[#allocation80_spill] sm:$0xff] }
 0x75e   : > { %7935 = vst [vmem:[#allocation31_spill] sm:$0xff] %v7076_v62  ;;  %v7079_v21 = vpop.eup %5169  ;;  %5189 = vpow2.f32 %v3183_v2  ;;  %v3276_v56 = vpop.xlane.xlu1 %3275  ;;  %v3418_v49 = vadd.f32 %v7076_v62, %v7068_v0 }
 0x75f   : > { %7937 = vst [vmem:[#allocation32_spill] sm:$0xff] %v7079_v21  ;;  %3371 = vadd.xlane.f32.xlu1 %v3370_v12  ;;  %v2865_v17 = vpop.xlane.xlu0 %2864  ;;  %v7085_v33 = vpop.eup %5171  ;;  %5191 = vrcp.f32 %v3276_v56  ;;  %v3189_v35 = vmul.f32 1.442695, %v2974_v1  ;;  %v3376_v1 = vadd.f32 %v6991_v43, %v6987_v45  ;;  %v7950_v45 = vld [vmem:[#allocation88_spill] sm:$0xff] }
 0x760   : > { %7939 = vst [vmem:[#allocation34_spill] sm:$0xff] %v7085_v33  ;;  %v7087_v34 = vpop.eup %5173  ;;  %5193 = vpow2.f32 %v3185_v11  ;;  %3374 = vadd.xlane.f32.xlu0 %v3373_v29  ;;  %v3421_v26 = vadd.f32 %v7085_v33, %v7079_v21  ;;  %v7943_v29 = vld [vmem:[#allocation78_spill] sm:$0xff]  ;;  %v2999_v14 = vsub.f32 %v7945_v50, %v2865_v17  ;;  %v7948_v33 = vld [vmem:[#allocation84_spill] sm:$0xff] }
 0x761   : > { %v7093_v2 = vpop.eup %5175  ;;  %5195 = vpow2.f32 %v3187_v15  ;;  %v2998_v47 = vsub.f32 %v7943_v29, %v7061_v58  ;;  %v3235_v15 = vmul.f32 1.442695, %v2997_v54  ;;  %v3379_v58 = vadd.f32 %v7017_v48, %v6996_v23 }
 0x762   : > { %v7095_v12 = vpop.eup %5177  ;;  %5197 = vpow2.f32 %v3227_v9  ;;  %v2868_v11 = vpop.xlane.xlu1 %2867 }
 0x763   : > { %7941 = vst [vmem:[#allocation36_spill] sm:$0xff] %v7095_v12  ;;  %3419 = vadd.xlane.f32.xlu1 %v3418_v49  ;;  %v3279_v27 = vpop.xlane.xlu0 %3278  ;;  %v7099_v56 = vpop.eup %5179  ;;  %5199 = vpow2.f32 %v3229_v41  ;;  %v7947_v49 = vld [vmem:[#allocation82_spill] sm:$0xff]  ;;  %v3001_v41 = vsub.f32 %v7948_v33, %v2868_v11  ;;  %v3237_v29 = vmul.f32 1.442695, %v2998_v47 }
 0x764   : > { %7942 = vst [vmem:[#allocation65_spill] sm:$0xff] %v7099_v56  ;;  %v7103_v59 = vpop.eup %5181  ;;  %5201 = vpow2.f32 %v3231_v55  ;;  %3422 = vadd.xlane.f32.xlu0 %v3421_v26  ;;  %v3000_v21 = vsub.f32 %v7947_v49, %v2865_v17  ;;  %v3424_v50 = vadd.f32 %v7099_v56, %v7095_v12  ;;  %v3239_v17 = vmul.f32 1.442695, %v2999_v14  ;;  %v7949_v33 = vld [vmem:[#allocation86_spill] sm:$0xff]  ;;  %v7951_v56 = vld [vmem:[#allocation81_spill] sm:$0xff] }
 0x765   : > { %7944 = vst [vmem:[#allocation66_spill] sm:$0xff] %v7103_v59  ;;  %v7108_v9 = vpop.eup %5183  ;;  %5203 = vpow2.f32 %v3233_v32  ;;  %v3002_v49 = vsub.f32 %v7949_v33, %v2868_v11  ;;  %v3243_v48 = vmul.f32 1.442695, %v3001_v41  ;;  %v7952_v14 = vld [vmem:[#allocation85_spill] sm:$0xff]  ;;  %v7953_v11 = vld [vmem:[#allocation79_spill] sm:$0xff] }
 0x766   : > { %7946 = vst [vmem:[#allocation67_spill] sm:$0xff] %v7108_v9  ;;  %v7112_v0 = vpop.eup %5185  ;;  %5205 = vpow2.f32 %v3189_v35  ;;  %v3282_v55 = vpop.xlane.xlu1 %3281  ;;  %v3427_v35 = vadd.f32 %v7108_v9, %v7103_v59  ;;  %v3241_v23 = vmul.f32 1.442695, %v3000_v21  ;;  %v7954_v33 = vld [vmem:[#allocation83_spill] sm:$0xff]  ;;  %v7955_v21 = vld [vmem:[#allocation90_spill] sm:$0xff] }
 0x767   : > { %3377 = vadd.xlane.f32.xlu1 %v3376_v1  ;;  %v2871_v54 = vpop.xlane.xlu0 %2870  ;;  %v5188_v26 = vpop.eup %5187  ;;  %5207 = vrcp.f32 %v3279_v27 }
 0x768   : > { %v7118_v32 = vpop.eup %5189  ;;  %5209 = vpow2.f32 %v3235_v15  ;;  %3380 = vadd.xlane.f32.xlu0 %v3379_v58  ;;  %v3003_v47 = vsub.f32 %v7950_v45, %v2871_v54  ;;  %v3528_v15 = vmul.f32 %v5188_v26, %v7951_v56  ;;  %v3527_v58 = vmul.f32 %v5188_v26, %v7953_v11 }
 0x769   : > { %v5192_v1 = vpop.eup %5191  ;;  %5211 = vrcp.f32 %v3282_v55  ;;  %v3004_v41 = vsub.f32 %v7955_v21, %v2871_v54  ;;  %v3382_v45 = vadd.f32 %v7025_v39, %v7022_v52  ;;  %v3385_v54 = vadd.f32 %v7047_v30, %v7030_v20  ;;  %v7959_v21 = vld [vmem:[#allocation94_spill] sm:$0xff] }
 0x76a   : > { %v7124_v27 = vpop.eup %5193  ;;  %v7126_v12 = vpop.xlane.xlu1 %2873  ;;  %v3530_v43 = vmul.f32 %v5192_v1, %v7952_v14  ;;  %v3529_v62 = vmul.f32 %v5192_v1, %v7954_v33  ;;  %5213 = vpow2.f32 %v3237_v29  ;;  %v3247_v29 = vmul.f32 1.442695, %v3003_v47 }
 0x76b   : > { %3425 = vadd.xlane.f32.xlu1 %v3424_v50  ;;  %v7132_v59 = vpop.eup %5195  ;;  %5215 = vpow2.f32 %v3239_v17  ;;  %v3245_v50 = vmul.f32 1.442695, %v3002_v49  ;;  %v3285_v56 = vpop.xlane.xlu0 %3284  ;;  %v3249_v17 = vmul.f32 1.442695, %v3004_v41  ;;  %v7957_v49 = vld [vmem:[#allocation92_spill] sm:$0xff]  ;;  %v3006_v41 = vsub.f32 %v7959_v21, %v7126_v12 }
 0x76c   : > { %v7137_v55 = vpop.eup %5197  ;;  %3428 = vadd.xlane.f32.xlu0 %v3427_v35  ;;  %v4742_v9 = vpack.c.bf16 %v3530_v43, %v3528_v15  ;;  %v4744_v14 = vpack.c.bf16 %v3529_v62, %v3527_v58  ;;  %5217 = vpow2.f32 %v3241_v23  ;;  %v7958_v58 = vsub.f32 %v7846_v19, %v6850_v38 }
 0x76d   : > { %v7139_v31 = vpop.eup %5199  ;;  %5219 = vpow2.f32 %v3243_v48  ;;  %v7964_v19 = vsub.f32 %v7848_v5, %v6850_v38  ;;  %v3253_v5 = vmul.f32 1.442695, %v3006_v41 }
 0x76e   : > { %v7141_v26 = vpop.eup %5201  ;;  %v3288_v1 = vpop.xlane.xlu1 %3287  ;;  %4743 = vmatprep.subr.bf16.mxu0 %v4742_v9  ;;  %5221 = vrcp.f32 %v3285_v56  ;;  %v3430_v23 = vadd.f32 %v7139_v31, %v7137_v55  ;;  %v3005_v9 = vsub.f32 %v7957_v49, %v7126_v12  ;;  %v3191_v33 = vmul.f32 1.442695, %v7958_v58 }
 0x76f   : > { %7956 = vst [vmem:[#allocation68_spill] sm:$0xff] %v7141_v26  ;;  %3383 = vadd.xlane.f32.xlu1 %v3382_v45  ;;  %v7145_v11 = vpop.eup %5203  ;;  %4745 = vmatpush1.bf16.xpose.msra.mxu0 %v4744_v14  ;;  %5223 = vpow2.f32 %v3245_v50  ;;  %v3388_v45 = vadd.f32 %v7055_v25, %v7051_v8  ;;  %v7960_v50 = vld [vmem:[#allocation89_spill] sm:$0xff]  ;;  %v3391_v12 = vadd.f32 %v7087_v34, %v7065_v7 }
 0x770   : > { %v7147_v43 = vpop.eup %5205  ;;  %3386 = vadd.xlane.f32.xlu0 %v3385_v54  ;;  %5225 = vrcp.f32 %v3288_v1  ;;  %v3433_v35 = vadd.f32 %v7145_v11, %v7141_v26  ;;  %v7961_v14 = vld [vmem:[#allocation93_spill] sm:$0xff]  ;;  %v7962_v54 = vld [vmem:[#allocation87_spill] sm:$0xff] }
 0x771   : > { %v5208_v48 = vpop.eup %5207  ;;  %5227 = vpow2.f32 %v3247_v29 }
 0x772   : > { %v7151_v62 = vpop.eup %5209  ;;  %v3291_v47 = vpop.xlane.xlu0 %3290  ;;  %5229 = vpow2.f32 %v3249_v17  ;;  %v3532_v56 = vmul.f32 %v5208_v48, %v7960_v50  ;;  %v3531_v1 = vmul.f32 %v5208_v48, %v7962_v54  ;;  %v3193_v17 = vmul.f32 1.442695, %v7964_v19 }
 0x773   : > { %3431 = vadd.xlane.f32.xlu1 %v3430_v23  ;;  %v5212_v15 = vpop.eup %5211  ;;  %v7963_v23 = vld [vmem:[#allocation91_spill] sm:$0xff]  ;;  %5231 = vrcp.f32 %v3291_v47  ;;  %v3251_v50 = vmul.f32 1.442695, %v3005_v9 }
 0x774   : > { %3434 = vadd.xlane.f32.xlu0 %v3433_v35  ;;  %v3534_v29 = vmul.f32 %v5212_v15, %v7961_v14  ;;  %v3533_v49 = vmul.f32 %v5212_v15, %v7963_v23  ;;  %v7168_v26 = vpop.eup %5213  ;;  %v7966_v35 = vld [vmem:[#allocation54_spill] sm:$0xff]  ;;  %v7967_v23 = vld [vmem:[#allocation56_spill] sm:$0xff] }
 0x775   : > { %v7175_v58 = vpop.eup %5215  ;;  %v2977_v21 = vsub.f32 %v7966_v35, %v6887_v28  ;;  %v2978_v38 = vsub.f32 %v7967_v23, %v6887_v28  ;;  %v3436_v19 = vadd.f32 %v7168_v26, %v7151_v62 }
 0x776   : > { %7965 = vst [vmem:[#allocation38_spill] sm:$0xff] %v7175_v58  ;;  %v3294_v48 = vpop.xlane.xlu1 %3293  ;;  %v4746_v14 = vpack.c.bf16 %v3534_v29, %v3532_v56  ;;  %v4748_v15 = vpack.c.bf16 %v3533_v49, %v3531_v1  ;;  %v7179_v54 = vpop.eup %5217  ;;  %v7968_v49 = vld [vmem:[#allocation96_spill] sm:$0xff] }
 0x777   : > { %3389 = vadd.xlane.f32.xlu1 %v3388_v45  ;;  %5233 = vrcp.f32 %v3294_v48  ;;  %v7183_v47 = vpop.eup %5219  ;;  %v3195_v56 = vmul.f32 1.442695, %v2977_v21  ;;  %v3439_v28 = vadd.f32 %v7179_v54, %v7175_v58  ;;  %v3197_v29 = vmul.f32 1.442695, %v2978_v38  ;;  %v7970_v48 = vld [vmem:[#allocation95_spill] sm:$0xff] }
 0x778   : > { %5235 = vpow2.f32 %v3191_v33  ;;  %3392 = vadd.xlane.f32.xlu0 %v3391_v12  ;;  %4747 = vmatprep.subr.bf16.mxu0 %v4746_v14  ;;  %v5222_v9 = vpop.eup %5221  ;;  %v3394_v33 = vadd.f32 %v7112_v0, %v7093_v2  ;;  %v7969_v12 = vld [vmem:[#allocation98_spill] sm:$0xff]  ;;  %v3397_v38 = vadd.f32 %v7124_v27, %v7118_v32 }
 0x779   : > { %5237 = vpow2.f32 %v3193_v17  ;;  %4749 = vmatpush1.bf16.xpose.msra.mxu0 %v4748_v15  ;;  %v7187_v45 = vpop.eup %5223  ;;  %v3536_v17 = vmul.f32 %v5222_v9, %v7968_v49  ;;  %v3535_v21 = vmul.f32 %v5222_v9, %v7970_v48  ;;  %v1715_v15 = vld [vmem:[#allocation4 + $0x8] sm:$0xff]  ;;  %v7975_v48 = vld [vmem:[#allocation102_spill] sm:$0xff] }
 0x77a   : > { %5239 = vpow2.f32 %v3251_v50  ;;  %v5226_v41 = vpop.eup %5225  ;;  %v7971_v50 = vld [vmem:[#allocation97_spill] sm:$0xff]  ;;  %3719 = vmatprep.mubr.f32.mxu0 %v1715_v15  ;;  %v3442_v9 = vadd.f32 %v7187_v45, %v7183_v47 }
 0x77b   : > { %3437 = vadd.xlane.f32.xlu1 %v3436_v19  ;;  %5241 = vpow2.f32 %v3253_v5  ;;  %v7193_v1 = vpop.eup %5227  ;;  %v3538_v35 = vmul.f32 %v5226_v41, %v7969_v12  ;;  %v3537_v14 = vmul.f32 %v5226_v41, %v7971_v50  ;;  %v7974_v12 = vld [vmem:[#allocation104_spill] sm:$0xff]  ;;  %v7976_v50 = vld [vmem:[#allocation99_spill] sm:$0xff] }
 0x77c   : > { %3440 = vadd.xlane.f32.xlu0 %v3439_v28  ;;  %v7199_v23 = vpop.eup %5229  ;;  %5243 = vpow2.f32 %v3195_v56  ;;  %v1719_v28 = vld [vmem:[#allocation4 + $0x28] sm:$0xff] }
 0x77d   : > { %v4750_v5 = vpack.c.bf16 %v3538_v35, %v3536_v17  ;;  %v4752_v19 = vpack.c.bf16 %v3537_v14, %v3535_v21  ;;  %v5232_v58 = vpop.eup %5231  ;;  %5245 = vpow2.f32 %v3197_v29  ;;  %3794 = vmatprep.mubr.f32.mxu1 %v1719_v28  ;;  %v3445_v56 = vadd.f32 %v7199_v23, %v7193_v1 }
 0x77e   : > { %v3539_v14 = vmul.f32 %v5232_v58, %v7976_v50 }
 0x77f   : > { %3395 = vadd.xlane.f32.xlu1 %v3394_v33  ;;  %4751 = vmatprep.subr.bf16.mxu0 %v4750_v5  ;;  %v7973_v33 = vld [vmem:[#allocation100_spill] sm:$0xff] }
 0x780   : > { %3398 = vadd.xlane.f32.xlu0 %v3397_v38  ;;  %v3540_v17 = vmul.f32 %v5232_v58, %v7973_v33  ;;  %v3400_v38 = vadd.f32 %v7147_v43, %v7132_v59 }
 0x781   : > { %v5234_v41 = vpop.eup %5233  ;;  %4753 = vmatpush1.bf16.xpose.msra.mxu0 %v4752_v19 }
 0x782   : > { %v7205_v49 = vpop.eup %5235  ;;  %v3542_v35 = vmul.f32 %v5234_v41, %v7974_v12  ;;  %v3541_v29 = vmul.f32 %v5234_v41, %v7975_v48 }
 0x783   : > { %7972 = vst [vmem:[#allocation40_spill] sm:$0xff] %v7205_v49  ;;  %3443 = vadd.xlane.f32.xlu1 %v3442_v9  ;;  %v7212_v21 = vpop.eup %5237 }
 0x784   : > { %v7215_v15 = vpop.eup %5239  ;;  %3446 = vadd.xlane.f32.xlu0 %v3445_v56  ;;  %v4754_v5 = vpack.c.bf16 %v3542_v35, %v3540_v17  ;;  %v4756_v28 = vpack.c.bf16 %v3541_v29, %v3539_v14  ;;  %v3403_v9 = vadd.f32 %v7212_v21, %v7205_v49 }
 0x785   : > { %v7219_v19 = vpop.eup %5241 }
 0x786   : > { %4755 = vmatprep.subr.bf16.mxu0 %v4754_v5  ;;  %v7223_v41 = vpop.eup %5243  ;;  %v3448_v58 = vadd.f32 %v7219_v19, %v7215_v15 }
 0x787   : > { %3401 = vadd.xlane.f32.xlu1 %v3400_v38  ;;  %7977 = vst [vmem:[#allocation69_spill] sm:$0xff] %v7223_v41  ;;  %v7227_v33 = vpop.eup %5245 }
 0x788   : > { %3404 = vadd.xlane.f32.xlu0 %v3403_v9  ;;  %v3406_v56 = vadd.f32 %v7227_v33, %v7223_v41 }
 0x789   : > { %4757 = vmatpush1.bf16.xpose.msra.mxu0 %v4756_v28 }
 0x78b   : > { %3449 = vadd.xlane.f32.xlu1 %v3448_v58 }
 0x78f   : > { %3407 = vadd.xlane.f32.xlu1 %v3406_v56 }
 0x7a6   : > { %v3321_v17 = vpop.xlane.xlu0 %3320 }
 0x7a7   : > { %5247 = vrcp.f32 %v3321_v17 }
 0x7aa   : > { %v2877_v12 = vpop.xlane.xlu0 %2876 }
 0x7ab   : > { %v3007_v35 = vsub.f32 %v6659_v10, %v2877_v12  ;;  %v3008_v48 = vsub.f32 %v6663_v24, %v2877_v12 }
 0x7ad   : > { %v3255_v29 = vmul.f32 1.442695, %v3007_v35  ;;  %v3257_v50 = vmul.f32 1.442695, %v3008_v48 }
 0x7ae   : > { %v3324_v14 = vpop.xlane.xlu1 %3323 }
 0x7af   : > { %5249 = vpow2.f32 %v3255_v29 }
 0x7b0   : > { %5251 = vpow2.f32 %v3257_v50  ;;  %v3327_v38 = vpop.xlane.xlu0 %3326 }
 0x7b1   : > { %5253 = vrcp.f32 %v3324_v14  ;;  %v5248_v48 = vpop.eup %5247 }
 0x7b2   : > { %v2880_v5 = vpop.xlane.xlu1 %2879  ;;  %5255 = vrcp.f32 %v3327_v38 }
 0x7b3   : > { %v3009_v28 = vsub.f32 %v6671_v22, %v2880_v5  ;;  %v3010_v9 = vsub.f32 %v6675_v13, %v2880_v5 }
 0x7b4   : > { %v2835_v58 = vpop.xlane.xlu0 %2834 }
 0x7b5   : > { %v3259_v56 = vmul.f32 1.442695, %v3009_v28  ;;  %v3261_v41 = vmul.f32 1.442695, %v3010_v9  ;;  %v2979_v10 = vsub.f32 %v6527_v36, %v2835_v58  ;;  %v2980_v24 = vsub.f32 %v6531_v40, %v2835_v58  ;;  %v7980_v58 = vld [vmem:[#allocation112_spill] sm:$0xff] }
 0x7b6   : > { %v3330_v12 = vpop.xlane.xlu1 %3329  ;;  %v3559_v9 = vmul.f32 %v5248_v48, %v6745_v51 }
 0x7b7   : > { %5257 = vpow2.f32 %v3259_v56  ;;  %v3199_v17 = vmul.f32 1.442695, %v2979_v10  ;;  %v3201_v35 = vmul.f32 1.442695, %v2980_v24 }
 0x7b8   : > { %5259 = vpow2.f32 %v3261_v41  ;;  %v3333_v29 = vpop.xlane.xlu0 %3332  ;;  %v3560_v41 = vmul.f32 %v5248_v48, %v6747_v60 }
 0x7b9   : > { %v7237_v50 = vpop.eup %5249  ;;  %5261 = vpow2.f32 %v3199_v17 }
 0x7ba   : > { %7978 = vst [vmem:[#allocation70_spill] sm:$0xff] %v7237_v50  ;;  %v7239_v22 = vpop.eup %5251  ;;  %5263 = vpow2.f32 %v3201_v35 }
 0x7bb   : > { %7979 = vst [vmem:[#allocation71_spill] sm:$0xff] %v7239_v22  ;;  %v5254_v14 = vpop.eup %5253  ;;  %5265 = vrcp.f32 %v3330_v12  ;;  %v3451_v38 = vadd.f32 %v7239_v22, %v7237_v50  ;;  %v8000_v22 = vld [vmem:[#allocation108_spill] sm:$0xff] }
 0x7bc   : > { %v2838_v13 = vpop.xlane.xlu1 %2837  ;;  %v3562_v28 = vmul.f32 %v5254_v14, %v6781_v57  ;;  %v3561_v56 = vmul.f32 %v5254_v14, %v7980_v58  ;;  %5267 = vrcp.f32 %v3333_v29  ;;  %v5256_v17 = vpop.eup %5255 }
 0x7bd   : > { %v2981_v36 = vsub.f32 %v6545_v3, %v2838_v13  ;;  %v2982_v40 = vsub.f32 %v7852_v18, %v2838_v13  ;;  %v3297_v5 = vpop.xlane.xlu0 %3296  ;;  %3452 = vadd.xlane.f32.xlu0 %v3451_v38  ;;  %v7985_v38 = vld [vmem:[#allocation101_spill] sm:$0xff] }
 0x7be   : > { %5269 = vrcp.f32 %v3297_v5  ;;  %v4774_v12 = vpack.c.bf16 %v3562_v28, %v3560_v41  ;;  %v4776_v18 = vpack.c.bf16 %v3561_v56, %v3559_v9  ;;  %v7986_v9 = vld [vmem:[#allocation114_spill] sm:$0xff]  ;;  %v7987_v56 = vld [vmem:[#allocation117_spill] sm:$0xff] }
 0x7bf   : > { %v3203_v10 = vmul.f32 1.442695, %v2981_v36  ;;  %v3205_v24 = vmul.f32 1.442695, %v2982_v40  ;;  %v3564_v58 = vmul.f32 %v5256_v17, %v7986_v9 }
 0x7c0   : > { %v3336_v3 = vpop.xlane.xlu1 %3335  ;;  %4775 = vmatprep.subr.bf16.mxu1 %v4774_v12  ;;  %v7989_v12 = vld [vmem:[#allocation116_spill] sm:$0xff] }
 0x7c1   : > { %5271 = vpow2.f32 %v3203_v10  ;;  %v3339_v35 = vpop.xlane.xlu0 %3338  ;;  %v7249_v60 = vpop.eup %5257  ;;  %4777 = vmatpush1.bf16.xpose.msra.mxu1 %v4776_v18 }
 0x7c2   : > { %5273 = vpow2.f32 %v3205_v24  ;;  %7981 = vst [vmem:[#allocation72_spill] sm:$0xff] %v7249_v60  ;;  %v7251_v51 = vpop.eup %5259  ;;  %v7988_v24 = vld [vmem:[#allocation113_spill] sm:$0xff] }
 0x7c3   : > { %5275 = vrcp.f32 %v3336_v3  ;;  %7982 = vst [vmem:[#allocation42_spill] sm:$0xff] %v7251_v51  ;;  %v7253_v48 = vpop.eup %5261  ;;  %v3454_v29 = vadd.f32 %v7251_v51, %v7249_v60  ;;  %v3563_v3 = vmul.f32 %v5256_v17, %v7988_v24 }
 0x7c4   : > { %v3300_v57 = vpop.xlane.xlu1 %3299  ;;  %7983 = vst [vmem:[#allocation46_spill] sm:$0xff] %v7253_v48  ;;  %v7257_v13 = vpop.eup %5263 }
 0x7c5   : > { %5277 = vrcp.f32 %v3300_v57  ;;  %7984 = vst [vmem:[#allocation73_spill] sm:$0xff] %v7257_v13  ;;  %v2883_v14 = vpop.xlane.xlu0 %2882  ;;  %v5266_v36 = vpop.eup %5265  ;;  %3455 = vadd.xlane.f32.xlu1 %v3454_v29  ;;  %v3409_v41 = vadd.f32 %v7257_v13, %v7253_v48 }
 0x7c6   : > { %5279 = vrcp.f32 %v3339_v35  ;;  %v3011_v40 = vsub.f32 %v6683_v63, %v2883_v14  ;;  %v3012_v5 = vsub.f32 %v7985_v38, %v2883_v14  ;;  %v3566_v10 = vmul.f32 %v5266_v36, %v7987_v56  ;;  %v5268_v57 = vpop.eup %5267 }
 0x7c7   : > { %v3565_v18 = vmul.f32 %v5266_v36, %v7989_v12  ;;  %3410 = vadd.xlane.f32.xlu0 %v3409_v41  ;;  %v7996_v12 = vld [vmem:[#allocation39_spill] sm:$0xff] }
 0x7c8   : > { %v3342_v28 = vpop.xlane.xlu1 %3341  ;;  %v3263_v60 = vmul.f32 1.442695, %v3011_v40  ;;  %v3265_v35 = vmul.f32 1.442695, %v3012_v5  ;;  %v5270_v63 = vpop.eup %5269  ;;  %v4778_v14 = vpack.c.bf16 %v3566_v10, %v3564_v58  ;;  %v7992_v40 = vld [vmem:[#allocation105_spill] sm:$0xff]  ;;  %v7994_v10 = vld [vmem:[#allocation19_spill] sm:$0xff] }
 0x7c9   : > { %5281 = vrcp.f32 %v3342_v28  ;;  %v3345_v29 = vpop.xlane.xlu0 %3344  ;;  %v4780_v38 = vpack.c.bf16 %v3565_v18, %v3563_v3  ;;  %v7993_v28 = vld [vmem:[#allocation33_spill] sm:$0xff] }
 0x7ca   : > { %5283 = vpow2.f32 %v3263_v60  ;;  %4779 = vmatprep.subr.bf16.mxu1 %v4778_v14  ;;  %v3568_v58 = vmul.f32 %v5268_v57, %v7993_v28  ;;  %v7995_v60 = vld [vmem:[#allocation118_spill] sm:$0xff]  ;;  %v7999_v28 = vld [vmem:[#allocation109_spill] sm:$0xff] }
 0x7cb   : > { %v7267_v50 = vpop.eup %5271  ;;  %5285 = vpow2.f32 %v3265_v35  ;;  %4781 = vmatpush1.bf16.xpose.msra.mxu1 %v4780_v38  ;;  %v3567_v3 = vmul.f32 %v5268_v57, %v7995_v60  ;;  %v7997_v35 = vld [vmem:[#allocation107_spill] sm:$0xff] }
 0x7cc   : > { %7990 = vst [vmem:[#allocation74_spill] sm:$0xff] %v7267_v50  ;;  %v7269_v48 = vpop.eup %5273  ;;  %v2886_v9 = vpop.xlane.xlu1 %2885  ;;  %v3544_v14 = vmul.f32 %v5270_v63, %v7997_v35  ;;  %5287 = vrcp.f32 %v3345_v29 }
 0x7cd   : > { %7991 = vst [vmem:[#allocation75_spill] sm:$0xff] %v7269_v48  ;;  %v5276_v17 = vpop.eup %5275  ;;  %v3013_v36 = vsub.f32 %v7886_v53, %v2886_v9  ;;  %v3014_v5 = vsub.f32 %v7992_v40, %v2886_v9  ;;  %v3412_v41 = vadd.f32 %v7269_v48, %v7267_v50  ;;  %v3303_v56 = vpop.xlane.xlu0 %3302  ;;  %v7998_v9 = vld [vmem:[#allocation106_spill] sm:$0xff] }
 0x7ce   : > { %v3570_v24 = vmul.f32 %v5276_v17, %v7994_v10  ;;  %v3569_v18 = vmul.f32 %v5276_v17, %v7996_v12  ;;  %v3543_v40 = vmul.f32 %v5270_v63, %v7998_v9  ;;  %5289 = vrcp.f32 %v3303_v56  ;;  %v8001_v63 = vld [vmem:[#allocation50_spill] sm:$0xff]  ;;  %v8002_v56 = vld [vmem:[#allocation41_spill] sm:$0xff]  ;;  %v8004_v12 = vld [vmem:[#allocation20_spill] sm:$0xff] }
 0x7cf   : > { %v5278_v13 = vpop.eup %5277  ;;  %v3267_v38 = vmul.f32 1.442695, %v3013_v36  ;;  %v3269_v53 = vmul.f32 1.442695, %v3014_v5  ;;  %3413 = vadd.xlane.f32.xlu1 %v3412_v41 }
 0x7d0   : > { %v3348_v50 = vpop.xlane.xlu1 %3347  ;;  %v4782_v48 = vpack.c.bf16 %v3570_v24, %v3568_v58  ;;  %v3546_v51 = vmul.f32 %v5278_v13, %v7999_v28  ;;  %v3545_v10 = vmul.f32 %v5278_v13, %v8000_v22  ;;  %v5280_v49 = vpop.eup %5279  ;;  %v4784_v57 = vpack.c.bf16 %v3569_v18, %v3567_v3  ;;  %v8003_v22 = vld [vmem:[#allocation64_spill] sm:$0xff] }
 0x7d1   : > { %5291 = vpow2.f32 %v3267_v38  ;;  %v3351_v17 = vpop.xlane.xlu0 %3350  ;;  %v3572_v41 = vmul.f32 %v5280_v49, %v8001_v63  ;;  %v3571_v18 = vmul.f32 %v5280_v49, %v8004_v12  ;;  %v8007_v63 = vld [vmem:[#allocation53_spill] sm:$0xff] }
 0x7d2   : > { %5293 = vpow2.f32 %v3269_v53  ;;  %4783 = vmatprep.subr.bf16.mxu1 %v4782_v48  ;;  %v4758_v60 = vpack.c.bf16 %v3546_v51, %v3544_v14  ;;  %v4760_v29 = vpack.c.bf16 %v3545_v10, %v3543_v40 }
 0x7d3   : > { %v5282_v36 = vpop.eup %5281  ;;  %5295 = vrcp.f32 %v3348_v50  ;;  %4785 = vmatpush1.bf16.xpose.msra.mxu1 %v4784_v57 }
 0x7d4   : > { %v3306_v5 = vpop.xlane.xlu1 %3305  ;;  %4759 = vmatprep.subr.bf16.mxu0 %v4758_v60  ;;  %v3574_v58 = vmul.f32 %v5282_v36, %v8002_v56  ;;  %v7285_v24 = vpop.eup %5283  ;;  %v3573_v13 = vmul.f32 %v5282_v36, %v8003_v22  ;;  %v8005_v60 = vld [vmem:[#allocation44_spill] sm:$0xff]  ;;  %v8006_v36 = vld [vmem:[#allocation23_spill] sm:$0xff] }
 0x7d5   : > { %5297 = vrcp.f32 %v3306_v5  ;;  %4761 = vmatpush1.bf16.xpose.msra.mxu0 %v4760_v29  ;;  %v7288_v3 = vpop.eup %5285  ;;  %v3309_v48 = vpop.xlane.xlu0 %3308 }
 0x7d6   : > { %v4786_v51 = vpack.c.bf16 %v3574_v58, %v3572_v41  ;;  %5299 = vrcp.f32 %v3351_v17  ;;  %v3457_v50 = vadd.f32 %v7288_v3, %v7285_v24  ;;  %v5288_v14 = vpop.eup %5287  ;;  %v4788_v38 = vpack.c.bf16 %v3573_v13, %v3571_v18  ;;  %v8008_v58 = vld [vmem:[#allocation43_spill] sm:$0xff]  ;;  %v8010_v18 = vld [vmem:[#allocation110_spill] sm:$0xff] }
 0x7d7   : > { %v3576_v29 = vmul.f32 %v5288_v14, %v8005_v60  ;;  %v3575_v22 = vmul.f32 %v5288_v14, %v8008_v58  ;;  %v8009_v13 = vld [vmem:[#allocation111_spill] sm:$0xff] }
 0x7d8   : > { %v3354_v35 = vpop.xlane.xlu1 %3353  ;;  %4787 = vmatprep.subr.bf16.mxu1 %v4786_v51  ;;  %3458 = vadd.xlane.f32.xlu0 %v3457_v50  ;;  %v5290_v53 = vpop.eup %5289 }
 0x7d9   : > { %5301 = vrcp.f32 %v3354_v35  ;;  %v3357_v9 = vpop.xlane.xlu0 %3356  ;;  %v3547_v35 = vmul.f32 %v5290_v53, %v8010_v18  ;;  %v8016_v18 = vld [vmem:[#allocation115_spill] sm:$0xff] }
 0x7da   : > { %5303 = vrcp.f32 %v3309_v48  ;;  %v3548_v48 = vmul.f32 %v5290_v53, %v8009_v13  ;;  %v8014_v13 = vld [vmem:[#allocation24_spill] sm:$0xff] }
 0x7db   : > { %v7293_v40 = vpop.eup %5291  ;;  %4789 = vmatpush1.bf16.xpose.msra.mxu1 %v4788_v38 }
 0x7dc   : > { %v7295_v28 = vpop.eup %5293  ;;  %v3312_v10 = vpop.xlane.xlu1 %3311 }
 0x7dd   : > { %v5296_v57 = vpop.eup %5295  ;;  %5305 = vrcp.f32 %v3312_v10  ;;  %v3460_v49 = vadd.f32 %v7295_v28, %v7293_v40  ;;  %v3315_v17 = vpop.xlane.xlu0 %3314 }
 0x7de   : > { %v3578_v5 = vmul.f32 %v5296_v57, %v8006_v36  ;;  %v3577_v41 = vmul.f32 %v5296_v57, %v8007_v63  ;;  %5307 = vrcp.f32 %v3357_v9  ;;  %v8011_v63 = vld [vmem:[#allocation47_spill] sm:$0xff] }
 0x7df   : > { %v5298_v56 = vpop.eup %5297  ;;  %3461 = vadd.xlane.f32.xlu1 %v3460_v49 }
 0x7e0   : > { %v3360_v51 = vpop.xlane.xlu1 %3359  ;;  %v4790_v50 = vpack.c.bf16 %v3578_v5, %v3576_v29  ;;  %v3550_v12 = vmul.f32 %v5298_v56, %v6798_v42  ;;  %v3549_v38 = vmul.f32 %v5298_v56, %v6777_v37  ;;  %v5300_v10 = vpop.eup %5299  ;;  %v4792_v60 = vpack.c.bf16 %v3577_v41, %v3575_v22  ;;  %v8012_v29 = vld [vmem:[#allocation55_spill] sm:$0xff]  ;;  %v8013_v37 = vld [vmem:[#allocation26_spill] sm:$0xff] }
 0x7e1   : > { %5309 = vrcp.f32 %v3360_v51  ;;  %v3363_v57 = vpop.xlane.xlu0 %3362  ;;  %v3580_v58 = vmul.f32 %v5300_v10, %v8011_v63 }
 0x7e2   : > { %4791 = vmatprep.subr.bf16.mxu1 %v4790_v50  ;;  %v4762_v36 = vpack.c.bf16 %v3550_v12, %v3548_v48  ;;  %v4764_v9 = vpack.c.bf16 %v3549_v38, %v3547_v35  ;;  %5311 = vrcp.f32 %v3315_v17  ;;  %v3579_v48 = vmul.f32 %v5300_v10, %v8014_v13  ;;  %v8015_v17 = vld [vmem:[#allocation35_spill] sm:$0xff]  ;;  %v8017_v38 = vld [vmem:[#allocation37_spill] sm:$0xff] }
 0x7e3   : > { %v5302_v49 = vpop.eup %5301  ;;  %4793 = vmatpush1.bf16.xpose.msra.mxu1 %v4792_v60  ;;  %v8018_v10 = vld [vmem:[#allocation57_spill] sm:$0xff] }
 0x7e4   : > { %v3318_v14 = vpop.xlane.xlu1 %3317  ;;  %4763 = vmatprep.subr.bf16.mxu0 %v4762_v36  ;;  %v3582_v5 = vmul.f32 %v5302_v49, %v8012_v29  ;;  %v5304_v42 = vpop.eup %5303  ;;  %v3581_v53 = vmul.f32 %v5302_v49, %v8013_v37  ;;  %v8020_v13 = vld [vmem:[#allocation25_spill] sm:$0xff] }
 0x7e5   : > { %5313 = vrcp.f32 %v3318_v14  ;;  %4765 = vmatpush1.bf16.xpose.msra.mxu0 %v4764_v9  ;;  %v3369_v56 = vpop.xlane.xlu0 %3368  ;;  %v3552_v50 = vmul.f32 %v5304_v42, %v8015_v17  ;;  %v3551_v35 = vmul.f32 %v5304_v42, %v8016_v18 }
 0x7e6   : > { %v4794_v41 = vpack.c.bf16 %v3582_v5, %v3580_v58  ;;  %5315 = vrcp.f32 %v3363_v57  ;;  %v4796_v9 = vpack.c.bf16 %v3581_v53, %v3579_v48 }
 0x7e7   : > { %v5306_v22 = vpop.eup %5305 }
 0x7e8   : > { %v3366_v51 = vpop.xlane.xlu1 %3365  ;;  %4795 = vmatprep.subr.bf16.mxu1 %v4794_v41  ;;  %v3554_v12 = vmul.f32 %v5306_v22, %v6852_v6  ;;  %v3553_v60 = vmul.f32 %v5306_v22, %v8017_v38  ;;  %v5308_v36 = vpop.eup %5307  ;;  %v8019_v6 = vld [vmem:[#allocation28_spill] sm:$0xff] }
 0x7e9   : > { %5317 = vrcp.f32 %v3366_v51  ;;  %v3417_v49 = vpop.xlane.xlu0 %3416  ;;  %v3584_v29 = vmul.f32 %v5308_v36, %v8018_v10  ;;  %v3583_v48 = vmul.f32 %v5308_v36, %v8020_v13  ;;  %v8027_v13 = vld [vmem:[#allocation18_spill] sm:$0xff] }
 0x7ea   : > { %v4766_v14 = vpack.c.bf16 %v3554_v12, %v3552_v50  ;;  %v4768_v63 = vpack.c.bf16 %v3553_v60, %v3551_v35  ;;  %5319 = vrcp.f32 %v3369_v56  ;;  %v8021_v56 = vld [vmem:[#allocation51_spill] sm:$0xff]  ;;  %v8022_v12 = vld [vmem:[#allocation45_spill] sm:$0xff] }
 0x7eb   : > { %v5310_v58 = vpop.eup %5309  ;;  %4797 = vmatpush1.bf16.xpose.msra.mxu1 %v4796_v9 }
 0x7ec   : > { %v3372_v57 = vpop.xlane.xlu1 %3371  ;;  %4767 = vmatprep.subr.bf16.mxu0 %v4766_v14  ;;  %v3586_v5 = vmul.f32 %v5310_v58, %v7004_v44  ;;  %v5312_v37 = vpop.eup %5311  ;;  %v3585_v42 = vmul.f32 %v5310_v58, %v8019_v6 }
 0x7ed   : > { %5321 = vrcp.f32 %v3372_v57  ;;  %4769 = vmatpush1.bf16.xpose.msra.mxu0 %v4768_v63  ;;  %v3375_v41 = vpop.xlane.xlu0 %3374  ;;  %v3556_v17 = vmul.f32 %v5312_v37, %v8021_v56  ;;  %v3555_v44 = vmul.f32 %v5312_v37, %v8022_v12  ;;  %v8024_v37 = vld [vmem:[#allocation29_spill] sm:$0xff] }
 0x7ee   : > { %v4798_v22 = vpack.c.bf16 %v3586_v5, %v3584_v29  ;;  %5323 = vrcp.f32 %v3417_v49  ;;  %v4800_v38 = vpack.c.bf16 %v3585_v42, %v3583_v48  ;;  %v8028_v48 = vld [vmem:[#allocation21_spill] sm:$0xff] }
 0x7ef   : > { %v5314_v53 = vpop.eup %5313 }
 0x7f0   : > { %v3420_v51 = vpop.xlane.xlu1 %3419  ;;  %4799 = vmatprep.subr.bf16.mxu1 %v4798_v22  ;;  %v3558_v50 = vmul.f32 %v5314_v53, %v6953_v61  ;;  %v3557_v18 = vmul.f32 %v5314_v53, %v6928_v16  ;;  %v5316_v35 = vpop.eup %5315  ;;  %v8023_v61 = vld [vmem:[#allocation60_spill] sm:$0xff]  ;;  %v8026_v53 = vld [vmem:[#allocation22_spill] sm:$0xff] }
 0x7f1   : > { %5325 = vrcp.f32 %v3420_v51  ;;  %v3423_v60 = vpop.xlane.xlu0 %3422  ;;  %v3588_v36 = vmul.f32 %v5316_v35, %v7013_v4  ;;  %v3587_v6 = vmul.f32 %v5316_v35, %v8024_v37  ;;  %v1717_v35 = vld [vmem:[#allocation4 + $0x18] sm:$0xff] }
 0x7f2   : > { %5327 = vrcp.f32 %v3375_v41  ;;  %v4770_v9 = vpack.c.bf16 %v3558_v50, %v3556_v17  ;;  %v4772_v14 = vpack.c.bf16 %v3557_v18, %v3555_v44  ;;  %v8025_v41 = vld [vmem:[#allocation52_spill] sm:$0xff]  ;;  %v1714_v50 = vld [vmem:[#allocation4] sm:$0xff]  ;;  %v8032_v37 = vld [vmem:[#allocation61_spill] sm:$0xff] }
 0x7f3   : > { %v5318_v49 = vpop.eup %5317  ;;  %4801 = vmatpush1.bf16.xpose.msra.mxu1 %v4800_v38 }
 0x7f4   : > { %v3378_v63 = vpop.xlane.xlu1 %3377  ;;  %4771 = vmatprep.subr.bf16.mxu0 %v4770_v9  ;;  %v3590_v58 = vmul.f32 %v5318_v49, %v7039_v46  ;;  %v5320_v57 = vpop.eup %5319  ;;  %v3589_v16 = vmul.f32 %v5318_v49, %v8023_v61  ;;  %v1716_v61 = vld [vmem:[#allocation4 + $0x10] sm:$0xff] }
 0x7f5   : > { %5329 = vrcp.f32 %v3378_v63  ;;  %4773 = vmatpush1.bf16.xpose.msra.mxu0 %v4772_v14  ;;  %v3381_v10 = vpop.xlane.xlu0 %3380  ;;  %v3592_v22 = vmul.f32 %v5320_v57, %v8025_v41  ;;  %v3591_v46 = vmul.f32 %v5320_v57, %v8027_v13  ;;  %v8029_v14 = vld [vmem:[#allocation62_spill] sm:$0xff]  ;;  %v8030_v63 = vld [vmem:[#allocation31_spill] sm:$0xff]  ;;  %v8035_v13 = vld [vmem:[#allocation49_spill] sm:$0xff] }
 0x7f6   : > { %v4802_v29 = vpack.c.bf16 %v3590_v58, %v3588_v36  ;;  %5331 = vrcp.f32 %v3423_v60  ;;  %v4804_v17 = vpack.c.bf16 %v3589_v16, %v3587_v6  ;;  %v8031_v58 = vld [vmem:[#allocation63_spill] sm:$0xff] }
 0x7f7   : > { %v5322_v5 = vpop.eup %5321 }
 0x7f8   : > { %v3426_v42 = vpop.xlane.xlu1 %3425  ;;  %4803 = vmatprep.subr.bf16.mxu1 %v4802_v29  ;;  %v3594_v4 = vmul.f32 %v5322_v5, %v8026_v53  ;;  %v3593_v51 = vmul.f32 %v5322_v5, %v8028_v48  ;;  %v5324_v56 = vpop.eup %5323  ;;  %v1723_v29 = vld [vmem:[#allocation4 + $0x48] sm:$0xff] }
 0x7f9   : > { %5333 = vrcp.f32 %v3426_v42  ;;  %v3429_v12 = vpop.xlane.xlu0 %3428  ;;  %v3624_v49 = vmul.f32 %v5324_v56, %v8029_v14  ;;  %v3623_v6 = vmul.f32 %v5324_v56, %v8032_v37  ;;  %v8033_v42 = vld [vmem:[#allocation58_spill] sm:$0xff]  ;;  %v8034_v53 = vld [vmem:[#allocation27_spill] sm:$0xff]  ;;  %v8040_v37 = vld [vmem:[#allocation32_spill] sm:$0xff] }
 0x7fa   : > { %5335 = vrcp.f32 %v3381_v10  ;;  %v4806_v44 = vpack.c.bf16 %v3594_v4, %v3592_v22  ;;  %v4808_v18 = vpack.c.bf16 %v3593_v51, %v3591_v46  ;;  %v8036_v48 = vld [vmem:[#allocation59_spill] sm:$0xff] }
 0x7fb   : > { %v5326_v38 = vpop.eup %5325  ;;  %4805 = vmatpush1.bf16.xpose.msra.mxu1 %v4804_v17 }
 0x7fc   : > { %v5328_v60 = vpop.eup %5327  ;;  %v3384_v9 = vpop.xlane.xlu1 %3383  ;;  %4807 = vmatprep.subr.bf16.mxu0 %v4806_v44  ;;  %3720 = vmatmul.mubr.f32.vlgmr.msra.gmra.mrb[58].mxu0 %v1714_v50  ;;  %v3626_v36 = vmul.f32 %v5326_v38, %v8030_v63  ;;  %v3625_v57 = vmul.f32 %v5326_v38, %v8031_v58  ;;  %v1718_v50 = vld [vmem:[#allocation4 + $0x20] sm:$0xff]  ;;  %v8038_v63 = vld [vmem:[#allocation65_spill] sm:$0xff]  ;;  %v8039_v58 = vld [vmem:[#allocation36_spill] sm:$0xff] }
 0x7fd   : > { %5337 = vrcp.f32 %v3384_v9  ;;  %4809 = vmatpush1.bf16.xpose.msra.mxu0 %v4808_v18  ;;  %v3387_v16 = vpop.xlane.xlu0 %3386  ;;  %3724 = vmatprep.mubr.f32.mxu0 %v1717_v35  ;;  %v3596_v41 = vmul.f32 %v5328_v60, %v8033_v42  ;;  %v3595_v46 = vmul.f32 %v5328_v60, %v8035_v13  ;;  %v1721_v35 = vld [vmem:[#allocation4 + $0x38] sm:$0xff]  ;;  %v8041_v42 = vld [vmem:[#allocation30_spill] sm:$0xff] }
 0x7fe   : > { %v4838_v10 = vpack.c.bf16 %v3626_v36, %v3624_v49  ;;  %5339 = vrcp.f32 %v3429_v12  ;;  %v4840_v44 = vpack.c.bf16 %v3625_v57, %v3623_v6  ;;  %v8037_v49 = vld [vmem:[#allocation34_spill] sm:$0xff] }
 0x7ff   : > { %v5330_v5 = vpop.eup %5329 }
 0x800   : > { %v3432_v22 = vpop.xlane.xlu1 %3431  ;;  %4839 = vmatprep.subr.bf16.mxu1 %v4838_v10  ;;  %v3598_v4 = vmul.f32 %v5330_v5, %v8034_v53  ;;  %v3597_v51 = vmul.f32 %v5330_v5, %v8036_v48  ;;  %3725 = vmatmul.mubr.f32.gmra.mrb[60].mxu0 %v1716_v61  ;;  %v5332_v17 = vpop.eup %5331  ;;  %v1720_v61 = vld [vmem:[#allocation4 + $0x30] sm:$0xff]  ;;  %v1727_v5 = vld [vmem:[#allocation4 + $0x68] sm:$0xff] }
 0x801   : > { %5341 = vrcp.f32 %v3432_v22  ;;  %3869 = vmatprep.mubr.f32.mxu0 %v1723_v29  ;;  %v3435_v18 = vpop.xlane.xlu0 %3434  ;;  %v3628_v60 = vmul.f32 %v5332_v17, %v8037_v49  ;;  %v3627_v6 = vmul.f32 %v5332_v17, %v8040_v37 }
 0x802   : > { %v4810_v12 = vpack.c.bf16 %v3598_v4, %v3596_v41  ;;  %v4812_v38 = vpack.c.bf16 %v3597_v51, %v3595_v46  ;;  %5343 = vrcp.f32 %v3387_v16  ;;  %3795 = vmatmul.mubr.f32.vlgmr.msra.gmra.mrb[70].mxu1 %v1718_v50  ;;  %v8042_v4 = vld [vmem:[#allocation103_spill] sm:$0xff] }
 0x803   : > { %v5334_v56 = vpop.eup %5333  ;;  %4841 = vmatpush1.bf16.xpose.msra.mxu1 %v4840_v44  ;;  %3799 = vmatprep.mubr.f32.mxu1 %v1721_v35 }
 0x804   : > { %v5336_v9 = vpop.eup %5335  ;;  %v3390_v14 = vpop.xlane.xlu1 %3389  ;;  %4811 = vmatprep.subr.bf16.mxu0 %v4810_v12  ;;  %v3630_v36 = vmul.f32 %v5334_v56, %v8038_v63  ;;  %v3629_v57 = vmul.f32 %v5334_v56, %v8039_v58 }
 0x805   : > { %5345 = vrcp.f32 %v3390_v14  ;;  %4813 = vmatpush1.bf16.xpose.msra.mxu0 %v4812_v38  ;;  %v3393_v10 = vpop.xlane.xlu0 %3392  ;;  %v3600_v41 = vmul.f32 %v5336_v9, %v8041_v42  ;;  %v3599_v13 = vmul.f32 %v5336_v9, %v8042_v4  ;;  %v8043_v38 = vld [vmem:[#allocation67_spill] sm:$0xff] }
 0x806   : > { %v4842_v29 = vpack.c.bf16 %v3630_v36, %v3628_v60  ;;  %5347 = vrcp.f32 %v3435_v18  ;;  %3800 = vmatmul.mubr.f32.gmra.mrb[72].mxu1 %v1720_v61  ;;  %v4844_v51 = vpack.c.bf16 %v3629_v57, %v3627_v6  ;;  %v8044_v60 = vld [vmem:[#allocation66_spill] sm:$0xff] }
 0x807   : > { %v5338_v16 = vpop.eup %5337  ;;  %3944 = vmatprep.mubr.f32.mxu1 %v1727_v5 }
 0x808   : > { %v3438_v22 = vpop.xlane.xlu1 %3437  ;;  %4843 = vmatprep.subr.bf16.mxu1 %v4842_v29  ;;  %v3602_v53 = vmul.f32 %v5338_v16, %v7025_v39  ;;  %v3601_v46 = vmul.f32 %v5338_v16, %v7022_v52  ;;  %v5340_v48 = vpop.eup %5339 }
 0x809   : > { %5349 = vrcp.f32 %v3438_v22  ;;  %v3441_v50 = vpop.xlane.xlu0 %3440  ;;  %v3632_v56 = vmul.f32 %v5340_v48, %v8043_v38  ;;  %v3631_v63 = vmul.f32 %v5340_v48, %v8044_v60  ;;  %v8045_v22 = vld [vmem:[#allocation68_spill] sm:$0xff] }
 0x80a   : > { %v4814_v44 = vpack.c.bf16 %v3602_v53, %v3600_v41  ;;  %v4816_v18 = vpack.c.bf16 %v3601_v46, %v3599_v13  ;;  %5351 = vrcp.f32 %v3393_v10 }
 0x80b   : > { %v5342_v12 = vpop.eup %5341  ;;  %4845 = vmatpush1.bf16.xpose.msra.mxu1 %v4844_v51 }
 0x80c   : > { %v3396_v17 = vpop.xlane.xlu1 %3395  ;;  %4815 = vmatprep.subr.bf16.mxu0 %v4814_v44  ;;  %v3634_v39 = vmul.f32 %v5342_v12, %v7139_v31  ;;  %v5344_v35 = vpop.eup %5343  ;;  %v3633_v52 = vmul.f32 %v5342_v12, %v7137_v55 }
 0x80d   : > { %5353 = vrcp.f32 %v3396_v17  ;;  %4817 = vmatpush1.bf16.xpose.msra.mxu0 %v4816_v18  ;;  %v3399_v9 = vpop.xlane.xlu0 %3398  ;;  %v3604_v58 = vmul.f32 %v5344_v35, %v7047_v30  ;;  %v3603_v31 = vmul.f32 %v5344_v35, %v7030_v20 }
 0x80e   : > { %v4846_v14 = vpack.c.bf16 %v3634_v39, %v3632_v56  ;;  %5355 = vrcp.f32 %v3441_v50  ;;  %v4848_v29 = vpack.c.bf16 %v3633_v52, %v3631_v63  ;;  %v8046_v56 = vld [vmem:[#allocation38_spill] sm:$0xff] }
 0x80f   : > { %v5346_v49 = vpop.eup %5345 }
 0x810   : > { %v3444_v36 = vpop.xlane.xlu1 %3443  ;;  %4847 = vmatprep.subr.bf16.mxu1 %v4846_v14  ;;  %v3606_v57 = vmul.f32 %v5346_v49, %v7055_v25  ;;  %v3605_v61 = vmul.f32 %v5346_v49, %v7051_v8  ;;  %v5348_v10 = vpop.eup %5347 }
 0x811   : > { %5357 = vrcp.f32 %v3444_v36  ;;  %v3447_v55 = vpop.xlane.xlu0 %3446  ;;  %v3636_v42 = vmul.f32 %v5348_v10, %v7145_v11  ;;  %v3635_v53 = vmul.f32 %v5348_v10, %v8045_v22 }
 0x812   : > { %v4818_v5 = vpack.c.bf16 %v3606_v57, %v3604_v58  ;;  %v4820_v16 = vpack.c.bf16 %v3605_v61, %v3603_v31  ;;  %5359 = vrcp.f32 %v3399_v9  ;;  %v8047_v61 = vld [vmem:[#allocation40_spill] sm:$0xff] }
 0x813   : > { %v5350_v37 = vpop.eup %5349  ;;  %4849 = vmatpush1.bf16.xpose.msra.mxu1 %v4848_v29  ;;  %v8048_v29 = vld [vmem:[#allocation69_spill] sm:$0xff] }
 0x814   : > { %v3402_v6 = vpop.xlane.xlu1 %3401  ;;  %4819 = vmatprep.subr.bf16.mxu0 %v4818_v5  ;;  %v3638_v30 = vmul.f32 %v5350_v37, %v7168_v26  ;;  %v5352_v41 = vpop.eup %5351  ;;  %v3637_v20 = vmul.f32 %v5350_v37, %v7151_v62 }
 0x815   : > { %5361 = vrcp.f32 %v3402_v6  ;;  %4821 = vmatpush1.bf16.xpose.msra.mxu0 %v4820_v16  ;;  %v3405_v4 = vpop.xlane.xlu0 %3404  ;;  %v3608_v46 = vmul.f32 %v5352_v41, %v7087_v34  ;;  %v3607_v26 = vmul.f32 %v5352_v41, %v7065_v7  ;;  %v8049_v6 = vld [vmem:[#allocation71_spill] sm:$0xff] }
 0x816   : > { %v4850_v8 = vpack.c.bf16 %v3638_v30, %v3636_v42  ;;  %5363 = vrcp.f32 %v3447_v55  ;;  %v4852_v50 = vpack.c.bf16 %v3637_v20, %v3635_v53  ;;  %v8050_v30 = vld [vmem:[#allocation42_spill] sm:$0xff] }
 0x817   : > { %v5354_v25 = vpop.eup %5353  ;;  %v8051_v20 = vld [vmem:[#allocation70_spill] sm:$0xff] }
 0x818   : > { %v3450_v13 = vpop.xlane.xlu1 %3449  ;;  %4851 = vmatprep.subr.bf16.mxu1 %v4850_v8  ;;  %v3610_v11 = vmul.f32 %v5354_v25, %v7112_v0  ;;  %v3609_v48 = vmul.f32 %v5354_v25, %v7093_v2  ;;  %v5356_v51 = vpop.eup %5355  ;;  %v8052_v25 = vld [vmem:[#allocation72_spill] sm:$0xff] }
 0x819   : > { %5365 = vrcp.f32 %v3450_v13  ;;  %v3640_v17 = vmul.f32 %v5356_v51, %v7179_v54  ;;  %v3639_v39 = vmul.f32 %v5356_v51, %v8046_v56  ;;  %v8054_v51 = vld [vmem:[#allocation75_spill] sm:$0xff]  ;;  %v1724_v56 = vld [vmem:[#allocation4 + $0x50] sm:$0xff] }
 0x81a   : > { %v4822_v62 = vpack.c.bf16 %v3610_v11, %v3608_v46  ;;  %v4824_v44 = vpack.c.bf16 %v3609_v48, %v3607_v26  ;;  %5367 = vrcp.f32 %v3405_v4  ;;  %v8053_v26 = vld [vmem:[#allocation73_spill] sm:$0xff] }
 0x81b   : > { %v5358_v18 = vpop.eup %5357  ;;  %4853 = vmatpush1.bf16.xpose.msra.mxu1 %v4852_v50 }
 0x81c   : > { %v3408_v12 = vpop.xlane.xlu1 %3407  ;;  %4823 = vmatprep.subr.bf16.mxu0 %v4822_v62  ;;  %v3642_v38 = vmul.f32 %v5358_v18, %v7187_v45  ;;  %v5360_v34 = vpop.eup %5359  ;;  %v3641_v7 = vmul.f32 %v5358_v18, %v7183_v47  ;;  %v8055_v62 = vld [vmem:[#allocation46_spill] sm:$0xff] }
 0x81d   : > { %5369 = vrcp.f32 %v3408_v12  ;;  %4825 = vmatpush1.bf16.xpose.msra.mxu0 %v4824_v44  ;;  %v3612_v35 = vmul.f32 %v5360_v34, %v7124_v27  ;;  %v3611_v9 = vmul.f32 %v5360_v34, %v7118_v32  ;;  %v8056_v18 = vld [vmem:[#allocation74_spill] sm:$0xff] }
 0x81e   : > { %v4854_v0 = vpack.c.bf16 %v3642_v38, %v3640_v17  ;;  %v4856_v14 = vpack.c.bf16 %v3641_v7, %v3639_v39  ;;  %v1722_v7 = vld [vmem:[#allocation4 + $0x40] sm:$0xff] }
 0x81f   : > { %v5362_v2 = vpop.eup %5361 }
 0x820   : > { %4855 = vmatprep.subr.bf16.mxu1 %v4854_v0  ;;  %v3614_v52 = vmul.f32 %v5362_v2, %v7147_v43  ;;  %v3613_v54 = vmul.f32 %v5362_v2, %v7132_v59  ;;  %v5364_v45 = vpop.eup %5363  ;;  %v1725_v0 = vld [vmem:[#allocation4 + $0x58] sm:$0xff] }
 0x821   : > { %v3644_v47 = vmul.f32 %v5364_v45, %v7199_v23  ;;  %v3643_v32 = vmul.f32 %v5364_v45, %v7193_v1 }
 0x822   : > { %v4826_v49 = vpack.c.bf16 %v3614_v52, %v3612_v35  ;;  %v4828_v60 = vpack.c.bf16 %v3613_v54, %v3611_v9 }
 0x823   : > { %v5366_v63 = vpop.eup %5365  ;;  %4857 = vmatpush1.bf16.xpose.msra.mxu1 %v4856_v14 }
 0x824   : > { %4827 = vmatprep.subr.bf16.mxu0 %v4826_v49  ;;  %v3646_v36 = vmul.f32 %v5366_v63, %v7219_v19  ;;  %v5368_v58 = vpop.eup %5367  ;;  %v3645_v27 = vmul.f32 %v5366_v63, %v7215_v15  ;;  %v1726_v49 = vld [vmem:[#allocation4 + $0x60] sm:$0xff]  ;;  %v1728_v63 = vld [vmem:[#allocation4 + $0x70] sm:$0xff] }
 0x825   : > { %4829 = vmatpush1.bf16.xpose.msra.mxu0 %v4828_v60  ;;  %v3616_v59 = vmul.f32 %v5368_v58, %v7212_v21  ;;  %v3615_v10 = vmul.f32 %v5368_v58, %v8047_v61  ;;  %v1729_v60 = vld [vmem:[#allocation4 + $0x78] sm:$0xff]  ;;  %v3963_v61 = vld [vmem:[%s7532_s7] sm:$0xff] }
 0x826   : > { %v4858_v43 = vpack.c.bf16 %v3646_v36, %v3644_v47  ;;  %v4860_v55 = vpack.c.bf16 %v3645_v27, %v3643_v32  ;;  %v3955_v32 = vld [vmem:[%s7531_s6] sm:$0xff] }
 0x827   : > { %v5370_v57 = vpop.eup %5369 }
 0x828   : > { %4859 = vmatprep.subr.bf16.mxu1 %v4858_v43  ;;  %v3618_v31 = vmul.f32 %v5370_v57, %v7227_v33  ;;  %v3617_v23 = vmul.f32 %v5370_v57, %v8048_v29  ;;  %v3966_v29 = vld [vmem:[%s7532_s7 + $0x18] sm:$0xff] }
 0x82a   : > { %v4830_v19 = vpack.c.bf16 %v3618_v31, %v3616_v59  ;;  %v4832_v5 = vpack.c.bf16 %v3617_v23, %v3615_v10  ;;  %v3964_v59 = vld [vmem:[%s7532_s7 + $0x8] sm:$0xff]  ;;  %v5553_v31 = vmov 0   ;;  %v3965_v10 = vld [vmem:[%s7532_s7 + $0x10] sm:$0xff]  ;;  %v3967_v23 = vld [vmem:[%s7532_s7 + $0x20] sm:$0xff] }
 0x82b   : > { %4861 = vmatpush1.bf16.xpose.msra.mxu1 %v4860_v55  ;;  %4998 = vset.pattern.permute.xlu1 %v5553_v31  ;;  %v3968_v55 = vld [vmem:[%s7532_s7 + $0x28] sm:$0xff] }
 0x82c   : > { %4831 = vmatprep.subr.bf16.mxu0 %v4830_v19  ;;  %4997 = vset.pattern.permute.xlu0 %v5553_v31  ;;  %v3969_v19 = vld [vmem:[%s7532_s7 + $0x30] sm:$0xff] }
 0x82d   : > { %4833 = vmatpush1.bf16.xpose.msra.mxu0 %v4832_v5  ;;  %3978 = vperm.xlu1 %4998, %v3964_v59   ;;  %v3970_v5 = vld [vmem:[%s7532_s7 + $0x38] sm:$0xff] }
 0x82e   : > { %3973 = vperm.xlu0 %4997, %v3963_v61  }
 0x831   : > { %3983 = vperm.xlu1 %4998, %v3965_v10  }
 0x835   : > { %3988 = vperm.xlu1 %4998, %v3966_v29  }
 0x839   : > { %3993 = vperm.xlu1 %4998, %v3967_v23  }
 0x83d   : > { %3998 = vperm.xlu1 %4998, %v3968_v55  }
 0x841   : > { %4003 = vperm.xlu1 %4998, %v3969_v19  }
 0x845   : > { %4008 = vperm.xlu1 %4998, %v3970_v5  }
 0x84a   : > { %v3453_v15 = vpop.xlane.xlu0 %3452 }
 0x84b   : > { %5371 = vrcp.f32 %v3453_v15 }
 0x852   : > { %v3456_v16 = vpop.xlane.xlu1 %3455 }
 0x853   : > { %5373 = vrcp.f32 %v3456_v16 }
 0x854   : > { %v3411_v1 = vpop.xlane.xlu0 %3410 }
 0x855   : > { %5375 = vrcp.f32 %v3411_v1  ;;  %v5372_v21 = vpop.eup %5371 }
 0x856   : > { %v3648_v42 = vmul.f32 %v5372_v21, %v8049_v6  ;;  %v3647_v8 = vmul.f32 %v5372_v21, %v8051_v20  ;;  %v3956_v20 = vld [vmem:[%s7531_s6 + $0x8] sm:$0xff] }
 0x85c   : > { %v3414_v37 = vpop.xlane.xlu1 %3413 }
 0x85d   : > { %5377 = vrcp.f32 %v3414_v37  ;;  %v5374_v33 = vpop.eup %5373 }
 0x85e   : > { %v3650_v41 = vmul.f32 %v5374_v33, %v8050_v30  ;;  %v3649_v22 = vmul.f32 %v5374_v33, %v8052_v25  ;;  %v3958_v25 = vld [vmem:[%s7531_s6 + $0x18] sm:$0xff] }
 0x85f   : > { %v5376_v13 = vpop.eup %5375 }
 0x860   : > { %v4862_v53 = vpack.c.bf16 %v3650_v41, %v3648_v42  ;;  %v4864_v4 = vpack.c.bf16 %v3649_v22, %v3647_v8  ;;  %v3620_v48 = vmul.f32 %v5376_v13, %v8053_v26  ;;  %v3619_v44 = vmul.f32 %v5376_v13, %v8055_v62  ;;  %v3957_v8 = vld [vmem:[%s7531_s6 + $0x10] sm:$0xff]  ;;  %v3959_v22 = vld [vmem:[%s7531_s6 + $0x20] sm:$0xff]  ;;  %v3962_v13 = vld [vmem:[%s7531_s6 + $0x38] sm:$0xff] }
 0x862   : > { %4863 = vmatprep.subr.bf16.mxu1 %v4862_v53  ;;  %v3960_v53 = vld [vmem:[%s7531_s6 + $0x28] sm:$0xff] }
 0x863   : > { %4865 = vmatpush1.bf16.xpose.msra.mxu1 %v4864_v4  ;;  %v3961_v4 = vld [vmem:[%s7531_s6 + $0x30] sm:$0xff] }
 0x865   : > { %v3459_v11 = vpop.xlane.xlu0 %3458 }
 0x866   : > { %5379 = vrcp.f32 %v3459_v11 }
 0x867   : > { %v5378_v46 = vpop.eup %5377 }
 0x868   : > { %v3622_v50 = vmul.f32 %v5378_v46, %v8054_v51  ;;  %v3621_v12 = vmul.f32 %v5378_v46, %v8056_v18 }
 0x86a   : > { %v4834_v17 = vpack.c.bf16 %v3622_v50, %v3620_v48  ;;  %v4836_v38 = vpack.c.bf16 %v3621_v12, %v3619_v44  ;;  %v4142_v44 = vld [vmem:[%s5781_s19 + $0x8] sm:$0xff] }
 0x86c   : > { %v3462_v34 = vpop.xlane.xlu1 %3461  ;;  %4835 = vmatprep.subr.bf16.mxu0 %v4834_v17  ;;  %v4141_v17 = vld [vmem:[%s5781_s19] sm:$0xff] }
 0x86d   : > { %5381 = vrcp.f32 %v3462_v34  ;;  %4837 = vmatpush1.bf16.xpose.msra.mxu0 %v4836_v38 }
 0x870   : > { %v5380_v2 = vpop.eup %5379 }
 0x871   : > { %v3652_v35 = vmul.f32 %v5380_v2, %v7288_v3  ;;  %v3651_v9 = vmul.f32 %v5380_v2, %v7285_v24  ;;  %v4144_v2 = vld [vmem:[%s5781_s19 + $0x18] sm:$0xff] }
 0x874   : > { %3870 = vmatmul.mubr.f32.vlgmr.msra.gmra.mrb[62].mxu0 %v1722_v7 }
 0x875   : > { %3874 = vmatprep.mubr.f32.mxu0 %v1725_v0 }
 0x877   : > { %v5382_v39 = vpop.eup %5381 }
 0x878   : > { %v3654_v52 = vmul.f32 %v5382_v39, %v7295_v28  ;;  %v3653_v54 = vmul.f32 %v5382_v39, %v7293_v40  ;;  %3875 = vmatmul.mubr.f32.gmra.mrb[64].mxu0 %v1724_v56 }
 0x879   : > { %4618 = vmatprep.mubr.msk.f32.mxu0 %vm4011_vm3, %v3955_v32 }
 0x87a   : > { %v4866_v45 = vpack.c.bf16 %v3654_v52, %v3652_v35  ;;  %v4868_v14 = vpack.c.bf16 %v3653_v54, %v3651_v9  ;;  %v4143_v35 = vld [vmem:[%s5781_s19 + $0x10] sm:$0xff] }
 0x87c   : > { %4867 = vmatprep.subr.bf16.mxu1 %v4866_v45 }
 0x87d   : > { %4869 = vmatpush1.bf16.xpose.msra.mxu1 %v4868_v14 }
 0x884   : > { %3945 = vmatmul.mubr.f32.vlgmr.msra.gmra.mrb[74].mxu1 %v1726_v49  ;;  %v4146_v49 = vld [vmem:[%s5781_s19 + $0x28] sm:$0xff] }
 0x885   : > { %3949 = vmatprep.mubr.f32.mxu1 %v1729_v60 }
 0x888   : > { %3950 = vmatmul.mubr.f32.gmra.mrb[76].mxu1 %v1728_v63 }
 0x8ac   : > { %v3979_v46 = vpop.permute.xlu1 %3978 }
 0x8ad   : > { %v3974_v51 = vpop.permute.xlu0 %3973 }
 0x8b0   : > { %v3984_v11 = vpop.permute.xlu1 %3983 }
 0x8b4   : > { %v3989_v26 = vpop.permute.xlu1 %3988 }
 0x8b8   : > { %v3994_v48 = vpop.permute.xlu1 %3993 }
 0x8bc   : > { %v3999_v50 = vpop.permute.xlu1 %3998 }
 0x8c0   : > { %v4004_v52 = vpop.permute.xlu1 %4003 }
 0x8cf   : > { %v3721_v47 = vpop.f32.mrb[58].mxu0 }
 0x8d0   : > { %v3723_v36 = vpop.f32.mrb[59].mxu0 }
 0x8d3   : > { %v3726_v3 = vpop.f32.mrb[60].mxu0 }
 0x8d4   : > { %v4870_v58 = vpack.c.bf16 %v3726_v3, %v3721_v47  ;;  %v3728_v28 = vpop.f32.mrb[61].mxu0  ;;  %v4145_v47 = vld [vmem:[%s5781_s19 + $0x20] sm:$0xff] }
 0x8d5   : > { %v3796_v24 = vpop.f32.mrb[70].mxu1 }
 0x8d6   : > { %4871 = vmatprep.subr.bf16.mxu0 %v4870_v58  ;;  %v3798_v40 = vpop.f32.mrb[71].mxu1 }
 0x8d7   : > { %4873 = vmatpush3.bf16.msra.mxu0 %v4870_v58  ;;  %v4009_v58 = vpop.permute.xlu1 %4008  ;;  %v4148_v40 = vld [vmem:[%s5781_s19 + $0x38] sm:$0xff] }
 0x8d9   : > { %v3801_v27 = vpop.f32.mrb[72].mxu1 }
 0x8da   : > { %v4874_v43 = vpack.c.bf16 %v3801_v27, %v3796_v24  ;;  %v3803_v57 = vpop.f32.mrb[73].mxu1 }
 0x8db   : > { %v4147_v57 = vld [vmem:[%s5781_s19 + $0x30] sm:$0xff]  ;;  %s5554_s19 = smov [#allocation10]  }
 0x8dc   : > { %4875 = vmatprep.subr.bf16.mxu0 %v4874_v43  ;;  %s5445_s23 = sshll.u32 %s5554_s19, 4  ;;  %s5446_s23 = int_to_ptr.vmem [resolvable:$false] %s5445_s23 }
 0x8dd   : > { %4877 = vmatpush3.bf16.msra.mxu0 %v4874_v43  ;;  %s5447_s2 = scalar_lea.vmem %s5446_s23, 2048  ;;  %p5448_p9 = scmp.lt.s32.totalorder %s7464_s26, %s5446_s23 }
 0x8de   : > { %p5449_p2 = scmp.lt.s32.totalorder %s5447_s2, %s5441_s14 }
 0x8e0   : > { %p5450_p6 = por %p5449_p2, %p5448_p9 }
 0x8e2   : > { %p5451_p10 = pnand %p5450_p6, %p5444_p7 }
 0x947   : > { %v3871_v15 = vpop.f32.mrb[62].mxu0 }
 0x948   : > { %v3873_v16 = vpop.f32.mrb[63].mxu0 }
 0x94b   : > { %v3876_v1 = vpop.f32.mrb[64].mxu0 }
 0x94c   : > { %v4878_v37 = vpack.c.bf16 %v3876_v1, %v3871_v15  ;;  %v3878_v21 = vpop.f32.mrb[65].mxu0 }
 0x94e   : > { %4879 = vmatprep.subr.bf16.mxu0 %v4878_v37 }
 0x94f   : > { %4881 = vmatpush3.bf16.msra.mxu0 %v4878_v37 }
 0x957   : > { %v3946_v33 = vpop.f32.mrb[74].mxu1 }
 0x958   : > { %v3948_v6 = vpop.f32.mrb[75].mxu1 }
 0x95b   : > { %v3951_v42 = vpop.f32.mrb[76].mxu1 }
 0x95c   : > { %v4882_v30 = vpack.c.bf16 %v3951_v42, %v3946_v33  ;;  %v3953_v41 = vpop.f32.mrb[77].mxu1 }
 0x95e   : > { %4883 = vmatprep.subr.bf16.mxu0 %v4882_v30 }
 0x95f   : > { %4885 = vmatpush3.bf16.msra.mxu0 %v4882_v30 }
 0x962   : > { %4619 = vmatmul.mubr.msk.f32.vlgmr.msra.gmra.mrb[66].mxu0 %vm4011_vm3, %v3956_v20 }
 0x963   : > { %4621 = vmatprep.mubr.msk.f32.mxu0 %vm4011_vm3, %v3957_v8 }
 0x966   : > { %4622 = vmatmul.mubr.msk.f32.gmra.mrb[68].mxu0 %vm4011_vm3, %v3958_v25 }
 0x967   : > { %4624 = vmatprep.mubr.msk.f32.mxu0 %vm4011_vm3, %v3959_v22 }
 0x96a   : > { %4625 = vmatmul.mubr.msk.f32.gmra.mrb[70].mxu0 %vm4011_vm3, %v3960_v53 }
 0x96b   : > { %4627 = vmatprep.mubr.msk.f32.mxu0 %vm4011_vm3, %v3961_v4 }
 0x96e   : > { %4628 = vmatmul.mubr.msk.f32.gmra.mrb[72].mxu0 %vm4011_vm3, %v3962_v13 }
 0xa35   : > { %v4620_v62 = vpop.f32.mrb[66].mxu0 }
 0xa36   : > { %v4108_v18 = vadd.f32 %v4620_v62, %v3979_v46  ;;  %v4102_v12 = vpop.f32.mrb[67].mxu0 }
 0xa37   : > { %v4103_v38 = vadd.f32 %v4102_v12, %v3974_v51 }
 0xa38   : > { %v4150_v34 = vadd.f32 %v4142_v44, %v4108_v18 }
 0xa39   : > { %v4149_v7 = vadd.f32 %v4141_v17, %v4103_v38  ;;  %v4623_v0 = vpop.f32.mrb[68].mxu0 }
 0xa3a   : > { %4158 = vst [vmem:[%s5796_s4 + $0x8] sm:$0xff] %v4150_v34  ;;  %v4118_v56 = vadd.f32 %v4623_v0, %v3989_v26  ;;  %v4112_v39 = vpop.f32.mrb[69].mxu0 }
 0xa3b   : > { %4157 = vst [vmem:[%s5796_s4] sm:$0xff] %v4149_v7  ;;  %v4113_v9 = vadd.f32 %v4112_v39, %v3984_v11 }
 0xa3c   : > { %v4152_v54 = vadd.f32 %v4144_v2, %v4118_v56 }
 0xa3d   : > { %v4151_v45 = vadd.f32 %v4143_v35, %v4113_v9  ;;  %v4626_v14 = vpop.f32.mrb[70].mxu0 }
 0xa3e   : > { %4160 = vst [vmem:[%s5796_s4 + $0x18] sm:$0xff] %v4152_v54  ;;  %v4128_v60 = vadd.f32 %v4626_v14, %v3999_v50  ;;  %v4122_v63 = vpop.f32.mrb[71].mxu0 }
 0xa3f   : > { %4159 = vst [vmem:[%s5796_s4 + $0x10] sm:$0xff] %v4151_v45  ;;  %v4123_v36 = vadd.f32 %v4122_v63, %v3994_v48 }
 0xa40   : > { %v4154_v3 = vadd.f32 %v4146_v49, %v4128_v60 }
 0xa41   : > { %v4153_v28 = vadd.f32 %v4145_v47, %v4123_v36  ;;  %v4629_v24 = vpop.f32.mrb[72].mxu0 }
 0xa42   : > { %4162 = vst [vmem:[%s5796_s4 + $0x28] sm:$0xff] %v4154_v3  ;;  %v4138_v27 = vadd.f32 %v4629_v24, %v4009_v58  ;;  %v4132_v43 = vpop.f32.mrb[73].mxu0 }
 0xa43   : > { %4161 = vst [vmem:[%s5796_s4 + $0x20] sm:$0xff] %v4153_v28  ;;  %v4133_v32 = vadd.f32 %v4132_v43, %v4004_v52 }
 0xa44   : > { %v4156_v59 = vadd.f32 %v4148_v40, %v4138_v27 }
 0xa45   : > { %v4155_v31 = vadd.f32 %v4147_v57, %v4133_v32 }
 0xa46   : > { %4164 = vst [vmem:[%s5796_s4 + $0x38] sm:$0xff] %v4156_v59 }
 0xa47   : > { %4163 = vst [vmem:[%s5796_s4 + $0x30] sm:$0xff] %v4155_v31 }
 0xa48   : > { %5454 = shalt.err (!%p5451_p10)
}
 0xa49   : > { %s5455_s4 = scalar_lea.hbm %s7469_s17, 1024  ;;  %s5459_s8 = scalar_lea.hbm %s8057_s15, 4096 }
 0xa4a   : > { %p5456_p11 = scmp.ne.s32.totalorder %s7469_s17, %s5455_s4  ;;  %p5460_p8 = scmp.lt.u32.totalorder %s7469_s17, %s8057_s15 }
 0xa4b   : > { %p5461_p12 = scmp.lt.u32.totalorder %s5459_s8, %s5455_s4  ;;  %p5463_p5 = scmp.lt.u32.totalorder %s5455_s4, %s7469_s17 }
 0xa4c   : > { %p5457_p1 = pnand %p5456_p11, %p8058_p0 }
 0xa4d   : > { %p5462_p13 = por %p5461_p12, %p5460_p8 }
 0xa4e   : > { %p5458_p4 = pneg %p5457_p1 }
 0xa4f   : > { %p5464_p3 = por %p5463_p5, %p5462_p13 }
 0xa51   : > { %p5465_p7 = pnand %p5464_p3, %p5458_p4 }
 0xa53   : > { %5468 = shalt.err (!%p5465_p7)
}
 0xa54   : > { %s5555_s30 = smov 128   ;;  %s5556_s29 = smov 256  }
 0xa55   : > { %s5557_s16 = smov 8  }
 0xa56   : > { %4894 = dma.vmem_to_hbm [thread:$0]  (%p8058_p0), %s7464_s26, 1024, %s7469_s17, %s4166_s11, %s5555_s30, %s5556_s29, %s5557_s16  }
 0xa57 PF: > { %s8059_s14 = sld [smem:[#allocation15_spill]]  ;;  %s8060_s19 = sld [smem:[#allocation14_spill]] }
 0xa58   : > { %s8061_s23 = sld [smem:[#allocation16_spill]] }
 0xa5d   : > { %p4911_p9 = scmp.ge.s32.totalorder %s8059_s14, 2  ;;  %s4195_s2 = sand.u32 1, %s8060_s19  }
 0xa5e   : > { %p8062_p2 = scmp.ne.s32.totalorder %s8061_s23, 0  ;;  %s4196_s4 = scalar_lea.sflag [#allocation7], %s4195_s2 }
 0xa60   : > { %p4905_p6 = pnand %p4911_p9, %p8062_p2 }
 0xa62   : > { %5510 = dma.done.wait (!%p4905_p6), %s4196_s4, 1024  }
 0xa63   : > { %5512 = vsyncadd (!%p4905_p6), %s4196_s4, 4294966272  ;;  %s25_s11 = sadd.s32 1, %s8059_s14   ;;  %s8063_s18 = sld [smem:[#allocation17_spill]] }
 0xa64   : > { %p22_p10 = scmp.ge.s32.totalorder %s25_s11, 6   ;;  %s8064_s2 = smov %s5519_s27 }
 0xa65   : > { %s8065_s27 = smov %s5523_s28  ;;  %s8066_s28 = smov %s5772_s25 }
 0xa66   : > { %s8067_s29 = smov %s5535_s9  ;;  %s8068_s30 = smov %s5539_s10 }
 0xa67   : > { %s8070_s10 = smov %s8076_s13  ;;  %24 = sbr.rel (!%p22_p10) target bundleno = 11 (0xb), region = 113 }
 0xa69   : > { %s8069_s9 = smov %s8063_s18 }
 0xa6e   :  { %4201 = vsyncpa [#allocation6], 1 }
 0xa6f   :  { %4203 = vsyncpa [#allocation6 + $0x1], 1 }
 0xa70   :  { %4204 = vsyncpa [#allocation9], 1 }
 0xa71   :  { %4205 = vsyncpa [#allocation7], 1 }
 0xa72   :  { %4207 = vsyncpa [#allocation7 + $0x1], 1 }

// kernel: tpu_custom_call.1
= control target key start
LH: loop header
LB: loop body
LE: loop exit
PB: predicated region body
PF: predicated region fallthrough
CT: control target
= control target key end

     0   :  { %s7522_s0 = inlined_call_operand.vmem [shape: f32[2,64,256], index: 0, kind: input, shape index: {}]   ;;  %s7523_s1 = inlined_call_operand.hbm [shape: f32[2,64,256], index: 1, kind: input, shape index: {}]   ;;  %s7524_s2 = inlined_call_operand.vmem [shape: f32[1,256], index: 2, kind: input, shape index: {}]   ;;  %s7525_s3 = inlined_call_operand.vmem [shape: f32[64,32], index: 3, kind: input, shape index: {}]   ;;  %s7526_s4 = inlined_call_operand.hbm [shape: f32[3,64,64], index: 4, kind: input, shape index: {}]   ;;  %s7527_s5 = inlined_call_operand.vmem [shape: f32[3,64,1], index: 5, kind: input, shape index: {}]   ;;  %s7528_s6 = inlined_call_operand.vmem [shape: f32[64,64], index: 6, kind: input, shape index: {}]   ;;  %s7529_s7 = inlined_call_operand.vmem [shape: f32[64,1], index: 7, kind: input, shape index: {}]   ;;  %s7530_s8 = inlined_call_operand.hbm [shape: f32[2,64,256], index: 8, kind: output, shape index: {}]  }
   0x1   :  { %7707 = sst [smem:[#allocation119_spill]] %s7526_s4 }
   0x2   :  { %7708 = sst [smem:[#allocation120_spill]] %s7530_s8 }
   0x3   :  { %13 = vsyncpa [#allocation6], 0 }
   0x4   :  { %15 = vsyncpa [#allocation6 + $0x1], 0 }
   0x5   :  { %16 = vsyncpa [#allocation9], 0 }
   0x6   :  { %17 = vsyncpa [#allocation7], 0 }
   0x7   :  { %19 = vsyncpa [#allocation7 + $0x1], 0  ;;  %s5600_s2 = smov 0   ;;  %s5602_s27 = smov 0  }
   0x8   :  { %s5604_s28 = smov 0   ;;  %s5606_s29 = smov 0  }
   0x9   :  { %s5608_s30 = smov 0   ;;  %s5610_s9 = smov 0  }
   0xa   :  { %s5612_s10 = smov 0   ;;  %s5614_s11 = smov 0  }
   0xb LB: > { %7709 = sst [smem:[#allocation14_spill]] %s5512_s2  ;;  %s4292_s12 = sadd.s32 4294967295, %s5540_s11   ;;  %s5540_s11 = sphi %s5614_s11, %s25_s11   ;;  %s5536_s10 = sphi %s5612_s10, %s8067_s10   ;;  %s5532_s9 = sphi %s5610_s9, %s8066_s9   ;;  %s5528_s30 = sphi %s5608_s30, %s8065_s30   ;;  %s5524_s29 = sphi %s5606_s29, %s8064_s29   ;;  %s5520_s28 = sphi %s5604_s28, %s8063_s28   ;;  %s5516_s27 = sphi %s5602_s27, %s8062_s27   ;;  %s5512_s2 = sphi %s5600_s2, %s8061_s2  }
   0xc   : > { %7710 = sst [smem:[#allocation15_spill]] %s5540_s11  ;;  %s4293_s13 = sadd.s32 4294967294, %s5540_s11  }
   0xd   : > { %p79_p0 = scmp.ne.s32.totalorder %s5520_s28, %s5516_s27  ;;  %p80_p1 = scmp.eq.s32.totalorder %s5540_s11, 0 }
   0xe   : > { %p85_p2 = scmp.ne.s32.totalorder %s5516_s27, %s5512_s2  ;;  %p5648_p3 = scmp.eq.s32.totalorder %s4292_s12, 0 }
   0xf   : > { %p237_p4 = scmp.eq.s32.totalorder %s4292_s12, 3  ;;  %p5652_p5 = por %p80_p1, %p79_p0 }
  0x10   : > { %s7711_s15 = scalar_select %p5648_p3, 1, 0 }
  0x11   : > { %p243_p6 = scmp.eq.s32.totalorder %s4293_s13, 3  ;;  %p5658_p7 = por %p5648_p3, %p85_p2 }
  0x12   : > { %p5662_p8 = por %p237_p4, %p79_p0  ;;  %p4294_p10 = scmp.ge.s32.totalorder %s5540_s11, 1 }
  0x13   : > { %s7713_s17 = scalar_select %p5658_p7, 1, 0 }
  0x14   : > { %s7714_s18 = scalar_select %p5662_p8, 1, 0 }
  0x15   : > { %p5666_p9 = por %p243_p6, %p85_p2  ;;  %p250_p11 = scmp.lt.s32.totalorder %s5540_s11, 5 }
  0x16   : > { %s5542_s21 = smov [#allocation8]   ;;  %p4906_p0 = scmp.lt.s32.totalorder %s5540_s11, 4 }
  0x17   : > { %s7715_s19 = scalar_select %p5666_p9, 1, 0 }
  0x18   : > { %p5672_p12 = pnand %p4294_p10, %p250_p11  ;;  %s268_s22 = sshll.u32 %s5542_s21, 4  ;;  %s269_s22 = int_to_ptr.vmem [resolvable:$true] %s268_s22 }
  0x19   : > { %7716 = sst [smem:[#allocation16_spill]] %s7715_s19  ;;  %p5687_p2 = pnand %p4906_p0, %p5652_p5 }
  0x1a   : > { %s7717_s20 = scalar_select %p5672_p12, 1, 0 }
  0x1b   : > { %p4893_p13 = pneg %p5672_p12  ;;  %s7720_s4 = sld [smem:[#allocation119_spill]] }
  0x1c   : > { %s7719_s24 = scalar_select %p5687_p2, 1, 0 }
  0x1d   : > { %p5681_p1 = pnand %p4893_p13, %p5648_p3 }
  0x1f   : > { %p5382_p6 = pneg %p5681_p1 }
  0x21   : > { %s5380_s12 = scalar_lea.hbm %s7720_s4, 3072 }
  0x22   : > { %p5381_p4 = scmp.ne.s32.totalorder %s7720_s4, %s5380_s12  ;;  %p5387_p13 = scmp.lt.u32.totalorder %s5380_s12, %s7720_s4 }
  0x24   : > { %p5383_p10 = pnand %p5382_p6, %p5381_p4 }
  0x26   : > { %p5384_p11 = pneg %p5383_p10 }
  0x28   : > { %p5389_p5 = pnand %p5387_p13, %p5384_p11 }
  0x2a   : > { %5392 = shalt.err (!%p5389_p5)
}
  0x2b   : > { %s5393_s16 = scalar_lea.vmem %s269_s22, 3072  ;;  %p5401_p3 = scmp.lt.s32.totalorder %s269_s22, %s269_s22 }
  0x2c   : > { %p5394_p0 = scmp.ne.s32.totalorder %s269_s22, %s5393_s16  ;;  %p5402_p7 = scmp.lt.s32.totalorder %s5393_s16, %s5393_s16 }
  0x2e   : > { %p5396_p9 = pnand %p5394_p0, %p5382_p6  ;;  %p5403_p12 = por %p5402_p7, %p5401_p3 }
  0x30   : > { %p5397_p8 = pneg %p5396_p9 }
  0x32   : > { %p5404_p2 = pnand %p5403_p12, %p5397_p8 }
  0x34   : > { %5407 = shalt.err (!%p5404_p2)
}
  0x35   : > { %s7541_s25 = smov 128   ;;  %s7542_s14 = smov 8  }
  0x36   : > { %4896 = dma.hbm_to_vmem [thread:$0]  (!%p5681_p1), %s7720_s4, 3072, %s269_s22, [#allocation9], %s7541_s25, %s7541_s25, %s7542_s14  }
  0x37   : > { %s34_s12 = sadd.s32 1, %s5532_s9  ;;  %s37_s13 = sadd.s32 1, %s5536_s10 }
  0x38   : > { %p35_p3 = scmp.ge.s32.totalorder %s34_s12, 2  ;;  %s299_s21 = sand.u32 1, %s5520_s28  }
  0x39   : > { %s4298_s16 = sshll.u32 %s5536_s10, 4  ;;  %s4297_s23 = sshll.u32 %s299_s21, 6 }
  0x3a   : > { %s8069_s12 = smov (%p35_p3, %s34_s12), 0  ;;  %s8071_s13 = smov (!%p35_p3, %s37_s13), %s5536_s10 }
  0x3b   : > { %7721 = sst [smem:[#allocation17_spill]] %s8069_s12  ;;  %s68_s2 = ssub.s32 %s5532_s9, %s8069_s12 }
  0x3c   : > { %p39_p7 = scmp.ge.s32.totalorder %s8071_s13, 2  ;;  %s308_s11 = sadd.s32 %s5532_s9, %s4298_s16 }
  0x3d   : > { %s4299_s22 = sshll.u32 %s308_s11, 7  ;;  %s303_s19 = scalar_lea.vmem [#allocation5], %s4297_s23 }
  0x3e   : > { %s8073_s13 = smov (%p39_p7, %s8071_s13), 0  ;;  %s311_s26 = sshll.u32 %s303_s19, 4  ;;  %s5731_s26 = int_to_ptr.vmem [resolvable:$true] %s311_s26 }
  0x3f   : > { %s67_s25 = ssub.s32 %s5536_s10, %s8073_s13  ;;  %s5727_s8 = scalar_lea.hbm %s7523_s1, %s4299_s22 }
  0x40   : > { %s5729_s12 = sor.u32 %s68_s2, %s67_s25  ;;  %s5734_s16 = scalar_lea.sflag [#allocation6], %s299_s21 }
  0x41   : > { %p70_p8 = scmp.eq.s32.totalorder %s5729_s12, 0  ;;  %s5408_s11 = scalar_lea.hbm %s5727_s8, 1024 }
  0x42   : > { %p5409_p9 = scmp.ne.s32.totalorder %s5727_s8, %s5408_s11  ;;  %p7722_p12 = scmp.ne.s32.totalorder %s7719_s24, 0 }
  0x43   : > { %s5413_s23 = scalar_lea.hbm %s7523_s1, 4096  ;;  %p5414_p6 = scmp.lt.u32.totalorder %s5727_s8, %s7523_s1 }
  0x44   : > { %p5410_p1 = pneg %p7722_p12  ;;  %p5415_p10 = scmp.lt.u32.totalorder %s5413_s23, %s5408_s11 }
  0x45   : > { %p5417_p13 = scmp.lt.u32.totalorder %s5408_s11, %s5727_s8 }
  0x46   : > { %p5411_p2 = pnand %p5410_p1, %p5409_p9  ;;  %p5416_p11 = por %p5415_p10, %p5414_p6 }
  0x48   : > { %p5412_p4 = pneg %p5411_p2  ;;  %p5418_p5 = por %p5417_p13, %p5416_p11 }
  0x4a   : > { %p5419_p0 = pnand %p5418_p5, %p5412_p4 }
  0x4c   : > { %5422 = shalt.err (!%p5419_p0)
}
  0x4d   : > { %s5423_s21 = scalar_lea.vmem %s5731_s26, 1024  ;;  %s5545_s22 = smov [#allocation5]  }
  0x4e   : > { %p5424_p3 = scmp.ne.s32.totalorder %s5731_s26, %s5423_s21  ;;  %s5428_s19 = sshll.u32 %s5545_s22, 4  ;;  %s5429_s19 = int_to_ptr.vmem [resolvable:$false] %s5428_s19 }
  0x4f   : > { %s5430_s4 = scalar_lea.vmem %s5429_s19, 2048  ;;  %p5431_p2 = scmp.lt.s32.totalorder %s5731_s26, %s5429_s19 }
  0x50   : > { %p5426_p7 = pnand %p5424_p3, %p5410_p1  ;;  %p5432_p6 = scmp.lt.s32.totalorder %s5430_s4, %s5423_s21 }
  0x52   : > { %p5427_p9 = pneg %p5426_p7  ;;  %p5433_p10 = por %p5432_p6, %p5431_p2 }
  0x54   : > { %p5434_p11 = pnand %p5433_p10, %p5427_p9 }
  0x56   : > { %5437 = shalt.err (!%p5434_p11)
}
  0x57   : > { %s5546_s11 = smov 256   ;;  %s7723_s14 = smov 8  }
  0x58   : > { %s7724_s23 = smov 128   ;;  %s7725_s2 = sadd.s32 1, %s5520_s28 }
  0x59   : > { %4900 = dma.hbm_to_vmem [thread:$0]  (!%p7722_p12), %s5727_s8, 1024, %s5731_s26, %s5734_s16, %s5546_s11, %s7724_s23, %s7723_s14  }
  0x5a   : > { %s5769_s25 = scalar_select %p70_p8, %s5520_s28, %s7725_s2  }
  0x5b   : > { %p7726_p1 = scmp.ne.s32.totalorder %s7717_s20, 0 }
  0x5d   : > { %323 = sbr.rel (%p7726_p1) target bundleno = 2647 (0xa57), region = 52 }
  0x64   : > { %s5774_s21 = sand.u32 1, %s5516_s27   ;;  %p7727_p4 = scmp.ne.s32.totalorder %s7713_s17, 0 }
  0x65   : > { %s4301_s24 = sshll.u32 %s5774_s21, 6  ;;  %s326_s22 = scalar_lea.sflag [#allocation6], %s5774_s21 }
  0x66   : > { %s5778_s19 = scalar_lea.vmem [#allocation5], %s4301_s24 }
  0x67   : > { %5499 = dma.done.wait (%p7727_p4), %s326_s22, 1024  }
  0x68   : > { %5501 = vsyncadd (%p7727_p4), %s326_s22, 4294966272  ;;  %p7728_p8 = scmp.ne.s32.totalorder %s7711_s15, 0 }
  0x6a   : > { %5503 = dma.done.wait (%p7728_p8), [#allocation9], 3072  }
  0x6b   : > { %5505 = vsyncadd (%p7728_p8), [#allocation9], 4294964224  ;;  %p371_p12 = scmp.lt.s32.totalorder %s5528_s30, 1  ;;  %s5793_s4 = scalar_lea.vmem [#allocation10], %s4301_s24 }
  0x6c   : > { %p4306_p13 = scmp.ne.s32.totalorder %s5524_s29, 0 }
  0x6d   : > { %s372_s8 = scalar_select %p371_p12, %s5528_s30, 1 }
  0x6e   : > { %379 = sbr.rel (%p4306_p13) target bundleno = 1232 (0x4d0), region = 64  ;;  %v5879_v48 = vld [vmem:[%s7525_s3] sm:$0xff] (!%p4306_p13)  ;;  %v5885_v49 = vld [vmem:[%s7525_s3 + $0x8] sm:$0xff] (!%p4306_p13)  ;;  %v5891_v50 = vld [vmem:[%s7525_s3 + $0x10] sm:$0xff] (!%p4306_p13)  ;;  %vm500_vm0 = vcmask (!%p4306_p13), 523264   ;;  %vm707_vm1 = vcmask (!%p4306_p13), 261120  }
  0x6f   : > { %s4450_s20 = sshll.u32 %s372_s8, 7  ;;  %v5897_v51 = vld [vmem:[%s7525_s3 + $0x18] sm:$0xff] (!%p4306_p13)  ;;  %v5903_v52 = vld [vmem:[%s7525_s3 + $0x20] sm:$0xff] (!%p4306_p13)  ;;  %v5909_v53 = vld [vmem:[%s7525_s3 + $0x28] sm:$0xff] (!%p4306_p13)  ;;  %4567 = vmatprep.mubr.msk.f32.mxu0 (!%p4306_p13), %vm707_vm1, %v5879_v48 }
  0x70   : > { %s375_s16 = scalar_lea.vmem %s7522_s0, %s4450_s20  ;;  %v5915_v54 = vld [vmem:[%s7525_s3 + $0x30] sm:$0xff] (!%p4306_p13)  ;;  %v5921_v55 = vld [vmem:[%s7525_s3 + $0x38] sm:$0xff] (!%p4306_p13) }
  0x71   : > { %v5796_v0 = vld [vmem:[%s375_s16 + $0x20] sm:$0xff] (!%p4306_p13)  ;;  %v5798_v1 = vld [vmem:[%s375_s16 + $0x28] sm:$0xff] (!%p4306_p13)  ;;  %v5806_v5 = vld [vmem:[%s375_s16 + $0x30] sm:$0xff] (!%p4306_p13) }
  0x72   : > { %v5800_v2 = vld [vmem:[%s375_s16] sm:$0xff] (!%p4306_p13)  ;;  %v402_v3 = vadd.f32 (!%p4306_p13), %v5798_v1, %v5796_v0  ;;  %v5804_v4 = vld [vmem:[%s375_s16 + $0x8] sm:$0xff] (!%p4306_p13)  ;;  %v5808_v6 = vld [vmem:[%s375_s16 + $0x38] sm:$0xff] (!%p4306_p13)  ;;  %v426_v29 = vmul.f32 (!%p4306_p13), %v5806_v5, %v5806_v5  ;;  %v424_v32 = vmul.f32 (!%p4306_p13), %v5796_v0, %v5796_v0  ;;  %v425_v33 = vmul.f32 (!%p4306_p13), %v5798_v1, %v5798_v1 }
  0x73   : > { %v396_v7 = vadd.f32 (!%p4306_p13), %v5804_v4, %v5800_v2  ;;  %v5812_v8 = vld [vmem:[%s375_s16 + $0x10] sm:$0xff] (!%p4306_p13)  ;;  %v5814_v9 = vld [vmem:[%s375_s16 + $0x18] sm:$0xff] (!%p4306_p13)  ;;  %v405_v10 = vadd.f32 (!%p4306_p13), %v5808_v6, %v5806_v5  ;;  %v5824_v14 = vld [vmem:[%s375_s16 + $0x40] sm:$0xff] (!%p4306_p13)  ;;  %v420_v26 = vmul.f32 (!%p4306_p13), %v5800_v2, %v5800_v2  ;;  %v421_v27 = vmul.f32 (!%p4306_p13), %v5804_v4, %v5804_v4 }
  0x74   : > { %403 = vadd.xlane.f32.xlu1 (!%p4306_p13), %v402_v3  ;;  %v399_v11 = vadd.f32 (!%p4306_p13), %v5814_v9, %v5812_v8  ;;  %v5820_v12 = vld [vmem:[%s375_s16 + $0x50] sm:$0xff] (!%p4306_p13)  ;;  %v5822_v13 = vld [vmem:[%s375_s16 + $0x58] sm:$0xff] (!%p4306_p13)  ;;  %v5826_v15 = vld [vmem:[%s375_s16 + $0x48] sm:$0xff] (!%p4306_p13)  ;;  %v422_v23 = vmul.f32 (!%p4306_p13), %v5812_v8, %v5812_v8  ;;  %v423_v24 = vmul.f32 (!%p4306_p13), %v5814_v9, %v5814_v9  ;;  %v427_v30 = vmul.f32 (!%p4306_p13), %v5808_v6, %v5808_v6 }
  0x75   : > { %397 = vadd.xlane.f32.xlu0 %v396_v7  ;;  %v411_v16 = vadd.f32 %v5822_v13, %v5820_v12  ;;  %v408_v17 = vadd.f32 %v5826_v15, %v5824_v14  ;;  %v5832_v18 = vld [vmem:[%s375_s16 + $0x70] sm:$0xff]  ;;  %v5834_v19 = vld [vmem:[%s375_s16 + $0x78] sm:$0xff]  ;;  %v5836_v20 = vld [vmem:[%s375_s16 + $0x60] sm:$0xff]  ;;  %v436_v31 = vadd.f32 %v421_v27, %v420_v26  ;;  %v430_v35 = vmul.f32 %v5820_v12, %v5820_v12 }
  0x76   : > { %v5838_v21 = vld [vmem:[%s375_s16 + $0x68] sm:$0xff]  ;;  %v417_v22 = vadd.f32 %v5834_v19, %v5832_v18  ;;  %v439_v28 = vadd.f32 %v423_v24, %v422_v23  ;;  %v445_v34 = vadd.f32 %v427_v30, %v426_v29  ;;  %v431_v36 = vmul.f32 %v5822_v13, %v5822_v13 }
  0x77   : > { %v414_v25 = vadd.f32 %v5838_v21, %v5836_v20  ;;  %v442_v37 = vadd.f32 %v425_v33, %v424_v32  ;;  %v428_v38 = vmul.f32 %v5824_v14, %v5824_v14  ;;  %v429_v39 = vmul.f32 %v5826_v15, %v5826_v15 }
  0x78   : > { %406 = vadd.xlane.f32.xlu1 %v405_v10  ;;  %v451_v40 = vadd.f32 %v431_v36, %v430_v35  ;;  %v434_v41 = vmul.f32 %v5832_v18, %v5832_v18  ;;  %v435_v42 = vmul.f32 %v5834_v19, %v5834_v19  ;;  %v432_v44 = vmul.f32 %v5836_v20, %v5836_v20 }
  0x79   : > { %400 = vadd.xlane.f32.xlu0 %v399_v11  ;;  %v448_v43 = vadd.f32 %v429_v39, %v428_v38  ;;  %v433_v45 = vmul.f32 %v5838_v21, %v5838_v21  ;;  %v5547_v36 = vmov 0  }
  0x7a   : > { %v457_v46 = vadd.f32 %v435_v42, %v434_v41  ;;  %4984 = vset.pattern.permute.xlu1 %v5547_v36 }
  0x7b   : > { %v454_v47 = vadd.f32 %v433_v45, %v432_v44 }
  0x7c   : > { %412 = vadd.xlane.f32.xlu1 %v411_v16 }
  0x7d   : > { %409 = vadd.xlane.f32.xlu0 %v408_v17 }
  0x80   : > { %418 = vadd.xlane.f32.xlu1 %v417_v22 }
  0x81   : > { %415 = vadd.xlane.f32.xlu0 %v414_v25 }
  0x84   : > { %440 = vadd.xlane.f32.xlu1 %v439_v28 }
  0x85   : > { %437 = vadd.xlane.f32.xlu0 %v436_v31 }
  0x88   : > { %446 = vadd.xlane.f32.xlu1 %v445_v34 }
  0x89   : > { %443 = vadd.xlane.f32.xlu0 %v442_v37 }
  0x8c   : > { %452 = vadd.xlane.f32.xlu1 %v451_v40 }
  0x8d   : > { %449 = vadd.xlane.f32.xlu0 %v448_v43 }
  0x90   : > { %458 = vadd.xlane.f32.xlu1 %v457_v46 }
  0x91   : > { %455 = vadd.xlane.f32.xlu0 %v454_v47 }
  0xbe   : > { %468 = vxpose.xlu0.b32.start [1/8] (short) (narrow) %v5879_v48, 32 }
  0xc2   : > { %469 = vxpose.xlu0.b32.cont [2/8] (short) (narrow) %v5885_v49, 32 }
  0xc6   : > { %470 = vxpose.xlu0.b32.cont [3/8] (short) (narrow) %v5891_v50, 32 }
  0xca   : > { %471 = vxpose.xlu0.b32.cont [4/8] (short) (narrow) %v5897_v51, 32 }
  0xce   : > { %472 = vxpose.xlu0.b32.cont [5/8] (short) (narrow) %v5903_v52, 32 }
  0xd2   : > { %473 = vxpose.xlu0.b32.cont [6/8] (short) (narrow) %v5909_v53, 32 }
  0xd6   : > { %474 = vxpose.xlu0.b32.cont [7/8] (short) (narrow) %v5915_v54, 32 }
  0xda   : > { %475 = vxpose.xlu0.b32.end [8/8] (short) (narrow) %v5921_v55, 32 }
 0x101   : > { %v404_v56 = vpop.xlane.xlu1 %403 }
 0x102   : > { %v398_v57 = vpop.xlane.xlu0 %397 }
 0x103   : > { %4985 = vset.pattern.permute.xlu0 %v5547_v36 }
 0x105   : > { %v407_v58 = vpop.xlane.xlu1 %406 }
 0x106   : > { %v401_v59 = vpop.xlane.xlu0 %400  ;;  %v4631_v60 = vpack.c.bf16 %v407_v58, %v404_v56 }
 0x107   : > { %v4627_v61 = vpack.c.bf16 %v401_v59, %v398_v57 }
 0x109   : > { %4628 = vmatprep.subr.bf16.mxu1 %v4627_v61  ;;  %v413_v62 = vpop.xlane.xlu1 %412 }
 0x10a   : > { %4630 = vmatpush3.bf16.msra.mxu1 %v4627_v61  ;;  %v410_v63 = vpop.xlane.xlu0 %409 }
 0x10b   : > { %4632 = vmatprep.subr.bf16.mxu1 %v4631_v60  ;;  %v4635_v3 = vpack.c.bf16 %v413_v62, %v410_v63 }
 0x10d   : > { %v419_v7 = vpop.xlane.xlu1 %418 }
 0x10e   : > { %4634 = vmatpush3.bf16.msra.mxu1 %v4631_v60  ;;  %v416_v10 = vpop.xlane.xlu0 %415 }
 0x10f   : > { %4636 = vmatprep.subr.bf16.mxu1 %v4635_v3  ;;  %v4639_v11 = vpack.c.bf16 %v419_v7, %v416_v10 }
 0x111   : > { %v441_v16 = vpop.xlane.xlu1 %440 }
 0x112   : > { %4638 = vmatpush3.bf16.msra.mxu1 %v4635_v3  ;;  %v438_v17 = vpop.xlane.xlu0 %437 }
 0x113   : > { %4640 = vmatprep.subr.bf16.mxu1 %v4639_v11  ;;  %v4643_v22 = vpack.c.bf16 %v441_v16, %v438_v17 }
 0x115   : > { %v447_v26 = vpop.xlane.xlu1 %446 }
 0x116   : > { %4642 = vmatpush3.bf16.msra.mxu1 %v4639_v11  ;;  %v444_v23 = vpop.xlane.xlu0 %443 }
 0x117   : > { %4644 = vmatprep.subr.bf16.mxu1 %v4643_v22  ;;  %v4647_v30 = vpack.c.bf16 %v447_v26, %v444_v23 }
 0x119   : > { %v453_v28 = vpop.xlane.xlu1 %452 }
 0x11a   : > { %v450_v24 = vpop.xlane.xlu0 %449 }
 0x11b   : > { %v4651_v32 = vpack.c.bf16 %v453_v28, %v450_v24 }
 0x11d   : > { %v459_v33 = vpop.xlane.xlu1 %458 }
 0x11e   : > { %v456_v25 = vpop.xlane.xlu0 %455 }
 0x11f   : > { %v4655_v35 = vpack.c.bf16 %v459_v33, %v456_v25 }
 0x13e   : > { %v484_v27 = vpop.trf.xlu0 }
 0x13f   : > { %4531 = vmatprep.mubr.msk.f32.mxu1 %vm500_vm0, %v484_v27 }
 0x142   : > { %v485_v29 = vpop.trf.xlu0 }
 0x143   : > { %4532 = vmatmul.mubr.msk.f32.vlgmr.msra.gmra.mrb[0].mxu1 %vm500_vm0, %v485_v29 }
 0x144   : > { %4646 = vmatpush3.bf16.msra.mxu1 %v4643_v22 }
 0x145   : > { %4648 = vmatprep.subr.bf16.mxu1 %v4647_v30 }
 0x146   : > { %v486_v31 = vpop.trf.xlu0 }
 0x147   : > { %4534 = vmatprep.mubr.msk.f32.mxu1 %vm500_vm0, %v486_v31 }
 0x148   : > { %4650 = vmatpush3.bf16.msra.mxu1 %v4647_v30 }
 0x149   : > { %4652 = vmatprep.subr.bf16.mxu1 %v4651_v32 }
 0x14a   : > { %v487_v34 = vpop.trf.xlu0 }
 0x14b   : > { %4535 = vmatmul.mubr.msk.f32.gmra.mrb[2].mxu1 %vm500_vm0, %v487_v34 }
 0x14c   : > { %4654 = vmatpush3.bf16.msra.mxu1 %v4651_v32  ;;  %4553 = vmatprep.mubr.msk.f32.mxu1 %vm500_vm0, %v484_v27 }
 0x14d   : > { %4656 = vmatprep.subr.bf16.mxu1 %v4655_v35 }
 0x150   : > { %4658 = vmatpush3.bf16.msra.mxu1 %v4655_v35 }
 0x153   : > { %4554 = vmatmul.mubr.msk.f32.vlgmr.msra.gmra.mrb[4].mxu1 %vm500_vm0, %v485_v29 }
 0x154   : > { %4556 = vmatprep.mubr.msk.f32.mxu1 %vm500_vm0, %v486_v31 }
 0x157   : > { %4557 = vmatmul.mubr.msk.f32.gmra.mrb[6].mxu1 %vm500_vm0, %v487_v34 }
 0x158   : > { %4587 = vmatprep.mubr.msk.f32.mxu1 %vm707_vm1, %v5879_v48 }
 0x216   : > { %v4533_v37 = vpop.f32.mrb[0].mxu1 }
 0x217   : > { %v684_v38 = vmul.f32 0.001953125, %v4533_v37  ;;  %v579_v39 = vpop.f32.mrb[1].mxu1 }
 0x218   : > { %v683_v40 = vmul.f32 0.001953125, %v579_v39 }
 0x219   : > { %v692_v56 = vmul.f32 %v684_v38, %v684_v38 }
 0x21a   : > { %v4659_v41 = vpack.c.bf16 %v684_v38, %v683_v40  ;;  %v691_v58 = vmul.f32 %v683_v40, %v683_v40 }
 0x21c   : > { %4660 = vmatprep.subr.bf16.mxu0 %v4659_v41 }
 0x21d   : > { %4662 = vmatpush3.bf16.msra.mxu0 %v4659_v41  ;;  %v4342_v41 = vld [vmem:[%s7527_s5 + $0x58] sm:$0xff] }
 0x21e   : > { %v4536_v42 = vpop.f32.mrb[2].mxu1 }
 0x21f   : > { %v686_v43 = vmul.f32 0.001953125, %v4536_v42  ;;  %v589_v44 = vpop.f32.mrb[3].mxu1  ;;  %v4344_v42 = vld [vmem:[%s7527_s5 + $0x68] sm:$0xff] }
 0x220   : > { %v685_v45 = vmul.f32 0.001953125, %v589_v44  ;;  %v4356_v44 = vld [vmem:[%s7527_s5 + $0x88] sm:$0xff] }
 0x221   : > { %v694_v63 = vmul.f32 %v686_v43, %v686_v43 }
 0x222   : > { %v4663_v46 = vpack.c.bf16 %v686_v43, %v685_v45  ;;  %v693_v11 = vmul.f32 %v685_v45, %v685_v45  ;;  %v4346_v43 = vld [vmem:[%s7527_s5 + $0x78] sm:$0xff] }
 0x223   : > { %v4358_v45 = vld [vmem:[%s7527_s5 + $0x98] sm:$0xff] }
 0x224   : > { %4664 = vmatprep.subr.bf16.mxu0 %v4663_v46 }
 0x225   : > { %4666 = vmatpush3.bf16.msra.mxu0 %v4663_v46  ;;  %v1062_v46 = vld [vmem:[%s7527_s5] sm:$0xff] }
 0x226   : > { %v4555_v47 = vpop.f32.mrb[4].mxu1 }
 0x227   : > { %v688_v48 = vmul.f32 0.001953125, %v4555_v47  ;;  %v664_v57 = vpop.f32.mrb[5].mxu1  ;;  %v4360_v47 = vld [vmem:[%s7527_s5 + $0xa8] sm:$0xff] }
 0x228   : > { %v687_v59 = vmul.f32 0.001953125, %v664_v57  ;;  %4568 = vmatmul.mubr.msk.f32.vlgmr.msra.gmra.mrb[0].mxu0 %vm707_vm1, %v5885_v49  ;;  %v4362_v57 = vld [vmem:[%s7527_s5 + $0xb8] sm:$0xff] }
 0x229   : > { %v696_v60 = vsub.f32 %v688_v48, %v692_v56  ;;  %4570 = vmatprep.mubr.msk.f32.mxu0 %vm707_vm1, %v5891_v50  ;;  %v1063_v56 = vld [vmem:[%s7527_s5 + $0x8] sm:$0xff]  ;;  %v5548_v48 = vmov 0.0  }
 0x22a   : > { %v695_v61 = vsub.f32 %v687_v59, %v691_v58  ;;  %v4558_v62 = vpop.f32.mrb[6].mxu1  ;;  %v1064_v58 = vld [vmem:[%s7527_s5 + $0x10] sm:$0xff]  ;;  %v1065_v59 = vld [vmem:[%s7527_s5 + $0x18] sm:$0xff] }
 0x22b   : > { %v700_v3 = vadd.f32 1e-05, %v696_v60  ;;  %v690_v7 = vmul.f32 0.001953125, %v4558_v62  ;;  %v674_v10 = vpop.f32.mrb[7].mxu1  ;;  %v1066_v60 = vld [vmem:[%s7527_s5 + $0x20] sm:$0xff]  ;;  %v1068_v62 = vld [vmem:[%s7527_s5 + $0x30] sm:$0xff] }
 0x22c   : > { %v699_v16 = vadd.f32 1e-05, %v695_v61  ;;  %v689_v17 = vmul.f32 0.001953125, %v674_v10  ;;  %4571 = vmatmul.mubr.msk.f32.gmra.mrb[2].mxu0 %vm707_vm1, %v5897_v51  ;;  %v1067_v61 = vld [vmem:[%s7527_s5 + $0x28] sm:$0xff]  ;;  %v4341_v10 = vld [vmem:[%s7527_s5 + $0x50] sm:$0xff] }
 0x22d   : > { %4986 = vrsqrt.f32 %v700_v3  ;;  %v698_v22 = vsub.f32 %v690_v7, %v694_v63  ;;  %4573 = vmatprep.mubr.msk.f32.mxu0 %vm707_vm1, %v5903_v52  ;;  %v1069_v63 = vld [vmem:[%s7527_s5 + $0x38] sm:$0xff]  ;;  %v4339_v3 = vld [vmem:[%s7527_s5 + $0x40] sm:$0xff]  ;;  %v4340_v7 = vld [vmem:[%s7527_s5 + $0x48] sm:$0xff] }
 0x22e   : > { %4988 = vrsqrt.f32 %v699_v16  ;;  %v697_v23 = vsub.f32 %v689_v17, %v693_v11  ;;  %v4343_v11 = vld [vmem:[%s7527_s5 + $0x60] sm:$0xff]  ;;  %v4345_v16 = vld [vmem:[%s7527_s5 + $0x70] sm:$0xff] }
 0x22f   : > { %v702_v24 = vadd.f32 1e-05, %v698_v22  ;;  %v4355_v17 = vld [vmem:[%s7527_s5 + $0x80] sm:$0xff]  ;;  %v4357_v22 = vld [vmem:[%s7527_s5 + $0x90] sm:$0xff] }
 0x230   : > { %v701_v25 = vadd.f32 1e-05, %v697_v23  ;;  %4574 = vmatmul.mubr.msk.f32.gmra.mrb[4].mxu0 %vm707_vm1, %v5909_v53  ;;  %v4359_v23 = vld [vmem:[%s7527_s5 + $0xa0] sm:$0xff] }
 0x231   : > { %4990 = vrsqrt.f32 %v702_v24  ;;  %4576 = vmatprep.mubr.msk.f32.mxu0 %vm707_vm1, %v5915_v54  ;;  %v4361_v24 = vld [vmem:[%s7527_s5 + $0xb0] sm:$0xff] }
 0x232   : > { %4992 = vrsqrt.f32 %v701_v25 }
 0x234   : > { %4577 = vmatmul.mubr.msk.f32.gmra.mrb[6].mxu0 %vm707_vm1, %v5921_v55 }
 0x235   : > { %1198 = vmatprep.mubr.f32.mxu0 %v5548_v48 }
 0x237   : > { %v4987_v26 = vpop.eup %4986 }
 0x238   : > { %v4989_v27 = vpop.eup %4988 }
 0x239   : > { %v4667_v28 = vpack.c.bf16 %v4987_v26, %v4989_v27 }
 0x23b   : > { %v4991_v29 = vpop.eup %4990  ;;  %4668 = vmatprep.subr.bf16.mxu1 %v4667_v28 }
 0x23c   : > { %v4993_v30 = vpop.eup %4992  ;;  %4670 = vmatpush3.bf16.msra.mxu1 %v4667_v28 }
 0x23d   : > { %v4671_v31 = vpack.c.bf16 %v4991_v29, %v4993_v30 }
 0x23f   : > { %4672 = vmatprep.subr.bf16.mxu1 %v4671_v31 }
 0x240   : > { %4674 = vmatpush3.bf16.msra.mxu1 %v4671_v31 }
 0x243   : > { %4588 = vmatmul.mubr.msk.f32.vlgmr.msra.gmra.mrb[8].mxu1 %vm707_vm1, %v5885_v49 }
 0x244   : > { %4590 = vmatprep.mubr.msk.f32.mxu1 %vm707_vm1, %v5891_v50 }
 0x247   : > { %4591 = vmatmul.mubr.msk.f32.gmra.mrb[10].mxu1 %vm707_vm1, %v5897_v51 }
 0x248   : > { %4593 = vmatprep.mubr.msk.f32.mxu1 %vm707_vm1, %v5903_v52 }
 0x24b   : > { %4594 = vmatmul.mubr.msk.f32.gmra.mrb[12].mxu1 %vm707_vm1, %v5909_v53 }
 0x24c   : > { %4596 = vmatprep.mubr.msk.f32.mxu1 %vm707_vm1, %v5915_v54 }
 0x24f   : > { %4597 = vmatmul.mubr.msk.f32.gmra.mrb[14].mxu1 %vm707_vm1, %v5921_v55 }
 0x250   : > { %1409 = vmatprep.mubr.f32.mxu1 %v5548_v48 }
 0x2fb   : > { %v4569_v32 = vpop.f32.mrb[0].mxu0 }
 0x2fc   : > { %949 = vperm.xlu1 %4984, %v4569_v32   ;;  %v798_v49 = vpop.f32.mrb[1].mxu0 }
 0x2ff   : > { %v4572_v33 = vpop.f32.mrb[2].mxu0 }
 0x300   : > { %944 = vperm.xlu1 %4984, %v798_v49   ;;  %v808_v50 = vpop.f32.mrb[3].mxu0 }
 0x303   : > { %v4575_v34 = vpop.f32.mrb[4].mxu0 }
 0x304   : > { %959 = vperm.xlu1 %4984, %v4572_v33   ;;  %v818_v51 = vpop.f32.mrb[5].mxu0 }
 0x307   : > { %v4578_v35 = vpop.f32.mrb[6].mxu0 }
 0x308   : > { %954 = vperm.xlu1 %4984, %v808_v50   ;;  %v828_v52 = vpop.f32.mrb[7].mxu0 }
 0x30c   : > { %969 = vperm.xlu1 %4984, %v4575_v34  }
 0x310   : > { %964 = vperm.xlu1 %4984, %v818_v51  }
 0x314   : > { %979 = vperm.xlu1 %4984, %v4578_v35  }
 0x316   : > { %v4589_v53 = vpop.f32.mrb[8].mxu1 }
 0x317   : > { %v903_v54 = vpop.f32.mrb[9].mxu1 }
 0x318   : > { %974 = vperm.xlu1 %4984, %v828_v52  }
 0x31a   : > { %v4592_v36 = vpop.f32.mrb[10].mxu1 }
 0x31b   : > { %v913_v55 = vpop.f32.mrb[11].mxu1 }
 0x31c   : > { %1005 = vperm.xlu1 %4984, %v4589_v53  }
 0x31e   : > { %v4595_v37 = vpop.f32.mrb[12].mxu1 }
 0x31f   : > { %v923_v38 = vpop.f32.mrb[13].mxu1 }
 0x320   : > { %1000 = vperm.xlu1 %4984, %v903_v54  }
 0x322   : > { %v4598_v39 = vpop.f32.mrb[14].mxu1 }
 0x323   : > { %1035 = vperm.xlu0 %4985, %v4598_v39   ;;  %v933_v40 = vpop.f32.mrb[15].mxu1 }
 0x324   : > { %1015 = vperm.xlu1 %4984, %v4592_v36  }
 0x327   : > { %1298 = vperm.xlu0 %4985, %v4342_v41  }
 0x328   : > { %1010 = vperm.xlu1 %4984, %v913_v55  }
 0x32b   : > { %1308 = vperm.xlu0 %4985, %v4344_v42  }
 0x32c   : > { %1025 = vperm.xlu1 %4984, %v4595_v37  }
 0x32f   : > { %1318 = vperm.xlu0 %4985, %v4346_v43  }
 0x330   : > { %1020 = vperm.xlu1 %4984, %v923_v38  }
 0x333   : > { %1499 = vperm.xlu0 %4985, %v4356_v44  }
 0x334   : > { %1030 = vperm.xlu1 %4984, %v933_v40  }
 0x337   : > { %1509 = vperm.xlu0 %4985, %v4358_v45  }
 0x338   : > { %1072 = vperm.xlu1 %4984, %v1062_v46  }
 0x33b   : > { %1519 = vperm.xlu0 %4985, %v4360_v47  }
 0x33c   : > { %1077 = vperm.xlu1 %4984, %v1063_v56  }
 0x33f   : > { %1529 = vperm.xlu0 %4985, %v4362_v57  }
 0x340   : > { %1082 = vperm.xlu1 %4984, %v1064_v58  }
 0x344   : > { %1087 = vperm.xlu1 %4984, %v1065_v59  }
 0x348   : > { %1092 = vperm.xlu1 %4984, %v1066_v60  }
 0x34c   : > { %1097 = vperm.xlu1 %4984, %v1067_v61  }
 0x350   : > { %1102 = vperm.xlu1 %4984, %v1068_v62  }
 0x354   : > { %1107 = vperm.xlu1 %4984, %v1069_v63  }
 0x358   : > { %1283 = vperm.xlu1 %4984, %v4339_v3  }
 0x35c   : > { %1288 = vperm.xlu1 %4984, %v4340_v7  }
 0x360   : > { %1293 = vperm.xlu1 %4984, %v4341_v10  }
 0x364   : > { %1303 = vperm.xlu1 %4984, %v4343_v11  }
 0x368   : > { %1313 = vperm.xlu1 %4984, %v4345_v16  }
 0x36c   : > { %1494 = vperm.xlu1 %4984, %v4355_v17  }
 0x370   : > { %1504 = vperm.xlu1 %4984, %v4357_v22   ;;  %v1056_v22 = vld [vmem:[#allocation8 + $0x10] sm:$0xff] }
 0x374   : > { %1514 = vperm.xlu1 %4984, %v4359_v23   ;;  %v1266_v23 = vld [vmem:[#allocation8 + $0x50] sm:$0xff] }
 0x378   : > { %1524 = vperm.xlu1 %4984, %v4361_v24   ;;  %v1057_v24 = vld [vmem:[#allocation8 + $0x18] sm:$0xff] }
 0x37b   : > { %v950_v25 = vpop.permute.xlu1 %949 }
 0x37c   : > { %v984_v33 = vsub.f32 %v5812_v8, %v950_v25  ;;  %v985_v50 = vsub.f32 %v5814_v9, %v950_v25  ;;  %v1267_v25 = vld [vmem:[#allocation8 + $0x58] sm:$0xff] }
 0x37f   : > { %v945_v26 = vpop.permute.xlu1 %944 }
 0x380   : > { %v982_v34 = vsub.f32 %v5800_v2, %v945_v26  ;;  %v983_v51 = vsub.f32 %v5804_v4, %v945_v26  ;;  %v1058_v26 = vld [vmem:[#allocation8 + $0x20] sm:$0xff] }
 0x383   : > { %v960_v27 = vpop.permute.xlu1 %959 }
 0x384   : > { %v988_v8 = vsub.f32 %v5806_v5, %v960_v27  ;;  %v989_v9 = vsub.f32 %v5808_v6, %v960_v27  ;;  %v1268_v27 = vld [vmem:[#allocation8 + $0x60] sm:$0xff] }
 0x387   : > { %v955_v28 = vpop.permute.xlu1 %954 }
 0x388   : > { %v986_v2 = vsub.f32 %v5796_v0, %v955_v28  ;;  %v987_v4 = vsub.f32 %v5798_v1, %v955_v28  ;;  %v1059_v28 = vld [vmem:[#allocation8 + $0x28] sm:$0xff] }
 0x38b   : > { %v970_v29 = vpop.permute.xlu1 %969 }
 0x38c   : > { %v992_v5 = vsub.f32 %v5820_v12, %v970_v29  ;;  %v993_v6 = vsub.f32 %v5822_v13, %v970_v29  ;;  %v1269_v29 = vld [vmem:[#allocation8 + $0x68] sm:$0xff] }
 0x38f   : > { %v965_v30 = vpop.permute.xlu1 %964 }
 0x390   : > { %v990_v0 = vsub.f32 %v5824_v14, %v965_v30  ;;  %v991_v1 = vsub.f32 %v5826_v15, %v965_v30  ;;  %v1060_v30 = vld [vmem:[#allocation8 + $0x30] sm:$0xff] }
 0x393   : > { %v980_v31 = vpop.permute.xlu1 %979 }
 0x394   : > { %v996_v61 = vsub.f32 %v5832_v18, %v980_v31  ;;  %v997_v62 = vsub.f32 %v5834_v19, %v980_v31  ;;  %v1054_v18 = vld [vmem:[#allocation8] sm:$0xff]  ;;  %v1270_v31 = vld [vmem:[#allocation8 + $0x70] sm:$0xff] }
 0x395   : > { %v1264_v19 = vld [vmem:[#allocation8 + $0x40] sm:$0xff] }
 0x397   : > { %v975_v32 = vpop.permute.xlu1 %974 }
 0x398   : > { %v994_v63 = vsub.f32 %v5836_v20, %v975_v32  ;;  %v995_v12 = vsub.f32 %v5838_v21, %v975_v32  ;;  %v1055_v20 = vld [vmem:[#allocation8 + $0x8] sm:$0xff]  ;;  %v1061_v32 = vld [vmem:[#allocation8 + $0x38] sm:$0xff] }
 0x399   : > { %v1265_v21 = vld [vmem:[#allocation8 + $0x48] sm:$0xff] }
 0x39b   : > { %v1006_v49 = vpop.permute.xlu1 %1005 }
 0x39c   : > { %v1040_v52 = vmul.f32 %v1006_v49, %v984_v33  ;;  %v1041_v53 = vmul.f32 %v1006_v49, %v985_v50  ;;  %v1271_v49 = vld [vmem:[#allocation8 + $0x78] sm:$0xff]  ;;  %v1475_v33 = vld [vmem:[#allocation8 + $0x80] sm:$0xff]  ;;  %v1476_v50 = vld [vmem:[#allocation8 + $0x88] sm:$0xff] }
 0x39f   : > { %v1001_v35 = vpop.permute.xlu1 %1000 }
 0x3a0   : > { %v1038_v54 = vmul.f32 %v1001_v35, %v982_v34  ;;  %v1039_v36 = vmul.f32 %v1001_v35, %v983_v51  ;;  %v1477_v34 = vld [vmem:[#allocation8 + $0x90] sm:$0xff]  ;;  %v1478_v51 = vld [vmem:[#allocation8 + $0x98] sm:$0xff]  ;;  %v1479_v35 = vld [vmem:[#allocation8 + $0xa0] sm:$0xff] }
 0x3a2   : > { %v4675_v55 = vpack.c.bf16 %v1041_v53, %v1039_v36  ;;  %v4677_v37 = vpack.c.bf16 %v1040_v52, %v1038_v54  ;;  %v1036_v56 = vpop.permute.xlu0 %1035  ;;  %v1480_v52 = vld [vmem:[#allocation8 + $0xa8] sm:$0xff]  ;;  %v1481_v53 = vld [vmem:[#allocation8 + $0xb0] sm:$0xff]  ;;  %v1482_v54 = vld [vmem:[#allocation8 + $0xb8] sm:$0xff] }
 0x3a3   : > { %v1016_v38 = vpop.permute.xlu1 %1015  ;;  %v1052_v7 = vmul.f32 %v1036_v56, %v996_v61  ;;  %v1053_v10 = vmul.f32 %v1036_v56, %v997_v62 }
 0x3a4   : > { %4676 = vmatprep.subr.bf16.mxu0 %v4675_v55  ;;  %4692 = vmatprep.subr.bf16.mxu1 %v4675_v55  ;;  %v1044_v40 = vmul.f32 %v1016_v38, %v988_v8  ;;  %v1045_v41 = vmul.f32 %v1016_v38, %v989_v9 }
 0x3a5   : > { %4678 = vmatpush1.bf16.msra.mxu0 %v4677_v37  ;;  %4694 = vmatpush1.bf16.msra.mxu1 %v4677_v37 }
 0x3a7   : > { %v1011_v39 = vpop.permute.xlu1 %1010 }
 0x3a8   : > { %v1042_v42 = vmul.f32 %v1011_v39, %v986_v2  ;;  %v1043_v43 = vmul.f32 %v1011_v39, %v987_v4 }
 0x3aa   : > { %v4679_v44 = vpack.c.bf16 %v1045_v41, %v1043_v43  ;;  %v4681_v45 = vpack.c.bf16 %v1044_v40, %v1042_v42 }
 0x3ab   : > { %v1026_v46 = vpop.permute.xlu1 %1025 }
 0x3ac   : > { %4680 = vmatprep.subr.bf16.mxu0 %v4679_v44  ;;  %4696 = vmatprep.subr.bf16.mxu1 %v4679_v44  ;;  %v1048_v57 = vmul.f32 %v1026_v46, %v992_v5  ;;  %v1049_v58 = vmul.f32 %v1026_v46, %v993_v6 }
 0x3ad   : > { %4682 = vmatpush1.bf16.msra.mxu0 %v4681_v45  ;;  %4698 = vmatpush1.bf16.msra.mxu1 %v4681_v45 }
 0x3af   : > { %v1021_v47 = vpop.permute.xlu1 %1020 }
 0x3b0   : > { %v1046_v59 = vmul.f32 %v1021_v47, %v990_v0  ;;  %v1047_v60 = vmul.f32 %v1021_v47, %v991_v1 }
 0x3b2   : > { %v4683_v3 = vpack.c.bf16 %v1049_v58, %v1047_v60  ;;  %v4685_v13 = vpack.c.bf16 %v1048_v57, %v1046_v59 }
 0x3b3   : > { %v1031_v14 = vpop.permute.xlu1 %1030 }
 0x3b4   : > { %v1050_v15 = vmul.f32 %v1031_v14, %v994_v63  ;;  %v1051_v11 = vmul.f32 %v1031_v14, %v995_v12  ;;  %4684 = vmatprep.subr.bf16.mxu0 %v4683_v3  ;;  %4700 = vmatprep.subr.bf16.mxu1 %v4683_v3 }
 0x3b5   : > { %4686 = vmatpush1.bf16.msra.mxu0 %v4685_v13  ;;  %4702 = vmatpush1.bf16.msra.mxu1 %v4685_v13 }
 0x3b6   : > { %v4687_v16 = vpack.c.bf16 %v1053_v10, %v1051_v11  ;;  %v4689_v17 = vpack.c.bf16 %v1052_v7, %v1050_v15  ;;  %v1299_v10 = vpop.permute.xlu0 %1298 }
 0x3b7   : > { %v1073_v36 = vpop.permute.xlu1 %1072 }
 0x3b8   : > { %4688 = vmatprep.subr.bf16.mxu0 %v4687_v16  ;;  %4704 = vmatprep.subr.bf16.mxu1 %v4687_v16 }
 0x3b9   : > { %4690 = vmatpush1.bf16.msra.mxu0 %v4689_v17  ;;  %4706 = vmatpush1.bf16.msra.mxu1 %v4689_v17 }
 0x3ba   : > { %4708 = vmatprep.subr.bf16.mxu0 %v4675_v55 }
 0x3bb   : > { %v1078_v55 = vpop.permute.xlu1 %1077 }
 0x3bc   : > { %4331 = vmatmul.mubr.msk.f32.vlgmr.msra.gmra.mrb[8].mxu0 %vm500_vm0, %v1054_v18  ;;  %4347 = vmatmul.mubr.msk.f32.vlgmr.msra.gmra.mrb[16].mxu1 %vm500_vm0, %v1264_v19 }
 0x3bd   : > { %4710 = vmatpush1.bf16.msra.mxu0 %v4677_v37  ;;  %1204 = vmatprep.mubr.f32.mxu0 %v5548_v48 }
 0x3be   : > { %4712 = vmatprep.subr.bf16.mxu0 %v4679_v44  ;;  %1415 = vmatprep.mubr.f32.mxu1 %v5548_v48 }
 0x3bf   : > { %v1083_v37 = vpop.permute.xlu1 %1082 }
 0x3c0   : > { %4332 = vmatmul.mubr.msk.f32.gmra.mrb[10].mxu0 %vm500_vm0, %v1055_v20  ;;  %4348 = vmatmul.mubr.msk.f32.gmra.mrb[18].mxu1 %vm500_vm0, %v1265_v21 }
 0x3c1   : > { %4714 = vmatpush1.bf16.msra.mxu0 %v4681_v45  ;;  %1210 = vmatprep.mubr.f32.mxu0 %v5548_v48 }
 0x3c2   : > { %4716 = vmatprep.subr.bf16.mxu0 %v4683_v3  ;;  %1421 = vmatprep.mubr.f32.mxu1 %v5548_v48 }
 0x3c3   : > { %v1088_v38 = vpop.permute.xlu1 %1087 }
 0x3c4   : > { %4333 = vmatmul.mubr.msk.f32.gmra.mrb[12].mxu0 %vm500_vm0, %v1056_v22  ;;  %4349 = vmatmul.mubr.msk.f32.gmra.mrb[20].mxu1 %vm500_vm0, %v1266_v23 }
 0x3c5   : > { %4718 = vmatpush1.bf16.msra.mxu0 %v4685_v13  ;;  %1216 = vmatprep.mubr.f32.mxu0 %v5548_v48 }
 0x3c6   : > { %4720 = vmatprep.subr.bf16.mxu0 %v4687_v16  ;;  %1427 = vmatprep.mubr.f32.mxu1 %v5548_v48 }
 0x3c7   : > { %v6100_v8 = vpop.permute.xlu1 %1092 }
 0x3c8   : > { %4334 = vmatmul.mubr.msk.f32.gmra.mrb[14].mxu0 %vm500_vm0, %v1057_v24  ;;  %4350 = vmatmul.mubr.msk.f32.gmra.mrb[22].mxu1 %vm500_vm0, %v1267_v25 }
 0x3c9   : > { %4722 = vmatpush1.bf16.msra.mxu0 %v4689_v17  ;;  %1222 = vmatprep.mubr.f32.mxu0 %v5548_v48 }
 0x3ca   : > { %1433 = vmatprep.mubr.f32.mxu1 %v5548_v48 }
 0x3cb   : > { %v6102_v9 = vpop.permute.xlu1 %1097 }
 0x3cc   : > { %4335 = vmatmul.mubr.msk.f32.gmra.mrb[16].mxu0 %vm500_vm0, %v1058_v26  ;;  %4351 = vmatmul.mubr.msk.f32.gmra.mrb[24].mxu1 %vm500_vm0, %v1268_v27 }
 0x3cd   : > { %1228 = vmatprep.mubr.f32.mxu0 %v5548_v48  ;;  %1439 = vmatprep.mubr.f32.mxu1 %v5548_v48 }
 0x3cf   : > { %v6104_v2 = vpop.permute.xlu1 %1102 }
 0x3d0   : > { %4336 = vmatmul.mubr.msk.f32.gmra.mrb[18].mxu0 %vm500_vm0, %v1059_v28  ;;  %4352 = vmatmul.mubr.msk.f32.gmra.mrb[26].mxu1 %vm500_vm0, %v1269_v29 }
 0x3d1   : > { %1234 = vmatprep.mubr.f32.mxu0 %v5548_v48  ;;  %1445 = vmatprep.mubr.f32.mxu1 %v5548_v48 }
 0x3d3   : > { %v6106_v4 = vpop.permute.xlu1 %1107 }
 0x3d4   : > { %4337 = vmatmul.mubr.msk.f32.gmra.mrb[20].mxu0 %vm500_vm0, %v1060_v30  ;;  %4353 = vmatmul.mubr.msk.f32.gmra.mrb[28].mxu1 %vm500_vm0, %v1270_v31  ;;  %v1309_v31 = vpop.permute.xlu0 %1308 }
 0x3d5   : > { %1240 = vmatprep.mubr.f32.mxu0 %v5548_v48  ;;  %1451 = vmatprep.mubr.f32.mxu1 %v5548_v48 }
 0x3d7   : > { %v1284_v39 = vpop.permute.xlu1 %1283 }
 0x3d8   : > { %4338 = vmatmul.mubr.msk.f32.gmra.mrb[22].mxu0 %vm500_vm0, %v1061_v32  ;;  %4354 = vmatmul.mubr.msk.f32.gmra.mrb[30].mxu1 %vm500_vm0, %v1271_v49 }
 0x3d9   : > { %1620 = vmatprep.mubr.f32.mxu0 %v5548_v48 }
 0x3db   : > { %v1289_v40 = vpop.permute.xlu1 %1288 }
 0x3dc   : > { %4363 = vmatmul.mubr.msk.f32.vlgmr.msra.gmra.mrb[24].mxu0 %vm500_vm0, %v1475_v33 }
 0x3dd   : > { %1626 = vmatprep.mubr.f32.mxu0 %v5548_v48 }
 0x3df   : > { %v1294_v60 = vpop.permute.xlu1 %1293 }
 0x3e0   : > { %4364 = vmatmul.mubr.msk.f32.gmra.mrb[26].mxu0 %vm500_vm0, %v1476_v50 }
 0x3e1   : > { %1632 = vmatprep.mubr.f32.mxu0 %v5548_v48 }
 0x3e3   : > { %v1304_v22 = vpop.permute.xlu1 %1303 }
 0x3e4   : > { %4365 = vmatmul.mubr.msk.f32.gmra.mrb[28].mxu0 %vm500_vm0, %v1477_v34 }
 0x3e5   : > { %1638 = vmatprep.mubr.f32.mxu0 %v5548_v48 }
 0x3e8   : > { %4366 = vmatmul.mubr.msk.f32.gmra.mrb[30].mxu0 %vm500_vm0, %v1478_v51 }
 0x3e9   : > { %1644 = vmatprep.mubr.f32.mxu0 %v5548_v48 }
 0x3ec   : > { %4367 = vmatmul.mubr.msk.f32.gmra.mrb[32].mxu0 %vm500_vm0, %v1479_v35 }
 0x3ed   : > { %1650 = vmatprep.mubr.f32.mxu0 %v5548_v48 }
 0x3f0   : > { %4368 = vmatmul.mubr.msk.f32.gmra.mrb[34].mxu0 %vm500_vm0, %v1480_v52 }
 0x3f1   : > { %1656 = vmatprep.mubr.f32.mxu0 %v5548_v48 }
 0x3f4   : > { %4369 = vmatmul.mubr.msk.f32.gmra.mrb[36].mxu0 %vm500_vm0, %v1481_v53  ;;  %v1314_v53 = vpop.permute.xlu1 %1313 }
 0x3f5   : > { %1662 = vmatprep.mubr.f32.mxu0 %v5548_v48 }
 0x3f8   : > { %4370 = vmatmul.mubr.msk.f32.gmra.mrb[38].mxu0 %vm500_vm0, %v1482_v54 }
 0x48f   : > { %v1200_v41 = vpop.f32.mrb[8].mxu0  ;;  %v1411_v42 = vpop.f32.mrb[16].mxu1 }
 0x490   : > { %v1201_v48 = vadd.f32 %v1200_v41, %v1073_v36  ;;  %v1412_v43 = vadd.f32 %v1411_v42, %v1284_v39  ;;  %v1202_v44 = vpop.f32.mrb[9].mxu0  ;;  %v1413_v45 = vpop.f32.mrb[17].mxu1 }
 0x491   : > { %v1203_v46 = vadd.f32 %v1202_v44, %v1073_v36  ;;  %v1414_v5 = vadd.f32 %v1413_v45, %v1284_v39  ;;  %v1319_v41 = vpop.permute.xlu0 %1318 }
 0x492   : > { %1247 = vst [vmem:[#allocation2] sm:$0xff] %v1201_v48  ;;  %1458 = vst [vmem:[#allocation3] sm:$0xff] %v1412_v43 }
 0x493   : > { %1248 = vst [vmem:[#allocation2 + $0x8] sm:$0xff] %v1203_v46  ;;  %1459 = vst [vmem:[#allocation3 + $0x8] sm:$0xff] %v1414_v5  ;;  %v1206_v6 = vpop.f32.mrb[10].mxu0  ;;  %v1417_v0 = vpop.f32.mrb[18].mxu1 }
 0x494   : > { %v1207_v1 = vadd.f32 %v1206_v6, %v1078_v55  ;;  %v1418_v47 = vadd.f32 %v1417_v0, %v1289_v40  ;;  %v1208_v56 = vpop.f32.mrb[11].mxu0  ;;  %v1419_v57 = vpop.f32.mrb[19].mxu1 }
 0x495   : > { %v1209_v58 = vadd.f32 %v1208_v56, %v1078_v55  ;;  %v1420_v59 = vadd.f32 %v1419_v57, %v1289_v40  ;;  %v1495_v6 = vpop.permute.xlu1 %1494  ;;  %v1500_v56 = vpop.permute.xlu0 %1499 }
 0x496   : > { %1249 = vst [vmem:[#allocation2 + $0x10] sm:$0xff] %v1207_v1  ;;  %1460 = vst [vmem:[#allocation3 + $0x10] sm:$0xff] %v1418_v47 }
 0x497   : > { %1250 = vst [vmem:[#allocation2 + $0x18] sm:$0xff] %v1209_v58  ;;  %1461 = vst [vmem:[#allocation3 + $0x18] sm:$0xff] %v1420_v59  ;;  %v1212_v61 = vpop.f32.mrb[12].mxu0  ;;  %v1423_v62 = vpop.f32.mrb[20].mxu1 }
 0x498   : > { %v1213_v63 = vadd.f32 %v1212_v61, %v1083_v37  ;;  %v1424_v12 = vadd.f32 %v1423_v62, %v1294_v60  ;;  %v1214_v3 = vpop.f32.mrb[13].mxu0  ;;  %v1425_v13 = vpop.f32.mrb[21].mxu1 }
 0x499   : > { %v1215_v7 = vadd.f32 %v1214_v3, %v1083_v37  ;;  %v1426_v14 = vadd.f32 %v1425_v13, %v1294_v60  ;;  %v1505_v61 = vpop.permute.xlu1 %1504  ;;  %v1510_v3 = vpop.permute.xlu0 %1509 }
 0x49a   : > { %1251 = vst [vmem:[#allocation2 + $0x20] sm:$0xff] %v1213_v63  ;;  %1462 = vst [vmem:[#allocation3 + $0x20] sm:$0xff] %v1424_v12 }
 0x49b   : > { %1252 = vst [vmem:[#allocation2 + $0x28] sm:$0xff] %v1215_v7  ;;  %1463 = vst [vmem:[#allocation3 + $0x28] sm:$0xff] %v1426_v14  ;;  %v1218_v15 = vpop.f32.mrb[14].mxu0  ;;  %v1429_v11 = vpop.f32.mrb[22].mxu1 }
 0x49c   : > { %v1219_v16 = vadd.f32 %v1218_v15, %v1088_v38  ;;  %v1430_v17 = vadd.f32 %v1429_v11, %v1299_v10  ;;  %v1220_v18 = vpop.f32.mrb[15].mxu0  ;;  %v1431_v19 = vpop.f32.mrb[23].mxu1 }
 0x49d   : > { %v1221_v20 = vadd.f32 %v1220_v18, %v1088_v38  ;;  %v1432_v21 = vadd.f32 %v1431_v19, %v1299_v10  ;;  %v1515_v15 = vpop.permute.xlu1 %1514  ;;  %v1520_v19 = vpop.permute.xlu0 %1519 }
 0x49e   : > { %1253 = vst [vmem:[#allocation2 + $0x30] sm:$0xff] %v1219_v16  ;;  %1464 = vst [vmem:[#allocation3 + $0x30] sm:$0xff] %v1430_v17 }
 0x49f   : > { %1254 = vst [vmem:[#allocation2 + $0x38] sm:$0xff] %v1221_v20  ;;  %1465 = vst [vmem:[#allocation3 + $0x38] sm:$0xff] %v1432_v21  ;;  %v1224_v23 = vpop.f32.mrb[16].mxu0  ;;  %v1435_v24 = vpop.f32.mrb[24].mxu1 }
 0x4a0   : > { %v1225_v25 = vadd.f32 %v1224_v23, %v6100_v8  ;;  %v1436_v26 = vadd.f32 %v1435_v24, %v1304_v22  ;;  %v1226_v27 = vpop.f32.mrb[17].mxu0  ;;  %v1437_v28 = vpop.f32.mrb[25].mxu1 }
 0x4a1   : > { %v1227_v29 = vadd.f32 %v1226_v27, %v6100_v8  ;;  %v1438_v30 = vadd.f32 %v1437_v28, %v1304_v22  ;;  %v1525_v24 = vpop.permute.xlu1 %1524 }
 0x4a2   : > { %1255 = vst [vmem:[#allocation2 + $0x40] sm:$0xff] %v1225_v25  ;;  %1466 = vst [vmem:[#allocation3 + $0x40] sm:$0xff] %v1436_v26 }
 0x4a3   : > { %1256 = vst [vmem:[#allocation2 + $0x48] sm:$0xff] %v1227_v29  ;;  %1467 = vst [vmem:[#allocation3 + $0x48] sm:$0xff] %v1438_v30  ;;  %v1230_v32 = vpop.f32.mrb[18].mxu0  ;;  %v1441_v49 = vpop.f32.mrb[26].mxu1 }
 0x4a4   : > { %v1231_v33 = vadd.f32 %v1230_v32, %v6102_v9  ;;  %v1442_v50 = vadd.f32 %v1441_v49, %v1309_v31  ;;  %v1232_v34 = vpop.f32.mrb[19].mxu0  ;;  %v1443_v51 = vpop.f32.mrb[27].mxu1 }
 0x4a5   : > { %v1233_v35 = vadd.f32 %v1232_v34, %v6102_v9  ;;  %v1444_v52 = vadd.f32 %v1443_v51, %v1309_v31  ;;  %v1530_v29 = vpop.permute.xlu0 %1529 }
 0x4a6   : > { %1257 = vst [vmem:[#allocation2 + $0x50] sm:$0xff] %v1231_v33  ;;  %1468 = vst [vmem:[#allocation3 + $0x50] sm:$0xff] %v1442_v50 }
 0x4a7   : > { %1258 = vst [vmem:[#allocation2 + $0x58] sm:$0xff] %v1233_v35  ;;  %1469 = vst [vmem:[#allocation3 + $0x58] sm:$0xff] %v1444_v52  ;;  %v1236_v54 = vpop.f32.mrb[20].mxu0  ;;  %v1447_v36 = vpop.f32.mrb[28].mxu1 }
 0x4a8   : > { %v1237_v55 = vadd.f32 %v1236_v54, %v6104_v2  ;;  %v1448_v37 = vadd.f32 %v1447_v36, %v1314_v53  ;;  %v1238_v38 = vpop.f32.mrb[21].mxu0  ;;  %v1449_v8 = vpop.f32.mrb[29].mxu1 }
 0x4a9   : > { %v1239_v39 = vadd.f32 %v1238_v38, %v6104_v2  ;;  %v1450_v40 = vadd.f32 %v1449_v8, %v1314_v53 }
 0x4aa   : > { %1259 = vst [vmem:[#allocation2 + $0x60] sm:$0xff] %v1237_v55  ;;  %1470 = vst [vmem:[#allocation3 + $0x60] sm:$0xff] %v1448_v37 }
 0x4ab   : > { %1260 = vst [vmem:[#allocation2 + $0x68] sm:$0xff] %v1239_v39  ;;  %1471 = vst [vmem:[#allocation3 + $0x68] sm:$0xff] %v1450_v40  ;;  %v1242_v9 = vpop.f32.mrb[22].mxu0  ;;  %v1453_v42 = vpop.f32.mrb[30].mxu1 }
 0x4ac   : > { %v1243_v48 = vadd.f32 %v1242_v9, %v6106_v4  ;;  %v1454_v43 = vadd.f32 %v1453_v42, %v1319_v41  ;;  %v1244_v44 = vpop.f32.mrb[23].mxu0  ;;  %v1455_v45 = vpop.f32.mrb[31].mxu1 }
 0x4ad   : > { %v1245_v46 = vadd.f32 %v1244_v44, %v6106_v4  ;;  %v1456_v5 = vadd.f32 %v1455_v45, %v1319_v41 }
 0x4ae   : > { %1261 = vst [vmem:[#allocation2 + $0x70] sm:$0xff] %v1243_v48  ;;  %1472 = vst [vmem:[#allocation3 + $0x70] sm:$0xff] %v1454_v43 }
 0x4af   : > { %1262 = vst [vmem:[#allocation2 + $0x78] sm:$0xff] %v1245_v46  ;;  %1473 = vst [vmem:[#allocation3 + $0x78] sm:$0xff] %v1456_v5  ;;  %v1622_v2 = vpop.f32.mrb[24].mxu0 }
 0x4b0   : > { %v1623_v0 = vadd.f32 %v1622_v2, %v1495_v6  ;;  %v1624_v1 = vpop.f32.mrb[25].mxu0 }
 0x4b1   : > { %v1625_v47 = vadd.f32 %v1624_v1, %v1495_v6 }
 0x4b2   : > { %1669 = vst [vmem:[#allocation4] sm:$0xff] %v1623_v0 }
 0x4b3   : > { %1670 = vst [vmem:[#allocation4 + $0x8] sm:$0xff] %v1625_v47  ;;  %v1628_v57 = vpop.f32.mrb[26].mxu0 }
 0x4b4   : > { %v1629_v58 = vadd.f32 %v1628_v57, %v1500_v56  ;;  %v1630_v59 = vpop.f32.mrb[27].mxu0 }
 0x4b5   : > { %v1631_v60 = vadd.f32 %v1630_v59, %v1500_v56 }
 0x4b6   : > { %1671 = vst [vmem:[#allocation4 + $0x10] sm:$0xff] %v1629_v58 }
 0x4b7   : > { %1672 = vst [vmem:[#allocation4 + $0x18] sm:$0xff] %v1631_v60  ;;  %v1634_v4 = vpop.f32.mrb[28].mxu0 }
 0x4b8   : > { %v1635_v62 = vadd.f32 %v1634_v4, %v1505_v61  ;;  %v1636_v63 = vpop.f32.mrb[29].mxu0 }
 0x4b9   : > { %v1637_v12 = vadd.f32 %v1636_v63, %v1505_v61 }
 0x4ba   : > { %1673 = vst [vmem:[#allocation4 + $0x20] sm:$0xff] %v1635_v62 }
 0x4bb   : > { %1674 = vst [vmem:[#allocation4 + $0x28] sm:$0xff] %v1637_v12  ;;  %v1640_v13 = vpop.f32.mrb[30].mxu0 }
 0x4bc   : > { %v1641_v7 = vadd.f32 %v1640_v13, %v1510_v3  ;;  %v1642_v14 = vpop.f32.mrb[31].mxu0 }
 0x4bd   : > { %v1643_v10 = vadd.f32 %v1642_v14, %v1510_v3 }
 0x4be   : > { %1675 = vst [vmem:[#allocation4 + $0x30] sm:$0xff] %v1641_v7 }
 0x4bf   : > { %1676 = vst [vmem:[#allocation4 + $0x38] sm:$0xff] %v1643_v10  ;;  %v1646_v11 = vpop.f32.mrb[32].mxu0 }
 0x4c0   : > { %v1647_v16 = vadd.f32 %v1646_v11, %v1515_v15  ;;  %v1648_v17 = vpop.f32.mrb[33].mxu0 }
 0x4c1   : > { %v1649_v18 = vadd.f32 %v1648_v17, %v1515_v15 }
 0x4c2   : > { %1677 = vst [vmem:[#allocation4 + $0x40] sm:$0xff] %v1647_v16 }
 0x4c3   : > { %1678 = vst [vmem:[#allocation4 + $0x48] sm:$0xff] %v1649_v18  ;;  %v1652_v20 = vpop.f32.mrb[34].mxu0 }
 0x4c4   : > { %v1653_v21 = vadd.f32 %v1652_v20, %v1520_v19  ;;  %v1654_v22 = vpop.f32.mrb[35].mxu0 }
 0x4c5   : > { %v1655_v23 = vadd.f32 %v1654_v22, %v1520_v19 }
 0x4c6   : > { %1679 = vst [vmem:[#allocation4 + $0x50] sm:$0xff] %v1653_v21 }
 0x4c7   : > { %1680 = vst [vmem:[#allocation4 + $0x58] sm:$0xff] %v1655_v23  ;;  %v1658_v25 = vpop.f32.mrb[36].mxu0 }
 0x4c8   : > { %v1659_v26 = vadd.f32 %v1658_v25, %v1525_v24  ;;  %v1660_v27 = vpop.f32.mrb[37].mxu0 }
 0x4c9   : > { %v1661_v28 = vadd.f32 %v1660_v27, %v1525_v24 }
 0x4ca   : > { %1681 = vst [vmem:[#allocation4 + $0x60] sm:$0xff] %v1659_v26 }
 0x4cb   : > { %1682 = vst [vmem:[#allocation4 + $0x68] sm:$0xff] %v1661_v28  ;;  %v1664_v30 = vpop.f32.mrb[38].mxu0 }
 0x4cc   : > { %v1665_v31 = vadd.f32 %v1664_v30, %v1530_v29  ;;  %v1666_v32 = vpop.f32.mrb[39].mxu0 }
 0x4cd   : > { %v1667_v49 = vadd.f32 %v1666_v32, %v1530_v29 }
 0x4ce   : > { %1683 = vst [vmem:[#allocation4 + $0x70] sm:$0xff] %v1665_v31 }
 0x4cf   : > { %1684 = vst [vmem:[#allocation4 + $0x78] sm:$0xff] %v1667_v49 }
 0x4d0 PF: > { %s4371_s16 = sshll.u32 %s5524_s29, 7  ;;  %v1699_v33 = vld [vmem:[#allocation3 + $0x8] sm:$0xff]  ;;  %v1701_v50 = vld [vmem:[#allocation3 + $0x18] sm:$0xff]  ;;  %v1698_v34 = vld [vmem:[#allocation3] sm:$0xff]  ;;  %v5549_v52 = vmov 0.0   ;;  %vm1762_vm2 = vcmask 130048  }
 0x4d1   : > { %s1686_s15 = sshra.s32 %s4371_s16, 7  ;;  %v4723_v51 = vpack.c.bf16 %v1701_v50, %v1699_v33  ;;  %v1700_v35 = vld [vmem:[#allocation3 + $0x10] sm:$0xff]  ;;  %1875 = vmatprep.mubr.f32.mxu0 %v5549_v52  ;;  %1953 = vmatprep.mubr.f32.mxu1 %v5549_v52  ;;  %v1707_v38 = vld [vmem:[#allocation3 + $0x48] sm:$0xff]  ;;  %v1709_v8 = vld [vmem:[#allocation3 + $0x58] sm:$0xff]  ;;  %vm4011_vm3 = vcmask 523264   ;;  %s4446_s20 = sshll.u32 %s5528_s30, 4 }
 0x4d2   : > { %s4372_s17 = sshll.u32 %s1686_s15, 3  ;;  %v4725_v53 = vpack.c.bf16 %v1700_v35, %v1698_v34  ;;  %v4731_v39 = vpack.c.bf16 %v1709_v8, %v1707_v38  ;;  %v1703_v9 = vld [vmem:[#allocation3 + $0x28] sm:$0xff]  ;;  %v1705_v42 = vld [vmem:[#allocation3 + $0x38] sm:$0xff]  ;;  %v1706_v45 = vld [vmem:[#allocation3 + $0x40] sm:$0xff]  ;;  %s4177_s12 = sadd.s32 %s5524_s29, %s4446_s20 }
 0x4d3   : > { %4724 = vmatprep.subr.bf16.mxu0 %v4723_v51  ;;  %4883 = vmatprep.subr.bf16.mxu1 %v4723_v51  ;;  %s1689_s11 = scalar_lea.vmem [#allocation2], %s4372_s17  ;;  %v4727_v48 = vpack.c.bf16 %v1705_v42, %v1703_v9  ;;  %v1708_v46 = vld [vmem:[#allocation3 + $0x50] sm:$0xff]  ;;  %v1702_v10 = vld [vmem:[#allocation3 + $0x20] sm:$0xff]  ;;  %v1711_v16 = vld [vmem:[#allocation3 + $0x68] sm:$0xff]  ;;  %s4180_s26 = sshll.u32 %s5793_s4, 4  ;;  %s7461_s26 = int_to_ptr.vmem [resolvable:$true] %s4180_s26 }
 0x4d4   : > { %v1690_v54 = vld [vmem:[%s1689_s11] sm:$0xff]  ;;  %4726 = vmatpush1.bf16.msra.mxu0 %v4725_v53  ;;  %4884 = vmatpush1.bf16.msra.mxu1 %v4725_v53  ;;  %v1691_v55 = vld [vmem:[%s1689_s11 + $0x10] sm:$0xff]  ;;  %v4733_v5 = vpack.c.bf16 %v1708_v46, %v1706_v45  ;;  %v1713_v17 = vld [vmem:[#allocation3 + $0x78] sm:$0xff]  ;;  %s4447_s30 = sshll.u32 %s4177_s12, 7  ;;  %s8054_s15 = sld [smem:[#allocation120_spill]] }
 0x4d5   : > { %v1692_v36 = vld [vmem:[%s1689_s11 + $0x20] sm:$0xff]  ;;  %1730 = vxpose.xlu0.b32.start [1/2] (short) %v1690_v54, 128  ;;  %v1693_v37 = vld [vmem:[%s1689_s11 + $0x30] sm:$0xff]  ;;  %4732 = vmatprep.subr.bf16.mxu0 %v4731_v39  ;;  %v4735_v19 = vpack.c.bf16 %v1713_v17, %v1711_v16  ;;  %s5438_s14 = scalar_lea.vmem %s7461_s26, 1024  ;;  %p8055_p0 = scmp.ne.s32.totalorder %s7714_s18, 0 }
 0x4d6   : > { %1972 = vxpose.xlu1.b32.start [1/2] (short) %v1692_v36, 128  ;;  %v1694_v40 = vld [vmem:[%s1689_s11 + $0x40] sm:$0xff]  ;;  %v1695_v43 = vld [vmem:[%s1689_s11 + $0x50] sm:$0xff]  ;;  %4728 = vmatprep.subr.bf16.mxu1 %v4727_v48  ;;  %p5439_p5 = scmp.ne.s32.totalorder %s7461_s26, %s5438_s14 }
 0x4d7   : > { %v1696_v41 = vld [vmem:[%s1689_s11 + $0x60] sm:$0xff]  ;;  %v1697_v44 = vld [vmem:[%s1689_s11 + $0x70] sm:$0xff]  ;;  %s4166_s11 = scalar_lea.sflag [#allocation7], %s5774_s21 }
 0x4d8   : > { %v1704_v15 = vld [vmem:[#allocation3 + $0x30] sm:$0xff]  ;;  %v1710_v25 = vld [vmem:[#allocation3 + $0x60] sm:$0xff]  ;;  %p5440_p3 = pnand %p5439_p5, %p8055_p0 }
 0x4d9   : > { %1731 = vxpose.xlu0.b32.end [2/2] (short) %v1691_v55, 128  ;;  %v4729_v18 = vpack.c.bf16 %v1704_v15, %v1702_v10  ;;  %v1712_v26 = vld [vmem:[#allocation3 + $0x70] sm:$0xff] }
 0x4da   : > { %1973 = vxpose.xlu1.b32.end [2/2] (short) %v1693_v37, 128  ;;  %v4737_v27 = vpack.c.bf16 %v1712_v26, %v1710_v25  ;;  %s7466_s17 = scalar_lea.hbm %s8054_s15, %s4447_s30  ;;  %p5441_p7 = pneg %p5440_p3 }
 0x512   : > { %2213 = vxpose.xlu0.b32.start [1/2] (short) %v1694_v40, 128 }
 0x513   : > { %2454 = vxpose.xlu1.b32.start [1/2] (short) %v1696_v41, 128 }
 0x516   : > { %2214 = vxpose.xlu0.b32.end [2/2] (short) %v1695_v43, 128 }
 0x517   : > { %2455 = vxpose.xlu1.b32.end [2/2] (short) %v1697_v44, 128 }
 0x555   : > { %v1746_v6 = vpop.trf.xlu0 }
 0x556   : > { %4373 = vmatmul.mubr.msk.f32.vlgmr.msra.gmra.mrb[0].mxu0 %vm1762_vm2, %v1746_v6  ;;  %v1988_v1 = vpop.trf.xlu1 }
 0x557   : > { %1881 = vmatprep.mubr.f32.mxu0 %v5549_v52  ;;  %4734 = vmatpush1.bf16.msra.mxu0 %v4733_v5 }
 0x559   : > { %v1747_v2 = vpop.trf.xlu0 }
 0x55a   : > { %4374 = vmatmul.mubr.msk.f32.gmra.mrb[2].mxu0 %vm1762_vm2, %v1747_v2  ;;  %v1989_v57 = vpop.trf.xlu1 }
 0x55b   : > { %1887 = vmatprep.mubr.f32.mxu0 %v5549_v52 }
 0x55d   : > { %v1748_v0 = vpop.trf.xlu0 }
 0x55e   : > { %4375 = vmatmul.mubr.msk.f32.gmra.mrb[4].mxu0 %vm1762_vm2, %v1748_v0  ;;  %v1990_v59 = vpop.trf.xlu1 }
 0x55f   : > { %1893 = vmatprep.mubr.f32.mxu0 %v5549_v52 }
 0x561   : > { %v1749_v47 = vpop.trf.xlu0 }
 0x562   : > { %4376 = vmatmul.mubr.msk.f32.gmra.mrb[6].mxu0 %vm1762_vm2, %v1749_v47  ;;  %v6133_v4 = vpop.trf.xlu1 }
 0x563   : > { %1899 = vmatprep.mubr.f32.mxu0 %v5549_v52 }
 0x565   : > { %v1750_v56 = vpop.trf.xlu0 }
 0x566   : > { %4377 = vmatmul.mubr.msk.f32.gmra.mrb[8].mxu0 %vm1762_vm2, %v1750_v56  ;;  %v1992_v63 = vpop.trf.xlu1 }
 0x567   : > { %1905 = vmatprep.mubr.f32.mxu0 %v5549_v52 }
 0x569   : > { %v1751_v58 = vpop.trf.xlu0 }
 0x56a   : > { %4378 = vmatmul.mubr.msk.f32.gmra.mrb[10].mxu0 %vm1762_vm2, %v1751_v58  ;;  %v6141_v13 = vpop.trf.xlu1 }
 0x56b   : > { %1911 = vmatprep.mubr.f32.mxu0 %v5549_v52 }
 0x56d   : > { %v1752_v60 = vpop.trf.xlu0 }
 0x56e   : > { %4379 = vmatmul.mubr.msk.f32.gmra.mrb[12].mxu0 %vm1762_vm2, %v1752_v60  ;;  %v6147_v14 = vpop.trf.xlu1 }
 0x56f   : > { %1917 = vmatprep.mubr.f32.mxu0 %v5549_v52 }
 0x571   : > { %v1753_v61 = vpop.trf.xlu0 }
 0x572   : > { %4380 = vmatmul.mubr.msk.f32.gmra.mrb[14].mxu0 %vm1762_vm2, %v1753_v61  ;;  %v1995_v21 = vpop.trf.xlu1 }
 0x573   : > { %1923 = vmatprep.mubr.f32.mxu0 %v5549_v52 }
 0x575   : > { %v1754_v62 = vpop.trf.xlu0 }
 0x576   : > { %4381 = vmatmul.mubr.msk.f32.gmra.mrb[16].mxu0 %vm1762_vm2, %v1754_v62  ;;  %v1996_v23 = vpop.trf.xlu1 }
 0x577   : > { %1929 = vmatprep.mubr.f32.mxu0 %v5549_v52 }
 0x579   : > { %v1755_v12 = vpop.trf.xlu0 }
 0x57a   : > { %4382 = vmatmul.mubr.msk.f32.gmra.mrb[18].mxu0 %vm1762_vm2, %v1755_v12  ;;  %v1997_v29 = vpop.trf.xlu1 }
 0x57b   : > { %1935 = vmatprep.mubr.f32.mxu0 %v5549_v52 }
 0x57d   : > { %v1756_v3 = vpop.trf.xlu0 }
 0x57e   : > { %4383 = vmatmul.mubr.msk.f32.gmra.mrb[20].mxu0 %vm1762_vm2, %v1756_v3  ;;  %v1998_v31 = vpop.trf.xlu1 }
 0x57f   : > { %1941 = vmatprep.mubr.f32.mxu0 %v5549_v52 }
 0x581   : > { %v1757_v7 = vpop.trf.xlu0 }
 0x582   : > { %4384 = vmatmul.mubr.msk.f32.gmra.mrb[22].mxu0 %vm1762_vm2, %v1757_v7  ;;  %v1999_v33 = vpop.trf.xlu1 }
 0x583   : > { %1947 = vmatprep.mubr.f32.mxu0 %v5549_v52 }
 0x585   : > { %v1758_v11 = vpop.trf.xlu0 }
 0x586   : > { %4385 = vmatmul.mubr.msk.f32.gmra.mrb[24].mxu0 %vm1762_vm2, %v1758_v11  ;;  %v2000_v34 = vpop.trf.xlu1 }
 0x587   : > { %2357 = vmatprep.mubr.f32.mxu0 %v5549_v52 }
 0x589   : > { %v1759_v20 = vpop.trf.xlu0 }
 0x58a   : > { %4386 = vmatmul.mubr.msk.f32.vlgmr.msra.gmra.mrb[0].mxu1 %vm1762_vm2, %v1759_v20  ;;  %v2001_v53 = vpop.trf.xlu1 }
 0x58b   : > { %1959 = vmatprep.mubr.f32.mxu1 %v5549_v52  ;;  %4730 = vmatpush1.bf16.msra.mxu1 %v4729_v18 }
 0x58c   : > { %4736 = vmatprep.subr.bf16.mxu1 %v4735_v19 }
 0x58d   : > { %v1760_v22 = vpop.trf.xlu0 }
 0x58e   : > { %4387 = vmatmul.mubr.msk.f32.gmra.mrb[2].mxu1 %vm1762_vm2, %v1760_v22  ;;  %v2002_v36 = vpop.trf.xlu1 }
 0x58f   : > { %1965 = vmatprep.mubr.f32.mxu1 %v5549_v52 }
 0x591   : > { %v1761_v24 = vpop.trf.xlu0 }
 0x592   : > { %4388 = vmatmul.mubr.msk.f32.gmra.mrb[4].mxu1 %vm1762_vm2, %v1761_v24  ;;  %v2003_v38 = vpop.trf.xlu1 }
 0x593   : > { %2116 = vmatprep.mubr.f32.mxu1 %v5549_v52 }
 0x595   : > { %v2229_v28 = vpop.trf.xlu0 }
 0x596   : > { %4389 = vmatmul.mubr.msk.f32.vlgmr.msra.gmra.mrb[6].mxu1 %vm1762_vm2, %v1988_v1  ;;  %4405 = vmatmul.mubr.msk.f32.vlgmr.msra.gmra.mrb[26].mxu0 %vm1762_vm2, %v2229_v28  ;;  %v2470_v39 = vpop.trf.xlu1 }
 0x597   : > { %2122 = vmatprep.mubr.f32.mxu1 %v5549_v52  ;;  %2363 = vmatprep.mubr.f32.mxu0 %v5549_v52 }
 0x598   : > { %4738 = vmatpush1.bf16.msra.mxu1 %v4737_v27 }
 0x599   : > { %v2230_v30 = vpop.trf.xlu0 }
 0x59a   : > { %4390 = vmatmul.mubr.msk.f32.gmra.mrb[8].mxu1 %vm1762_vm2, %v1989_v57  ;;  %4406 = vmatmul.mubr.msk.f32.gmra.mrb[28].mxu0 %vm1762_vm2, %v2230_v30  ;;  %v2471_v9 = vpop.trf.xlu1 }
 0x59b   : > { %2128 = vmatprep.mubr.f32.mxu1 %v5549_v52  ;;  %2369 = vmatprep.mubr.f32.mxu0 %v5549_v52 }
 0x59d   : > { %v2231_v32 = vpop.trf.xlu0 }
 0x59e   : > { %4391 = vmatmul.mubr.msk.f32.gmra.mrb[10].mxu1 %vm1762_vm2, %v1990_v59  ;;  %4407 = vmatmul.mubr.msk.f32.gmra.mrb[30].mxu0 %vm1762_vm2, %v2231_v32  ;;  %v2472_v48 = vpop.trf.xlu1 }
 0x59f   : > { %2134 = vmatprep.mubr.f32.mxu1 %v5549_v52  ;;  %2375 = vmatprep.mubr.f32.mxu0 %v5549_v52 }
 0x5a1   : > { %v2232_v49 = vpop.trf.xlu0 }
 0x5a2   : > { %4392 = vmatmul.mubr.msk.f32.gmra.mrb[12].mxu1 %vm1762_vm2, %v6133_v4  ;;  %4408 = vmatmul.mubr.msk.f32.gmra.mrb[32].mxu0 %vm1762_vm2, %v2232_v49  ;;  %v2473_v44 = vpop.trf.xlu1 }
 0x5a3   : > { %2140 = vmatprep.mubr.f32.mxu1 %v5549_v52  ;;  %2381 = vmatprep.mubr.f32.mxu0 %v5549_v52 }
 0x5a5   : > { %v2233_v50 = vpop.trf.xlu0 }
 0x5a6   : > { %4393 = vmatmul.mubr.msk.f32.gmra.mrb[14].mxu1 %vm1762_vm2, %v1992_v63  ;;  %4409 = vmatmul.mubr.msk.f32.gmra.mrb[34].mxu0 %vm1762_vm2, %v2233_v50  ;;  %v2474_v46 = vpop.trf.xlu1 }
 0x5a7   : > { %2146 = vmatprep.mubr.f32.mxu1 %v5549_v52  ;;  %2387 = vmatprep.mubr.f32.mxu0 %v5549_v52 }
 0x5a9   : > { %v2234_v51 = vpop.trf.xlu0 }
 0x5aa   : > { %4394 = vmatmul.mubr.msk.f32.gmra.mrb[16].mxu1 %vm1762_vm2, %v6141_v13  ;;  %4410 = vmatmul.mubr.msk.f32.gmra.mrb[36].mxu0 %vm1762_vm2, %v2234_v51  ;;  %v2475_v5 = vpop.trf.xlu1 }
 0x5ab   : > { %2152 = vmatprep.mubr.f32.mxu1 %v5549_v52  ;;  %2393 = vmatprep.mubr.f32.mxu0 %v5549_v52 }
 0x5ad   : > { %v2235_v35 = vpop.trf.xlu0 }
 0x5ae   : > { %4395 = vmatmul.mubr.msk.f32.gmra.mrb[18].mxu1 %vm1762_vm2, %v6147_v14  ;;  %4411 = vmatmul.mubr.msk.f32.gmra.mrb[38].mxu0 %vm1762_vm2, %v2235_v35  ;;  %v2476_v6 = vpop.trf.xlu1 }
 0x5af   : > { %2158 = vmatprep.mubr.f32.mxu1 %v5549_v52  ;;  %2399 = vmatprep.mubr.f32.mxu0 %v5549_v52 }
 0x5b1   : > { %v2236_v54 = vpop.trf.xlu0 }
 0x5b2   : > { %4396 = vmatmul.mubr.msk.f32.gmra.mrb[20].mxu1 %vm1762_vm2, %v1995_v21  ;;  %4412 = vmatmul.mubr.msk.f32.gmra.mrb[40].mxu0 %vm1762_vm2, %v2236_v54  ;;  %v2477_v2 = vpop.trf.xlu1 }
 0x5b3   : > { %2164 = vmatprep.mubr.f32.mxu1 %v5549_v52  ;;  %2405 = vmatprep.mubr.f32.mxu0 %v5549_v52 }
 0x5b5   : > { %v2237_v55 = vpop.trf.xlu0 }
 0x5b6   : > { %4397 = vmatmul.mubr.msk.f32.gmra.mrb[22].mxu1 %vm1762_vm2, %v1996_v23  ;;  %4413 = vmatmul.mubr.msk.f32.gmra.mrb[42].mxu0 %vm1762_vm2, %v2237_v55  ;;  %v2478_v0 = vpop.trf.xlu1 }
 0x5b7   : > { %2170 = vmatprep.mubr.f32.mxu1 %v5549_v52  ;;  %2411 = vmatprep.mubr.f32.mxu0 %v5549_v52 }
 0x5b9   : > { %v2238_v37 = vpop.trf.xlu0 }
 0x5ba   : > { %4398 = vmatmul.mubr.msk.f32.gmra.mrb[24].mxu1 %vm1762_vm2, %v1997_v29  ;;  %4414 = vmatmul.mubr.msk.f32.gmra.mrb[44].mxu0 %vm1762_vm2, %v2238_v37  ;;  %v2479_v1 = vpop.trf.xlu1 }
 0x5bb   : > { %2176 = vmatprep.mubr.f32.mxu1 %v5549_v52  ;;  %2417 = vmatprep.mubr.f32.mxu0 %v5549_v52 }
 0x5bd   : > { %v2239_v8 = vpop.trf.xlu0 }
 0x5be   : > { %4399 = vmatmul.mubr.msk.f32.gmra.mrb[26].mxu1 %vm1762_vm2, %v1998_v31  ;;  %4415 = vmatmul.mubr.msk.f32.gmra.mrb[46].mxu0 %vm1762_vm2, %v2239_v8  ;;  %v2480_v47 = vpop.trf.xlu1 }
 0x5bf   : > { %2182 = vmatprep.mubr.f32.mxu1 %v5549_v52  ;;  %2423 = vmatprep.mubr.f32.mxu0 %v5549_v52 }
 0x5c1   : > { %v2240_v40 = vpop.trf.xlu0 }
 0x5c2   : > { %4400 = vmatmul.mubr.msk.f32.gmra.mrb[28].mxu1 %vm1762_vm2, %v1999_v33  ;;  %4416 = vmatmul.mubr.msk.f32.gmra.mrb[48].mxu0 %vm1762_vm2, %v2240_v40  ;;  %v2481_v56 = vpop.trf.xlu1 }
 0x5c3   : > { %2188 = vmatprep.mubr.f32.mxu1 %v5549_v52  ;;  %2429 = vmatprep.mubr.f32.mxu0 %v5549_v52 }
 0x5c5   : > { %v2241_v41 = vpop.trf.xlu0 }
 0x5c6   : > { %4401 = vmatmul.mubr.msk.f32.gmra.mrb[30].mxu1 %vm1762_vm2, %v2000_v34  ;;  %4417 = vmatmul.mubr.msk.f32.gmra.mrb[50].mxu0 %vm1762_vm2, %v2241_v41  ;;  %v2482_v57 = vpop.trf.xlu1 }
 0x5c7   : > { %2194 = vmatprep.mubr.f32.mxu1 %v5549_v52  ;;  %2435 = vmatprep.mubr.f32.mxu0 %v5549_v52 }
 0x5c9   : > { %v2242_v42 = vpop.trf.xlu0 }
 0x5ca   : > { %4402 = vmatmul.mubr.msk.f32.gmra.mrb[32].mxu1 %vm1762_vm2, %v2001_v53  ;;  %4418 = vmatmul.mubr.msk.f32.gmra.mrb[52].mxu0 %vm1762_vm2, %v2242_v42  ;;  %v2483_v58 = vpop.trf.xlu1 }
 0x5cb   : > { %2200 = vmatprep.mubr.f32.mxu1 %v5549_v52  ;;  %2441 = vmatprep.mubr.f32.mxu0 %v5549_v52 }
 0x5cd   : > { %v2243_v43 = vpop.trf.xlu0 }
 0x5ce   : > { %4403 = vmatmul.mubr.msk.f32.gmra.mrb[34].mxu1 %vm1762_vm2, %v2002_v36  ;;  %4419 = vmatmul.mubr.msk.f32.gmra.mrb[54].mxu0 %vm1762_vm2, %v2243_v43  ;;  %v2484_v59 = vpop.trf.xlu1 }
 0x5cf   : > { %2206 = vmatprep.mubr.f32.mxu1 %v5549_v52  ;;  %2447 = vmatprep.mubr.f32.mxu0 %v5549_v52 }
 0x5d1   : > { %v2244_v45 = vpop.trf.xlu0 }
 0x5d2   : > { %4404 = vmatmul.mubr.msk.f32.gmra.mrb[36].mxu1 %vm1762_vm2, %v2003_v38  ;;  %4420 = vmatmul.mubr.msk.f32.gmra.mrb[56].mxu0 %vm1762_vm2, %v2244_v45  ;;  %v2485_v60 = vpop.trf.xlu1 }
 0x5d3   : > { %2598 = vmatprep.mubr.f32.mxu1 %v5549_v52 }
 0x5d6   : > { %4421 = vmatmul.mubr.msk.f32.vlgmr.msra.gmra.mrb[38].mxu1 %vm1762_vm2, %v2470_v39 }
 0x5d7   : > { %2604 = vmatprep.mubr.f32.mxu1 %v5549_v52 }
 0x5da   : > { %4422 = vmatmul.mubr.msk.f32.gmra.mrb[40].mxu1 %vm1762_vm2, %v2471_v9 }
 0x5db   : > { %2610 = vmatprep.mubr.f32.mxu1 %v5549_v52 }
 0x5de   : > { %4423 = vmatmul.mubr.msk.f32.gmra.mrb[42].mxu1 %vm1762_vm2, %v2472_v48 }
 0x5df   : > { %2616 = vmatprep.mubr.f32.mxu1 %v5549_v52 }
 0x5e2   : > { %4424 = vmatmul.mubr.msk.f32.gmra.mrb[44].mxu1 %vm1762_vm2, %v2473_v44 }
 0x5e3   : > { %2622 = vmatprep.mubr.f32.mxu1 %v5549_v52 }
 0x5e6   : > { %4425 = vmatmul.mubr.msk.f32.gmra.mrb[46].mxu1 %vm1762_vm2, %v2474_v46 }
 0x5e7   : > { %2628 = vmatprep.mubr.f32.mxu1 %v5549_v52 }
 0x5ea   : > { %4426 = vmatmul.mubr.msk.f32.gmra.mrb[48].mxu1 %vm1762_vm2, %v2475_v5 }
 0x5eb   : > { %2634 = vmatprep.mubr.f32.mxu1 %v5549_v52 }
 0x5ee   : > { %4427 = vmatmul.mubr.msk.f32.gmra.mrb[50].mxu1 %vm1762_vm2, %v2476_v6 }
 0x5ef   : > { %2640 = vmatprep.mubr.f32.mxu1 %v5549_v52 }
 0x5f2   : > { %4428 = vmatmul.mubr.msk.f32.gmra.mrb[52].mxu1 %vm1762_vm2, %v2477_v2 }
 0x5f3   : > { %2646 = vmatprep.mubr.f32.mxu1 %v5549_v52 }
 0x5f6   : > { %4429 = vmatmul.mubr.msk.f32.gmra.mrb[54].mxu1 %vm1762_vm2, %v2478_v0 }
 0x5f7   : > { %2652 = vmatprep.mubr.f32.mxu1 %v5549_v52 }
 0x5fa   : > { %4430 = vmatmul.mubr.msk.f32.gmra.mrb[56].mxu1 %vm1762_vm2, %v2479_v1 }
 0x5fb   : > { %2658 = vmatprep.mubr.f32.mxu1 %v5549_v52 }
 0x5fe   : > { %4431 = vmatmul.mubr.msk.f32.gmra.mrb[58].mxu1 %vm1762_vm2, %v2480_v47 }
 0x5ff   : > { %2664 = vmatprep.mubr.f32.mxu1 %v5549_v52 }
 0x602   : > { %4432 = vmatmul.mubr.msk.f32.gmra.mrb[60].mxu1 %vm1762_vm2, %v2481_v56 }
 0x603   : > { %2670 = vmatprep.mubr.f32.mxu1 %v5549_v52 }
 0x606   : > { %4433 = vmatmul.mubr.msk.f32.gmra.mrb[62].mxu1 %vm1762_vm2, %v2482_v57 }
 0x607   : > { %2676 = vmatprep.mubr.f32.mxu1 %v5549_v52 }
 0x60a   : > { %4434 = vmatmul.mubr.msk.f32.gmra.mrb[64].mxu1 %vm1762_vm2, %v2483_v58 }
 0x60b   : > { %2682 = vmatprep.mubr.f32.mxu1 %v5549_v52 }
 0x60e   : > { %4435 = vmatmul.mubr.msk.f32.gmra.mrb[66].mxu1 %vm1762_vm2, %v2484_v59 }
 0x60f   : > { %2688 = vmatprep.mubr.f32.mxu1 %v5549_v52 }
 0x612   : > { %4436 = vmatmul.mubr.msk.f32.gmra.mrb[68].mxu1 %vm1762_vm2, %v2485_v60 }
 0x629   : > { %v6254_v61 = vpop.f32.mrb[0].mxu0 }
 0x62a   : > { %v6256_v4 = vpop.f32.mrb[1].mxu0 }
 0x62b   : > { %v2695_v62 = vmax.f32 %v6254_v61, %v6256_v4 }
 0x62d   : > { %2696 = vmax.xlane.f32.xlu0 %v2695_v62  ;;  %v6260_v63 = vpop.f32.mrb[2].mxu0 }
 0x62e   : > { %v6262_v12 = vpop.f32.mrb[3].mxu0 }
 0x62f   : > { %v2698_v3 = vmax.f32 %v6260_v63, %v6262_v12 }
 0x631   : > { %2699 = vmax.xlane.f32.xlu1 %v2698_v3  ;;  %v6266_v13 = vpop.f32.mrb[4].mxu0 }
 0x632   : > { %v6268_v52 = vpop.f32.mrb[5].mxu0 }
 0x633   : > { %v2701_v7 = vmax.f32 %v6266_v13, %v6268_v52 }
 0x635   : > { %2702 = vmax.xlane.f32.xlu0 %v2701_v7  ;;  %v6272_v14 = vpop.f32.mrb[6].mxu0 }
 0x636   : > { %v6274_v10 = vpop.f32.mrb[7].mxu0 }
 0x637   : > { %v2704_v15 = vmax.f32 %v6272_v14, %v6274_v10 }
 0x639   : > { %2705 = vmax.xlane.f32.xlu1 %v2704_v15  ;;  %v6278_v11 = vpop.f32.mrb[8].mxu0 }
 0x63a   : > { %v6280_v16 = vpop.f32.mrb[9].mxu0 }
 0x63b   : > { %v2707_v17 = vmax.f32 %v6278_v11, %v6280_v16 }
 0x63d   : > { %2708 = vmax.xlane.f32.xlu0 %v2707_v17  ;;  %v6284_v18 = vpop.f32.mrb[10].mxu0 }
 0x63e   : > { %v6286_v19 = vpop.f32.mrb[11].mxu0 }
 0x63f   : > { %v2710_v20 = vmax.f32 %v6284_v18, %v6286_v19 }
 0x641   : > { %2711 = vmax.xlane.f32.xlu1 %v2710_v20  ;;  %v6290_v21 = vpop.f32.mrb[12].mxu0 }
 0x642   : > { %v6292_v22 = vpop.f32.mrb[13].mxu0 }
 0x643   : > { %v2713_v23 = vmax.f32 %v6290_v21, %v6292_v22 }
 0x645   : > { %2714 = vmax.xlane.f32.xlu0 %v2713_v23  ;;  %v6296_v24 = vpop.f32.mrb[14].mxu0 }
 0x646   : > { %v6298_v25 = vpop.f32.mrb[15].mxu0 }
 0x647   : > { %v2716_v26 = vmax.f32 %v6296_v24, %v6298_v25 }
 0x649   : > { %2717 = vmax.xlane.f32.xlu1 %v2716_v26  ;;  %v6302_v27 = vpop.f32.mrb[16].mxu0 }
 0x64a   : > { %v6304_v28 = vpop.f32.mrb[17].mxu0 }
 0x64b   : > { %v2719_v29 = vmax.f32 %v6302_v27, %v6304_v28 }
 0x64d   : > { %2720 = vmax.xlane.f32.xlu0 %v2719_v29  ;;  %v6308_v30 = vpop.f32.mrb[18].mxu0 }
 0x64e   : > { %v6310_v31 = vpop.f32.mrb[19].mxu0 }
 0x64f   : > { %v2722_v32 = vmax.f32 %v6308_v30, %v6310_v31 }
 0x651   : > { %2723 = vmax.xlane.f32.xlu1 %v2722_v32  ;;  %v6314_v49 = vpop.f32.mrb[20].mxu0 }
 0x652   : > { %v6316_v33 = vpop.f32.mrb[21].mxu0 }
 0x653   : > { %v2725_v50 = vmax.f32 %v6314_v49, %v6316_v33 }
 0x655   : > { %2726 = vmax.xlane.f32.xlu0 %v2725_v50  ;;  %v6320_v34 = vpop.f32.mrb[22].mxu0 }
 0x656   : > { %v6322_v51 = vpop.f32.mrb[23].mxu0 }
 0x657   : > { %v2728_v35 = vmax.f32 %v6320_v34, %v6322_v51 }
 0x659   : > { %2729 = vmax.xlane.f32.xlu1 %v2728_v35  ;;  %v6326_v53 = vpop.f32.mrb[24].mxu0 }
 0x65a   : > { %v6328_v54 = vpop.f32.mrb[25].mxu0 }
 0x65b   : > { %v2731_v36 = vmax.f32 %v6326_v53, %v6328_v54 }
 0x65d   : > { %2732 = vmax.xlane.f32.xlu0 %v2731_v36  ;;  %v6332_v55 = vpop.f32.mrb[0].mxu1 }
 0x65e   : > { %v6334_v37 = vpop.f32.mrb[1].mxu1 }
 0x65f   : > { %v2734_v38 = vmax.f32 %v6332_v55, %v6334_v37 }
 0x661   : > { %2735 = vmax.xlane.f32.xlu1 %v2734_v38  ;;  %v6338_v8 = vpop.f32.mrb[2].mxu1 }
 0x662   : > { %7729 = vst [vmem:[#allocation18_spill] sm:$0xff] %v6338_v8  ;;  %v6340_v39 = vpop.f32.mrb[3].mxu1 }
 0x663   : > { %7730 = vst [vmem:[#allocation19_spill] sm:$0xff] %v6340_v39  ;;  %v2737_v40 = vmax.f32 %v6338_v8, %v6340_v39 }
 0x665   : > { %v6344_v41 = vpop.f32.mrb[4].mxu1 }
 0x666   : > { %7731 = vst [vmem:[#allocation20_spill] sm:$0xff] %v6344_v41  ;;  %v6346_v9 = vpop.f32.mrb[5].mxu1 }
 0x667   : > { %7732 = vst [vmem:[#allocation21_spill] sm:$0xff] %v6346_v9  ;;  %v2740_v42 = vmax.f32 %v6344_v41, %v6346_v9 }
 0x669   : > { %v6350_v48 = vpop.f32.mrb[26].mxu0  ;;  %v6352_v43 = vpop.f32.mrb[6].mxu1 }
 0x66a   : > { %v6354_v44 = vpop.f32.mrb[27].mxu0  ;;  %v6356_v45 = vpop.f32.mrb[7].mxu1 }
 0x66b   : > { %v2791_v46 = vmax.f32 %v6350_v48, %v6354_v44  ;;  %v2743_v5 = vmax.f32 %v6352_v43, %v6356_v45 }
 0x66d   : > { %2792 = vmax.xlane.f32.xlu0 %v2791_v46  ;;  %v6362_v6 = vpop.f32.mrb[28].mxu0  ;;  %v6364_v2 = vpop.f32.mrb[8].mxu1 }
 0x66e   : > { %v6366_v0 = vpop.f32.mrb[29].mxu0  ;;  %v6368_v1 = vpop.f32.mrb[9].mxu1 }
 0x66f   : > { %v2794_v47 = vmax.f32 %v6362_v6, %v6366_v0  ;;  %v2746_v56 = vmax.f32 %v6364_v2, %v6368_v1 }
 0x671   : > { %2738 = vmax.xlane.f32.xlu0 %v2737_v40  ;;  %2795 = vmax.xlane.f32.xlu1 %v2794_v47  ;;  %v6374_v57 = vpop.f32.mrb[30].mxu0  ;;  %v6376_v58 = vpop.f32.mrb[10].mxu1 }
 0x672   : > { %7733 = vst [vmem:[#allocation22_spill] sm:$0xff] %v6374_v57  ;;  %v6378_v59 = vpop.f32.mrb[31].mxu0  ;;  %v6380_v60 = vpop.f32.mrb[11].mxu1 }
 0x673   : > { %7734 = vst [vmem:[#allocation23_spill] sm:$0xff] %v6378_v59  ;;  %v2797_v62 = vmax.f32 %v6374_v57, %v6378_v59  ;;  %v2749_v3 = vmax.f32 %v6376_v58, %v6380_v60 }
 0x675   : > { %2741 = vmax.xlane.f32.xlu1 %v2740_v42  ;;  %2798 = vmax.xlane.f32.xlu0 %v2797_v62  ;;  %v6386_v7 = vpop.f32.mrb[32].mxu0  ;;  %v6388_v15 = vpop.f32.mrb[12].mxu1 }
 0x676   : > { %7735 = vst [vmem:[#allocation24_spill] sm:$0xff] %v6386_v7  ;;  %v6390_v17 = vpop.f32.mrb[33].mxu0  ;;  %v6392_v20 = vpop.f32.mrb[13].mxu1 }
 0x677   : > { %7736 = vst [vmem:[#allocation25_spill] sm:$0xff] %v6390_v17  ;;  %v2800_v23 = vmax.f32 %v6386_v7, %v6390_v17  ;;  %v2752_v26 = vmax.f32 %v6388_v15, %v6392_v20 }
 0x679   : > { %2744 = vmax.xlane.f32.xlu1 %v2743_v5  ;;  %v6398_v29 = vpop.f32.mrb[34].mxu0  ;;  %v6400_v32 = vpop.f32.mrb[14].mxu1 }
 0x67a   : > { %7737 = vst [vmem:[#allocation26_spill] sm:$0xff] %v6398_v29  ;;  %v6402_v50 = vpop.f32.mrb[35].mxu0  ;;  %v6404_v35 = vpop.f32.mrb[15].mxu1 }
 0x67b   : > { %7738 = vst [vmem:[#allocation27_spill] sm:$0xff] %v6402_v50  ;;  %v2803_v36 = vmax.f32 %v6398_v29, %v6402_v50  ;;  %v2755_v38 = vmax.f32 %v6400_v32, %v6404_v35 }
 0x67d   : > { %2801 = vmax.xlane.f32.xlu1 %v2800_v23  ;;  %2804 = vmax.xlane.f32.xlu0 %v2803_v36  ;;  %v6410_v40 = vpop.f32.mrb[36].mxu0  ;;  %v6412_v42 = vpop.f32.mrb[16].mxu1 }
 0x67e   : > { %7739 = vst [vmem:[#allocation28_spill] sm:$0xff] %v6410_v40  ;;  %v6414_v46 = vpop.f32.mrb[37].mxu0  ;;  %v6416_v5 = vpop.f32.mrb[17].mxu1 }
 0x67f   : > { %7740 = vst [vmem:[#allocation29_spill] sm:$0xff] %v6414_v46  ;;  %v2806_v47 = vmax.f32 %v6410_v40, %v6414_v46  ;;  %v2758_v62 = vmax.f32 %v6412_v42, %v6416_v5 }
 0x681   : > { %2747 = vmax.xlane.f32.xlu1 %v2746_v56  ;;  %2750 = vmax.xlane.f32.xlu0 %v2749_v3  ;;  %v6422_v50 = vpop.f32.mrb[38].mxu0  ;;  %v6424_v23 = vpop.f32.mrb[18].mxu1 }
 0x682   : > { %7741 = vst [vmem:[#allocation30_spill] sm:$0xff] %v6422_v50  ;;  %v6426_v36 = vpop.f32.mrb[39].mxu0  ;;  %v6428_v29 = vpop.f32.mrb[19].mxu1 }
 0x683   : > { %7742 = vst [vmem:[#allocation31_spill] sm:$0xff] %v6426_v36  ;;  %v2809_v17 = vmax.f32 %v6422_v50, %v6426_v36  ;;  %v2761_v7 = vmax.f32 %v6424_v23, %v6428_v29 }
 0x685   : > { %2807 = vmax.xlane.f32.xlu1 %v2806_v47  ;;  %2810 = vmax.xlane.f32.xlu0 %v2809_v17  ;;  %v6434_v46 = vpop.f32.mrb[40].mxu0  ;;  %v6436_v56 = vpop.f32.mrb[20].mxu1 }
 0x686   : > { %7743 = vst [vmem:[#allocation32_spill] sm:$0xff] %v6434_v46  ;;  %7744 = vst [vmem:[#allocation33_spill] sm:$0xff] %v6436_v56  ;;  %v6438_v3 = vpop.f32.mrb[41].mxu0  ;;  %v6440_v40 = vpop.f32.mrb[21].mxu1 }
 0x687   : > { %7745 = vst [vmem:[#allocation34_spill] sm:$0xff] %v6438_v3  ;;  %7746 = vst [vmem:[#allocation35_spill] sm:$0xff] %v6440_v40  ;;  %v2812_v59 = vmax.f32 %v6434_v46, %v6438_v3  ;;  %v2764_v57 = vmax.f32 %v6436_v56, %v6440_v40 }
 0x689   : > { %2753 = vmax.xlane.f32.xlu1 %v2752_v26  ;;  %2756 = vmax.xlane.f32.xlu0 %v2755_v38  ;;  %v6446_v36 = vpop.f32.mrb[42].mxu0  ;;  %v6448_v47 = vpop.f32.mrb[22].mxu1 }
 0x68a   : > { %7747 = vst [vmem:[#allocation36_spill] sm:$0xff] %v6446_v36  ;;  %7748 = vst [vmem:[#allocation37_spill] sm:$0xff] %v6448_v47  ;;  %v6450_v17 = vpop.f32.mrb[43].mxu0  ;;  %v6452_v50 = vpop.f32.mrb[23].mxu1 }
 0x68b   : > { %7749 = vst [vmem:[#allocation38_spill] sm:$0xff] %v6450_v17  ;;  %7750 = vst [vmem:[#allocation39_spill] sm:$0xff] %v6452_v50  ;;  %v2815_v9 = vmax.f32 %v6446_v36, %v6450_v17  ;;  %v2767_v41 = vmax.f32 %v6448_v47, %v6452_v50 }
 0x68d   : > { %2813 = vmax.xlane.f32.xlu1 %v2812_v59  ;;  %2816 = vmax.xlane.f32.xlu0 %v2815_v9  ;;  %v6458_v3 = vpop.f32.mrb[44].mxu0  ;;  %v6460_v26 = vpop.f32.mrb[24].mxu1 }
 0x68e   : > { %7751 = vst [vmem:[#allocation40_spill] sm:$0xff] %v6458_v3  ;;  %7752 = vst [vmem:[#allocation41_spill] sm:$0xff] %v6460_v26  ;;  %v6462_v38 = vpop.f32.mrb[45].mxu0  ;;  %v6464_v46 = vpop.f32.mrb[25].mxu1 }
 0x68f   : > { %7753 = vst [vmem:[#allocation42_spill] sm:$0xff] %v6462_v38  ;;  %7754 = vst [vmem:[#allocation43_spill] sm:$0xff] %v6464_v46  ;;  %v2818_v39 = vmax.f32 %v6458_v3, %v6462_v38  ;;  %v2770_v8 = vmax.f32 %v6460_v26, %v6464_v46 }
 0x691   : > { %2759 = vmax.xlane.f32.xlu1 %v2758_v62  ;;  %2762 = vmax.xlane.f32.xlu0 %v2761_v7  ;;  %v6470_v17 = vpop.f32.mrb[46].mxu0  ;;  %v6472_v59 = vpop.f32.mrb[26].mxu1 }
 0x692   : > { %7755 = vst [vmem:[#allocation44_spill] sm:$0xff] %v6472_v59  ;;  %v6474_v9 = vpop.f32.mrb[47].mxu0  ;;  %v6476_v36 = vpop.f32.mrb[27].mxu1 }
 0x693   : > { %7756 = vst [vmem:[#allocation45_spill] sm:$0xff] %v6476_v36  ;;  %v2821_v50 = vmax.f32 %v6470_v17, %v6474_v9  ;;  %v2773_v47 = vmax.f32 %v6472_v59, %v6476_v36 }
 0x695   : > { %2819 = vmax.xlane.f32.xlu1 %v2818_v39  ;;  %2822 = vmax.xlane.f32.xlu0 %v2821_v50  ;;  %v6482_v38 = vpop.f32.mrb[48].mxu0  ;;  %v6484_v62 = vpop.f32.mrb[28].mxu1 }
 0x696   : > { %7757 = vst [vmem:[#allocation46_spill] sm:$0xff] %v6482_v38  ;;  %7758 = vst [vmem:[#allocation47_spill] sm:$0xff] %v6484_v62  ;;  %v6486_v7 = vpop.f32.mrb[49].mxu0  ;;  %v6488_v3 = vpop.f32.mrb[29].mxu1 }
 0x697   : > { %7759 = vst [vmem:[#allocation48_spill] sm:$0xff] %v6486_v7  ;;  %7760 = vst [vmem:[#allocation49_spill] sm:$0xff] %v6488_v3  ;;  %v2824_v46 = vmax.f32 %v6482_v38, %v6486_v7  ;;  %v2776_v26 = vmax.f32 %v6484_v62, %v6488_v3 }
 0x699   : > { %2765 = vmax.xlane.f32.xlu1 %v2764_v57  ;;  %2768 = vmax.xlane.f32.xlu0 %v2767_v41  ;;  %v6494_v40 = vpop.f32.mrb[50].mxu0  ;;  %v6496_v39 = vpop.f32.mrb[30].mxu1 }
 0x69a   : > { %7761 = vst [vmem:[#allocation50_spill] sm:$0xff] %v6494_v40  ;;  %7762 = vst [vmem:[#allocation51_spill] sm:$0xff] %v6496_v39  ;;  %v6498_v50 = vpop.f32.mrb[51].mxu0  ;;  %v6500_v36 = vpop.f32.mrb[31].mxu1 }
 0x69b   : > { %7763 = vst [vmem:[#allocation52_spill] sm:$0xff] %v6498_v50  ;;  %7764 = vst [vmem:[#allocation53_spill] sm:$0xff] %v6500_v36  ;;  %v2827_v59 = vmax.f32 %v6494_v40, %v6498_v50  ;;  %v2779_v56 = vmax.f32 %v6496_v39, %v6500_v36 }
 0x69d   : > { %2825 = vmax.xlane.f32.xlu1 %v2824_v46  ;;  %2828 = vmax.xlane.f32.xlu0 %v2827_v59  ;;  %v6506_v7 = vpop.f32.mrb[52].mxu0  ;;  %v6508_v57 = vpop.f32.mrb[32].mxu1 }
 0x69e   : > { %7765 = vst [vmem:[#allocation54_spill] sm:$0xff] %v6506_v7  ;;  %7766 = vst [vmem:[#allocation55_spill] sm:$0xff] %v6508_v57  ;;  %v6510_v41 = vpop.f32.mrb[53].mxu0  ;;  %v6512_v38 = vpop.f32.mrb[33].mxu1 }
 0x69f   : > { %7767 = vst [vmem:[#allocation56_spill] sm:$0xff] %v6510_v41  ;;  %7768 = vst [vmem:[#allocation57_spill] sm:$0xff] %v6512_v38  ;;  %v2830_v3 = vmax.f32 %v6506_v7, %v6510_v41  ;;  %v2782_v62 = vmax.f32 %v6508_v57, %v6512_v38 }
 0x6a1   : > { %2771 = vmax.xlane.f32.xlu1 %v2770_v8  ;;  %2774 = vmax.xlane.f32.xlu0 %v2773_v47  ;;  %v6518_v50 = vpop.f32.mrb[34].mxu1  ;;  %v6524_v36 = vpop.f32.mrb[54].mxu0 }
 0x6a2   : > { %7769 = vst [vmem:[#allocation58_spill] sm:$0xff] %v6518_v50  ;;  %v6520_v46 = vpop.f32.mrb[35].mxu1  ;;  %v6528_v40 = vpop.f32.mrb[55].mxu0 }
 0x6a3   : > { %7770 = vst [vmem:[#allocation59_spill] sm:$0xff] %v6520_v46  ;;  %v2785_v59 = vmax.f32 %v6518_v50, %v6520_v46 }
 0x6a5   : > { %2780 = vmax.xlane.f32.xlu0 %v2779_v56  ;;  %2831 = vmax.xlane.f32.xlu1 %v2830_v3  ;;  %v6526_v39 = vpop.f32.mrb[36].mxu1  ;;  %v6542_v3 = vpop.f32.mrb[56].mxu0 }
 0x6a6   : > { %7771 = vst [vmem:[#allocation60_spill] sm:$0xff] %v6526_v39  ;;  %v6530_v41 = vpop.f32.mrb[37].mxu1  ;;  %v6544_v50 = vpop.f32.mrb[57].mxu0 }
 0x6a7   : > { %7772 = vst [vmem:[#allocation61_spill] sm:$0xff] %v6530_v41  ;;  %v2788_v47 = vmax.f32 %v6526_v39, %v6530_v41  ;;  %7775 = vst [vmem:[#allocation64_spill] sm:$0xff] %v6544_v50 }
 0x6a9   : > { %v6536_v7 = vpop.f32.mrb[38].mxu1  ;;  %2786 = vmax.xlane.f32.xlu0 %v2785_v59  ;;  %2777 = vmax.xlane.f32.xlu1 %v2776_v26 }
 0x6aa   : > { %7773 = vst [vmem:[#allocation62_spill] sm:$0xff] %v6536_v7  ;;  %v6538_v46 = vpop.f32.mrb[39].mxu1 }
 0x6ab   : > { %7774 = vst [vmem:[#allocation63_spill] sm:$0xff] %v6538_v46  ;;  %v2839_v56 = vmax.f32 %v6536_v7, %v6538_v46 }
 0x6ad   : > { %2840 = vmax.xlane.f32.xlu0 %v2839_v56  ;;  %2783 = vmax.xlane.f32.xlu1 %v2782_v62  ;;  %v6546_v38 = vpop.f32.mrb[40].mxu1 }
 0x6ae   : > { %7776 = vst [vmem:[#allocation65_spill] sm:$0xff] %v6546_v38  ;;  %v6550_v41 = vpop.f32.mrb[41].mxu1 }
 0x6af   : > { %7777 = vst [vmem:[#allocation66_spill] sm:$0xff] %v6550_v41  ;;  %v2842_v26 = vmax.f32 %v6546_v38, %v6550_v41 }
 0x6b1   : > { %v6554_v59 = vpop.f32.mrb[42].mxu1  ;;  %2789 = vmax.xlane.f32.xlu1 %v2788_v47 }
 0x6b2   : > { %7778 = vst [vmem:[#allocation67_spill] sm:$0xff] %v6554_v59  ;;  %v6556_v46 = vpop.f32.mrb[43].mxu1 }
 0x6b3   : > { %7779 = vst [vmem:[#allocation68_spill] sm:$0xff] %v6556_v46  ;;  %v2845_v7 = vmax.f32 %v6554_v59, %v6556_v46 }
 0x6b5   : > { %v6560_v56 = vpop.f32.mrb[44].mxu1  ;;  %2846 = vmax.xlane.f32.xlu0 %v2845_v7  ;;  %2843 = vmax.xlane.f32.xlu1 %v2842_v26 }
 0x6b6   : > { %7780 = vst [vmem:[#allocation69_spill] sm:$0xff] %v6560_v56  ;;  %v6562_v62 = vpop.f32.mrb[45].mxu1 }
 0x6b7   : > { %7781 = vst [vmem:[#allocation70_spill] sm:$0xff] %v6562_v62  ;;  %v2848_v8 = vmax.f32 %v6560_v56, %v6562_v62 }
 0x6b9   : > { %v6566_v39 = vpop.f32.mrb[46].mxu1  ;;  %2849 = vmax.xlane.f32.xlu1 %v2848_v8 }
 0x6ba   : > { %7782 = vst [vmem:[#allocation71_spill] sm:$0xff] %v6566_v39  ;;  %v6568_v41 = vpop.f32.mrb[47].mxu1  ;;  %v2697_v47 = vpop.xlane.xlu0 %2696 }
 0x6bb   : > { %7783 = vst [vmem:[#allocation72_spill] sm:$0xff] %v6568_v41  ;;  %v2851_v38 = vmax.f32 %v6566_v39, %v6568_v41  ;;  %v2887_v46 = vsub.f32 %v6254_v61, %v2697_v47  ;;  %v2888_v59 = vsub.f32 %v6256_v4, %v2697_v47 }
 0x6bd   : > { %v3015_v7 = vmul.f32 1.442695, %v2887_v46  ;;  %v3017_v26 = vmul.f32 1.442695, %v2888_v59  ;;  %v6574_v57 = vpop.f32.mrb[48].mxu1  ;;  %2852 = vmax.xlane.f32.xlu0 %v2851_v38 }
 0x6be   : > { %7784 = vst [vmem:[#allocation73_spill] sm:$0xff] %v6574_v57  ;;  %v2700_v50 = vpop.xlane.xlu1 %2699  ;;  %v6576_v62 = vpop.f32.mrb[49].mxu1 }
 0x6bf   : > { %7785 = vst [vmem:[#allocation74_spill] sm:$0xff] %v6576_v62  ;;  %4996 = vpow2.f32 %v3015_v7  ;;  %v2889_v8 = vsub.f32 %v6260_v63, %v2700_v50  ;;  %v2890_v56 = vsub.f32 %v6262_v12, %v2700_v50  ;;  %v2854_v41 = vmax.f32 %v6574_v57, %v6576_v62 }
 0x6c0   : > { %4998 = vpow2.f32 %v3017_v26 }
 0x6c1   : > { %v3019_v61 = vmul.f32 1.442695, %v2889_v8  ;;  %v3021_v39 = vmul.f32 1.442695, %v2890_v56  ;;  %v6582_v4 = vpop.f32.mrb[50].mxu1  ;;  %2855 = vmax.xlane.f32.xlu1 %v2854_v41 }
 0x6c2   : > { %7786 = vst [vmem:[#allocation75_spill] sm:$0xff] %v6582_v4  ;;  %v6584_v46 = vpop.f32.mrb[51].mxu1  ;;  %v2703_v38 = vpop.xlane.xlu0 %2702 }
 0x6c3   : > { %7787 = vst [vmem:[#allocation76_spill] sm:$0xff] %v6584_v46  ;;  %5000 = vpow2.f32 %v3019_v61  ;;  %v2857_v59 = vmax.f32 %v6582_v4, %v6584_v46  ;;  %v2891_v63 = vsub.f32 %v6266_v13, %v2703_v38  ;;  %v2892_v12 = vsub.f32 %v6268_v52, %v2703_v38 }
 0x6c4   : > { %5002 = vpow2.f32 %v3021_v39 }
 0x6c5   : > { %v3023_v50 = vmul.f32 1.442695, %v2891_v63  ;;  %v3025_v47 = vmul.f32 1.442695, %v2892_v12  ;;  %v6590_v7 = vpop.f32.mrb[52].mxu1  ;;  %2858 = vmax.xlane.f32.xlu0 %v2857_v59 }
 0x6c6   : > { %7788 = vst [vmem:[#allocation77_spill] sm:$0xff] %v6590_v7  ;;  %v2706_v56 = vpop.xlane.xlu1 %2705  ;;  %v6592_v26 = vpop.f32.mrb[53].mxu1 }
 0x6c7   : > { %7789 = vst [vmem:[#allocation78_spill] sm:$0xff] %v6592_v26  ;;  %5004 = vpow2.f32 %v3023_v50  ;;  %v2893_v41 = vsub.f32 %v6272_v14, %v2706_v56  ;;  %v2894_v8 = vsub.f32 %v6274_v10, %v2706_v56  ;;  %v2860_v61 = vmax.f32 %v6590_v7, %v6592_v26 }
 0x6c8   : > { %5006 = vpow2.f32 %v3025_v47 }
 0x6c9   : > { %v6598_v13 = vpop.eup %4996  ;;  %v3027_v52 = vmul.f32 1.442695, %v2893_v41  ;;  %v3029_v39 = vmul.f32 1.442695, %v2894_v8  ;;  %2861 = vmax.xlane.f32.xlu1 %v2860_v61  ;;  %v6600_v38 = vpop.f32.mrb[54].mxu1 }
 0x6ca   : > { %7790 = vst [vmem:[#allocation79_spill] sm:$0xff] %v6598_v13  ;;  %7791 = vst [vmem:[#allocation80_spill] sm:$0xff] %v6600_v38  ;;  %v6602_v59 = vpop.eup %4998  ;;  %v2709_v63 = vpop.xlane.xlu0 %2708 }
 0x6cb   : > { %7792 = vst [vmem:[#allocation81_spill] sm:$0xff] %v6602_v59  ;;  %v6604_v12 = vpop.f32.mrb[55].mxu1  ;;  %5008 = vpow2.f32 %v3027_v52  ;;  %v2895_v14 = vsub.f32 %v6278_v11, %v2709_v63  ;;  %v2896_v10 = vsub.f32 %v6280_v16, %v2709_v63  ;;  %v3271_v50 = vadd.f32 %v6602_v59, %v6598_v13 }
 0x6cc   : > { %7793 = vst [vmem:[#allocation82_spill] sm:$0xff] %v6604_v12  ;;  %5010 = vpow2.f32 %v3029_v39  ;;  %v2863_v47 = vmax.f32 %v6600_v38, %v6604_v12 }
 0x6cd   : > { %v6612_v56 = vpop.eup %5000  ;;  %v3031_v41 = vmul.f32 1.442695, %v2895_v14  ;;  %v3033_v8 = vmul.f32 1.442695, %v2896_v10  ;;  %3272 = vadd.xlane.f32.xlu0 %v3271_v50  ;;  %v6614_v61 = vpop.f32.mrb[56].mxu1 }
 0x6ce   : > { %7794 = vst [vmem:[#allocation83_spill] sm:$0xff] %v6612_v56  ;;  %7795 = vst [vmem:[#allocation84_spill] sm:$0xff] %v6614_v61  ;;  %v6616_v26 = vpop.eup %5002  ;;  %v2712_v52 = vpop.xlane.xlu1 %2711 }
 0x6cf   : > { %7796 = vst [vmem:[#allocation85_spill] sm:$0xff] %v6616_v26  ;;  %v6618_v11 = vpop.f32.mrb[57].mxu1  ;;  %5012 = vpow2.f32 %v3031_v41  ;;  %v2897_v16 = vsub.f32 %v6284_v18, %v2712_v52  ;;  %v2898_v39 = vsub.f32 %v6286_v19, %v2712_v52  ;;  %v3274_v63 = vadd.f32 %v6616_v26, %v6612_v56 }
 0x6d0   : > { %7797 = vst [vmem:[#allocation86_spill] sm:$0xff] %v6618_v11  ;;  %5014 = vpow2.f32 %v3033_v8  ;;  %v2866_v14 = vmax.f32 %v6614_v61, %v6618_v11 }
 0x6d1   : > { %v6626_v10 = vpop.eup %5004  ;;  %v3035_v50 = vmul.f32 1.442695, %v2897_v16  ;;  %v3037_v13 = vmul.f32 1.442695, %v2898_v39  ;;  %3275 = vadd.xlane.f32.xlu1 %v3274_v63  ;;  %2864 = vmax.xlane.f32.xlu0 %v2863_v47  ;;  %v6628_v59 = vpop.f32.mrb[58].mxu1 }
 0x6d2   : > { %7798 = vst [vmem:[#allocation87_spill] sm:$0xff] %v6626_v10  ;;  %7799 = vst [vmem:[#allocation88_spill] sm:$0xff] %v6628_v59  ;;  %v6630_v41 = vpop.eup %5006  ;;  %v2715_v18 = vpop.xlane.xlu0 %2714 }
 0x6d3   : > { %7800 = vst [vmem:[#allocation89_spill] sm:$0xff] %v6630_v41  ;;  %v6632_v12 = vpop.f32.mrb[59].mxu1  ;;  %5016 = vpow2.f32 %v3035_v50  ;;  %v2899_v19 = vsub.f32 %v6290_v21, %v2715_v18  ;;  %v2900_v8 = vsub.f32 %v6292_v22, %v2715_v18  ;;  %v3277_v52 = vadd.f32 %v6630_v41, %v6626_v10 }
 0x6d4   : > { %7801 = vst [vmem:[#allocation90_spill] sm:$0xff] %v6632_v12  ;;  %5018 = vpow2.f32 %v3037_v13  ;;  %v2869_v16 = vmax.f32 %v6628_v59, %v6632_v12 }
 0x6d5   : > { %v6640_v47 = vpop.eup %5008  ;;  %v3039_v39 = vmul.f32 1.442695, %v2899_v19  ;;  %v3041_v63 = vmul.f32 1.442695, %v2900_v8  ;;  %2867 = vmax.xlane.f32.xlu1 %v2866_v14  ;;  %3278 = vadd.xlane.f32.xlu0 %v3277_v52  ;;  %v6642_v56 = vpop.f32.mrb[60].mxu1 }
 0x6d6   : > { %7802 = vst [vmem:[#allocation91_spill] sm:$0xff] %v6640_v47  ;;  %7803 = vst [vmem:[#allocation92_spill] sm:$0xff] %v6642_v56  ;;  %v6644_v50 = vpop.eup %5010  ;;  %v2718_v21 = vpop.xlane.xlu1 %2717 }
 0x6d7   : > { %7804 = vst [vmem:[#allocation93_spill] sm:$0xff] %v6644_v50  ;;  %v6646_v26 = vpop.f32.mrb[61].mxu1  ;;  %5020 = vpow2.f32 %v3039_v39  ;;  %v2901_v22 = vsub.f32 %v6296_v24, %v2718_v21  ;;  %v2902_v13 = vsub.f32 %v6298_v25, %v2718_v21  ;;  %v3280_v18 = vadd.f32 %v6644_v50, %v6640_v47 }
 0x6d8   : > { %7805 = vst [vmem:[#allocation94_spill] sm:$0xff] %v6646_v26  ;;  %5022 = vpow2.f32 %v3041_v63  ;;  %v2872_v14 = vmax.f32 %v6642_v56, %v6646_v26 }
 0x6d9   : > { %v6654_v19 = vpop.eup %5012  ;;  %v3043_v8 = vmul.f32 1.442695, %v2901_v22  ;;  %v3045_v52 = vmul.f32 1.442695, %v2902_v13  ;;  %3281 = vadd.xlane.f32.xlu1 %v3280_v18  ;;  %2870 = vmax.xlane.f32.xlu0 %v2869_v16  ;;  %v6656_v10 = vpop.f32.mrb[62].mxu1 }
 0x6da   : > { %7806 = vst [vmem:[#allocation95_spill] sm:$0xff] %v6654_v19  ;;  %v6658_v39 = vpop.eup %5014  ;;  %v6660_v24 = vpop.f32.mrb[63].mxu1 }
 0x6db   : > { %7807 = vst [vmem:[#allocation96_spill] sm:$0xff] %v6658_v39  ;;  %5024 = vpow2.f32 %v3043_v8  ;;  %v3283_v25 = vadd.f32 %v6658_v39, %v6654_v19 }
 0x6dc   : > { %5026 = vpow2.f32 %v3045_v52 }
 0x6dd   : > { %v6666_v21 = vpop.eup %5016  ;;  %2873 = vmax.xlane.f32.xlu1 %v2872_v14  ;;  %3284 = vadd.xlane.f32.xlu0 %v3283_v25  ;;  %v6668_v22 = vpop.f32.mrb[64].mxu1 }
 0x6de   : > { %7808 = vst [vmem:[#allocation97_spill] sm:$0xff] %v6666_v21  ;;  %v6670_v16 = vpop.eup %5018  ;;  %v6672_v13 = vpop.f32.mrb[65].mxu1 }
 0x6df   : > { %7809 = vst [vmem:[#allocation98_spill] sm:$0xff] %v6670_v16  ;;  %v3286_v18 = vadd.f32 %v6670_v16, %v6666_v21 }
 0x6e1   : > { %v6678_v52 = vpop.eup %5020  ;;  %3287 = vadd.xlane.f32.xlu1 %v3286_v18  ;;  %v6680_v63 = vpop.f32.mrb[66].mxu1 }
 0x6e2   : > { %7810 = vst [vmem:[#allocation99_spill] sm:$0xff] %v6678_v52  ;;  %v6682_v19 = vpop.eup %5022  ;;  %v6684_v14 = vpop.f32.mrb[67].mxu1 }
 0x6e3   : > { %7811 = vst [vmem:[#allocation100_spill] sm:$0xff] %v6682_v19  ;;  %7812 = vst [vmem:[#allocation101_spill] sm:$0xff] %v6684_v14  ;;  %v3289_v25 = vadd.f32 %v6682_v19, %v6678_v52  ;;  %v2721_v52 = vpop.xlane.xlu0 %2720  ;;  %v2724_v19 = vpop.xlane.xlu1 %2723 }
 0x6e4   : > { %v2905_v11 = vsub.f32 %v6308_v30, %v2724_v19  ;;  %v2906_v7 = vsub.f32 %v6310_v31, %v2724_v19 }
 0x6e5   : > { %v6690_v47 = vpop.eup %5024  ;;  %3290 = vadd.xlane.f32.xlu0 %v3289_v25  ;;  %v6692_v21 = vpop.f32.mrb[68].mxu1 }
 0x6e6   : > { %7813 = vst [vmem:[#allocation102_spill] sm:$0xff] %v6690_v47  ;;  %7814 = vst [vmem:[#allocation103_spill] sm:$0xff] %v6692_v21  ;;  %v6694_v8 = vpop.eup %5026  ;;  %v6696_v18 = vpop.f32.mrb[69].mxu1  ;;  %v3053_v31 = vmul.f32 1.442695, %v2906_v7 }
 0x6e7   : > { %7815 = vst [vmem:[#allocation104_spill] sm:$0xff] %v6694_v8  ;;  %7816 = vst [vmem:[#allocation105_spill] sm:$0xff] %v6696_v18  ;;  %v3292_v16 = vadd.f32 %v6694_v8, %v6690_v47  ;;  %v2727_v41 = vpop.xlane.xlu0 %2726  ;;  %v2730_v39 = vpop.xlane.xlu1 %2729  ;;  %v2903_v47 = vsub.f32 %v6302_v27, %v2721_v52 }
 0x6e8   : > { %v2907_v62 = vsub.f32 %v6314_v49, %v2727_v41  ;;  %v2908_v27 = vsub.f32 %v6316_v33, %v2727_v41  ;;  %v2909_v30 = vsub.f32 %v6320_v34, %v2730_v39 }
 0x6e9   : > { %3293 = vadd.xlane.f32.xlu1 %v3292_v16  ;;  %v2904_v16 = vsub.f32 %v6304_v28, %v2721_v52  ;;  %v3047_v50 = vmul.f32 1.442695, %v2903_v47  ;;  %v3051_v28 = vmul.f32 1.442695, %v2905_v11  ;;  %v2910_v11 = vsub.f32 %v6322_v51, %v2730_v39 }
 0x6ea   : > { %v3059_v49 = vmul.f32 1.442695, %v2909_v30 }
 0x6eb   : > { %v6702_v26 = vpop.xlane.xlu0 %2732  ;;  %v3049_v57 = vmul.f32 1.442695, %v2904_v16  ;;  %5028 = vpow2.f32 %v3047_v50 }
 0x6ec   : > { %v2911_v50 = vsub.f32 %v6326_v53, %v6702_v26 }
 0x6ee   : > { %v6704_v25 = vpop.xlane.xlu1 %2735  ;;  %v3063_v39 = vmul.f32 1.442695, %v2911_v50 }
 0x6fa   : > { %v6706_v56 = vpop.xlane.xlu0 %2792 }
 0x6fe   : > { %v6708_v12 = vpop.xlane.xlu1 %2795  ;;  %v6710_v59 = vpop.xlane.xlu0 %2738 }
 0x702   : > { %v6713_v8 = vpop.xlane.xlu1 %2741  ;;  %v6717_v61 = vpop.xlane.xlu0 %2798 }
 0x706   : > { %v2745_v38 = vpop.xlane.xlu1 %2744 }
 0x707   : > { %v2919_v46 = vsub.f32 %v6352_v43, %v2745_v38  ;;  %v2920_v4 = vsub.f32 %v6356_v45, %v2745_v38  ;;  %v3055_v43 = vmul.f32 1.442695, %v2907_v62  ;;  %v3057_v45 = vmul.f32 1.442695, %v2908_v27 }
 0x708   : > { %v2912_v27 = vsub.f32 %v6328_v54, %v6702_v26  ;;  %v2914_v54 = vsub.f32 %v6334_v37, %v6704_v25 }
 0x709   : > { %v3079_v18 = vmul.f32 1.442695, %v2919_v46  ;;  %v3081_v21 = vmul.f32 1.442695, %v2920_v4 }
 0x70a   : > { %v6725_v47 = vpop.xlane.xlu1 %2801  ;;  %v6727_v52 = vpop.xlane.xlu0 %2804 }
 0x70b   : > { %5030 = vpow2.f32 %v3079_v18 }
 0x70c   : > { %5032 = vpow2.f32 %v3081_v21 }
 0x70d   : > { %5034 = vpow2.f32 %v3049_v57 }
 0x70e   : > { %5036 = vpow2.f32 %v3051_v28  ;;  %v2748_v38 = vpop.xlane.xlu1 %2747  ;;  %v2751_v33 = vpop.xlane.xlu0 %2750 }
 0x70f   : > { %5038 = vpow2.f32 %v3053_v31  ;;  %v2921_v4 = vsub.f32 %v6364_v2, %v2748_v38  ;;  %v2922_v46 = vsub.f32 %v6368_v1, %v2748_v38  ;;  %v2923_v34 = vsub.f32 %v6376_v58, %v2751_v33  ;;  %v6740_v1 = vpop.eup %5028 }
 0x710   : > { %5040 = vpow2.f32 %v3055_v43  ;;  %v2924_v7 = vsub.f32 %v6380_v60, %v2751_v33  ;;  %7817 = vst [vmem:[#allocation106_spill] sm:$0xff] %v6740_v1  ;;  %v3061_v58 = vmul.f32 1.442695, %v2910_v11  ;;  %v3065_v11 = vmul.f32 1.442695, %v2912_v27 }
 0x711   : > { %5042 = vpow2.f32 %v3057_v45  ;;  %v3083_v62 = vmul.f32 1.442695, %v2921_v4  ;;  %v3085_v57 = vmul.f32 1.442695, %v2922_v46  ;;  %v3087_v41 = vmul.f32 1.442695, %v2923_v34 }
 0x712   : > { %5044 = vpow2.f32 %v3059_v49  ;;  %v3089_v19 = vmul.f32 1.442695, %v2924_v7  ;;  %v6736_v21 = vpop.xlane.xlu1 %2807  ;;  %v6738_v2 = vpop.xlane.xlu0 %2810  ;;  %v2913_v45 = vsub.f32 %v6332_v55, %v6704_v25  ;;  %v2951_v4 = vsub.f32 %v6350_v48, %v6706_v56 }
 0x713   : > { %5046 = vpow2.f32 %v3083_v62  ;;  %v3069_v62 = vmul.f32 1.442695, %v2914_v54 }
 0x714   : > { %5048 = vpow2.f32 %v3085_v57  ;;  %v3067_v25 = vmul.f32 1.442695, %v2913_v45  ;;  %v3143_v48 = vmul.f32 1.442695, %v2951_v4 }
 0x715   : > { %v6742_v51 = vpop.eup %5030  ;;  %5050 = vpow2.f32 %v3087_v41  ;;  %v7824_v41 = vmax.f32 %v6656_v10, %v6660_v24 }
 0x716   : > { %v6744_v60 = vpop.eup %5032  ;;  %5052 = vpow2.f32 %v3089_v19  ;;  %v2754_v18 = vpop.xlane.xlu1 %2753 }
 0x717   : > { %v2757_v16 = vpop.xlane.xlu0 %2756  ;;  %v6746_v53 = vpop.eup %5034  ;;  %v2925_v28 = vsub.f32 %v6388_v15, %v2754_v18  ;;  %v2926_v30 = vsub.f32 %v6392_v20, %v2754_v18  ;;  %5054 = vpow2.f32 %v3061_v58  ;;  %v3319_v38 = vadd.f32 %v6744_v60, %v6742_v51 }
 0x718   : > { %7818 = vst [vmem:[#allocation107_spill] sm:$0xff] %v6746_v53  ;;  %v2927_v31 = vsub.f32 %v6400_v32, %v2757_v16  ;;  %v6753_v43 = vpop.eup %5036  ;;  %v2928_v49 = vsub.f32 %v6404_v35, %v2757_v16  ;;  %5056 = vpow2.f32 %v3063_v39 }
 0x719   : > { %7819 = vst [vmem:[#allocation108_spill] sm:$0xff] %v6753_v43  ;;  %v6760_v33 = vpop.eup %5038  ;;  %v3091_v15 = vmul.f32 1.442695, %v2925_v28  ;;  %v3093_v20 = vmul.f32 1.442695, %v2926_v30  ;;  %3320 = vadd.xlane.f32.xlu0 %v3319_v38  ;;  %v2952_v28 = vsub.f32 %v6354_v44, %v6706_v56 }
 0x71a   : > { %7820 = vst [vmem:[#allocation109_spill] sm:$0xff] %v6760_v33  ;;  %v3095_v26 = vmul.f32 1.442695, %v2927_v31  ;;  %v6764_v32 = vpop.eup %5040  ;;  %v3097_v55 = vmul.f32 1.442695, %v2928_v49  ;;  %v6768_v35 = vpop.xlane.xlu1 %2813 }
 0x71b   : > { %7821 = vst [vmem:[#allocation110_spill] sm:$0xff] %v6764_v32  ;;  %v6770_v46 = vpop.xlane.xlu0 %2816  ;;  %v6772_v34 = vpop.eup %5042  ;;  %5058 = vpow2.f32 %v3091_v15 }
 0x71c   : > { %7822 = vst [vmem:[#allocation111_spill] sm:$0xff] %v6772_v34  ;;  %v6774_v37 = vpop.eup %5044  ;;  %5060 = vpow2.f32 %v3093_v20  ;;  %v3145_v20 = vmul.f32 1.442695, %v2952_v28 }
 0x71d   : > { %v6776_v7 = vpop.eup %5046  ;;  %5062 = vpow2.f32 %v3095_v26  ;;  %2876 = vmax.xlane.f32.xlu0 %v7824_v41  ;;  %v2954_v41 = vsub.f32 %v6366_v0, %v6708_v12 }
 0x71e   : > { %7823 = vst [vmem:[#allocation112_spill] sm:$0xff] %v6776_v7  ;;  %v6778_v57 = vpop.eup %5048  ;;  %5064 = vpow2.f32 %v3097_v55  ;;  %v2760_v50 = vpop.xlane.xlu1 %2759 }
 0x71f   : > { %v2763_v19 = vpop.xlane.xlu0 %2762  ;;  %v6783_v58 = vpop.eup %5050  ;;  %5066 = vpow2.f32 %v3065_v11  ;;  %v2929_v39 = vsub.f32 %v6412_v42, %v2760_v50  ;;  %v2930_v18 = vsub.f32 %v6416_v5, %v2760_v50  ;;  %v3322_v31 = vadd.f32 %v6778_v57, %v6776_v7  ;;  %v7832_v50 = vld [vmem:[#allocation33_spill] sm:$0xff] }
 0x720   : > { %7825 = vst [vmem:[#allocation113_spill] sm:$0xff] %v6783_v58  ;;  %v2931_v16 = vsub.f32 %v6424_v23, %v2763_v19  ;;  %v6788_v27 = vpop.eup %5052  ;;  %5068 = vpow2.f32 %v3067_v25  ;;  %v2932_v30 = vsub.f32 %v6428_v29, %v2763_v19  ;;  %v2953_v5 = vsub.f32 %v6362_v6, %v6708_v12 }
 0x721   : > { %7826 = vst [vmem:[#allocation114_spill] sm:$0xff] %v6788_v27  ;;  %5070 = vpow2.f32 %v3069_v62  ;;  %v3099_v45 = vmul.f32 1.442695, %v2929_v39  ;;  %v3101_v49 = vmul.f32 1.442695, %v2930_v18  ;;  %v6795_v42 = vpop.eup %5054  ;;  %3323 = vadd.xlane.f32.xlu1 %v3322_v31  ;;  %v3325_v44 = vadd.f32 %v6788_v27, %v6783_v58  ;;  %v7833_v39 = vld [vmem:[#allocation35_spill] sm:$0xff] }
 0x722   : > { %v3103_v38 = vmul.f32 1.442695, %v2931_v16  ;;  %5072 = vpow2.f32 %v3143_v48  ;;  %v3105_v23 = vmul.f32 1.442695, %v2932_v30  ;;  %v6801_v56 = vpop.xlane.xlu1 %2819  ;;  %v6807_v15 = vpop.eup %5056  ;;  %v3147_v55 = vmul.f32 1.442695, %v2953_v5 }
 0x723   : > { %v6803_v29 = vpop.xlane.xlu0 %2822  ;;  %5074 = vpow2.f32 %v3099_v45  ;;  %7827 = vst [vmem:[#allocation115_spill] sm:$0xff] %v6807_v15  ;;  %3326 = vadd.xlane.f32.xlu0 %v3325_v44  ;;  %v7830_v11 = vmax.f32 %v6668_v22, %v6672_v13  ;;  %v7834_v16 = vld [vmem:[#allocation37_spill] sm:$0xff]  ;;  %v7836_v31 = vld [vmem:[#allocation18_spill] sm:$0xff] }
 0x724   : > { %5076 = vpow2.f32 %v3101_v49  ;;  %v2915_v45 = vsub.f32 %v7836_v31, %v6710_v59  ;;  %v7837_v49 = vmax.f32 %v6524_v36, %v6528_v40 }
 0x725   : > { %v6811_v26 = vpop.eup %5058  ;;  %5078 = vpow2.f32 %v3103_v38  ;;  %2879 = vmax.xlane.f32.xlu1 %v7830_v11  ;;  %v7838_v38 = vld [vmem:[#allocation39_spill] sm:$0xff] }
 0x726   : > { %7828 = vst [vmem:[#allocation116_spill] sm:$0xff] %v6811_v26  ;;  %v6813_v4 = vpop.eup %5060  ;;  %5080 = vpow2.f32 %v3105_v23  ;;  %v2766_v25 = vpop.xlane.xlu1 %2765  ;;  %v7840_v23 = vld [vmem:[#allocation19_spill] sm:$0xff] }
 0x727   : > { %7829 = vst [vmem:[#allocation117_spill] sm:$0xff] %v6813_v4  ;;  %v2769_v62 = vpop.xlane.xlu0 %2768  ;;  %v6818_v48 = vpop.eup %5062  ;;  %v2933_v19 = vsub.f32 %v7832_v50, %v2766_v25  ;;  %v2934_v18 = vsub.f32 %v7833_v39, %v2766_v25  ;;  %5082 = vpow2.f32 %v3145_v20  ;;  %2834 = vmax.xlane.f32.xlu0 %v7837_v49  ;;  %v3328_v0 = vadd.f32 %v6813_v4, %v6811_v26  ;;  %v7842_v39 = vld [vmem:[#allocation20_spill] sm:$0xff]  ;;  %v7853_v26 = vld [vmem:[#allocation43_spill] sm:$0xff] }
 0x728   : > { %7831 = vst [vmem:[#allocation118_spill] sm:$0xff] %v6818_v48  ;;  %v2935_v28 = vsub.f32 %v7834_v16, %v2769_v62  ;;  %v6825_v30 = vpop.eup %5064  ;;  %v2936_v5 = vsub.f32 %v7838_v38, %v2769_v62  ;;  %v2916_v44 = vsub.f32 %v7840_v23, %v6710_v59  ;;  %5084 = vpow2.f32 %v3147_v55  ;;  %v7854_v4 = vld [vmem:[#allocation44_spill] sm:$0xff] }
 0x729   : > { %7835 = vst [vmem:[#allocation33_spill] sm:$0xff] %v6825_v30  ;;  %v6835_v12 = vpop.eup %5066  ;;  %v3107_v11 = vmul.f32 1.442695, %v2933_v19  ;;  %v3109_v25 = vmul.f32 1.442695, %v2934_v18  ;;  %v2917_v16 = vsub.f32 %v7842_v39, %v6713_v8  ;;  %3329 = vadd.xlane.f32.xlu1 %v3328_v0  ;;  %v3331_v62 = vadd.f32 %v6825_v30, %v6818_v48  ;;  %v7843_v19 = vld [vmem:[#allocation50_spill] sm:$0xff] }
 0x72a   : > { %7839 = vst [vmem:[#allocation35_spill] sm:$0xff] %v6835_v12  ;;  %v3111_v20 = vmul.f32 1.442695, %v2935_v28  ;;  %v6839_v50 = vpop.eup %5068  ;;  %v3113_v31 = vmul.f32 1.442695, %v2936_v5  ;;  %v6845_v49 = vpop.xlane.xlu1 %2825  ;;  %v7845_v5 = vld [vmem:[#allocation52_spill] sm:$0xff] }
 0x72b   : > { %7841 = vst [vmem:[#allocation37_spill] sm:$0xff] %v6839_v50  ;;  %v6847_v38 = vpop.xlane.xlu0 %2828  ;;  %v6849_v6 = vpop.eup %5070  ;;  %v3149_v59 = vmul.f32 1.442695, %v2954_v41  ;;  %5086 = vpow2.f32 %v3107_v11  ;;  %v3071_v28 = vmul.f32 1.442695, %v2915_v45  ;;  %3332 = vadd.xlane.f32.xlu0 %v3331_v62  ;;  %v7848_v41 = vld [vmem:[#allocation21_spill] sm:$0xff]  ;;  %v3295_v45 = vadd.f32 %v6746_v53, %v6740_v1 }
 0x72c   : > { %v6853_v55 = vpop.eup %5072  ;;  %5088 = vpow2.f32 %v3109_v25  ;;  %v3073_v39 = vmul.f32 1.442695, %v2916_v44  ;;  %v2918_v11 = vsub.f32 %v7848_v41, %v6713_v8  ;;  %v3075_v48 = vmul.f32 1.442695, %v2917_v16  ;;  %v7849_v18 = vld [vmem:[#allocation64_spill] sm:$0xff]  ;;  %v7852_v44 = vld [vmem:[#allocation41_spill] sm:$0xff] }
 0x72d   : > { %7844 = vst [vmem:[#allocation18_spill] sm:$0xff] %v6853_v55  ;;  %v6857_v23 = vpop.eup %5074  ;;  %5090 = vpow2.f32 %v3111_v20  ;;  %v7850_v30 = vmax.f32 %v6542_v3, %v7849_v18  ;;  %v7857_v41 = vld [vmem:[#allocation45_spill] sm:$0xff] }
 0x72e   : > { %7846 = vst [vmem:[#allocation39_spill] sm:$0xff] %v6857_v23  ;;  %v6859_v54 = vpop.eup %5076  ;;  %5092 = vpow2.f32 %v3113_v31  ;;  %v2772_v25 = vpop.xlane.xlu1 %2771  ;;  %v7856_v31 = vld [vmem:[#allocation22_spill] sm:$0xff] }
 0x72f   : > { %7847 = vst [vmem:[#allocation19_spill] sm:$0xff] %v6859_v54  ;;  %2837 = vmax.xlane.f32.xlu1 %v7850_v30  ;;  %v2775_v62 = vpop.xlane.xlu0 %2774  ;;  %v6868_v0 = vpop.eup %5078  ;;  %5094 = vpow2.f32 %v3149_v59  ;;  %v2937_v20 = vsub.f32 %v7852_v44, %v2772_v25  ;;  %v2938_v58 = vsub.f32 %v7853_v26, %v2772_v25  ;;  %v2955_v30 = vsub.f32 %v7856_v31, %v6717_v61 }
 0x730   : > { %7851 = vst [vmem:[#allocation20_spill] sm:$0xff] %v6868_v0  ;;  %v2939_v8 = vsub.f32 %v7854_v4, %v2775_v62  ;;  %v6873_v16 = vpop.eup %5080  ;;  %5096 = vpow2.f32 %v3071_v28  ;;  %3296 = vadd.xlane.f32.xlu0 %v3295_v45  ;;  %v2940_v1 = vsub.f32 %v7857_v41, %v2775_v62  ;;  %v3334_v53 = vadd.f32 %v6859_v54, %v6857_v23  ;;  %v7859_v62 = vld [vmem:[#allocation51_spill] sm:$0xff]  ;;  %v7878_v54 = vld [vmem:[#allocation58_spill] sm:$0xff] }
 0x731   : > { %7855 = vst [vmem:[#allocation50_spill] sm:$0xff] %v6873_v16  ;;  %5098 = vpow2.f32 %v3073_v39  ;;  %v3115_v59 = vmul.f32 1.442695, %v2937_v20  ;;  %v3117_v27 = vmul.f32 1.442695, %v2938_v58  ;;  %v6880_v7 = vpop.eup %5082  ;;  %v3337_v4 = vadd.f32 %v6873_v16, %v6868_v0  ;;  %v7867_v0 = vld [vmem:[#allocation47_spill] sm:$0xff] }
 0x732   : > { %v3119_v44 = vmul.f32 1.442695, %v2939_v8  ;;  %7858 = vst [vmem:[#allocation52_spill] sm:$0xff] %v6880_v7  ;;  %5100 = vpow2.f32 %v3075_v48  ;;  %v3121_v26 = vmul.f32 1.442695, %v2940_v1  ;;  %v6884_v28 = vpop.xlane.xlu1 %2831  ;;  %v6887_v41 = vpop.eup %5084  ;;  %v3298_v58 = vadd.f32 %v6760_v33, %v6753_v43 }
 0x733   : > { %3335 = vadd.xlane.f32.xlu1 %v3334_v53  ;;  %v2781_v45 = vpop.xlane.xlu0 %2780  ;;  %v3077_v25 = vmul.f32 1.442695, %v2918_v11  ;;  %5102 = vpow2.f32 %v3115_v59  ;;  %7860 = vst [vmem:[#allocation21_spill] sm:$0xff] %v6887_v41  ;;  %v3151_v39 = vmul.f32 1.442695, %v2955_v30  ;;  %v7862_v53 = vld [vmem:[#allocation53_spill] sm:$0xff] }
 0x734   : > { %v2943_v31 = vsub.f32 %v7859_v62, %v2781_v45  ;;  %5104 = vpow2.f32 %v3117_v27  ;;  %3338 = vadd.xlane.f32.xlu0 %v3337_v4  ;;  %v2944_v48 = vsub.f32 %v7862_v53, %v2781_v45  ;;  %v7864_v11 = vld [vmem:[#allocation23_spill] sm:$0xff]  ;;  %v7866_v27 = vld [vmem:[#allocation24_spill] sm:$0xff]  ;;  %v7870_v53 = vld [vmem:[#allocation25_spill] sm:$0xff] }
 0x735   : > { %v6891_v1 = vpop.eup %5086  ;;  %5106 = vpow2.f32 %v3119_v44  ;;  %v2956_v8 = vsub.f32 %v7864_v11, %v6717_v61  ;;  %v2957_v4 = vsub.f32 %v7866_v27, %v6725_v47  ;;  %v7868_v44 = vld [vmem:[#allocation49_spill] sm:$0xff]  ;;  %v2958_v61 = vsub.f32 %v7870_v53, %v6725_v47 }
 0x736   : > { %7861 = vst [vmem:[#allocation64_spill] sm:$0xff] %v6891_v1  ;;  %v6894_v20 = vpop.eup %5088  ;;  %5108 = vpow2.f32 %v3121_v26  ;;  %v3127_v59 = vmul.f32 1.442695, %v2943_v31  ;;  %v2778_v62 = vpop.xlane.xlu1 %2777  ;;  %v7871_v26 = vmax.f32 %v6680_v63, %v6684_v14  ;;  %v3129_v11 = vmul.f32 1.442695, %v2944_v48 }
 0x737   : > { %7863 = vst [vmem:[#allocation41_spill] sm:$0xff] %v6894_v20  ;;  %3299 = vadd.xlane.f32.xlu1 %v3298_v58  ;;  %v6898_v30 = vpop.eup %5090  ;;  %5110 = vpow2.f32 %v3077_v25  ;;  %v2941_v16 = vsub.f32 %v7867_v0, %v2778_v62  ;;  %v2942_v43 = vsub.f32 %v7868_v44, %v2778_v62  ;;  %v3340_v25 = vadd.f32 %v6894_v20, %v6891_v1  ;;  %v7873_v58 = vld [vmem:[#allocation26_spill] sm:$0xff]  ;;  %v2787_v44 = vpop.xlane.xlu0 %2786  ;;  %v7876_v20 = vld [vmem:[#allocation55_spill] sm:$0xff] }
 0x738   : > { %7865 = vst [vmem:[#allocation43_spill] sm:$0xff] %v6898_v30  ;;  %v6904_v45 = vpop.eup %5092  ;;  %5112 = vpow2.f32 %v3151_v39  ;;  %2882 = vmax.xlane.f32.xlu0 %v7871_v26  ;;  %v2959_v0 = vsub.f32 %v7873_v58, %v6727_v52  ;;  %v3153_v33 = vmul.f32 1.442695, %v2956_v8  ;;  %v3155_v1 = vmul.f32 1.442695, %v2957_v4  ;;  %v7877_v58 = vld [vmem:[#allocation57_spill] sm:$0xff] }
 0x739   : > { %7869 = vst [vmem:[#allocation44_spill] sm:$0xff] %v6904_v45  ;;  %v6913_v31 = vpop.eup %5094  ;;  %v3123_v62 = vmul.f32 1.442695, %v2941_v16  ;;  %v3125_v27 = vmul.f32 1.442695, %v2942_v43  ;;  %5114 = vpow2.f32 %v3127_v59  ;;  %v3343_v47 = vadd.f32 %v6904_v45, %v6898_v30  ;;  %v7880_v30 = vld [vmem:[#allocation59_spill] sm:$0xff] }
 0x73a   : > { %7872 = vst [vmem:[#allocation22_spill] sm:$0xff] %v6913_v31  ;;  %v6917_v39 = vpop.eup %5096  ;;  %v2784_v53 = vpop.xlane.xlu1 %2783  ;;  %v3157_v43 = vmul.f32 1.442695, %v2958_v61  ;;  %v2947_v8 = vsub.f32 %v7878_v54, %v2787_v44  ;;  %v2948_v45 = vsub.f32 %v7880_v30, %v2787_v44  ;;  %v3301_v54 = vadd.f32 %v6772_v34, %v6764_v32 }
 0x73b   : > { %7874 = vst [vmem:[#allocation45_spill] sm:$0xff] %v6917_v39  ;;  %3341 = vadd.xlane.f32.xlu1 %v3340_v25  ;;  %v6921_v26 = vpop.eup %5098  ;;  %5116 = vpow2.f32 %v3123_v62  ;;  %v2945_v23 = vsub.f32 %v7876_v20, %v2784_v53  ;;  %v2946_v48 = vsub.f32 %v7877_v58, %v2784_v53  ;;  %v3159_v25 = vmul.f32 1.442695, %v2959_v0  ;;  %v7882_v20 = vld [vmem:[#allocation27_spill] sm:$0xff]  ;;  %v7884_v58 = vld [vmem:[#allocation105_spill] sm:$0xff]  ;;  %v7887_v0 = vld [vmem:[#allocation28_spill] sm:$0xff] }
 0x73c   : > { %7875 = vst [vmem:[#allocation51_spill] sm:$0xff] %v6921_v26  ;;  %v6925_v16 = vpop.eup %5100  ;;  %5118 = vpow2.f32 %v3125_v27  ;;  %3344 = vadd.xlane.f32.xlu0 %v3343_v47  ;;  %v2960_v4 = vsub.f32 %v7882_v20, %v6727_v52  ;;  %v7883_v53 = vld [vmem:[#allocation103_spill] sm:$0xff]  ;;  %v2961_v30 = vsub.f32 %v7887_v0, %v6736_v21  ;;  %v3135_v20 = vmul.f32 1.442695, %v2947_v8  ;;  %v7893_v8 = vld [vmem:[#allocation61_spill] sm:$0xff] }
 0x73d   : > { %v6928_v59 = vpop.eup %5102  ;;  %5120 = vpow2.f32 %v3129_v11  ;;  %v3131_v62 = vmul.f32 1.442695, %v2945_v23  ;;  %v7885_v61 = vmax.f32 %v7883_v53, %v7884_v58  ;;  %v3133_v11 = vmul.f32 1.442695, %v2946_v48  ;;  %v7889_v23 = vld [vmem:[#allocation29_spill] sm:$0xff]  ;;  %v2841_v48 = vpop.xlane.xlu0 %2840 }
 0x73e   : > { %7879 = vst [vmem:[#allocation53_spill] sm:$0xff] %v6928_v59  ;;  %v6931_v14 = vpop.eup %5104  ;;  %5122 = vpow2.f32 %v3153_v33  ;;  %v2790_v44 = vpop.xlane.xlu1 %2789  ;;  %v2962_v47 = vsub.f32 %v7889_v23, %v6736_v21  ;;  %v3137_v0 = vmul.f32 1.442695, %v2948_v45  ;;  %v3163_v21 = vmul.f32 1.442695, %v2961_v30  ;;  %v7895_v45 = vld [vmem:[#allocation62_spill] sm:$0xff] }
 0x73f   : > { %7881 = vst [vmem:[#allocation23_spill] sm:$0xff] %v6931_v14  ;;  %2885 = vmax.xlane.f32.xlu1 %v7885_v61  ;;  %v6940_v27 = vpop.eup %5106  ;;  %5124 = vpow2.f32 %v3155_v1  ;;  %v3346_v33 = vadd.f32 %v6931_v14, %v6928_v59  ;;  %v7890_v1 = vld [vmem:[#allocation30_spill] sm:$0xff]  ;;  %v3161_v14 = vmul.f32 1.442695, %v2960_v4 }
 0x740   : > { %7886 = vst [vmem:[#allocation24_spill] sm:$0xff] %v6940_v27  ;;  %v6946_v52 = vpop.eup %5108  ;;  %5126 = vpow2.f32 %v3157_v43  ;;  %3302 = vadd.xlane.f32.xlu0 %v3301_v54  ;;  %v2963_v32 = vsub.f32 %v7890_v1, %v6738_v2  ;;  %v7892_v43 = vld [vmem:[#allocation60_spill] sm:$0xff]  ;;  %v2950_v54 = vsub.f32 %v7893_v8, %v2790_v44  ;;  %v3165_v23 = vmul.f32 1.442695, %v2962_v47 }
 0x741   : > { %7888 = vst [vmem:[#allocation47_spill] sm:$0xff] %v6946_v52  ;;  %v6950_v61 = vpop.eup %5110  ;;  %5128 = vpow2.f32 %v3159_v25  ;;  %v3349_v34 = vadd.f32 %v6946_v52, %v6940_v27  ;;  %v2949_v58 = vsub.f32 %v7892_v43, %v2790_v44  ;;  %v2983_v1 = vsub.f32 %v7895_v45, %v2841_v48  ;;  %v7901_v43 = vld [vmem:[#allocation32_spill] sm:$0xff] }
 0x742   : > { %v6956_v59 = vpop.eup %5112  ;;  %5130 = vpow2.f32 %v3131_v62  ;;  %v3304_v27 = vadd.f32 %v6795_v42, %v6774_v37  ;;  %v3167_v4 = vmul.f32 1.442695, %v2963_v32  ;;  %v7897_v62 = vld [vmem:[#allocation63_spill] sm:$0xff]  ;;  %v2965_v32 = vsub.f32 %v7901_v43, %v6768_v35  ;;  %v2844_v8 = vpop.xlane.xlu1 %2843 }
 0x743   : > { %7891 = vst [vmem:[#allocation49_spill] sm:$0xff] %v6956_v59  ;;  %3347 = vadd.xlane.f32.xlu1 %v3346_v33  ;;  %5132 = vpow2.f32 %v3133_v11  ;;  %v6960_v25 = vpop.eup %5114  ;;  %v2984_v33 = vsub.f32 %v7897_v62, %v2841_v48  ;;  %v7899_v11 = vld [vmem:[#allocation31_spill] sm:$0xff]  ;;  %v3139_v47 = vmul.f32 1.442695, %v2949_v58 }
 0x744   : > { %7894 = vst [vmem:[#allocation25_spill] sm:$0xff] %v6960_v25  ;;  %5134 = vpow2.f32 %v3135_v20  ;;  %3350 = vadd.xlane.f32.xlu0 %v3349_v34  ;;  %v2964_v44 = vsub.f32 %v7899_v11, %v6738_v2  ;;  %v3307_v34 = vadd.f32 %v6835_v12, %v6807_v15  ;;  %v7903_v2 = vld [vmem:[#allocation34_spill] sm:$0xff]  ;;  %v7907_v12 = vld [vmem:[#allocation65_spill] sm:$0xff] }
 0x745   : > { %v6965_v52 = vpop.eup %5116  ;;  %5136 = vpow2.f32 %v3137_v0  ;;  %v3141_v0 = vmul.f32 1.442695, %v2950_v54  ;;  %v2966_v58 = vsub.f32 %v7903_v2, %v6768_v35  ;;  %v3209_v11 = vmul.f32 1.442695, %v2984_v33  ;;  %v2847_v54 = vpop.xlane.xlu0 %2846 }
 0x746   : > { %7896 = vst [vmem:[#allocation26_spill] sm:$0xff] %v6965_v52  ;;  %v6968_v30 = vpop.eup %5118  ;;  %5138 = vpow2.f32 %v3161_v14  ;;  %v3169_v15 = vmul.f32 1.442695, %v2964_v44 }
 0x747   : > { %7898 = vst [vmem:[#allocation55_spill] sm:$0xff] %v6968_v30  ;;  %3305 = vadd.xlane.f32.xlu1 %v3304_v27  ;;  %v6974_v20 = vpop.eup %5120  ;;  %5140 = vpow2.f32 %v3163_v21  ;;  %v3352_v48 = vadd.f32 %v6968_v30, %v6965_v52  ;;  %v3207_v27 = vmul.f32 1.442695, %v2983_v1  ;;  %v7905_v21 = vld [vmem:[#allocation36_spill] sm:$0xff]  ;;  %v2985_v52 = vsub.f32 %v7907_v12, %v2844_v8 }
 0x748   : > { %7900 = vst [vmem:[#allocation57_spill] sm:$0xff] %v6974_v20  ;;  %v6980_v14 = vpop.eup %5122  ;;  %5142 = vpow2.f32 %v3165_v23  ;;  %3308 = vadd.xlane.f32.xlu0 %v3307_v34  ;;  %v2967_v62 = vsub.f32 %v7905_v21, %v6770_v46  ;;  %v3355_v35 = vadd.f32 %v6974_v20, %v6960_v25  ;;  %v3171_v1 = vmul.f32 1.442695, %v2965_v32  ;;  %v7911_v21 = vld [vmem:[#allocation67_spill] sm:$0xff]  ;;  %v2850_v32 = vpop.xlane.xlu1 %2849  ;;  %v7917_v20 = vld [vmem:[#allocation69_spill] sm:$0xff] }
 0x749   : > { %7902 = vst [vmem:[#allocation58_spill] sm:$0xff] %v6980_v14  ;;  %v6984_v45 = vpop.eup %5124  ;;  %5144 = vpow2.f32 %v3167_v4  ;;  %v7909_v4 = vld [vmem:[#allocation66_spill] sm:$0xff]  ;;  %v3173_v33 = vmul.f32 1.442695, %v2966_v58  ;;  %v2987_v30 = vsub.f32 %v7911_v21, %v2847_v54  ;;  %v3310_v12 = vadd.f32 %v6849_v6, %v6839_v50 }
 0x74a   : > { %7904 = vst [vmem:[#allocation59_spill] sm:$0xff] %v6984_v45  ;;  %v6988_v43 = vpop.eup %5126  ;;  %5146 = vpow2.f32 %v3139_v47  ;;  %v2986_v34 = vsub.f32 %v7909_v4, %v2844_v8  ;;  %v3175_v47 = vmul.f32 1.442695, %v2967_v62  ;;  %v7914_v8 = vld [vmem:[#allocation38_spill] sm:$0xff]  ;;  %v7915_v62 = vld [vmem:[#allocation40_spill] sm:$0xff]  ;;  %v2989_v50 = vsub.f32 %v7917_v20, %v2850_v32 }
 0x74b   : > { %7906 = vst [vmem:[#allocation27_spill] sm:$0xff] %v6988_v43  ;;  %3353 = vadd.xlane.f32.xlu1 %v3352_v48  ;;  %v6993_v23 = vpop.eup %5128  ;;  %5148 = vpow2.f32 %v3141_v0  ;;  %v7912_v48 = vld [vmem:[#allocation68_spill] sm:$0xff]  ;;  %v2968_v58 = vsub.f32 %v7914_v8, %v6770_v46 }
 0x74c   : > { %7908 = vst [vmem:[#allocation103_spill] sm:$0xff] %v6993_v23  ;;  %v6996_v2 = vpop.eup %5130  ;;  %5150 = vpow2.f32 %v3207_v27  ;;  %3356 = vadd.xlane.f32.xlu0 %v3355_v35  ;;  %v2988_v25 = vsub.f32 %v7912_v48, %v2847_v54  ;;  %v3211_v27 = vmul.f32 1.442695, %v2985_v52  ;;  %v3313_v35 = vadd.f32 %v6921_v26, %v6917_v39  ;;  %v2853_v54 = vpop.xlane.xlu0 %2852 }
 0x74d   : > { %7910 = vst [vmem:[#allocation28_spill] sm:$0xff] %v6996_v2  ;;  %v7001_v44 = vpop.eup %5132  ;;  %5152 = vpow2.f32 %v3209_v11  ;;  %v2969_v11 = vsub.f32 %v7915_v62, %v6801_v56  ;;  %v3213_v21 = vmul.f32 1.442695, %v2986_v34  ;;  %v3177_v34 = vmul.f32 1.442695, %v2968_v58  ;;  %v7919_v62 = vld [vmem:[#allocation71_spill] sm:$0xff] }
 0x74e   : > { %v7004_v0 = vpop.eup %5134  ;;  %5154 = vpow2.f32 %v3169_v15  ;;  %v3215_v15 = vmul.f32 1.442695, %v2987_v30  ;;  %v3358_v46 = vadd.f32 %v7001_v44, %v6996_v2  ;;  %v2991_v26 = vsub.f32 %v7919_v62, %v2853_v54 }
 0x74f   : > { %7913 = vst [vmem:[#allocation29_spill] sm:$0xff] %v7004_v0  ;;  %3311 = vadd.xlane.f32.xlu1 %v3310_v12  ;;  %v7010_v4 = vpop.eup %5136  ;;  %5156 = vpow2.f32 %v3171_v1  ;;  %v3217_v12 = vmul.f32 1.442695, %v2988_v25  ;;  %v7918_v1 = vld [vmem:[#allocation70_spill] sm:$0xff]  ;;  %v3219_v58 = vmul.f32 1.442695, %v2989_v50 }
 0x750   : > { %v7014_v48 = vpop.eup %5138  ;;  %5158 = vpow2.f32 %v3173_v33  ;;  %3314 = vadd.xlane.f32.xlu0 %v3313_v35  ;;  %v2990_v8 = vsub.f32 %v7918_v1, %v2850_v32  ;;  %v3361_v30 = vadd.f32 %v7010_v4, %v7004_v0  ;;  %v3179_v33 = vmul.f32 1.442695, %v2969_v11  ;;  %v7920_v35 = vld [vmem:[#allocation72_spill] sm:$0xff]  ;;  %v7922_v25 = vld [vmem:[#allocation42_spill] sm:$0xff] }
 0x751   : > { %7916 = vst [vmem:[#allocation30_spill] sm:$0xff] %v7014_v48  ;;  %v7019_v52 = vpop.eup %5140  ;;  %5160 = vpow2.f32 %v3175_v47  ;;  %v2992_v2 = vsub.f32 %v7920_v35, %v2853_v54  ;;  %v2970_v32 = vsub.f32 %v7922_v25, %v6801_v56  ;;  %v3223_v11 = vmul.f32 1.442695, %v2991_v26  ;;  %v7925_v26 = vld [vmem:[#allocation46_spill] sm:$0xff] }
 0x752   : > { %v7022_v39 = vpop.eup %5142  ;;  %5162 = vpow2.f32 %v3211_v27  ;;  %v3316_v27 = vadd.f32 %v6950_v61, %v6925_v16  ;;  %v3221_v1 = vmul.f32 1.442695, %v2990_v8  ;;  %v2859_v54 = vpop.xlane.xlu0 %2858  ;;  %v3367_v56 = vadd.f32 %v6880_v7, %v6853_v55 }
 0x753   : > { %3359 = vadd.xlane.f32.xlu1 %v3358_v46  ;;  %v7027_v20 = vpop.eup %5144  ;;  %5164 = vpow2.f32 %v3213_v21  ;;  %v2856_v21 = vpop.xlane.xlu1 %2855  ;;  %v3225_v50 = vmul.f32 1.442695, %v2992_v2  ;;  %v3181_v35 = vmul.f32 1.442695, %v2970_v32 }
 0x754   : > { %v7030_v47 = vpop.eup %5146  ;;  %5166 = vpow2.f32 %v3215_v15  ;;  %3362 = vadd.xlane.f32.xlu0 %v3361_v30 }
 0x755   : > { %7921 = vst [vmem:[#allocation60_spill] sm:$0xff] %v7030_v47  ;;  %v7036_v46 = vpop.eup %5148  ;;  %5168 = vpow2.f32 %v3217_v12 }
 0x756   : > { %v7038_v62 = vpop.eup %5150  ;;  %5170 = vpow2.f32 %v3177_v34  ;;  %v3364_v12 = vadd.f32 %v7036_v46, %v7030_v47  ;;  %v2973_v34 = vsub.f32 %v7925_v26, %v6845_v49  ;;  %v7933_v47 = vld [vmem:[#allocation76_spill] sm:$0xff] }
 0x757   : > { %7923 = vst [vmem:[#allocation61_spill] sm:$0xff] %v7038_v62  ;;  %3317 = vadd.xlane.f32.xlu1 %v3316_v27  ;;  %v7042_v15 = vpop.eup %5152  ;;  %5172 = vpow2.f32 %v3179_v33  ;;  %v7926_v33 = vsub.f32 %v6470_v17, %v6803_v29  ;;  %v7927_v27 = vld [vmem:[#allocation73_spill] sm:$0xff]  ;;  %v7930_v17 = vsub.f32 %v6474_v9, %v6803_v29  ;;  %v3373_v29 = vadd.f32 %v6980_v14, %v6956_v59 }
 0x758   : > { %7924 = vst [vmem:[#allocation62_spill] sm:$0xff] %v7042_v15  ;;  %v7044_v30 = vpop.eup %5154  ;;  %5174 = vpow2.f32 %v3219_v58  ;;  %3368 = vadd.xlane.f32.xlu0 %v3367_v56  ;;  %v2993_v32 = vsub.f32 %v7927_v27, %v2856_v21  ;;  %v7058_v58 = vpop.xlane.xlu1 %2861  ;;  %v3415_v56 = vadd.f32 %v7042_v15, %v7038_v62  ;;  %v3187_v15 = vmul.f32 1.442695, %v2973_v34 }
 0x759   : > { %v7048_v8 = vpop.eup %5156  ;;  %5176 = vpow2.f32 %v3221_v1  ;;  %v3183_v2 = vmul.f32 1.442695, %v7926_v33  ;;  %v7928_v1 = vld [vmem:[#allocation74_spill] sm:$0xff]  ;;  %v7931_v33 = vld [vmem:[#allocation75_spill] sm:$0xff] }
 0x75a   : > { %v7052_v25 = vpop.eup %5158  ;;  %5178 = vpow2.f32 %v3223_v11  ;;  %v3273_v55 = vpop.xlane.xlu0 %3272  ;;  %v2994_v26 = vsub.f32 %v7928_v1, %v2856_v21  ;;  %v3185_v11 = vmul.f32 1.442695, %v7930_v17  ;;  %v2995_v27 = vsub.f32 %v7931_v33, %v2859_v54 }
 0x75b   : > { %3365 = vadd.xlane.f32.xlu1 %v3364_v12  ;;  %v7062_v7 = vpop.eup %5160  ;;  %5180 = vpow2.f32 %v3225_v50  ;;  %v3370_v12 = vadd.f32 %v6913_v31, %v6887_v41  ;;  %v2996_v50 = vsub.f32 %v7933_v47, %v2859_v54  ;;  %v3227_v9 = vmul.f32 1.442695, %v2993_v32  ;;  %v7937_v47 = vld [vmem:[#allocation77_spill] sm:$0xff] }
 0x75c   : > { %v7065_v0 = vpop.eup %5162  ;;  %5182 = vpow2.f32 %v3181_v35  ;;  %3416 = vadd.xlane.f32.xlu0 %v3415_v56  ;;  %v7935_v35 = vld [vmem:[#allocation48_spill] sm:$0xff]  ;;  %v3229_v41 = vmul.f32 1.442695, %v2994_v26  ;;  %v2997_v54 = vsub.f32 %v7937_v47, %v7058_v58 }
 0x75d   : > { %7929 = vst [vmem:[#allocation63_spill] sm:$0xff] %v7065_v0  ;;  %v7073_v62 = vpop.eup %5164  ;;  %5184 = vrcp.f32 %v3273_v55  ;;  %v2974_v1 = vsub.f32 %v7935_v35, %v6845_v49  ;;  %v3231_v55 = vmul.f32 1.442695, %v2995_v27  ;;  %v3233_v32 = vmul.f32 1.442695, %v2996_v50  ;;  %v7942_v50 = vld [vmem:[#allocation80_spill] sm:$0xff] }
 0x75e   : > { %7932 = vst [vmem:[#allocation31_spill] sm:$0xff] %v7073_v62  ;;  %v7076_v21 = vpop.eup %5166  ;;  %5186 = vpow2.f32 %v3183_v2  ;;  %v3276_v56 = vpop.xlane.xlu1 %3275  ;;  %v3418_v49 = vadd.f32 %v7073_v62, %v7065_v0 }
 0x75f   : > { %7934 = vst [vmem:[#allocation32_spill] sm:$0xff] %v7076_v21  ;;  %3371 = vadd.xlane.f32.xlu1 %v3370_v12  ;;  %v2865_v17 = vpop.xlane.xlu0 %2864  ;;  %v7082_v33 = vpop.eup %5168  ;;  %5188 = vrcp.f32 %v3276_v56  ;;  %v3189_v35 = vmul.f32 1.442695, %v2974_v1  ;;  %v3376_v1 = vadd.f32 %v6988_v43, %v6984_v45  ;;  %v7947_v45 = vld [vmem:[#allocation88_spill] sm:$0xff] }
 0x760   : > { %7936 = vst [vmem:[#allocation34_spill] sm:$0xff] %v7082_v33  ;;  %v7084_v34 = vpop.eup %5170  ;;  %5190 = vpow2.f32 %v3185_v11  ;;  %3374 = vadd.xlane.f32.xlu0 %v3373_v29  ;;  %v3421_v26 = vadd.f32 %v7082_v33, %v7076_v21  ;;  %v7940_v29 = vld [vmem:[#allocation78_spill] sm:$0xff]  ;;  %v2999_v14 = vsub.f32 %v7942_v50, %v2865_v17  ;;  %v7945_v33 = vld [vmem:[#allocation84_spill] sm:$0xff] }
 0x761   : > { %v7090_v2 = vpop.eup %5172  ;;  %5192 = vpow2.f32 %v3187_v15  ;;  %v2998_v47 = vsub.f32 %v7940_v29, %v7058_v58  ;;  %v3235_v15 = vmul.f32 1.442695, %v2997_v54  ;;  %v3379_v58 = vadd.f32 %v7014_v48, %v6993_v23 }
 0x762   : > { %v7092_v12 = vpop.eup %5174  ;;  %5194 = vpow2.f32 %v3227_v9  ;;  %v2868_v11 = vpop.xlane.xlu1 %2867 }
 0x763   : > { %7938 = vst [vmem:[#allocation36_spill] sm:$0xff] %v7092_v12  ;;  %3419 = vadd.xlane.f32.xlu1 %v3418_v49  ;;  %v3279_v27 = vpop.xlane.xlu0 %3278  ;;  %v7096_v56 = vpop.eup %5176  ;;  %5196 = vpow2.f32 %v3229_v41  ;;  %v7944_v49 = vld [vmem:[#allocation82_spill] sm:$0xff]  ;;  %v3001_v41 = vsub.f32 %v7945_v33, %v2868_v11  ;;  %v3237_v29 = vmul.f32 1.442695, %v2998_v47 }
 0x764   : > { %7939 = vst [vmem:[#allocation65_spill] sm:$0xff] %v7096_v56  ;;  %v7100_v59 = vpop.eup %5178  ;;  %5198 = vpow2.f32 %v3231_v55  ;;  %3422 = vadd.xlane.f32.xlu0 %v3421_v26  ;;  %v3000_v21 = vsub.f32 %v7944_v49, %v2865_v17  ;;  %v3424_v50 = vadd.f32 %v7096_v56, %v7092_v12  ;;  %v3239_v17 = vmul.f32 1.442695, %v2999_v14  ;;  %v7946_v33 = vld [vmem:[#allocation86_spill] sm:$0xff]  ;;  %v7948_v56 = vld [vmem:[#allocation81_spill] sm:$0xff] }
 0x765   : > { %7941 = vst [vmem:[#allocation66_spill] sm:$0xff] %v7100_v59  ;;  %v7105_v9 = vpop.eup %5180  ;;  %5200 = vpow2.f32 %v3233_v32  ;;  %v3002_v49 = vsub.f32 %v7946_v33, %v2868_v11  ;;  %v3243_v48 = vmul.f32 1.442695, %v3001_v41  ;;  %v7949_v14 = vld [vmem:[#allocation85_spill] sm:$0xff]  ;;  %v7950_v11 = vld [vmem:[#allocation79_spill] sm:$0xff] }
 0x766   : > { %7943 = vst [vmem:[#allocation67_spill] sm:$0xff] %v7105_v9  ;;  %v7109_v0 = vpop.eup %5182  ;;  %5202 = vpow2.f32 %v3189_v35  ;;  %v3282_v55 = vpop.xlane.xlu1 %3281  ;;  %v3427_v35 = vadd.f32 %v7105_v9, %v7100_v59  ;;  %v3241_v23 = vmul.f32 1.442695, %v3000_v21  ;;  %v7951_v33 = vld [vmem:[#allocation83_spill] sm:$0xff]  ;;  %v7952_v21 = vld [vmem:[#allocation90_spill] sm:$0xff] }
 0x767   : > { %3377 = vadd.xlane.f32.xlu1 %v3376_v1  ;;  %v2871_v54 = vpop.xlane.xlu0 %2870  ;;  %v5185_v26 = vpop.eup %5184  ;;  %5204 = vrcp.f32 %v3279_v27 }
 0x768   : > { %v7115_v32 = vpop.eup %5186  ;;  %5206 = vpow2.f32 %v3235_v15  ;;  %3380 = vadd.xlane.f32.xlu0 %v3379_v58  ;;  %v3003_v47 = vsub.f32 %v7947_v45, %v2871_v54  ;;  %v3528_v15 = vmul.f32 %v5185_v26, %v7948_v56  ;;  %v3527_v58 = vmul.f32 %v5185_v26, %v7950_v11 }
 0x769   : > { %v5189_v1 = vpop.eup %5188  ;;  %5208 = vrcp.f32 %v3282_v55  ;;  %v3004_v41 = vsub.f32 %v7952_v21, %v2871_v54  ;;  %v3382_v45 = vadd.f32 %v7022_v39, %v7019_v52  ;;  %v3385_v54 = vadd.f32 %v7044_v30, %v7027_v20  ;;  %v7956_v21 = vld [vmem:[#allocation94_spill] sm:$0xff] }
 0x76a   : > { %v7121_v27 = vpop.eup %5190  ;;  %v7123_v12 = vpop.xlane.xlu1 %2873  ;;  %v3530_v43 = vmul.f32 %v5189_v1, %v7949_v14  ;;  %v3529_v62 = vmul.f32 %v5189_v1, %v7951_v33  ;;  %5210 = vpow2.f32 %v3237_v29  ;;  %v3247_v29 = vmul.f32 1.442695, %v3003_v47 }
 0x76b   : > { %3425 = vadd.xlane.f32.xlu1 %v3424_v50  ;;  %v7129_v59 = vpop.eup %5192  ;;  %5212 = vpow2.f32 %v3239_v17  ;;  %v3245_v50 = vmul.f32 1.442695, %v3002_v49  ;;  %v3285_v56 = vpop.xlane.xlu0 %3284  ;;  %v3249_v17 = vmul.f32 1.442695, %v3004_v41  ;;  %v7954_v49 = vld [vmem:[#allocation92_spill] sm:$0xff]  ;;  %v3006_v41 = vsub.f32 %v7956_v21, %v7123_v12 }
 0x76c   : > { %v7134_v55 = vpop.eup %5194  ;;  %3428 = vadd.xlane.f32.xlu0 %v3427_v35  ;;  %v4739_v9 = vpack.c.bf16 %v3530_v43, %v3528_v15  ;;  %v4741_v14 = vpack.c.bf16 %v3529_v62, %v3527_v58  ;;  %5214 = vpow2.f32 %v3241_v23  ;;  %v7955_v58 = vsub.f32 %v7843_v19, %v6847_v38 }
 0x76d   : > { %v7136_v31 = vpop.eup %5196  ;;  %5216 = vpow2.f32 %v3243_v48  ;;  %v7961_v19 = vsub.f32 %v7845_v5, %v6847_v38  ;;  %v3253_v5 = vmul.f32 1.442695, %v3006_v41 }
 0x76e   : > { %v7138_v26 = vpop.eup %5198  ;;  %v3288_v1 = vpop.xlane.xlu1 %3287  ;;  %4740 = vmatprep.subr.bf16.mxu0 %v4739_v9  ;;  %5218 = vrcp.f32 %v3285_v56  ;;  %v3430_v23 = vadd.f32 %v7136_v31, %v7134_v55  ;;  %v3005_v9 = vsub.f32 %v7954_v49, %v7123_v12  ;;  %v3191_v33 = vmul.f32 1.442695, %v7955_v58 }
 0x76f   : > { %7953 = vst [vmem:[#allocation68_spill] sm:$0xff] %v7138_v26  ;;  %3383 = vadd.xlane.f32.xlu1 %v3382_v45  ;;  %v7142_v11 = vpop.eup %5200  ;;  %4742 = vmatpush1.bf16.xpose.msra.mxu0 %v4741_v14  ;;  %5220 = vpow2.f32 %v3245_v50  ;;  %v3388_v45 = vadd.f32 %v7052_v25, %v7048_v8  ;;  %v7957_v50 = vld [vmem:[#allocation89_spill] sm:$0xff]  ;;  %v3391_v12 = vadd.f32 %v7084_v34, %v7062_v7 }
 0x770   : > { %v7144_v43 = vpop.eup %5202  ;;  %3386 = vadd.xlane.f32.xlu0 %v3385_v54  ;;  %5222 = vrcp.f32 %v3288_v1  ;;  %v3433_v35 = vadd.f32 %v7142_v11, %v7138_v26  ;;  %v7958_v14 = vld [vmem:[#allocation93_spill] sm:$0xff]  ;;  %v7959_v54 = vld [vmem:[#allocation87_spill] sm:$0xff] }
 0x771   : > { %v5205_v48 = vpop.eup %5204  ;;  %5224 = vpow2.f32 %v3247_v29 }
 0x772   : > { %v7148_v62 = vpop.eup %5206  ;;  %v3291_v47 = vpop.xlane.xlu0 %3290  ;;  %5226 = vpow2.f32 %v3249_v17  ;;  %v3532_v56 = vmul.f32 %v5205_v48, %v7957_v50  ;;  %v3531_v1 = vmul.f32 %v5205_v48, %v7959_v54  ;;  %v3193_v17 = vmul.f32 1.442695, %v7961_v19 }
 0x773   : > { %3431 = vadd.xlane.f32.xlu1 %v3430_v23  ;;  %v5209_v15 = vpop.eup %5208  ;;  %v7960_v23 = vld [vmem:[#allocation91_spill] sm:$0xff]  ;;  %5228 = vrcp.f32 %v3291_v47  ;;  %v3251_v50 = vmul.f32 1.442695, %v3005_v9 }
 0x774   : > { %3434 = vadd.xlane.f32.xlu0 %v3433_v35  ;;  %v3534_v29 = vmul.f32 %v5209_v15, %v7958_v14  ;;  %v3533_v49 = vmul.f32 %v5209_v15, %v7960_v23  ;;  %v7165_v26 = vpop.eup %5210  ;;  %v7963_v35 = vld [vmem:[#allocation54_spill] sm:$0xff]  ;;  %v7964_v23 = vld [vmem:[#allocation56_spill] sm:$0xff] }
 0x775   : > { %v7172_v58 = vpop.eup %5212  ;;  %v2977_v21 = vsub.f32 %v7963_v35, %v6884_v28  ;;  %v2978_v38 = vsub.f32 %v7964_v23, %v6884_v28  ;;  %v3436_v19 = vadd.f32 %v7165_v26, %v7148_v62 }
 0x776   : > { %7962 = vst [vmem:[#allocation38_spill] sm:$0xff] %v7172_v58  ;;  %v3294_v48 = vpop.xlane.xlu1 %3293  ;;  %v4743_v14 = vpack.c.bf16 %v3534_v29, %v3532_v56  ;;  %v4745_v15 = vpack.c.bf16 %v3533_v49, %v3531_v1  ;;  %v7176_v54 = vpop.eup %5214  ;;  %v7965_v49 = vld [vmem:[#allocation96_spill] sm:$0xff] }
 0x777   : > { %3389 = vadd.xlane.f32.xlu1 %v3388_v45  ;;  %5230 = vrcp.f32 %v3294_v48  ;;  %v7180_v47 = vpop.eup %5216  ;;  %v3195_v56 = vmul.f32 1.442695, %v2977_v21  ;;  %v3439_v28 = vadd.f32 %v7176_v54, %v7172_v58  ;;  %v3197_v29 = vmul.f32 1.442695, %v2978_v38  ;;  %v7967_v48 = vld [vmem:[#allocation95_spill] sm:$0xff] }
 0x778   : > { %5232 = vpow2.f32 %v3191_v33  ;;  %3392 = vadd.xlane.f32.xlu0 %v3391_v12  ;;  %4744 = vmatprep.subr.bf16.mxu0 %v4743_v14  ;;  %v5219_v9 = vpop.eup %5218  ;;  %v3394_v33 = vadd.f32 %v7109_v0, %v7090_v2  ;;  %v7966_v12 = vld [vmem:[#allocation98_spill] sm:$0xff]  ;;  %v3397_v38 = vadd.f32 %v7121_v27, %v7115_v32 }
 0x779   : > { %5234 = vpow2.f32 %v3193_v17  ;;  %4746 = vmatpush1.bf16.xpose.msra.mxu0 %v4745_v15  ;;  %v7184_v45 = vpop.eup %5220  ;;  %v3536_v17 = vmul.f32 %v5219_v9, %v7965_v49  ;;  %v3535_v21 = vmul.f32 %v5219_v9, %v7967_v48  ;;  %v1715_v15 = vld [vmem:[#allocation4 + $0x8] sm:$0xff]  ;;  %v7972_v48 = vld [vmem:[#allocation102_spill] sm:$0xff] }
 0x77a   : > { %5236 = vpow2.f32 %v3251_v50  ;;  %v5223_v41 = vpop.eup %5222  ;;  %v7968_v50 = vld [vmem:[#allocation97_spill] sm:$0xff]  ;;  %3719 = vmatprep.mubr.f32.mxu0 %v1715_v15  ;;  %v3442_v9 = vadd.f32 %v7184_v45, %v7180_v47 }
 0x77b   : > { %3437 = vadd.xlane.f32.xlu1 %v3436_v19  ;;  %5238 = vpow2.f32 %v3253_v5  ;;  %v7190_v1 = vpop.eup %5224  ;;  %v3538_v35 = vmul.f32 %v5223_v41, %v7966_v12  ;;  %v3537_v14 = vmul.f32 %v5223_v41, %v7968_v50  ;;  %v7971_v12 = vld [vmem:[#allocation104_spill] sm:$0xff]  ;;  %v7973_v50 = vld [vmem:[#allocation99_spill] sm:$0xff] }
 0x77c   : > { %3440 = vadd.xlane.f32.xlu0 %v3439_v28  ;;  %v7196_v23 = vpop.eup %5226  ;;  %5240 = vpow2.f32 %v3195_v56  ;;  %v1719_v28 = vld [vmem:[#allocation4 + $0x28] sm:$0xff] }
 0x77d   : > { %v4747_v5 = vpack.c.bf16 %v3538_v35, %v3536_v17  ;;  %v4749_v19 = vpack.c.bf16 %v3537_v14, %v3535_v21  ;;  %v5229_v58 = vpop.eup %5228  ;;  %5242 = vpow2.f32 %v3197_v29  ;;  %3794 = vmatprep.mubr.f32.mxu1 %v1719_v28  ;;  %v3445_v56 = vadd.f32 %v7196_v23, %v7190_v1 }
 0x77e   : > { %v3539_v14 = vmul.f32 %v5229_v58, %v7973_v50 }
 0x77f   : > { %3395 = vadd.xlane.f32.xlu1 %v3394_v33  ;;  %4748 = vmatprep.subr.bf16.mxu0 %v4747_v5  ;;  %v7970_v33 = vld [vmem:[#allocation100_spill] sm:$0xff] }
 0x780   : > { %3398 = vadd.xlane.f32.xlu0 %v3397_v38  ;;  %v3540_v17 = vmul.f32 %v5229_v58, %v7970_v33  ;;  %v3400_v38 = vadd.f32 %v7144_v43, %v7129_v59 }
 0x781   : > { %v5231_v41 = vpop.eup %5230  ;;  %4750 = vmatpush1.bf16.xpose.msra.mxu0 %v4749_v19 }
 0x782   : > { %v7202_v49 = vpop.eup %5232  ;;  %v3542_v35 = vmul.f32 %v5231_v41, %v7971_v12  ;;  %v3541_v29 = vmul.f32 %v5231_v41, %v7972_v48 }
 0x783   : > { %7969 = vst [vmem:[#allocation40_spill] sm:$0xff] %v7202_v49  ;;  %3443 = vadd.xlane.f32.xlu1 %v3442_v9  ;;  %v7209_v21 = vpop.eup %5234 }
 0x784   : > { %v7212_v15 = vpop.eup %5236  ;;  %3446 = vadd.xlane.f32.xlu0 %v3445_v56  ;;  %v4751_v5 = vpack.c.bf16 %v3542_v35, %v3540_v17  ;;  %v4753_v28 = vpack.c.bf16 %v3541_v29, %v3539_v14  ;;  %v3403_v9 = vadd.f32 %v7209_v21, %v7202_v49 }
 0x785   : > { %v7216_v19 = vpop.eup %5238 }
 0x786   : > { %4752 = vmatprep.subr.bf16.mxu0 %v4751_v5  ;;  %v7220_v41 = vpop.eup %5240  ;;  %v3448_v58 = vadd.f32 %v7216_v19, %v7212_v15 }
 0x787   : > { %3401 = vadd.xlane.f32.xlu1 %v3400_v38  ;;  %7974 = vst [vmem:[#allocation69_spill] sm:$0xff] %v7220_v41  ;;  %v7224_v33 = vpop.eup %5242 }
 0x788   : > { %3404 = vadd.xlane.f32.xlu0 %v3403_v9  ;;  %v3406_v56 = vadd.f32 %v7224_v33, %v7220_v41 }
 0x789   : > { %4754 = vmatpush1.bf16.xpose.msra.mxu0 %v4753_v28 }
 0x78b   : > { %3449 = vadd.xlane.f32.xlu1 %v3448_v58 }
 0x78f   : > { %3407 = vadd.xlane.f32.xlu1 %v3406_v56 }
 0x7a6   : > { %v3321_v17 = vpop.xlane.xlu0 %3320 }
 0x7a7   : > { %5244 = vrcp.f32 %v3321_v17 }
 0x7aa   : > { %v2877_v12 = vpop.xlane.xlu0 %2876 }
 0x7ab   : > { %v3007_v35 = vsub.f32 %v6656_v10, %v2877_v12  ;;  %v3008_v48 = vsub.f32 %v6660_v24, %v2877_v12 }
 0x7ad   : > { %v3255_v29 = vmul.f32 1.442695, %v3007_v35  ;;  %v3257_v50 = vmul.f32 1.442695, %v3008_v48 }
 0x7ae   : > { %v3324_v14 = vpop.xlane.xlu1 %3323 }
 0x7af   : > { %5246 = vpow2.f32 %v3255_v29 }
 0x7b0   : > { %5248 = vpow2.f32 %v3257_v50  ;;  %v3327_v38 = vpop.xlane.xlu0 %3326 }
 0x7b1   : > { %5250 = vrcp.f32 %v3324_v14  ;;  %v5245_v48 = vpop.eup %5244 }
 0x7b2   : > { %v2880_v5 = vpop.xlane.xlu1 %2879  ;;  %5252 = vrcp.f32 %v3327_v38 }
 0x7b3   : > { %v3009_v28 = vsub.f32 %v6668_v22, %v2880_v5  ;;  %v3010_v9 = vsub.f32 %v6672_v13, %v2880_v5 }
 0x7b4   : > { %v2835_v58 = vpop.xlane.xlu0 %2834 }
 0x7b5   : > { %v3259_v56 = vmul.f32 1.442695, %v3009_v28  ;;  %v3261_v41 = vmul.f32 1.442695, %v3010_v9  ;;  %v2979_v10 = vsub.f32 %v6524_v36, %v2835_v58  ;;  %v2980_v24 = vsub.f32 %v6528_v40, %v2835_v58  ;;  %v7977_v58 = vld [vmem:[#allocation112_spill] sm:$0xff] }
 0x7b6   : > { %v3330_v12 = vpop.xlane.xlu1 %3329  ;;  %v3559_v9 = vmul.f32 %v5245_v48, %v6742_v51 }
 0x7b7   : > { %5254 = vpow2.f32 %v3259_v56  ;;  %v3199_v17 = vmul.f32 1.442695, %v2979_v10  ;;  %v3201_v35 = vmul.f32 1.442695, %v2980_v24 }
 0x7b8   : > { %5256 = vpow2.f32 %v3261_v41  ;;  %v3333_v29 = vpop.xlane.xlu0 %3332  ;;  %v3560_v41 = vmul.f32 %v5245_v48, %v6744_v60 }
 0x7b9   : > { %v7234_v50 = vpop.eup %5246  ;;  %5258 = vpow2.f32 %v3199_v17 }
 0x7ba   : > { %7975 = vst [vmem:[#allocation70_spill] sm:$0xff] %v7234_v50  ;;  %v7236_v22 = vpop.eup %5248  ;;  %5260 = vpow2.f32 %v3201_v35 }
 0x7bb   : > { %7976 = vst [vmem:[#allocation71_spill] sm:$0xff] %v7236_v22  ;;  %v5251_v14 = vpop.eup %5250  ;;  %5262 = vrcp.f32 %v3330_v12  ;;  %v3451_v38 = vadd.f32 %v7236_v22, %v7234_v50  ;;  %v7997_v22 = vld [vmem:[#allocation108_spill] sm:$0xff] }
 0x7bc   : > { %v2838_v13 = vpop.xlane.xlu1 %2837  ;;  %v3562_v28 = vmul.f32 %v5251_v14, %v6778_v57  ;;  %v3561_v56 = vmul.f32 %v5251_v14, %v7977_v58  ;;  %5264 = vrcp.f32 %v3333_v29  ;;  %v5253_v17 = vpop.eup %5252 }
 0x7bd   : > { %v2981_v36 = vsub.f32 %v6542_v3, %v2838_v13  ;;  %v2982_v40 = vsub.f32 %v7849_v18, %v2838_v13  ;;  %v3297_v5 = vpop.xlane.xlu0 %3296  ;;  %3452 = vadd.xlane.f32.xlu0 %v3451_v38  ;;  %v7982_v38 = vld [vmem:[#allocation101_spill] sm:$0xff] }
 0x7be   : > { %5266 = vrcp.f32 %v3297_v5  ;;  %v4771_v12 = vpack.c.bf16 %v3562_v28, %v3560_v41  ;;  %v4773_v18 = vpack.c.bf16 %v3561_v56, %v3559_v9  ;;  %v7983_v9 = vld [vmem:[#allocation114_spill] sm:$0xff]  ;;  %v7984_v56 = vld [vmem:[#allocation117_spill] sm:$0xff] }
 0x7bf   : > { %v3203_v10 = vmul.f32 1.442695, %v2981_v36  ;;  %v3205_v24 = vmul.f32 1.442695, %v2982_v40  ;;  %v3564_v58 = vmul.f32 %v5253_v17, %v7983_v9 }
 0x7c0   : > { %v3336_v3 = vpop.xlane.xlu1 %3335  ;;  %4772 = vmatprep.subr.bf16.mxu1 %v4771_v12  ;;  %v7986_v12 = vld [vmem:[#allocation116_spill] sm:$0xff] }
 0x7c1   : > { %5268 = vpow2.f32 %v3203_v10  ;;  %v3339_v35 = vpop.xlane.xlu0 %3338  ;;  %v7246_v60 = vpop.eup %5254  ;;  %4774 = vmatpush1.bf16.xpose.msra.mxu1 %v4773_v18 }
 0x7c2   : > { %5270 = vpow2.f32 %v3205_v24  ;;  %7978 = vst [vmem:[#allocation72_spill] sm:$0xff] %v7246_v60  ;;  %v7248_v51 = vpop.eup %5256  ;;  %v7985_v24 = vld [vmem:[#allocation113_spill] sm:$0xff] }
 0x7c3   : > { %5272 = vrcp.f32 %v3336_v3  ;;  %7979 = vst [vmem:[#allocation42_spill] sm:$0xff] %v7248_v51  ;;  %v7250_v48 = vpop.eup %5258  ;;  %v3454_v29 = vadd.f32 %v7248_v51, %v7246_v60  ;;  %v3563_v3 = vmul.f32 %v5253_v17, %v7985_v24 }
 0x7c4   : > { %v3300_v57 = vpop.xlane.xlu1 %3299  ;;  %7980 = vst [vmem:[#allocation46_spill] sm:$0xff] %v7250_v48  ;;  %v7254_v13 = vpop.eup %5260 }
 0x7c5   : > { %5274 = vrcp.f32 %v3300_v57  ;;  %7981 = vst [vmem:[#allocation73_spill] sm:$0xff] %v7254_v13  ;;  %v2883_v14 = vpop.xlane.xlu0 %2882  ;;  %v5263_v36 = vpop.eup %5262  ;;  %3455 = vadd.xlane.f32.xlu1 %v3454_v29  ;;  %v3409_v41 = vadd.f32 %v7254_v13, %v7250_v48 }
 0x7c6   : > { %5276 = vrcp.f32 %v3339_v35  ;;  %v3011_v40 = vsub.f32 %v6680_v63, %v2883_v14  ;;  %v3012_v5 = vsub.f32 %v7982_v38, %v2883_v14  ;;  %v3566_v10 = vmul.f32 %v5263_v36, %v7984_v56  ;;  %v5265_v57 = vpop.eup %5264 }
 0x7c7   : > { %v3565_v18 = vmul.f32 %v5263_v36, %v7986_v12  ;;  %3410 = vadd.xlane.f32.xlu0 %v3409_v41  ;;  %v7993_v12 = vld [vmem:[#allocation39_spill] sm:$0xff] }
 0x7c8   : > { %v3342_v28 = vpop.xlane.xlu1 %3341  ;;  %v3263_v60 = vmul.f32 1.442695, %v3011_v40  ;;  %v3265_v35 = vmul.f32 1.442695, %v3012_v5  ;;  %v5267_v63 = vpop.eup %5266  ;;  %v4775_v14 = vpack.c.bf16 %v3566_v10, %v3564_v58  ;;  %v7989_v40 = vld [vmem:[#allocation105_spill] sm:$0xff]  ;;  %v7991_v10 = vld [vmem:[#allocation19_spill] sm:$0xff] }
 0x7c9   : > { %5278 = vrcp.f32 %v3342_v28  ;;  %v3345_v29 = vpop.xlane.xlu0 %3344  ;;  %v4777_v38 = vpack.c.bf16 %v3565_v18, %v3563_v3  ;;  %v7990_v28 = vld [vmem:[#allocation33_spill] sm:$0xff] }
 0x7ca   : > { %5280 = vpow2.f32 %v3263_v60  ;;  %4776 = vmatprep.subr.bf16.mxu1 %v4775_v14  ;;  %v3568_v58 = vmul.f32 %v5265_v57, %v7990_v28  ;;  %v7992_v60 = vld [vmem:[#allocation118_spill] sm:$0xff]  ;;  %v7996_v28 = vld [vmem:[#allocation109_spill] sm:$0xff] }
 0x7cb   : > { %v7264_v50 = vpop.eup %5268  ;;  %5282 = vpow2.f32 %v3265_v35  ;;  %4778 = vmatpush1.bf16.xpose.msra.mxu1 %v4777_v38  ;;  %v3567_v3 = vmul.f32 %v5265_v57, %v7992_v60  ;;  %v7994_v35 = vld [vmem:[#allocation107_spill] sm:$0xff] }
 0x7cc   : > { %7987 = vst [vmem:[#allocation74_spill] sm:$0xff] %v7264_v50  ;;  %v7266_v48 = vpop.eup %5270  ;;  %v2886_v9 = vpop.xlane.xlu1 %2885  ;;  %v3544_v14 = vmul.f32 %v5267_v63, %v7994_v35  ;;  %5284 = vrcp.f32 %v3345_v29 }
 0x7cd   : > { %7988 = vst [vmem:[#allocation75_spill] sm:$0xff] %v7266_v48  ;;  %v5273_v17 = vpop.eup %5272  ;;  %v3013_v36 = vsub.f32 %v7883_v53, %v2886_v9  ;;  %v3014_v5 = vsub.f32 %v7989_v40, %v2886_v9  ;;  %v3412_v41 = vadd.f32 %v7266_v48, %v7264_v50  ;;  %v3303_v56 = vpop.xlane.xlu0 %3302  ;;  %v7995_v9 = vld [vmem:[#allocation106_spill] sm:$0xff] }
 0x7ce   : > { %v3570_v24 = vmul.f32 %v5273_v17, %v7991_v10  ;;  %v3569_v18 = vmul.f32 %v5273_v17, %v7993_v12  ;;  %v3543_v40 = vmul.f32 %v5267_v63, %v7995_v9  ;;  %5286 = vrcp.f32 %v3303_v56  ;;  %v7998_v63 = vld [vmem:[#allocation50_spill] sm:$0xff]  ;;  %v7999_v56 = vld [vmem:[#allocation41_spill] sm:$0xff]  ;;  %v8001_v12 = vld [vmem:[#allocation20_spill] sm:$0xff] }
 0x7cf   : > { %v5275_v13 = vpop.eup %5274  ;;  %v3267_v38 = vmul.f32 1.442695, %v3013_v36  ;;  %v3269_v53 = vmul.f32 1.442695, %v3014_v5  ;;  %3413 = vadd.xlane.f32.xlu1 %v3412_v41 }
 0x7d0   : > { %v3348_v50 = vpop.xlane.xlu1 %3347  ;;  %v4779_v48 = vpack.c.bf16 %v3570_v24, %v3568_v58  ;;  %v3546_v51 = vmul.f32 %v5275_v13, %v7996_v28  ;;  %v3545_v10 = vmul.f32 %v5275_v13, %v7997_v22  ;;  %v5277_v49 = vpop.eup %5276  ;;  %v4781_v57 = vpack.c.bf16 %v3569_v18, %v3567_v3  ;;  %v8000_v22 = vld [vmem:[#allocation64_spill] sm:$0xff] }
 0x7d1   : > { %5288 = vpow2.f32 %v3267_v38  ;;  %v3351_v17 = vpop.xlane.xlu0 %3350  ;;  %v3572_v41 = vmul.f32 %v5277_v49, %v7998_v63  ;;  %v3571_v18 = vmul.f32 %v5277_v49, %v8001_v12  ;;  %v8004_v63 = vld [vmem:[#allocation53_spill] sm:$0xff] }
 0x7d2   : > { %5290 = vpow2.f32 %v3269_v53  ;;  %4780 = vmatprep.subr.bf16.mxu1 %v4779_v48  ;;  %v4755_v60 = vpack.c.bf16 %v3546_v51, %v3544_v14  ;;  %v4757_v29 = vpack.c.bf16 %v3545_v10, %v3543_v40 }
 0x7d3   : > { %v5279_v36 = vpop.eup %5278  ;;  %5292 = vrcp.f32 %v3348_v50  ;;  %4782 = vmatpush1.bf16.xpose.msra.mxu1 %v4781_v57 }
 0x7d4   : > { %v3306_v5 = vpop.xlane.xlu1 %3305  ;;  %4756 = vmatprep.subr.bf16.mxu0 %v4755_v60  ;;  %v3574_v58 = vmul.f32 %v5279_v36, %v7999_v56  ;;  %v7282_v24 = vpop.eup %5280  ;;  %v3573_v13 = vmul.f32 %v5279_v36, %v8000_v22  ;;  %v8002_v60 = vld [vmem:[#allocation44_spill] sm:$0xff]  ;;  %v8003_v36 = vld [vmem:[#allocation23_spill] sm:$0xff] }
 0x7d5   : > { %5294 = vrcp.f32 %v3306_v5  ;;  %4758 = vmatpush1.bf16.xpose.msra.mxu0 %v4757_v29  ;;  %v7285_v3 = vpop.eup %5282  ;;  %v3309_v48 = vpop.xlane.xlu0 %3308 }
 0x7d6   : > { %v4783_v51 = vpack.c.bf16 %v3574_v58, %v3572_v41  ;;  %5296 = vrcp.f32 %v3351_v17  ;;  %v3457_v50 = vadd.f32 %v7285_v3, %v7282_v24  ;;  %v5285_v14 = vpop.eup %5284  ;;  %v4785_v38 = vpack.c.bf16 %v3573_v13, %v3571_v18  ;;  %v8005_v58 = vld [vmem:[#allocation43_spill] sm:$0xff]  ;;  %v8007_v18 = vld [vmem:[#allocation110_spill] sm:$0xff] }
 0x7d7   : > { %v3576_v29 = vmul.f32 %v5285_v14, %v8002_v60  ;;  %v3575_v22 = vmul.f32 %v5285_v14, %v8005_v58  ;;  %v8006_v13 = vld [vmem:[#allocation111_spill] sm:$0xff] }
 0x7d8   : > { %v3354_v35 = vpop.xlane.xlu1 %3353  ;;  %4784 = vmatprep.subr.bf16.mxu1 %v4783_v51  ;;  %3458 = vadd.xlane.f32.xlu0 %v3457_v50  ;;  %v5287_v53 = vpop.eup %5286 }
 0x7d9   : > { %5298 = vrcp.f32 %v3354_v35  ;;  %v3357_v9 = vpop.xlane.xlu0 %3356  ;;  %v3547_v35 = vmul.f32 %v5287_v53, %v8007_v18  ;;  %v8013_v18 = vld [vmem:[#allocation115_spill] sm:$0xff] }
 0x7da   : > { %5300 = vrcp.f32 %v3309_v48  ;;  %v3548_v48 = vmul.f32 %v5287_v53, %v8006_v13  ;;  %v8011_v13 = vld [vmem:[#allocation24_spill] sm:$0xff] }
 0x7db   : > { %v7290_v40 = vpop.eup %5288  ;;  %4786 = vmatpush1.bf16.xpose.msra.mxu1 %v4785_v38 }
 0x7dc   : > { %v7292_v28 = vpop.eup %5290  ;;  %v3312_v10 = vpop.xlane.xlu1 %3311 }
 0x7dd   : > { %v5293_v57 = vpop.eup %5292  ;;  %5302 = vrcp.f32 %v3312_v10  ;;  %v3460_v49 = vadd.f32 %v7292_v28, %v7290_v40  ;;  %v3315_v17 = vpop.xlane.xlu0 %3314 }
 0x7de   : > { %v3578_v5 = vmul.f32 %v5293_v57, %v8003_v36  ;;  %v3577_v41 = vmul.f32 %v5293_v57, %v8004_v63  ;;  %5304 = vrcp.f32 %v3357_v9  ;;  %v8008_v63 = vld [vmem:[#allocation47_spill] sm:$0xff] }
 0x7df   : > { %v5295_v56 = vpop.eup %5294  ;;  %3461 = vadd.xlane.f32.xlu1 %v3460_v49 }
 0x7e0   : > { %v3360_v51 = vpop.xlane.xlu1 %3359  ;;  %v4787_v50 = vpack.c.bf16 %v3578_v5, %v3576_v29  ;;  %v3550_v12 = vmul.f32 %v5295_v56, %v6795_v42  ;;  %v3549_v38 = vmul.f32 %v5295_v56, %v6774_v37  ;;  %v5297_v10 = vpop.eup %5296  ;;  %v4789_v60 = vpack.c.bf16 %v3577_v41, %v3575_v22  ;;  %v8009_v29 = vld [vmem:[#allocation55_spill] sm:$0xff]  ;;  %v8010_v37 = vld [vmem:[#allocation26_spill] sm:$0xff] }
 0x7e1   : > { %5306 = vrcp.f32 %v3360_v51  ;;  %v3363_v57 = vpop.xlane.xlu0 %3362  ;;  %v3580_v58 = vmul.f32 %v5297_v10, %v8008_v63 }
 0x7e2   : > { %4788 = vmatprep.subr.bf16.mxu1 %v4787_v50  ;;  %v4759_v36 = vpack.c.bf16 %v3550_v12, %v3548_v48  ;;  %v4761_v9 = vpack.c.bf16 %v3549_v38, %v3547_v35  ;;  %5308 = vrcp.f32 %v3315_v17  ;;  %v3579_v48 = vmul.f32 %v5297_v10, %v8011_v13  ;;  %v8012_v17 = vld [vmem:[#allocation35_spill] sm:$0xff]  ;;  %v8014_v38 = vld [vmem:[#allocation37_spill] sm:$0xff] }
 0x7e3   : > { %v5299_v49 = vpop.eup %5298  ;;  %4790 = vmatpush1.bf16.xpose.msra.mxu1 %v4789_v60  ;;  %v8015_v10 = vld [vmem:[#allocation57_spill] sm:$0xff] }
 0x7e4   : > { %v3318_v14 = vpop.xlane.xlu1 %3317  ;;  %4760 = vmatprep.subr.bf16.mxu0 %v4759_v36  ;;  %v3582_v5 = vmul.f32 %v5299_v49, %v8009_v29  ;;  %v5301_v42 = vpop.eup %5300  ;;  %v3581_v53 = vmul.f32 %v5299_v49, %v8010_v37  ;;  %v8017_v13 = vld [vmem:[#allocation25_spill] sm:$0xff] }
 0x7e5   : > { %5310 = vrcp.f32 %v3318_v14  ;;  %4762 = vmatpush1.bf16.xpose.msra.mxu0 %v4761_v9  ;;  %v3369_v56 = vpop.xlane.xlu0 %3368  ;;  %v3552_v50 = vmul.f32 %v5301_v42, %v8012_v17  ;;  %v3551_v35 = vmul.f32 %v5301_v42, %v8013_v18 }
 0x7e6   : > { %v4791_v41 = vpack.c.bf16 %v3582_v5, %v3580_v58  ;;  %5312 = vrcp.f32 %v3363_v57  ;;  %v4793_v9 = vpack.c.bf16 %v3581_v53, %v3579_v48 }
 0x7e7   : > { %v5303_v22 = vpop.eup %5302 }
 0x7e8   : > { %v3366_v51 = vpop.xlane.xlu1 %3365  ;;  %4792 = vmatprep.subr.bf16.mxu1 %v4791_v41  ;;  %v3554_v12 = vmul.f32 %v5303_v22, %v6849_v6  ;;  %v3553_v60 = vmul.f32 %v5303_v22, %v8014_v38  ;;  %v5305_v36 = vpop.eup %5304  ;;  %v8016_v6 = vld [vmem:[#allocation28_spill] sm:$0xff] }
 0x7e9   : > { %5314 = vrcp.f32 %v3366_v51  ;;  %v3417_v49 = vpop.xlane.xlu0 %3416  ;;  %v3584_v29 = vmul.f32 %v5305_v36, %v8015_v10  ;;  %v3583_v48 = vmul.f32 %v5305_v36, %v8017_v13  ;;  %v8024_v13 = vld [vmem:[#allocation18_spill] sm:$0xff] }
 0x7ea   : > { %v4763_v14 = vpack.c.bf16 %v3554_v12, %v3552_v50  ;;  %v4765_v63 = vpack.c.bf16 %v3553_v60, %v3551_v35  ;;  %5316 = vrcp.f32 %v3369_v56  ;;  %v8018_v56 = vld [vmem:[#allocation51_spill] sm:$0xff]  ;;  %v8019_v12 = vld [vmem:[#allocation45_spill] sm:$0xff] }
 0x7eb   : > { %v5307_v58 = vpop.eup %5306  ;;  %4794 = vmatpush1.bf16.xpose.msra.mxu1 %v4793_v9 }
 0x7ec   : > { %v3372_v57 = vpop.xlane.xlu1 %3371  ;;  %4764 = vmatprep.subr.bf16.mxu0 %v4763_v14  ;;  %v3586_v5 = vmul.f32 %v5307_v58, %v7001_v44  ;;  %v5309_v37 = vpop.eup %5308  ;;  %v3585_v42 = vmul.f32 %v5307_v58, %v8016_v6 }
 0x7ed   : > { %5318 = vrcp.f32 %v3372_v57  ;;  %4766 = vmatpush1.bf16.xpose.msra.mxu0 %v4765_v63  ;;  %v3375_v41 = vpop.xlane.xlu0 %3374  ;;  %v3556_v17 = vmul.f32 %v5309_v37, %v8018_v56  ;;  %v3555_v44 = vmul.f32 %v5309_v37, %v8019_v12  ;;  %v8021_v37 = vld [vmem:[#allocation29_spill] sm:$0xff] }
 0x7ee   : > { %v4795_v22 = vpack.c.bf16 %v3586_v5, %v3584_v29  ;;  %5320 = vrcp.f32 %v3417_v49  ;;  %v4797_v38 = vpack.c.bf16 %v3585_v42, %v3583_v48  ;;  %v8025_v48 = vld [vmem:[#allocation21_spill] sm:$0xff] }
 0x7ef   : > { %v5311_v53 = vpop.eup %5310 }
 0x7f0   : > { %v3420_v51 = vpop.xlane.xlu1 %3419  ;;  %4796 = vmatprep.subr.bf16.mxu1 %v4795_v22  ;;  %v3558_v50 = vmul.f32 %v5311_v53, %v6950_v61  ;;  %v3557_v18 = vmul.f32 %v5311_v53, %v6925_v16  ;;  %v5313_v35 = vpop.eup %5312  ;;  %v8020_v61 = vld [vmem:[#allocation60_spill] sm:$0xff]  ;;  %v8023_v53 = vld [vmem:[#allocation22_spill] sm:$0xff] }
 0x7f1   : > { %5322 = vrcp.f32 %v3420_v51  ;;  %v3423_v60 = vpop.xlane.xlu0 %3422  ;;  %v3588_v36 = vmul.f32 %v5313_v35, %v7010_v4  ;;  %v3587_v6 = vmul.f32 %v5313_v35, %v8021_v37  ;;  %v1717_v35 = vld [vmem:[#allocation4 + $0x18] sm:$0xff] }
 0x7f2   : > { %5324 = vrcp.f32 %v3375_v41  ;;  %v4767_v9 = vpack.c.bf16 %v3558_v50, %v3556_v17  ;;  %v4769_v14 = vpack.c.bf16 %v3557_v18, %v3555_v44  ;;  %v8022_v41 = vld [vmem:[#allocation52_spill] sm:$0xff]  ;;  %v1714_v50 = vld [vmem:[#allocation4] sm:$0xff]  ;;  %v8029_v37 = vld [vmem:[#allocation61_spill] sm:$0xff] }
 0x7f3   : > { %v5315_v49 = vpop.eup %5314  ;;  %4798 = vmatpush1.bf16.xpose.msra.mxu1 %v4797_v38 }
 0x7f4   : > { %v3378_v63 = vpop.xlane.xlu1 %3377  ;;  %4768 = vmatprep.subr.bf16.mxu0 %v4767_v9  ;;  %v3590_v58 = vmul.f32 %v5315_v49, %v7036_v46  ;;  %v5317_v57 = vpop.eup %5316  ;;  %v3589_v16 = vmul.f32 %v5315_v49, %v8020_v61  ;;  %v1716_v61 = vld [vmem:[#allocation4 + $0x10] sm:$0xff] }
 0x7f5   : > { %5326 = vrcp.f32 %v3378_v63  ;;  %4770 = vmatpush1.bf16.xpose.msra.mxu0 %v4769_v14  ;;  %v3381_v10 = vpop.xlane.xlu0 %3380  ;;  %v3592_v22 = vmul.f32 %v5317_v57, %v8022_v41  ;;  %v3591_v46 = vmul.f32 %v5317_v57, %v8024_v13  ;;  %v8026_v14 = vld [vmem:[#allocation62_spill] sm:$0xff]  ;;  %v8027_v63 = vld [vmem:[#allocation31_spill] sm:$0xff]  ;;  %v8032_v13 = vld [vmem:[#allocation49_spill] sm:$0xff] }
 0x7f6   : > { %v4799_v29 = vpack.c.bf16 %v3590_v58, %v3588_v36  ;;  %5328 = vrcp.f32 %v3423_v60  ;;  %v4801_v17 = vpack.c.bf16 %v3589_v16, %v3587_v6  ;;  %v8028_v58 = vld [vmem:[#allocation63_spill] sm:$0xff] }
 0x7f7   : > { %v5319_v5 = vpop.eup %5318 }
 0x7f8   : > { %v3426_v42 = vpop.xlane.xlu1 %3425  ;;  %4800 = vmatprep.subr.bf16.mxu1 %v4799_v29  ;;  %v3594_v4 = vmul.f32 %v5319_v5, %v8023_v53  ;;  %v3593_v51 = vmul.f32 %v5319_v5, %v8025_v48  ;;  %v5321_v56 = vpop.eup %5320  ;;  %v1723_v29 = vld [vmem:[#allocation4 + $0x48] sm:$0xff] }
 0x7f9   : > { %5330 = vrcp.f32 %v3426_v42  ;;  %v3429_v12 = vpop.xlane.xlu0 %3428  ;;  %v3624_v49 = vmul.f32 %v5321_v56, %v8026_v14  ;;  %v3623_v6 = vmul.f32 %v5321_v56, %v8029_v37  ;;  %v8030_v42 = vld [vmem:[#allocation58_spill] sm:$0xff]  ;;  %v8031_v53 = vld [vmem:[#allocation27_spill] sm:$0xff]  ;;  %v8037_v37 = vld [vmem:[#allocation32_spill] sm:$0xff] }
 0x7fa   : > { %5332 = vrcp.f32 %v3381_v10  ;;  %v4803_v44 = vpack.c.bf16 %v3594_v4, %v3592_v22  ;;  %v4805_v18 = vpack.c.bf16 %v3593_v51, %v3591_v46  ;;  %v8033_v48 = vld [vmem:[#allocation59_spill] sm:$0xff] }
 0x7fb   : > { %v5323_v38 = vpop.eup %5322  ;;  %4802 = vmatpush1.bf16.xpose.msra.mxu1 %v4801_v17 }
 0x7fc   : > { %v5325_v60 = vpop.eup %5324  ;;  %v3384_v9 = vpop.xlane.xlu1 %3383  ;;  %4804 = vmatprep.subr.bf16.mxu0 %v4803_v44  ;;  %3720 = vmatmul.mubr.f32.vlgmr.msra.gmra.mrb[58].mxu0 %v1714_v50  ;;  %v3626_v36 = vmul.f32 %v5323_v38, %v8027_v63  ;;  %v3625_v57 = vmul.f32 %v5323_v38, %v8028_v58  ;;  %v1718_v50 = vld [vmem:[#allocation4 + $0x20] sm:$0xff]  ;;  %v8035_v63 = vld [vmem:[#allocation65_spill] sm:$0xff]  ;;  %v8036_v58 = vld [vmem:[#allocation36_spill] sm:$0xff] }
 0x7fd   : > { %5334 = vrcp.f32 %v3384_v9  ;;  %4806 = vmatpush1.bf16.xpose.msra.mxu0 %v4805_v18  ;;  %v3387_v16 = vpop.xlane.xlu0 %3386  ;;  %3724 = vmatprep.mubr.f32.mxu0 %v1717_v35  ;;  %v3596_v41 = vmul.f32 %v5325_v60, %v8030_v42  ;;  %v3595_v46 = vmul.f32 %v5325_v60, %v8032_v13  ;;  %v1721_v35 = vld [vmem:[#allocation4 + $0x38] sm:$0xff]  ;;  %v8038_v42 = vld [vmem:[#allocation30_spill] sm:$0xff] }
 0x7fe   : > { %v4835_v10 = vpack.c.bf16 %v3626_v36, %v3624_v49  ;;  %5336 = vrcp.f32 %v3429_v12  ;;  %v4837_v44 = vpack.c.bf16 %v3625_v57, %v3623_v6  ;;  %v8034_v49 = vld [vmem:[#allocation34_spill] sm:$0xff] }
 0x7ff   : > { %v5327_v5 = vpop.eup %5326 }
 0x800   : > { %v3432_v22 = vpop.xlane.xlu1 %3431  ;;  %4836 = vmatprep.subr.bf16.mxu1 %v4835_v10  ;;  %v3598_v4 = vmul.f32 %v5327_v5, %v8031_v53  ;;  %v3597_v51 = vmul.f32 %v5327_v5, %v8033_v48  ;;  %3725 = vmatmul.mubr.f32.gmra.mrb[60].mxu0 %v1716_v61  ;;  %v5329_v17 = vpop.eup %5328  ;;  %v1720_v61 = vld [vmem:[#allocation4 + $0x30] sm:$0xff]  ;;  %v1727_v5 = vld [vmem:[#allocation4 + $0x68] sm:$0xff] }
 0x801   : > { %5338 = vrcp.f32 %v3432_v22  ;;  %3869 = vmatprep.mubr.f32.mxu0 %v1723_v29  ;;  %v3435_v18 = vpop.xlane.xlu0 %3434  ;;  %v3628_v60 = vmul.f32 %v5329_v17, %v8034_v49  ;;  %v3627_v6 = vmul.f32 %v5329_v17, %v8037_v37 }
 0x802   : > { %v4807_v12 = vpack.c.bf16 %v3598_v4, %v3596_v41  ;;  %v4809_v38 = vpack.c.bf16 %v3597_v51, %v3595_v46  ;;  %5340 = vrcp.f32 %v3387_v16  ;;  %3795 = vmatmul.mubr.f32.vlgmr.msra.gmra.mrb[70].mxu1 %v1718_v50  ;;  %v8039_v4 = vld [vmem:[#allocation103_spill] sm:$0xff] }
 0x803   : > { %v5331_v56 = vpop.eup %5330  ;;  %4838 = vmatpush1.bf16.xpose.msra.mxu1 %v4837_v44  ;;  %3799 = vmatprep.mubr.f32.mxu1 %v1721_v35 }
 0x804   : > { %v5333_v9 = vpop.eup %5332  ;;  %v3390_v14 = vpop.xlane.xlu1 %3389  ;;  %4808 = vmatprep.subr.bf16.mxu0 %v4807_v12  ;;  %v3630_v36 = vmul.f32 %v5331_v56, %v8035_v63  ;;  %v3629_v57 = vmul.f32 %v5331_v56, %v8036_v58 }
 0x805   : > { %5342 = vrcp.f32 %v3390_v14  ;;  %4810 = vmatpush1.bf16.xpose.msra.mxu0 %v4809_v38  ;;  %v3393_v10 = vpop.xlane.xlu0 %3392  ;;  %v3600_v41 = vmul.f32 %v5333_v9, %v8038_v42  ;;  %v3599_v13 = vmul.f32 %v5333_v9, %v8039_v4  ;;  %v8040_v38 = vld [vmem:[#allocation67_spill] sm:$0xff] }
 0x806   : > { %v4839_v29 = vpack.c.bf16 %v3630_v36, %v3628_v60  ;;  %5344 = vrcp.f32 %v3435_v18  ;;  %3800 = vmatmul.mubr.f32.gmra.mrb[72].mxu1 %v1720_v61  ;;  %v4841_v51 = vpack.c.bf16 %v3629_v57, %v3627_v6  ;;  %v8041_v60 = vld [vmem:[#allocation66_spill] sm:$0xff] }
 0x807   : > { %v5335_v16 = vpop.eup %5334  ;;  %3944 = vmatprep.mubr.f32.mxu1 %v1727_v5 }
 0x808   : > { %v3438_v22 = vpop.xlane.xlu1 %3437  ;;  %4840 = vmatprep.subr.bf16.mxu1 %v4839_v29  ;;  %v3602_v53 = vmul.f32 %v5335_v16, %v7022_v39  ;;  %v3601_v46 = vmul.f32 %v5335_v16, %v7019_v52  ;;  %v5337_v48 = vpop.eup %5336 }
 0x809   : > { %5346 = vrcp.f32 %v3438_v22  ;;  %v3441_v50 = vpop.xlane.xlu0 %3440  ;;  %v3632_v56 = vmul.f32 %v5337_v48, %v8040_v38  ;;  %v3631_v63 = vmul.f32 %v5337_v48, %v8041_v60  ;;  %v8042_v22 = vld [vmem:[#allocation68_spill] sm:$0xff] }
 0x80a   : > { %v4811_v44 = vpack.c.bf16 %v3602_v53, %v3600_v41  ;;  %v4813_v18 = vpack.c.bf16 %v3601_v46, %v3599_v13  ;;  %5348 = vrcp.f32 %v3393_v10 }
 0x80b   : > { %v5339_v12 = vpop.eup %5338  ;;  %4842 = vmatpush1.bf16.xpose.msra.mxu1 %v4841_v51 }
 0x80c   : > { %v3396_v17 = vpop.xlane.xlu1 %3395  ;;  %4812 = vmatprep.subr.bf16.mxu0 %v4811_v44  ;;  %v3634_v39 = vmul.f32 %v5339_v12, %v7136_v31  ;;  %v5341_v35 = vpop.eup %5340  ;;  %v3633_v52 = vmul.f32 %v5339_v12, %v7134_v55 }
 0x80d   : > { %5350 = vrcp.f32 %v3396_v17  ;;  %4814 = vmatpush1.bf16.xpose.msra.mxu0 %v4813_v18  ;;  %v3399_v9 = vpop.xlane.xlu0 %3398  ;;  %v3604_v58 = vmul.f32 %v5341_v35, %v7044_v30  ;;  %v3603_v31 = vmul.f32 %v5341_v35, %v7027_v20 }
 0x80e   : > { %v4843_v14 = vpack.c.bf16 %v3634_v39, %v3632_v56  ;;  %5352 = vrcp.f32 %v3441_v50  ;;  %v4845_v29 = vpack.c.bf16 %v3633_v52, %v3631_v63  ;;  %v8043_v56 = vld [vmem:[#allocation38_spill] sm:$0xff] }
 0x80f   : > { %v5343_v49 = vpop.eup %5342 }
 0x810   : > { %v3444_v36 = vpop.xlane.xlu1 %3443  ;;  %4844 = vmatprep.subr.bf16.mxu1 %v4843_v14  ;;  %v3606_v57 = vmul.f32 %v5343_v49, %v7052_v25  ;;  %v3605_v61 = vmul.f32 %v5343_v49, %v7048_v8  ;;  %v5345_v10 = vpop.eup %5344 }
 0x811   : > { %5354 = vrcp.f32 %v3444_v36  ;;  %v3447_v55 = vpop.xlane.xlu0 %3446  ;;  %v3636_v42 = vmul.f32 %v5345_v10, %v7142_v11  ;;  %v3635_v53 = vmul.f32 %v5345_v10, %v8042_v22 }
 0x812   : > { %v4815_v5 = vpack.c.bf16 %v3606_v57, %v3604_v58  ;;  %v4817_v16 = vpack.c.bf16 %v3605_v61, %v3603_v31  ;;  %5356 = vrcp.f32 %v3399_v9  ;;  %v8044_v61 = vld [vmem:[#allocation40_spill] sm:$0xff] }
 0x813   : > { %v5347_v37 = vpop.eup %5346  ;;  %4846 = vmatpush1.bf16.xpose.msra.mxu1 %v4845_v29  ;;  %v8045_v29 = vld [vmem:[#allocation69_spill] sm:$0xff] }
 0x814   : > { %v3402_v6 = vpop.xlane.xlu1 %3401  ;;  %4816 = vmatprep.subr.bf16.mxu0 %v4815_v5  ;;  %v3638_v30 = vmul.f32 %v5347_v37, %v7165_v26  ;;  %v5349_v41 = vpop.eup %5348  ;;  %v3637_v20 = vmul.f32 %v5347_v37, %v7148_v62 }
 0x815   : > { %5358 = vrcp.f32 %v3402_v6  ;;  %4818 = vmatpush1.bf16.xpose.msra.mxu0 %v4817_v16  ;;  %v3405_v4 = vpop.xlane.xlu0 %3404  ;;  %v3608_v46 = vmul.f32 %v5349_v41, %v7084_v34  ;;  %v3607_v26 = vmul.f32 %v5349_v41, %v7062_v7  ;;  %v8046_v6 = vld [vmem:[#allocation71_spill] sm:$0xff] }
 0x816   : > { %v4847_v8 = vpack.c.bf16 %v3638_v30, %v3636_v42  ;;  %5360 = vrcp.f32 %v3447_v55  ;;  %v4849_v50 = vpack.c.bf16 %v3637_v20, %v3635_v53  ;;  %v8047_v30 = vld [vmem:[#allocation42_spill] sm:$0xff] }
 0x817   : > { %v5351_v25 = vpop.eup %5350  ;;  %v8048_v20 = vld [vmem:[#allocation70_spill] sm:$0xff] }
 0x818   : > { %v3450_v13 = vpop.xlane.xlu1 %3449  ;;  %4848 = vmatprep.subr.bf16.mxu1 %v4847_v8  ;;  %v3610_v11 = vmul.f32 %v5351_v25, %v7109_v0  ;;  %v3609_v48 = vmul.f32 %v5351_v25, %v7090_v2  ;;  %v5353_v51 = vpop.eup %5352  ;;  %v8049_v25 = vld [vmem:[#allocation72_spill] sm:$0xff] }
 0x819   : > { %5362 = vrcp.f32 %v3450_v13  ;;  %v3640_v17 = vmul.f32 %v5353_v51, %v7176_v54  ;;  %v3639_v39 = vmul.f32 %v5353_v51, %v8043_v56  ;;  %v8051_v51 = vld [vmem:[#allocation75_spill] sm:$0xff]  ;;  %v1724_v56 = vld [vmem:[#allocation4 + $0x50] sm:$0xff] }
 0x81a   : > { %v4819_v62 = vpack.c.bf16 %v3610_v11, %v3608_v46  ;;  %v4821_v44 = vpack.c.bf16 %v3609_v48, %v3607_v26  ;;  %5364 = vrcp.f32 %v3405_v4  ;;  %v8050_v26 = vld [vmem:[#allocation73_spill] sm:$0xff] }
 0x81b   : > { %v5355_v18 = vpop.eup %5354  ;;  %4850 = vmatpush1.bf16.xpose.msra.mxu1 %v4849_v50 }
 0x81c   : > { %v3408_v12 = vpop.xlane.xlu1 %3407  ;;  %4820 = vmatprep.subr.bf16.mxu0 %v4819_v62  ;;  %v3642_v38 = vmul.f32 %v5355_v18, %v7184_v45  ;;  %v5357_v34 = vpop.eup %5356  ;;  %v3641_v7 = vmul.f32 %v5355_v18, %v7180_v47  ;;  %v8052_v62 = vld [vmem:[#allocation46_spill] sm:$0xff] }
 0x81d   : > { %5366 = vrcp.f32 %v3408_v12  ;;  %4822 = vmatpush1.bf16.xpose.msra.mxu0 %v4821_v44  ;;  %v3612_v35 = vmul.f32 %v5357_v34, %v7121_v27  ;;  %v3611_v9 = vmul.f32 %v5357_v34, %v7115_v32  ;;  %v8053_v18 = vld [vmem:[#allocation74_spill] sm:$0xff] }
 0x81e   : > { %v4851_v0 = vpack.c.bf16 %v3642_v38, %v3640_v17  ;;  %v4853_v14 = vpack.c.bf16 %v3641_v7, %v3639_v39  ;;  %v1722_v7 = vld [vmem:[#allocation4 + $0x40] sm:$0xff] }
 0x81f   : > { %v5359_v2 = vpop.eup %5358 }
 0x820   : > { %4852 = vmatprep.subr.bf16.mxu1 %v4851_v0  ;;  %v3614_v52 = vmul.f32 %v5359_v2, %v7144_v43  ;;  %v3613_v54 = vmul.f32 %v5359_v2, %v7129_v59  ;;  %v5361_v45 = vpop.eup %5360  ;;  %v1725_v0 = vld [vmem:[#allocation4 + $0x58] sm:$0xff] }
 0x821   : > { %v3644_v47 = vmul.f32 %v5361_v45, %v7196_v23  ;;  %v3643_v32 = vmul.f32 %v5361_v45, %v7190_v1 }
 0x822   : > { %v4823_v49 = vpack.c.bf16 %v3614_v52, %v3612_v35  ;;  %v4825_v60 = vpack.c.bf16 %v3613_v54, %v3611_v9 }
 0x823   : > { %v5363_v63 = vpop.eup %5362  ;;  %4854 = vmatpush1.bf16.xpose.msra.mxu1 %v4853_v14 }
 0x824   : > { %4824 = vmatprep.subr.bf16.mxu0 %v4823_v49  ;;  %v3646_v36 = vmul.f32 %v5363_v63, %v7216_v19  ;;  %v5365_v58 = vpop.eup %5364  ;;  %v3645_v27 = vmul.f32 %v5363_v63, %v7212_v15  ;;  %v1726_v49 = vld [vmem:[#allocation4 + $0x60] sm:$0xff]  ;;  %v1728_v63 = vld [vmem:[#allocation4 + $0x70] sm:$0xff] }
 0x825   : > { %4826 = vmatpush1.bf16.xpose.msra.mxu0 %v4825_v60  ;;  %v3616_v59 = vmul.f32 %v5365_v58, %v7209_v21  ;;  %v3615_v10 = vmul.f32 %v5365_v58, %v8044_v61  ;;  %v1729_v60 = vld [vmem:[#allocation4 + $0x78] sm:$0xff]  ;;  %v3963_v61 = vld [vmem:[%s7529_s7] sm:$0xff] }
 0x826   : > { %v4855_v43 = vpack.c.bf16 %v3646_v36, %v3644_v47  ;;  %v4857_v55 = vpack.c.bf16 %v3645_v27, %v3643_v32  ;;  %v3955_v32 = vld [vmem:[%s7528_s6] sm:$0xff] }
 0x827   : > { %v5367_v57 = vpop.eup %5366 }
 0x828   : > { %4856 = vmatprep.subr.bf16.mxu1 %v4855_v43  ;;  %v3618_v31 = vmul.f32 %v5367_v57, %v7224_v33  ;;  %v3617_v23 = vmul.f32 %v5367_v57, %v8045_v29  ;;  %v3966_v29 = vld [vmem:[%s7529_s7 + $0x18] sm:$0xff] }
 0x82a   : > { %v4827_v19 = vpack.c.bf16 %v3618_v31, %v3616_v59  ;;  %v4829_v5 = vpack.c.bf16 %v3617_v23, %v3615_v10  ;;  %v3964_v59 = vld [vmem:[%s7529_s7 + $0x8] sm:$0xff]  ;;  %v5550_v31 = vmov 0   ;;  %v3965_v10 = vld [vmem:[%s7529_s7 + $0x10] sm:$0xff]  ;;  %v3967_v23 = vld [vmem:[%s7529_s7 + $0x20] sm:$0xff] }
 0x82b   : > { %4858 = vmatpush1.bf16.xpose.msra.mxu1 %v4857_v55  ;;  %4995 = vset.pattern.permute.xlu1 %v5550_v31  ;;  %v3968_v55 = vld [vmem:[%s7529_s7 + $0x28] sm:$0xff] }
 0x82c   : > { %4828 = vmatprep.subr.bf16.mxu0 %v4827_v19  ;;  %4994 = vset.pattern.permute.xlu0 %v5550_v31  ;;  %v3969_v19 = vld [vmem:[%s7529_s7 + $0x30] sm:$0xff] }
 0x82d   : > { %4830 = vmatpush1.bf16.xpose.msra.mxu0 %v4829_v5  ;;  %3978 = vperm.xlu1 %4995, %v3964_v59   ;;  %v3970_v5 = vld [vmem:[%s7529_s7 + $0x38] sm:$0xff] }
 0x82e   : > { %3973 = vperm.xlu0 %4994, %v3963_v61  }
 0x831   : > { %3983 = vperm.xlu1 %4995, %v3965_v10  }
 0x835   : > { %3988 = vperm.xlu1 %4995, %v3966_v29  }
 0x839   : > { %3993 = vperm.xlu1 %4995, %v3967_v23  }
 0x83d   : > { %3998 = vperm.xlu1 %4995, %v3968_v55  }
 0x841   : > { %4003 = vperm.xlu1 %4995, %v3969_v19  }
 0x845   : > { %4008 = vperm.xlu1 %4995, %v3970_v5  }
 0x84a   : > { %v3453_v15 = vpop.xlane.xlu0 %3452 }
 0x84b   : > { %5368 = vrcp.f32 %v3453_v15 }
 0x852   : > { %v3456_v16 = vpop.xlane.xlu1 %3455 }
 0x853   : > { %5370 = vrcp.f32 %v3456_v16 }
 0x854   : > { %v3411_v1 = vpop.xlane.xlu0 %3410 }
 0x855   : > { %5372 = vrcp.f32 %v3411_v1  ;;  %v5369_v21 = vpop.eup %5368 }
 0x856   : > { %v3648_v42 = vmul.f32 %v5369_v21, %v8046_v6  ;;  %v3647_v8 = vmul.f32 %v5369_v21, %v8048_v20  ;;  %v3956_v20 = vld [vmem:[%s7528_s6 + $0x8] sm:$0xff] }
 0x85c   : > { %v3414_v37 = vpop.xlane.xlu1 %3413 }
 0x85d   : > { %5374 = vrcp.f32 %v3414_v37  ;;  %v5371_v33 = vpop.eup %5370 }
 0x85e   : > { %v3650_v41 = vmul.f32 %v5371_v33, %v8047_v30  ;;  %v3649_v22 = vmul.f32 %v5371_v33, %v8049_v25  ;;  %v3958_v25 = vld [vmem:[%s7528_s6 + $0x18] sm:$0xff] }
 0x85f   : > { %v5373_v13 = vpop.eup %5372 }
 0x860   : > { %v4859_v53 = vpack.c.bf16 %v3650_v41, %v3648_v42  ;;  %v4861_v4 = vpack.c.bf16 %v3649_v22, %v3647_v8  ;;  %v3620_v48 = vmul.f32 %v5373_v13, %v8050_v26  ;;  %v3619_v44 = vmul.f32 %v5373_v13, %v8052_v62  ;;  %v3957_v8 = vld [vmem:[%s7528_s6 + $0x10] sm:$0xff]  ;;  %v3959_v22 = vld [vmem:[%s7528_s6 + $0x20] sm:$0xff]  ;;  %v3962_v13 = vld [vmem:[%s7528_s6 + $0x38] sm:$0xff] }
 0x862   : > { %4860 = vmatprep.subr.bf16.mxu1 %v4859_v53  ;;  %v3960_v53 = vld [vmem:[%s7528_s6 + $0x28] sm:$0xff] }
 0x863   : > { %4862 = vmatpush1.bf16.xpose.msra.mxu1 %v4861_v4  ;;  %v3961_v4 = vld [vmem:[%s7528_s6 + $0x30] sm:$0xff] }
 0x865   : > { %v3459_v11 = vpop.xlane.xlu0 %3458 }
 0x866   : > { %5376 = vrcp.f32 %v3459_v11 }
 0x867   : > { %v5375_v46 = vpop.eup %5374 }
 0x868   : > { %v3622_v50 = vmul.f32 %v5375_v46, %v8051_v51  ;;  %v3621_v12 = vmul.f32 %v5375_v46, %v8053_v18 }
 0x86a   : > { %v4831_v17 = vpack.c.bf16 %v3622_v50, %v3620_v48  ;;  %v4833_v38 = vpack.c.bf16 %v3621_v12, %v3619_v44  ;;  %v4142_v44 = vld [vmem:[%s5778_s19 + $0x8] sm:$0xff] }
 0x86c   : > { %v3462_v34 = vpop.xlane.xlu1 %3461  ;;  %4832 = vmatprep.subr.bf16.mxu0 %v4831_v17  ;;  %v4141_v17 = vld [vmem:[%s5778_s19] sm:$0xff] }
 0x86d   : > { %5378 = vrcp.f32 %v3462_v34  ;;  %4834 = vmatpush1.bf16.xpose.msra.mxu0 %v4833_v38 }
 0x870   : > { %v5377_v2 = vpop.eup %5376 }
 0x871   : > { %v3652_v35 = vmul.f32 %v5377_v2, %v7285_v3  ;;  %v3651_v9 = vmul.f32 %v5377_v2, %v7282_v24  ;;  %v4144_v2 = vld [vmem:[%s5778_s19 + $0x18] sm:$0xff] }
 0x874   : > { %3870 = vmatmul.mubr.f32.vlgmr.msra.gmra.mrb[62].mxu0 %v1722_v7 }
 0x875   : > { %3874 = vmatprep.mubr.f32.mxu0 %v1725_v0 }
 0x877   : > { %v5379_v39 = vpop.eup %5378 }
 0x878   : > { %v3654_v52 = vmul.f32 %v5379_v39, %v7292_v28  ;;  %v3653_v54 = vmul.f32 %v5379_v39, %v7290_v40  ;;  %3875 = vmatmul.mubr.f32.gmra.mrb[64].mxu0 %v1724_v56 }
 0x879   : > { %4615 = vmatprep.mubr.msk.f32.mxu0 %vm4011_vm3, %v3955_v32 }
 0x87a   : > { %v4863_v45 = vpack.c.bf16 %v3654_v52, %v3652_v35  ;;  %v4865_v14 = vpack.c.bf16 %v3653_v54, %v3651_v9  ;;  %v4143_v35 = vld [vmem:[%s5778_s19 + $0x10] sm:$0xff] }
 0x87c   : > { %4864 = vmatprep.subr.bf16.mxu1 %v4863_v45 }
 0x87d   : > { %4866 = vmatpush1.bf16.xpose.msra.mxu1 %v4865_v14 }
 0x884   : > { %3945 = vmatmul.mubr.f32.vlgmr.msra.gmra.mrb[74].mxu1 %v1726_v49  ;;  %v4146_v49 = vld [vmem:[%s5778_s19 + $0x28] sm:$0xff] }
 0x885   : > { %3949 = vmatprep.mubr.f32.mxu1 %v1729_v60 }
 0x888   : > { %3950 = vmatmul.mubr.f32.gmra.mrb[76].mxu1 %v1728_v63 }
 0x8ac   : > { %v3979_v46 = vpop.permute.xlu1 %3978 }
 0x8ad   : > { %v3974_v51 = vpop.permute.xlu0 %3973 }
 0x8b0   : > { %v3984_v11 = vpop.permute.xlu1 %3983 }
 0x8b4   : > { %v3989_v26 = vpop.permute.xlu1 %3988 }
 0x8b8   : > { %v3994_v48 = vpop.permute.xlu1 %3993 }
 0x8bc   : > { %v3999_v50 = vpop.permute.xlu1 %3998 }
 0x8c0   : > { %v4004_v52 = vpop.permute.xlu1 %4003 }
 0x8cf   : > { %v3721_v47 = vpop.f32.mrb[58].mxu0 }
 0x8d0   : > { %v3723_v36 = vpop.f32.mrb[59].mxu0 }
 0x8d3   : > { %v3726_v3 = vpop.f32.mrb[60].mxu0 }
 0x8d4   : > { %v4867_v58 = vpack.c.bf16 %v3726_v3, %v3721_v47  ;;  %v3728_v28 = vpop.f32.mrb[61].mxu0  ;;  %v4145_v47 = vld [vmem:[%s5778_s19 + $0x20] sm:$0xff] }
 0x8d5   : > { %v3796_v24 = vpop.f32.mrb[70].mxu1 }
 0x8d6   : > { %4868 = vmatprep.subr.bf16.mxu0 %v4867_v58  ;;  %v3798_v40 = vpop.f32.mrb[71].mxu1 }
 0x8d7   : > { %4870 = vmatpush3.bf16.msra.mxu0 %v4867_v58  ;;  %v4009_v58 = vpop.permute.xlu1 %4008  ;;  %v4148_v40 = vld [vmem:[%s5778_s19 + $0x38] sm:$0xff] }
 0x8d9   : > { %v3801_v27 = vpop.f32.mrb[72].mxu1 }
 0x8da   : > { %v4871_v43 = vpack.c.bf16 %v3801_v27, %v3796_v24  ;;  %v3803_v57 = vpop.f32.mrb[73].mxu1 }
 0x8db   : > { %v4147_v57 = vld [vmem:[%s5778_s19 + $0x30] sm:$0xff]  ;;  %s5551_s19 = smov [#allocation10]  }
 0x8dc   : > { %4872 = vmatprep.subr.bf16.mxu0 %v4871_v43  ;;  %s5442_s23 = sshll.u32 %s5551_s19, 4  ;;  %s5443_s23 = int_to_ptr.vmem [resolvable:$false] %s5442_s23 }
 0x8dd   : > { %4874 = vmatpush3.bf16.msra.mxu0 %v4871_v43  ;;  %s5444_s2 = scalar_lea.vmem %s5443_s23, 2048  ;;  %p5445_p9 = scmp.lt.s32.totalorder %s7461_s26, %s5443_s23 }
 0x8de   : > { %p5446_p2 = scmp.lt.s32.totalorder %s5444_s2, %s5438_s14 }
 0x8e0   : > { %p5447_p6 = por %p5446_p2, %p5445_p9 }
 0x8e2   : > { %p5448_p10 = pnand %p5447_p6, %p5441_p7 }
 0x947   : > { %v3871_v15 = vpop.f32.mrb[62].mxu0 }
 0x948   : > { %v3873_v16 = vpop.f32.mrb[63].mxu0 }
 0x94b   : > { %v3876_v1 = vpop.f32.mrb[64].mxu0 }
 0x94c   : > { %v4875_v37 = vpack.c.bf16 %v3876_v1, %v3871_v15  ;;  %v3878_v21 = vpop.f32.mrb[65].mxu0 }
 0x94e   : > { %4876 = vmatprep.subr.bf16.mxu0 %v4875_v37 }
 0x94f   : > { %4878 = vmatpush3.bf16.msra.mxu0 %v4875_v37 }
 0x957   : > { %v3946_v33 = vpop.f32.mrb[74].mxu1 }
 0x958   : > { %v3948_v6 = vpop.f32.mrb[75].mxu1 }
 0x95b   : > { %v3951_v42 = vpop.f32.mrb[76].mxu1 }
 0x95c   : > { %v4879_v30 = vpack.c.bf16 %v3951_v42, %v3946_v33  ;;  %v3953_v41 = vpop.f32.mrb[77].mxu1 }
 0x95e   : > { %4880 = vmatprep.subr.bf16.mxu0 %v4879_v30 }
 0x95f   : > { %4882 = vmatpush3.bf16.msra.mxu0 %v4879_v30 }
 0x962   : > { %4616 = vmatmul.mubr.msk.f32.vlgmr.msra.gmra.mrb[66].mxu0 %vm4011_vm3, %v3956_v20 }
 0x963   : > { %4618 = vmatprep.mubr.msk.f32.mxu0 %vm4011_vm3, %v3957_v8 }
 0x966   : > { %4619 = vmatmul.mubr.msk.f32.gmra.mrb[68].mxu0 %vm4011_vm3, %v3958_v25 }
 0x967   : > { %4621 = vmatprep.mubr.msk.f32.mxu0 %vm4011_vm3, %v3959_v22 }
 0x96a   : > { %4622 = vmatmul.mubr.msk.f32.gmra.mrb[70].mxu0 %vm4011_vm3, %v3960_v53 }
 0x96b   : > { %4624 = vmatprep.mubr.msk.f32.mxu0 %vm4011_vm3, %v3961_v4 }
 0x96e   : > { %4625 = vmatmul.mubr.msk.f32.gmra.mrb[72].mxu0 %vm4011_vm3, %v3962_v13 }
 0xa35   : > { %v4617_v62 = vpop.f32.mrb[66].mxu0 }
 0xa36   : > { %v4108_v18 = vadd.f32 %v4617_v62, %v3979_v46  ;;  %v4102_v12 = vpop.f32.mrb[67].mxu0 }
 0xa37   : > { %v4103_v38 = vadd.f32 %v4102_v12, %v3974_v51 }
 0xa38   : > { %v4150_v34 = vadd.f32 %v4142_v44, %v4108_v18 }
 0xa39   : > { %v4149_v7 = vadd.f32 %v4141_v17, %v4103_v38  ;;  %v4620_v0 = vpop.f32.mrb[68].mxu0 }
 0xa3a   : > { %4158 = vst [vmem:[%s5793_s4 + $0x8] sm:$0xff] %v4150_v34  ;;  %v4118_v56 = vadd.f32 %v4620_v0, %v3989_v26  ;;  %v4112_v39 = vpop.f32.mrb[69].mxu0 }
 0xa3b   : > { %4157 = vst [vmem:[%s5793_s4] sm:$0xff] %v4149_v7  ;;  %v4113_v9 = vadd.f32 %v4112_v39, %v3984_v11 }
 0xa3c   : > { %v4152_v54 = vadd.f32 %v4144_v2, %v4118_v56 }
 0xa3d   : > { %v4151_v45 = vadd.f32 %v4143_v35, %v4113_v9  ;;  %v4623_v14 = vpop.f32.mrb[70].mxu0 }
 0xa3e   : > { %4160 = vst [vmem:[%s5793_s4 + $0x18] sm:$0xff] %v4152_v54  ;;  %v4128_v60 = vadd.f32 %v4623_v14, %v3999_v50  ;;  %v4122_v63 = vpop.f32.mrb[71].mxu0 }
 0xa3f   : > { %4159 = vst [vmem:[%s5793_s4 + $0x10] sm:$0xff] %v4151_v45  ;;  %v4123_v36 = vadd.f32 %v4122_v63, %v3994_v48 }
 0xa40   : > { %v4154_v3 = vadd.f32 %v4146_v49, %v4128_v60 }
 0xa41   : > { %v4153_v28 = vadd.f32 %v4145_v47, %v4123_v36  ;;  %v4626_v24 = vpop.f32.mrb[72].mxu0 }
 0xa42   : > { %4162 = vst [vmem:[%s5793_s4 + $0x28] sm:$0xff] %v4154_v3  ;;  %v4138_v27 = vadd.f32 %v4626_v24, %v4009_v58  ;;  %v4132_v43 = vpop.f32.mrb[73].mxu0 }
 0xa43   : > { %4161 = vst [vmem:[%s5793_s4 + $0x20] sm:$0xff] %v4153_v28  ;;  %v4133_v32 = vadd.f32 %v4132_v43, %v4004_v52 }
 0xa44   : > { %v4156_v59 = vadd.f32 %v4148_v40, %v4138_v27 }
 0xa45   : > { %v4155_v31 = vadd.f32 %v4147_v57, %v4133_v32 }
 0xa46   : > { %4164 = vst [vmem:[%s5793_s4 + $0x38] sm:$0xff] %v4156_v59 }
 0xa47   : > { %4163 = vst [vmem:[%s5793_s4 + $0x30] sm:$0xff] %v4155_v31 }
 0xa48   : > { %5451 = shalt.err (!%p5448_p10)
}
 0xa49   : > { %s5452_s4 = scalar_lea.hbm %s7466_s17, 1024  ;;  %s5456_s8 = scalar_lea.hbm %s8054_s15, 4096 }
 0xa4a   : > { %p5453_p11 = scmp.ne.s32.totalorder %s7466_s17, %s5452_s4  ;;  %p5457_p8 = scmp.lt.u32.totalorder %s7466_s17, %s8054_s15 }
 0xa4b   : > { %p5458_p12 = scmp.lt.u32.totalorder %s5456_s8, %s5452_s4  ;;  %p5460_p5 = scmp.lt.u32.totalorder %s5452_s4, %s7466_s17 }
 0xa4c   : > { %p5454_p1 = pnand %p5453_p11, %p8055_p0 }
 0xa4d   : > { %p5459_p13 = por %p5458_p12, %p5457_p8 }
 0xa4e   : > { %p5455_p4 = pneg %p5454_p1 }
 0xa4f   : > { %p5461_p3 = por %p5460_p5, %p5459_p13 }
 0xa51   : > { %p5462_p7 = pnand %p5461_p3, %p5455_p4 }
 0xa53   : > { %5465 = shalt.err (!%p5462_p7)
}
 0xa54   : > { %s5552_s30 = smov 128   ;;  %s5553_s29 = smov 256  }
 0xa55   : > { %s5554_s16 = smov 8  }
 0xa56   : > { %4891 = dma.vmem_to_hbm [thread:$0]  (%p8055_p0), %s7461_s26, 1024, %s7466_s17, %s4166_s11, %s5552_s30, %s5553_s29, %s5554_s16  }
 0xa57 PF: > { %s8056_s14 = sld [smem:[#allocation15_spill]]  ;;  %s8057_s19 = sld [smem:[#allocation14_spill]] }
 0xa58   : > { %s8058_s23 = sld [smem:[#allocation16_spill]] }
 0xa5d   : > { %p4908_p9 = scmp.ge.s32.totalorder %s8056_s14, 2  ;;  %s4195_s2 = sand.u32 1, %s8057_s19  }
 0xa5e   : > { %p8059_p2 = scmp.ne.s32.totalorder %s8058_s23, 0  ;;  %s4196_s4 = scalar_lea.sflag [#allocation7], %s4195_s2 }
 0xa60   : > { %p4902_p6 = pnand %p4908_p9, %p8059_p2 }
 0xa62   : > { %5507 = dma.done.wait (!%p4902_p6), %s4196_s4, 1024  }
 0xa63   : > { %5509 = vsyncadd (!%p4902_p6), %s4196_s4, 4294966272  ;;  %s25_s11 = sadd.s32 1, %s8056_s14   ;;  %s8060_s18 = sld [smem:[#allocation17_spill]] }
 0xa64   : > { %p22_p10 = scmp.ge.s32.totalorder %s25_s11, 6   ;;  %s8061_s2 = smov %s5516_s27 }
 0xa65   : > { %s8062_s27 = smov %s5520_s28  ;;  %s8063_s28 = smov %s5769_s25 }
 0xa66   : > { %s8064_s29 = smov %s5532_s9  ;;  %s8065_s30 = smov %s5536_s10 }
 0xa67   : > { %s8067_s10 = smov %s8073_s13  ;;  %24 = sbr.rel (!%p22_p10) target bundleno = 11 (0xb), region = 113 }
 0xa69   : > { %s8066_s9 = smov %s8060_s18 }
 0xa6e   :  { %4201 = vsyncpa [#allocation6], 1 }
 0xa6f   :  { %4203 = vsyncpa [#allocation6 + $0x1], 1 }
 0xa70   :  { %4204 = vsyncpa [#allocation9], 1 }
 0xa71   :  { %4205 = vsyncpa [#allocation7], 1 }
 0xa72   :  { %4207 = vsyncpa [#allocation7 + $0x1], 1 }

</bundles_post_ra>
